<compile_context>
chip_gen: v7x
topology: tpu7x:2x2x1
jax: 0.10.0
libtpu: 0.0.40
codegen_flags: <defaults>
</compile_context>

<pallas_src>
import functools
import math

import jax
import jax.numpy as jnp
from jax import lax
from jax.experimental import pallas as pl
from jax.experimental.pallas import tpu as pltpu

_LN_EPS = 1e-5   # torch.nn.LayerNorm default eps
_LEAK = 0.01     # torch.nn.LeakyReLU default negative slope


# ----------------------------------------------------------------------------
# In-kernel helpers (traced inside the fused Pallas kernel)
# ----------------------------------------------------------------------------
def _layernorm(h, gamma, beta, eps=_LN_EPS):
    mean = jnp.mean(h, axis=-1, keepdims=True)
    c = h - mean
    var = jnp.mean(c * c, axis=-1, keepdims=True)
    return c * lax.rsqrt(var + eps) * gamma + beta


def _static_bias_keep(attend_mode, tq, tk, neg):
    """Additive mask bias [tq,tk] and fully-masked-row keep vector [tq,1].

    Both depend only on the static attend_mode/shapes, so `keep` is derived
    from the mask structure instead of the reference's per-head runtime
    (dots <= -5e8) compare + cross-lane reduction.  This silently drops the
    astronomically unlikely case of raw unmasked dots below -5e8 (accepted).
    """
    if attend_mode == "full":
        return None, None
    row = lax.broadcasted_iota(jnp.int32, (tq, tk), 0)
    col = lax.broadcasted_iota(jnp.int32, (tq, tk), 1)
    if attend_mode == "only_attend_front":
        masked = col > row                      # torch triu(1)
        keep = None                             # row i always sees col <= i
    elif attend_mode == "only_attend_back":
        masked = col <= row + 1                 # torch tril(1) (faithful)
        # rows tq-2, tq-1 have every key masked -> zeroed by the keep trick
        keep = (lax.broadcasted_iota(jnp.int32, (tq, 1), 0)
                < (tk - 2)).astype(jnp.float32)
    elif attend_mode == "not_attend_self":
        masked = col == row
        keep = None if tk > 1 else jnp.zeros((tq, 1), jnp.float32)
    else:
        raise ValueError(attend_mode)
    bias = jnp.where(masked, jnp.float32(neg), jnp.float32(0.0))
    return bias, keep


def _mha_project(q, k, v, wo_ref, bo_ref, *, n_heads, inv_scale, bias, keep):
    """All heads of one attention + fused output projection.

    concat(head_0..head_{H-1}) @ Wo == sum_h head_h @ Wo[h*dvh:(h+1)*dvh, :],
    so per-head PV results are folded straight into the Wo projection: no
    concatenate / relayout of head outputs.  QK^T / PV matmuls run in bf16 on
    the MXU; softmax and accumulation stay f32.
    """
    tq, d = q.shape
    dh = d // n_heads
    dv = v.shape[-1]
    dvh = dv // n_heads
    dout = wo_ref.shape[1]

    qb = q.astype(jnp.bfloat16)
    kb = k.astype(jnp.bfloat16)
    vb = v.astype(jnp.bfloat16)
    wo = wo_ref[...].astype(jnp.float32)        # f32 rows slice on 8-sublane tiles

    acc = jnp.zeros((tq, dout), jnp.float32)
    for h in range(n_heads):                    # static unroll over heads
        qs = slice(h * dh, (h + 1) * dh)
        vs = slice(h * dvh, (h + 1) * dvh)
        dots = lax.dot_general(qb[:, qs], kb[:, qs],
                               (((1,), (1,)), ((), ())),
                               preferred_element_type=jnp.float32)
        logits = dots * jnp.float32(inv_scale)
        if bias is not None:
            logits = logits + bias
        m = jnp.max(logits, axis=-1, keepdims=True)
        e = jnp.exp(logits - m)
        s = jnp.sum(e, axis=-1, keepdims=True)
        probs = e * pl.reciprocal(s, approx=True)
        if keep is not None:
            probs = probs * keep
        pv = jnp.dot(probs.astype(jnp.bfloat16), vb[:, vs],
                     preferred_element_type=jnp.float32)          # [tq, dvh]
        acc = acc + jnp.dot(pv, wo[vs, :],
                            preferred_element_type=jnp.float32)   # [tq, dout]
    return acc + bo_ref[...]


# ----------------------------------------------------------------------------
# One fused kernel = one full decoder layer for one batch element
# ----------------------------------------------------------------------------
def _decoder_layer_kernel(
        pos_ref, x_ref, src_ref,
        sa_wqkv, sa_bqkv, sa_wo, sa_bo, sa_g, sa_b,
        pa_wqk, pa_bqk, pa_wv, pa_bv, pa_wo, pa_bo, pa_g, pa_b,
        ca_wq, ca_bq, ca_wkv, ca_bkv, ca_wo, ca_bo, ca_g, ca_b,
        ff_w1, ff_b1, ff_w2, ff_b2, gw1, gb1, gw2, gb2, hw_g, hw_b,
        o_ref, *, n_heads, inv_scale, attend_mode):
    x = x_ref[0]                                        # [T, D]  f32
    pos = pos_ref[0]                                    # [T, D]  f32
    src = src_ref[0]                                    # [Ts, Ds] f32
    t, d = x.shape
    bias, keep = _static_bias_keep(attend_mode, t, t, -1e9 * inv_scale)

    # ---- 1. self attention: LN(x + Wo(MHA(Wq x, Wk x, Wv x))) -------------
    qkv = (jnp.dot(x.astype(jnp.bfloat16), sa_wqkv[...],
                   preferred_element_type=jnp.float32) + sa_bqkv[...])
    q, k, v = qkv[:, :d], qkv[:, d:2 * d], qkv[:, 2 * d:]
    o = _mha_project(q, k, v, sa_wo, sa_bo, n_heads=n_heads,
                     inv_scale=inv_scale, bias=bias, keep=keep)
    x1 = _layernorm(x + o, sa_g[...], sa_b[...])

    # ---- 2. positional self attention: q = k = pos, v = x1 ----------------
    qk = (jnp.dot(pos.astype(jnp.bfloat16), pa_wqk[...],
                  preferred_element_type=jnp.float32) + pa_bqk[...])
    q, k = qk[:, :d], qk[:, d:]
    v = (jnp.dot(x1.astype(jnp.bfloat16), pa_wv[...],
                 preferred_element_type=jnp.float32) + pa_bv[...])
    o = _mha_project(q, k, v, pa_wo, pa_bo, n_heads=n_heads,
                     inv_scale=inv_scale, bias=bias, keep=keep)
    x2 = _layernorm(x1 + o, pa_g[...], pa_b[...])

    # ---- 3. source attention: q = x2, k = v = src (full attention) --------
    q = (jnp.dot(x2.astype(jnp.bfloat16), ca_wq[...],
                 preferred_element_type=jnp.float32) + ca_bq[...])
    kv = (jnp.dot(src.astype(jnp.bfloat16), ca_wkv[...],
                  preferred_element_type=jnp.float32) + ca_bkv[...])
    ds = kv.shape[-1] // 2
    k, v = kv[:, :ds], kv[:, ds:]
    o = _mha_project(q, k, v, ca_wo, ca_bo, n_heads=n_heads,
                     inv_scale=inv_scale, bias=None, keep=None)
    x3 = _layernorm(x2 + o, ca_g[...], ca_b[...])

    # ---- 4. highway FFN: LN(x3*g + FF(x3)*(1-g)) ---------------------------
    h = (jnp.dot(x3.astype(jnp.bfloat16), ff_w1[...],
                 preferred_element_type=jnp.float32) + ff_b1[...])
    h = jnp.where(h >= 0.0, h, _LEAK * h)
    ff = (jnp.dot(h.astype(jnp.bfloat16), ff_w2[...],
                  preferred_element_type=jnp.float32) + ff_b2[...])
    # rank-1 gate (D -> 1 -> D): VPU broadcast-mul + reduce, never the MXU
    g1 = jnp.sum(x3 * gw1[...], axis=-1, keepdims=True) + gb1[...]   # [T, 1]
    g1 = jnp.where(g1 >= 0.0, g1, _LEAK * g1)
    gate = 1.0 / (1.0 + jnp.exp(-(g1 * gw2[...] + gb2[...])))        # [T, D]
    mix = x3 * gate + ff * (1.0 - gate)
    o_ref[0] = _layernorm(mix, hw_g[...], hw_b[...]).astype(o_ref.dtype)


# ----------------------------------------------------------------------------
# pallas_call wrapper (one call per layer, grid over batch, "parallel")
# ----------------------------------------------------------------------------
_PARAM_KEYS = (
    "sa_wqkv", "sa_bqkv", "sa_wo", "sa_bo", "sa_g", "sa_b",
    "pa_wqk", "pa_bqk", "pa_wv", "pa_bv", "pa_wo", "pa_bo", "pa_g", "pa_b",
    "ca_wq", "ca_bq", "ca_wkv", "ca_bkv", "ca_wo", "ca_bo", "ca_g", "ca_b",
    "ff_w1", "ff_b1", "ff_w2", "ff_b2",
    "gw1", "gb1", "gw2", "gb2", "hw_g", "hw_b",
)


def decoder_layer(pos, x, src, params, *, attend_mode, n_heads, d_tar):
    B, T, D = x.shape
    _, Ts, Ds = src.shape
    weights = [params[k] for k in _PARAM_KEYS]
    kernel = functools.partial(
        _decoder_layer_kernel, n_heads=n_heads,
        inv_scale=1.0 / math.sqrt(d_tar), attend_mode=attend_mode)
    # full-array blocks, constant index_map -> weights stay VMEM resident
    w_specs = [pl.BlockSpec(w.shape, lambda b, _n=w.ndim: (0,) * _n)
               for w in weights]
    return pl.pallas_call(
        kernel,
        out_shape=jax.ShapeDtypeStruct((B, T, D), jnp.float32),
        grid=(B,),
        in_specs=[
            pl.BlockSpec((1, T, D), lambda b: (0, 0, 0)),      # shared pos
            pl.BlockSpec((1, T, D), lambda b: (b, 0, 0)),
            pl.BlockSpec((1, Ts, Ds), lambda b: (b, 0, 0)),
        ] + w_specs,
        out_specs=pl.BlockSpec((1, T, D), lambda b: (b, 0, 0)),
        compiler_params=pltpu.CompilerParams(
            dimension_semantics=("parallel",)),
    )(pos, x, src, *weights)


# ----------------------------------------------------------------------------
# Model glue (plain JAX, all under one jit)
# ----------------------------------------------------------------------------
def positional_encodings(seqlen, feature):
    # Faithful to the PyTorch helper (length=None path): [sin | cos] concat.
    assert feature % 2 == 0
    positions = jnp.arange(seqlen, dtype=jnp.float32)
    channels = jnp.arange(0, feature, 2, dtype=jnp.float32) / feature
    channels = 1.0 / (10000.0 ** channels)
    enc = positions[:, None] * channels[None, :]
    enc = jnp.concatenate([jnp.sin(enc), jnp.cos(enc)], axis=-1)
    return enc[None]                               # [1, T, feature]


@functools.partial(jax.jit, static_argnames=("attend_mode", "n_heads", "d_tar"))
def transformer_decoder_forward(layer_params, x, src_list, *, attend_mode,
                                n_heads, d_tar):
    # TODO(synk): window>0 masking, mask_src/mask_tar, dropout, gumbel_attend
    # and spectral_norm are not exercised (defaults / eval semantics).
    T, D = x.shape[1], x.shape[2]
    pos = positional_encodings(T, D)       # hoisted: built once for all layers
    xs = []
    for p, enc in zip(layer_params, src_list):
        x = decoder_layer(pos, x, enc, p, attend_mode=attend_mode,
                          n_heads=n_heads, d_tar=d_tar)
        xs.append(x)
    return xs


# ----------------------------------------------------------------------------
# Deterministic parameter init (matmul weights pre-fused, stored in bf16)
# ----------------------------------------------------------------------------
def _init_linear(key, din, dout, scale=0.02):
    kw, kb = jax.random.split(key)
    w = scale * jax.random.normal(kw, (din, dout), jnp.float32)
    b = scale * jax.random.normal(kb, (1, dout), jnp.float32)
    return w, b


def _bf16(w):
    return w.astype(jnp.bfloat16)


def _init_layer(key, d_tar, d_src, d_hidden):
    assert d_src == d_tar, "PyTorch module requires d_src == d_tar shape-wise"
    ks = jax.random.split(key, 16)
    d = d_tar
    # self attention
    wq, bq = _init_linear(ks[0], d, d)
    wk, bk = _init_linear(ks[1], d, d)
    wv, bv = _init_linear(ks[2], d, d)
    wo, bo = _init_linear(ks[3], d, d)
    p = dict(
        sa_wqkv=_bf16(jnp.concatenate([wq, wk, wv], axis=1)),
        sa_bqkv=jnp.concatenate([bq, bk, bv], axis=1),
        sa_wo=_bf16(wo), sa_bo=bo,
        sa_g=jnp.ones((1, d), jnp.float32), sa_b=jnp.zeros((1, d), jnp.float32))
    # positional self attention
    wq, bq = _init_linear(ks[4], d, d)
    wk, bk = _init_linear(ks[5], d, d)
    wv, bv = _init_linear(ks[6], d, d)
    wo, bo = _init_linear(ks[7], d, d)
    p.update(
        pa_wqk=_bf16(jnp.concatenate([wq, wk], axis=1)),
        pa_bqk=jnp.concatenate([bq, bk], axis=1),
        pa_wv=_bf16(wv), pa_bv=bv, pa_wo=_bf16(wo), pa_bo=bo,
        pa_g=jnp.ones((1, d), jnp.float32), pa_b=jnp.zeros((1, d), jnp.float32))
    # source attention
    wq, bq = _init_linear(ks[8], d, d)
    wk, bk = _init_linear(ks[9], d, d)
    wv, bv = _init_linear(ks[10], d_src, d_src)
    wo, bo = _init_linear(ks[11], d_src, d)
    p.update(
        ca_wq=_bf16(wq), ca_bq=bq,
        ca_wkv=_bf16(jnp.concatenate([wk, wv], axis=1)),
        ca_bkv=jnp.concatenate([bk, bv], axis=1),
        ca_wo=_bf16(wo), ca_bo=bo,
        ca_g=jnp.ones((1, d), jnp.float32), ca_b=jnp.zeros((1, d), jnp.float32))
    # highway feed-forward
    w1, b1 = _init_linear(ks[12], d, d_hidden)
    w2, b2 = _init_linear(ks[13], d_hidden, d)
    gw1, gb1 = _init_linear(ks[14], d, 1)        # gate = FeedForward(d, 1)
    gw2, gb2 = _init_linear(ks[15], 1, d)
    p.update(
        ff_w1=_bf16(w1), ff_b1=b1, ff_w2=_bf16(w2), ff_b2=b2,
        gw1=gw1.T,                                # [1, d] row vector, VPU path
        gb1=gb1,                                  # [1, 1]
        gw2=gw2,                                  # [1, d]
        gb2=gb2,                                  # [1, d]
        hw_g=jnp.ones((1, d), jnp.float32), hw_b=jnp.zeros((1, d), jnp.float32))
    return p


def init_bidecoder(key, d_tar, d_src, d_hidden, n_layers):
    kf, kb = jax.random.split(key)
    front = [_init_layer(k, d_tar, d_src, d_hidden)
             for k in jax.random.split(kf, n_layers)]
    back = [_init_layer(k, d_tar, d_src, d_hidden)
            for k in jax.random.split(kb, n_layers)]
    return {"front": front, "back": back}


# ----------------------------------------------------------------------------
# Main
# ----------------------------------------------------------------------------
if __name__ == "__main__":
    B, T, Ts = 2, 8, 8
    d_tar = d_src = 32
    d_hidden = 64
    n_heads = 4
    n_layers = 2

    root = jax.random.PRNGKey(0)
    k_param, k_x, k_src = jax.random.split(root, 3)

    params = init_bidecoder(k_param, d_tar, d_src, d_hidden, n_layers)
    x = jax.random.normal(k_x, (B, T, d_tar), jnp.float32)
    src_list = [jax.random.normal(k, (B, Ts, d_src), jnp.float32)
                for k in jax.random.split(k_src, n_layers)]

    front_h = transformer_decoder_forward(
        params["front"], x, src_list,
        attend_mode="only_attend_front", n_heads=n_heads, d_tar=d_tar)
    back_h = transformer_decoder_forward(
        params["back"], x, src_list,
        attend_mode="only_attend_back", n_heads=n_heads, d_tar=d_tar)

    jax.block_until_ready(front_h)
    jax.block_until_ready(back_h)

    assert len(front_h) == n_layers and len(back_h) == n_layers
    for h in front_h + back_h:
        assert h.shape == (B, T, d_tar)
        assert bool(jnp.all(jnp.isfinite(h)))

    print("KERNEL_OK")
</pallas_src>

<mosaic_0001>
module attributes {stable_mosaic.version = 11 : i64} {
  func.func @_decoder_layer_kernel(%arg0: i32, %arg1: memref<1x8x32xf32, #tpu.memory_space<vmem>>, %arg2: memref<1x8x32xf32, #tpu.memory_space<vmem>>, %arg3: memref<1x8x32xf32, #tpu.memory_space<vmem>>, %arg4: memref<32x96xbf16, #tpu.memory_space<vmem>>, %arg5: memref<1x96xf32, #tpu.memory_space<vmem>>, %arg6: memref<32x32xbf16, #tpu.memory_space<vmem>>, %arg7: memref<1x32xf32, #tpu.memory_space<vmem>>, %arg8: memref<1x32xf32, #tpu.memory_space<vmem>>, %arg9: memref<1x32xf32, #tpu.memory_space<vmem>>, %arg10: memref<32x64xbf16, #tpu.memory_space<vmem>>, %arg11: memref<1x64xf32, #tpu.memory_space<vmem>>, %arg12: memref<32x32xbf16, #tpu.memory_space<vmem>>, %arg13: memref<1x32xf32, #tpu.memory_space<vmem>>, %arg14: memref<32x32xbf16, #tpu.memory_space<vmem>>, %arg15: memref<1x32xf32, #tpu.memory_space<vmem>>, %arg16: memref<1x32xf32, #tpu.memory_space<vmem>>, %arg17: memref<1x32xf32, #tpu.memory_space<vmem>>, %arg18: memref<32x32xbf16, #tpu.memory_space<vmem>>, %arg19: memref<1x32xf32, #tpu.memory_space<vmem>>, %arg20: memref<32x64xbf16, #tpu.memory_space<vmem>>, %arg21: memref<1x64xf32, #tpu.memory_space<vmem>>, %arg22: memref<32x32xbf16, #tpu.memory_space<vmem>>, %arg23: memref<1x32xf32, #tpu.memory_space<vmem>>, %arg24: memref<1x32xf32, #tpu.memory_space<vmem>>, %arg25: memref<1x32xf32, #tpu.memory_space<vmem>>, %arg26: memref<32x64xbf16, #tpu.memory_space<vmem>>, %arg27: memref<1x64xf32, #tpu.memory_space<vmem>>, %arg28: memref<64x32xbf16, #tpu.memory_space<vmem>>, %arg29: memref<1x32xf32, #tpu.memory_space<vmem>>, %arg30: memref<1x32xf32, #tpu.memory_space<vmem>>, %arg31: memref<1x1xf32, #tpu.memory_space<vmem>>, %arg32: memref<1x32xf32, #tpu.memory_space<vmem>>, %arg33: memref<1x32xf32, #tpu.memory_space<vmem>>, %arg34: memref<1x32xf32, #tpu.memory_space<vmem>>, %arg35: memref<1x32xf32, #tpu.memory_space<vmem>>, %arg36: memref<1x8x32xf32, #tpu.memory_space<vmem>>) attributes {dimension_semantics = [#tpu.dimension_semantics<parallel>], iteration_bounds = array<i64: 2>, scalar_prefetch = 0 : i64, scratch_operands = 0 : i64, tpu.core_type = #tpu.core_type<tc>, window_params = [{pipeline_mode = #tpu.pipeline_mode<synchronous>, transform_indices = @transform_0, window_bounds = array<i64: 1, 8, 32>}, {transform_indices = @transform_1, window_bounds = array<i64: 1, 8, 32>}, {transform_indices = @transform_2, window_bounds = array<i64: 1, 8, 32>}, {pipeline_mode = #tpu.pipeline_mode<synchronous>, transform_indices = @transform_3, window_bounds = array<i64: 32, 96>}, {pipeline_mode = #tpu.pipeline_mode<synchronous>, transform_indices = @transform_4, window_bounds = array<i64: 1, 96>}, {pipeline_mode = #tpu.pipeline_mode<synchronous>, transform_indices = @transform_5, window_bounds = array<i64: 32, 32>}, {pipeline_mode = #tpu.pipeline_mode<synchronous>, transform_indices = @transform_6, window_bounds = array<i64: 1, 32>}, {pipeline_mode = #tpu.pipeline_mode<synchronous>, transform_indices = @transform_7, window_bounds = array<i64: 1, 32>}, {pipeline_mode = #tpu.pipeline_mode<synchronous>, transform_indices = @transform_8, window_bounds = array<i64: 1, 32>}, {pipeline_mode = #tpu.pipeline_mode<synchronous>, transform_indices = @transform_9, window_bounds = array<i64: 32, 64>}, {pipeline_mode = #tpu.pipeline_mode<synchronous>, transform_indices = @transform_10, window_bounds = array<i64: 1, 64>}, {pipeline_mode = #tpu.pipeline_mode<synchronous>, transform_indices = @transform_11, window_bounds = array<i64: 32, 32>}, {pipeline_mode = #tpu.pipeline_mode<synchronous>, transform_indices = @transform_12, window_bounds = array<i64: 1, 32>}, {pipeline_mode = #tpu.pipeline_mode<synchronous>, transform_indices = @transform_13, window_bounds = array<i64: 32, 32>}, {pipeline_mode = #tpu.pipeline_mode<synchronous>, transform_indices = @transform_14, window_bounds = array<i64: 1, 32>}, {pipeline_mode = #tpu.pipeline_mode<synchronous>, transform_indices = @transform_15, window_bounds = array<i64: 1, 32>}, {pipeline_mode = #tpu.pipeline_mode<synchronous>, transform_indices = @transform_16, window_bounds = array<i64: 1, 32>}, {pipeline_mode = #tpu.pipeline_mode<synchronous>, transform_indices = @transform_17, window_bounds = array<i64: 32, 32>}, {pipeline_mode = #tpu.pipeline_mode<synchronous>, transform_indices = @transform_18, window_bounds = array<i64: 1, 32>}, {pipeline_mode = #tpu.pipeline_mode<synchronous>, transform_indices = @transform_19, window_bounds = array<i64: 32, 64>}, {pipeline_mode = #tpu.pipeline_mode<synchronous>, transform_indices = @transform_20, window_bounds = array<i64: 1, 64>}, {pipeline_mode = #tpu.pipeline_mode<synchronous>, transform_indices = @transform_21, window_bounds = array<i64: 32, 32>}, {pipeline_mode = #tpu.pipeline_mode<synchronous>, transform_indices = @transform_22, window_bounds = array<i64: 1, 32>}, {pipeline_mode = #tpu.pipeline_mode<synchronous>, transform_indices = @transform_23, window_bounds = array<i64: 1, 32>}, {pipeline_mode = #tpu.pipeline_mode<synchronous>, transform_indices = @transform_24, window_bounds = array<i64: 1, 32>}, {pipeline_mode = #tpu.pipeline_mode<synchronous>, transform_indices = @transform_25, window_bounds = array<i64: 32, 64>}, {pipeline_mode = #tpu.pipeline_mode<synchronous>, transform_indices = @transform_26, window_bounds = array<i64: 1, 64>}, {pipeline_mode = #tpu.pipeline_mode<synchronous>, transform_indices = @transform_27, window_bounds = array<i64: 64, 32>}, {pipeline_mode = #tpu.pipeline_mode<synchronous>, transform_indices = @transform_28, window_bounds = array<i64: 1, 32>}, {pipeline_mode = #tpu.pipeline_mode<synchronous>, transform_indices = @transform_29, window_bounds = array<i64: 1, 32>}, {pipeline_mode = #tpu.pipeline_mode<synchronous>, transform_indices = @transform_30, window_bounds = array<i64: 1, 1>}, {pipeline_mode = #tpu.pipeline_mode<synchronous>, transform_indices = @transform_31, window_bounds = array<i64: 1, 32>}, {pipeline_mode = #tpu.pipeline_mode<synchronous>, transform_indices = @transform_32, window_bounds = array<i64: 1, 32>}, {pipeline_mode = #tpu.pipeline_mode<synchronous>, transform_indices = @transform_33, window_bounds = array<i64: 1, 32>}, {pipeline_mode = #tpu.pipeline_mode<synchronous>, transform_indices = @transform_34, window_bounds = array<i64: 1, 32>}, {transform_indices = @transform_35, window_bounds = array<i64: 1, 8, 32>}]} {
    %c0 = arith.constant 0 : index
    %c0_0 = arith.constant 0 : index
    %c0_1 = arith.constant 0 : index
    %0 = vector.load %arg2[%c0, %c0_0, %c0_1] : memref<1x8x32xf32, #tpu.memory_space<vmem>>, vector<1x8x32xf32>
    %1 = vector.shape_cast %0 : vector<1x8x32xf32> to vector<8x32xf32>
    %c0_2 = arith.constant 0 : index
    %c0_3 = arith.constant 0 : index
    %c0_4 = arith.constant 0 : index
    %2 = vector.load %arg1[%c0_2, %c0_3, %c0_4] : memref<1x8x32xf32, #tpu.memory_space<vmem>>, vector<1x8x32xf32>
    %3 = vector.shape_cast %2 : vector<1x8x32xf32> to vector<8x32xf32>
    %c0_5 = arith.constant 0 : index
    %c0_6 = arith.constant 0 : index
    %c0_7 = arith.constant 0 : index
    %4 = vector.load %arg3[%c0_5, %c0_6, %c0_7] : memref<1x8x32xf32, #tpu.memory_space<vmem>>, vector<1x8x32xf32>
    %5 = vector.shape_cast %4 : vector<1x8x32xf32> to vector<8x32xf32>
    %6 = tpu.iota {dimensions = array<i32: 0>} : vector<8x8xi32>
    %7 = tpu.iota {dimensions = array<i32: 1>} : vector<8x8xi32>
    %8 = arith.cmpi sgt, %7, %6 : vector<8x8xi32>
    %cst = arith.constant 0xCD28965F : f32
    %cst_8 = arith.constant 0.000000e+00 : f32
    %9 = vector.broadcast %cst : f32 to vector<8x8xf32>
    %10 = vector.broadcast %cst_8 : f32 to vector<8x8xf32>
    %11 = arith.select %8, %9, %10 : vector<8x8xi1>, vector<8x8xf32>
    %12 = arith.truncf %1 : vector<8x32xf32> to vector<8x32xbf16>
    %c0_9 = arith.constant 0 : index
    %c0_10 = arith.constant 0 : index
    %13 = vector.load %arg4[%c0_9, %c0_10] : memref<32x96xbf16, #tpu.memory_space<vmem>>, vector<32x96xbf16>
    %cst_11 = arith.constant dense<0.000000e+00> : vector<8x96xf32>
    %14 = tpu.matmul %12, %13, %cst_11 {dimension_numbers = #tpu.dot_dimension_numbers<[1], [0], [0], [1], [0, 0, 1, 1], [], []>} : vector<8x32xbf16>, vector<32x96xbf16>, vector<8x96xf32> -> vector<8x96xf32>
    %c0_12 = arith.constant 0 : index
    %c0_13 = arith.constant 0 : index
    %15 = vector.load %arg5[%c0_12, %c0_13] : memref<1x96xf32, #tpu.memory_space<vmem>>, vector<1x96xf32>
    %16 = vector.broadcast %15 : vector<1x96xf32> to vector<8x96xf32>
    %17 = arith.addf %14, %16 : vector<8x96xf32>
    %18 = vector.extract_strided_slice %17 {offsets = [0, 0], sizes = [8, 32], strides = [1, 1]} : vector<8x96xf32> to vector<8x32xf32>
    %19 = vector.extract_strided_slice %17 {offsets = [0, 32], sizes = [8, 32], strides = [1, 1]} : vector<8x96xf32> to vector<8x32xf32>
    %20 = vector.extract_strided_slice %17 {offsets = [0, 64], sizes = [8, 32], strides = [1, 1]} : vector<8x96xf32> to vector<8x32xf32>
    %21 = arith.truncf %18 : vector<8x32xf32> to vector<8x32xbf16>
    %22 = arith.truncf %19 : vector<8x32xf32> to vector<8x32xbf16>
    %23 = arith.truncf %20 : vector<8x32xf32> to vector<8x32xbf16>
    %c0_14 = arith.constant 0 : index
    %c0_15 = arith.constant 0 : index
    %24 = vector.load %arg6[%c0_14, %c0_15] : memref<32x32xbf16, #tpu.memory_space<vmem>>, vector<32x32xbf16>
    %25 = arith.extf %24 : vector<32x32xbf16> to vector<32x32xf32>
    %cst_16 = arith.constant 0.000000e+00 : f32
    %26 = vector.broadcast %cst_16 : f32 to vector<8x32xf32>
    %27 = vector.extract_strided_slice %21 {offsets = [0, 0], sizes = [8, 8], strides = [1, 1]} : vector<8x32xbf16> to vector<8x8xbf16>
    %28 = vector.extract_strided_slice %22 {offsets = [0, 0], sizes = [8, 8], strides = [1, 1]} : vector<8x32xbf16> to vector<8x8xbf16>
    %cst_17 = arith.constant dense<0.000000e+00> : vector<8x8xf32>
    %29 = tpu.matmul %27, %28, %cst_17 {dimension_numbers = #tpu.dot_dimension_numbers<[1], [1], [0], [0], [0, 0, 1, 0], [], []>} : vector<8x8xbf16>, vector<8x8xbf16>, vector<8x8xf32> -> vector<8x8xf32>
    %cst_18 = arith.constant 0.176776692 : f32
    %30 = vector.broadcast %cst_18 : f32 to vector<8x8xf32>
    %31 = arith.mulf %29, %30 : vector<8x8xf32>
    %32 = arith.addf %31, %11 : vector<8x8xf32>
    %cst_19 = arith.constant dense<0xFF800000> : vector<8xf32>
    %33 = vector.multi_reduction <maximumf>, %32, %cst_19 [1] : vector<8x8xf32> to vector<8xf32>
    %34 = vector.shape_cast %33 : vector<8xf32> to vector<8x1xf32>
    %35 = vector.broadcast %34 : vector<8x1xf32> to vector<8x8xf32>
    %36 = arith.subf %32, %35 : vector<8x8xf32>
    %37 = math.exp %36 : vector<8x8xf32>
    %cst_20 = arith.constant dense<0.000000e+00> : vector<8xf32>
    %38 = vector.multi_reduction <add>, %37, %cst_20 [1] : vector<8x8xf32> to vector<8xf32>
    %39 = vector.shape_cast %38 : vector<8xf32> to vector<8x1xf32>
    %40 = tpu.reciprocal %39 {approx = true} : vector<8x1xf32> -> vector<8x1xf32>
    %41 = vector.broadcast %40 : vector<8x1xf32> to vector<8x8xf32>
    %42 = arith.mulf %37, %41 : vector<8x8xf32>
    %43 = arith.truncf %42 : vector<8x8xf32> to vector<8x8xbf16>
    %44 = vector.extract_strided_slice %23 {offsets = [0, 0], sizes = [8, 8], strides = [1, 1]} : vector<8x32xbf16> to vector<8x8xbf16>
    %cst_21 = arith.constant dense<0.000000e+00> : vector<8x8xf32>
    %45 = tpu.matmul %43, %44, %cst_21 {dimension_numbers = #tpu.dot_dimension_numbers<[1], [0], [0], [1], [0, 0, 1, 1], [], []>} : vector<8x8xbf16>, vector<8x8xbf16>, vector<8x8xf32> -> vector<8x8xf32>
    %46 = vector.extract_strided_slice %25 {offsets = [0, 0], sizes = [8, 32], strides = [1, 1]} : vector<32x32xf32> to vector<8x32xf32>
    %cst_22 = arith.constant dense<0.000000e+00> : vector<8x32xf32>
    %47 = tpu.matmul %45, %46, %cst_22 {dimension_numbers = #tpu.dot_dimension_numbers<[1], [0], [0], [1], [0, 0, 1, 1], [], []>} : vector<8x8xf32>, vector<8x32xf32>, vector<8x32xf32> -> vector<8x32xf32>
    %48 = arith.addf %26, %47 : vector<8x32xf32>
    %49 = vector.extract_strided_slice %21 {offsets = [0, 8], sizes = [8, 8], strides = [1, 1]} : vector<8x32xbf16> to vector<8x8xbf16>
    %50 = vector.extract_strided_slice %22 {offsets = [0, 8], sizes = [8, 8], strides = [1, 1]} : vector<8x32xbf16> to vector<8x8xbf16>
    %cst_23 = arith.constant dense<0.000000e+00> : vector<8x8xf32>
    %51 = tpu.matmul %49, %50, %cst_23 {dimension_numbers = #tpu.dot_dimension_numbers<[1], [1], [0], [0], [0, 0, 1, 0], [], []>} : vector<8x8xbf16>, vector<8x8xbf16>, vector<8x8xf32> -> vector<8x8xf32>
    %cst_24 = arith.constant 0.176776692 : f32
    %52 = vector.broadcast %cst_24 : f32 to vector<8x8xf32>
    %53 = arith.mulf %51, %52 : vector<8x8xf32>
    %54 = arith.addf %53, %11 : vector<8x8xf32>
    %cst_25 = arith.constant dense<0xFF800000> : vector<8xf32>
    %55 = vector.multi_reduction <maximumf>, %54, %cst_25 [1] : vector<8x8xf32> to vector<8xf32>
    %56 = vector.shape_cast %55 : vector<8xf32> to vector<8x1xf32>
    %57 = vector.broadcast %56 : vector<8x1xf32> to vector<8x8xf32>
    %58 = arith.subf %54, %57 : vector<8x8xf32>
    %59 = math.exp %58 : vector<8x8xf32>
    %cst_26 = arith.constant dense<0.000000e+00> : vector<8xf32>
    %60 = vector.multi_reduction <add>, %59, %cst_26 [1] : vector<8x8xf32> to vector<8xf32>
    %61 = vector.shape_cast %60 : vector<8xf32> to vector<8x1xf32>
    %62 = tpu.reciprocal %61 {approx = true} : vector<8x1xf32> -> vector<8x1xf32>
    %63 = vector.broadcast %62 : vector<8x1xf32> to vector<8x8xf32>
    %64 = arith.mulf %59, %63 : vector<8x8xf32>
    %65 = arith.truncf %64 : vector<8x8xf32> to vector<8x8xbf16>
    %66 = vector.extract_strided_slice %23 {offsets = [0, 8], sizes = [8, 8], strides = [1, 1]} : vector<8x32xbf16> to vector<8x8xbf16>
    %cst_27 = arith.constant dense<0.000000e+00> : vector<8x8xf32>
    %67 = tpu.matmul %65, %66, %cst_27 {dimension_numbers = #tpu.dot_dimension_numbers<[1], [0], [0], [1], [0, 0, 1, 1], [], []>} : vector<8x8xbf16>, vector<8x8xbf16>, vector<8x8xf32> -> vector<8x8xf32>
    %68 = vector.extract_strided_slice %25 {offsets = [8, 0], sizes = [8, 32], strides = [1, 1]} : vector<32x32xf32> to vector<8x32xf32>
    %cst_28 = arith.constant dense<0.000000e+00> : vector<8x32xf32>
    %69 = tpu.matmul %67, %68, %cst_28 {dimension_numbers = #tpu.dot_dimension_numbers<[1], [0], [0], [1], [0, 0, 1, 1], [], []>} : vector<8x8xf32>, vector<8x32xf32>, vector<8x32xf32> -> vector<8x32xf32>
    %70 = arith.addf %48, %69 : vector<8x32xf32>
    %71 = vector.extract_strided_slice %21 {offsets = [0, 16], sizes = [8, 8], strides = [1, 1]} : vector<8x32xbf16> to vector<8x8xbf16>
    %72 = vector.extract_strided_slice %22 {offsets = [0, 16], sizes = [8, 8], strides = [1, 1]} : vector<8x32xbf16> to vector<8x8xbf16>
    %cst_29 = arith.constant dense<0.000000e+00> : vector<8x8xf32>
    %73 = tpu.matmul %71, %72, %cst_29 {dimension_numbers = #tpu.dot_dimension_numbers<[1], [1], [0], [0], [0, 0, 1, 0], [], []>} : vector<8x8xbf16>, vector<8x8xbf16>, vector<8x8xf32> -> vector<8x8xf32>
    %cst_30 = arith.constant 0.176776692 : f32
    %74 = vector.broadcast %cst_30 : f32 to vector<8x8xf32>
    %75 = arith.mulf %73, %74 : vector<8x8xf32>
    %76 = arith.addf %75, %11 : vector<8x8xf32>
    %cst_31 = arith.constant dense<0xFF800000> : vector<8xf32>
    %77 = vector.multi_reduction <maximumf>, %76, %cst_31 [1] : vector<8x8xf32> to vector<8xf32>
    %78 = vector.shape_cast %77 : vector<8xf32> to vector<8x1xf32>
    %79 = vector.broadcast %78 : vector<8x1xf32> to vector<8x8xf32>
    %80 = arith.subf %76, %79 : vector<8x8xf32>
    %81 = math.exp %80 : vector<8x8xf32>
    %cst_32 = arith.constant dense<0.000000e+00> : vector<8xf32>
    %82 = vector.multi_reduction <add>, %81, %cst_32 [1] : vector<8x8xf32> to vector<8xf32>
    %83 = vector.shape_cast %82 : vector<8xf32> to vector<8x1xf32>
    %84 = tpu.reciprocal %83 {approx = true} : vector<8x1xf32> -> vector<8x1xf32>
    %85 = vector.broadcast %84 : vector<8x1xf32> to vector<8x8xf32>
    %86 = arith.mulf %81, %85 : vector<8x8xf32>
    %87 = arith.truncf %86 : vector<8x8xf32> to vector<8x8xbf16>
    %88 = vector.extract_strided_slice %23 {offsets = [0, 16], sizes = [8, 8], strides = [1, 1]} : vector<8x32xbf16> to vector<8x8xbf16>
    %cst_33 = arith.constant dense<0.000000e+00> : vector<8x8xf32>
    %89 = tpu.matmul %87, %88, %cst_33 {dimension_numbers = #tpu.dot_dimension_numbers<[1], [0], [0], [1], [0, 0, 1, 1], [], []>} : vector<8x8xbf16>, vector<8x8xbf16>, vector<8x8xf32> -> vector<8x8xf32>
    %90 = vector.extract_strided_slice %25 {offsets = [16, 0], sizes = [8, 32], strides = [1, 1]} : vector<32x32xf32> to vector<8x32xf32>
    %cst_34 = arith.constant dense<0.000000e+00> : vector<8x32xf32>
    %91 = tpu.matmul %89, %90, %cst_34 {dimension_numbers = #tpu.dot_dimension_numbers<[1], [0], [0], [1], [0, 0, 1, 1], [], []>} : vector<8x8xf32>, vector<8x32xf32>, vector<8x32xf32> -> vector<8x32xf32>
    %92 = arith.addf %70, %91 : vector<8x32xf32>
    %93 = vector.extract_strided_slice %21 {offsets = [0, 24], sizes = [8, 8], strides = [1, 1]} : vector<8x32xbf16> to vector<8x8xbf16>
    %94 = vector.extract_strided_slice %22 {offsets = [0, 24], sizes = [8, 8], strides = [1, 1]} : vector<8x32xbf16> to vector<8x8xbf16>
    %cst_35 = arith.constant dense<0.000000e+00> : vector<8x8xf32>
    %95 = tpu.matmul %93, %94, %cst_35 {dimension_numbers = #tpu.dot_dimension_numbers<[1], [1], [0], [0], [0, 0, 1, 0], [], []>} : vector<8x8xbf16>, vector<8x8xbf16>, vector<8x8xf32> -> vector<8x8xf32>
    %cst_36 = arith.constant 0.176776692 : f32
    %96 = vector.broadcast %cst_36 : f32 to vector<8x8xf32>
    %97 = arith.mulf %95, %96 : vector<8x8xf32>
    %98 = arith.addf %97, %11 : vector<8x8xf32>
    %cst_37 = arith.constant dense<0xFF800000> : vector<8xf32>
    %99 = vector.multi_reduction <maximumf>, %98, %cst_37 [1] : vector<8x8xf32> to vector<8xf32>
    %100 = vector.shape_cast %99 : vector<8xf32> to vector<8x1xf32>
    %101 = vector.broadcast %100 : vector<8x1xf32> to vector<8x8xf32>
    %102 = arith.subf %98, %101 : vector<8x8xf32>
    %103 = math.exp %102 : vector<8x8xf32>
    %cst_38 = arith.constant dense<0.000000e+00> : vector<8xf32>
    %104 = vector.multi_reduction <add>, %103, %cst_38 [1] : vector<8x8xf32> to vector<8xf32>
    %105 = vector.shape_cast %104 : vector<8xf32> to vector<8x1xf32>
    %106 = tpu.reciprocal %105 {approx = true} : vector<8x1xf32> -> vector<8x1xf32>
    %107 = vector.broadcast %106 : vector<8x1xf32> to vector<8x8xf32>
    %108 = arith.mulf %103, %107 : vector<8x8xf32>
    %109 = arith.truncf %108 : vector<8x8xf32> to vector<8x8xbf16>
    %110 = vector.extract_strided_slice %23 {offsets = [0, 24], sizes = [8, 8], strides = [1, 1]} : vector<8x32xbf16> to vector<8x8xbf16>
    %cst_39 = arith.constant dense<0.000000e+00> : vector<8x8xf32>
    %111 = tpu.matmul %109, %110, %cst_39 {dimension_numbers = #tpu.dot_dimension_numbers<[1], [0], [0], [1], [0, 0, 1, 1], [], []>} : vector<8x8xbf16>, vector<8x8xbf16>, vector<8x8xf32> -> vector<8x8xf32>
    %112 = vector.extract_strided_slice %25 {offsets = [24, 0], sizes = [8, 32], strides = [1, 1]} : vector<32x32xf32> to vector<8x32xf32>
    %cst_40 = arith.constant dense<0.000000e+00> : vector<8x32xf32>
    %113 = tpu.matmul %111, %112, %cst_40 {dimension_numbers = #tpu.dot_dimension_numbers<[1], [0], [0], [1], [0, 0, 1, 1], [], []>} : vector<8x8xf32>, vector<8x32xf32>, vector<8x32xf32> -> vector<8x32xf32>
    %114 = arith.addf %92, %113 : vector<8x32xf32>
    %c0_41 = arith.constant 0 : index
    %c0_42 = arith.constant 0 : index
    %115 = vector.load %arg7[%c0_41, %c0_42] : memref<1x32xf32, #tpu.memory_space<vmem>>, vector<1x32xf32>
    %116 = vector.broadcast %115 : vector<1x32xf32> to vector<8x32xf32>
    %117 = arith.addf %114, %116 : vector<8x32xf32>
    %118 = arith.addf %1, %117 : vector<8x32xf32>
    %c0_43 = arith.constant 0 : index
    %c0_44 = arith.constant 0 : index
    %119 = vector.load %arg8[%c0_43, %c0_44] : memref<1x32xf32, #tpu.memory_space<vmem>>, vector<1x32xf32>
    %c0_45 = arith.constant 0 : index
    %c0_46 = arith.constant 0 : index
    %120 = vector.load %arg9[%c0_45, %c0_46] : memref<1x32xf32, #tpu.memory_space<vmem>>, vector<1x32xf32>
    %cst_47 = arith.constant dense<0.000000e+00> : vector<8xf32>
    %121 = vector.multi_reduction <add>, %118, %cst_47 [1] : vector<8x32xf32> to vector<8xf32>
    %122 = vector.shape_cast %121 : vector<8xf32> to vector<8x1xf32>
    %cst_48 = arith.constant 3.200000e+01 : f32
    %123 = vector.broadcast %cst_48 : f32 to vector<8x1xf32>
    %124 = arith.divf %122, %123 : vector<8x1xf32>
    %125 = vector.broadcast %124 : vector<8x1xf32> to vector<8x32xf32>
    %126 = arith.subf %118, %125 : vector<8x32xf32>
    %127 = arith.mulf %126, %126 : vector<8x32xf32>
    %cst_49 = arith.constant dense<0.000000e+00> : vector<8xf32>
    %128 = vector.multi_reduction <add>, %127, %cst_49 [1] : vector<8x32xf32> to vector<8xf32>
    %129 = vector.shape_cast %128 : vector<8xf32> to vector<8x1xf32>
    %cst_50 = arith.constant 3.200000e+01 : f32
    %130 = vector.broadcast %cst_50 : f32 to vector<8x1xf32>
    %131 = arith.divf %129, %130 : vector<8x1xf32>
    %cst_51 = arith.constant 9.99999974E-6 : f32
    %132 = vector.broadcast %cst_51 : f32 to vector<8x1xf32>
    %133 = arith.addf %131, %132 : vector<8x1xf32>
    %134 = math.rsqrt %133 : vector<8x1xf32>
    %135 = vector.broadcast %134 : vector<8x1xf32> to vector<8x32xf32>
    %136 = arith.mulf %126, %135 : vector<8x32xf32>
    %137 = vector.broadcast %119 : vector<1x32xf32> to vector<8x32xf32>
    %138 = arith.mulf %136, %137 : vector<8x32xf32>
    %139 = vector.broadcast %120 : vector<1x32xf32> to vector<8x32xf32>
    %140 = arith.addf %138, %139 : vector<8x32xf32>
    %141 = arith.truncf %3 : vector<8x32xf32> to vector<8x32xbf16>
    %c0_52 = arith.constant 0 : index
    %c0_53 = arith.constant 0 : index
    %142 = vector.load %arg10[%c0_52, %c0_53] : memref<32x64xbf16, #tpu.memory_space<vmem>>, vector<32x64xbf16>
    %cst_54 = arith.constant dense<0.000000e+00> : vector<8x64xf32>
    %143 = tpu.matmul %141, %142, %cst_54 {dimension_numbers = #tpu.dot_dimension_numbers<[1], [0], [0], [1], [0, 0, 1, 1], [], []>} : vector<8x32xbf16>, vector<32x64xbf16>, vector<8x64xf32> -> vector<8x64xf32>
    %c0_55 = arith.constant 0 : index
    %c0_56 = arith.constant 0 : index
    %144 = vector.load %arg11[%c0_55, %c0_56] : memref<1x64xf32, #tpu.memory_space<vmem>>, vector<1x64xf32>
    %145 = vector.broadcast %144 : vector<1x64xf32> to vector<8x64xf32>
    %146 = arith.addf %143, %145 : vector<8x64xf32>
    %147 = vector.extract_strided_slice %146 {offsets = [0, 0], sizes = [8, 32], strides = [1, 1]} : vector<8x64xf32> to vector<8x32xf32>
    %148 = vector.extract_strided_slice %146 {offsets = [0, 32], sizes = [8, 32], strides = [1, 1]} : vector<8x64xf32> to vector<8x32xf32>
    %149 = arith.truncf %140 : vector<8x32xf32> to vector<8x32xbf16>
    %c0_57 = arith.constant 0 : index
    %c0_58 = arith.constant 0 : index
    %150 = vector.load %arg12[%c0_57, %c0_58] : memref<32x32xbf16, #tpu.memory_space<vmem>>, vector<32x32xbf16>
    %cst_59 = arith.constant dense<0.000000e+00> : vector<8x32xf32>
    %151 = tpu.matmul %149, %150, %cst_59 {dimension_numbers = #tpu.dot_dimension_numbers<[1], [0], [0], [1], [0, 0, 1, 1], [], []>} : vector<8x32xbf16>, vector<32x32xbf16>, vector<8x32xf32> -> vector<8x32xf32>
    %c0_60 = arith.constant 0 : index
    %c0_61 = arith.constant 0 : index
    %152 = vector.load %arg13[%c0_60, %c0_61] : memref<1x32xf32, #tpu.memory_space<vmem>>, vector<1x32xf32>
    %153 = vector.broadcast %152 : vector<1x32xf32> to vector<8x32xf32>
    %154 = arith.addf %151, %153 : vector<8x32xf32>
    %155 = arith.truncf %147 : vector<8x32xf32> to vector<8x32xbf16>
    %156 = arith.truncf %148 : vector<8x32xf32> to vector<8x32xbf16>
    %157 = arith.truncf %154 : vector<8x32xf32> to vector<8x32xbf16>
    %c0_62 = arith.constant 0 : index
    %c0_63 = arith.constant 0 : index
    %158 = vector.load %arg14[%c0_62, %c0_63] : memref<32x32xbf16, #tpu.memory_space<vmem>>, vector<32x32xbf16>
    %159 = arith.extf %158 : vector<32x32xbf16> to vector<32x32xf32>
    %cst_64 = arith.constant 0.000000e+00 : f32
    %160 = vector.broadcast %cst_64 : f32 to vector<8x32xf32>
    %161 = vector.extract_strided_slice %155 {offsets = [0, 0], sizes = [8, 8], strides = [1, 1]} : vector<8x32xbf16> to vector<8x8xbf16>
    %162 = vector.extract_strided_slice %156 {offsets = [0, 0], sizes = [8, 8], strides = [1, 1]} : vector<8x32xbf16> to vector<8x8xbf16>
    %cst_65 = arith.constant dense<0.000000e+00> : vector<8x8xf32>
    %163 = tpu.matmul %161, %162, %cst_65 {dimension_numbers = #tpu.dot_dimension_numbers<[1], [1], [0], [0], [0, 0, 1, 0], [], []>} : vector<8x8xbf16>, vector<8x8xbf16>, vector<8x8xf32> -> vector<8x8xf32>
    %cst_66 = arith.constant 0.176776692 : f32
    %164 = vector.broadcast %cst_66 : f32 to vector<8x8xf32>
    %165 = arith.mulf %163, %164 : vector<8x8xf32>
    %166 = arith.addf %165, %11 : vector<8x8xf32>
    %cst_67 = arith.constant dense<0xFF800000> : vector<8xf32>
    %167 = vector.multi_reduction <maximumf>, %166, %cst_67 [1] : vector<8x8xf32> to vector<8xf32>
    %168 = vector.shape_cast %167 : vector<8xf32> to vector<8x1xf32>
    %169 = vector.broadcast %168 : vector<8x1xf32> to vector<8x8xf32>
    %170 = arith.subf %166, %169 : vector<8x8xf32>
    %171 = math.exp %170 : vector<8x8xf32>
    %cst_68 = arith.constant dense<0.000000e+00> : vector<8xf32>
    %172 = vector.multi_reduction <add>, %171, %cst_68 [1] : vector<8x8xf32> to vector<8xf32>
    %173 = vector.shape_cast %172 : vector<8xf32> to vector<8x1xf32>
    %174 = tpu.reciprocal %173 {approx = true} : vector<8x1xf32> -> vector<8x1xf32>
    %175 = vector.broadcast %174 : vector<8x1xf32> to vector<8x8xf32>
    %176 = arith.mulf %171, %175 : vector<8x8xf32>
    %177 = arith.truncf %176 : vector<8x8xf32> to vector<8x8xbf16>
    %178 = vector.extract_strided_slice %157 {offsets = [0, 0], sizes = [8, 8], strides = [1, 1]} : vector<8x32xbf16> to vector<8x8xbf16>
    %cst_69 = arith.constant dense<0.000000e+00> : vector<8x8xf32>
    %179 = tpu.matmul %177, %178, %cst_69 {dimension_numbers = #tpu.dot_dimension_numbers<[1], [0], [0], [1], [0, 0, 1, 1], [], []>} : vector<8x8xbf16>, vector<8x8xbf16>, vector<8x8xf32> -> vector<8x8xf32>
    %180 = vector.extract_strided_slice %159 {offsets = [0, 0], sizes = [8, 32], strides = [1, 1]} : vector<32x32xf32> to vector<8x32xf32>
    %cst_70 = arith.constant dense<0.000000e+00> : vector<8x32xf32>
    %181 = tpu.matmul %179, %180, %cst_70 {dimension_numbers = #tpu.dot_dimension_numbers<[1], [0], [0], [1], [0, 0, 1, 1], [], []>} : vector<8x8xf32>, vector<8x32xf32>, vector<8x32xf32> -> vector<8x32xf32>
    %182 = arith.addf %160, %181 : vector<8x32xf32>
    %183 = vector.extract_strided_slice %155 {offsets = [0, 8], sizes = [8, 8], strides = [1, 1]} : vector<8x32xbf16> to vector<8x8xbf16>
    %184 = vector.extract_strided_slice %156 {offsets = [0, 8], sizes = [8, 8], strides = [1, 1]} : vector<8x32xbf16> to vector<8x8xbf16>
    %cst_71 = arith.constant dense<0.000000e+00> : vector<8x8xf32>
    %185 = tpu.matmul %183, %184, %cst_71 {dimension_numbers = #tpu.dot_dimension_numbers<[1], [1], [0], [0], [0, 0, 1, 0], [], []>} : vector<8x8xbf16>, vector<8x8xbf16>, vector<8x8xf32> -> vector<8x8xf32>
    %cst_72 = arith.constant 0.176776692 : f32
    %186 = vector.broadcast %cst_72 : f32 to vector<8x8xf32>
    %187 = arith.mulf %185, %186 : vector<8x8xf32>
    %188 = arith.addf %187, %11 : vector<8x8xf32>
    %cst_73 = arith.constant dense<0xFF800000> : vector<8xf32>
    %189 = vector.multi_reduction <maximumf>, %188, %cst_73 [1] : vector<8x8xf32> to vector<8xf32>
    %190 = vector.shape_cast %189 : vector<8xf32> to vector<8x1xf32>
    %191 = vector.broadcast %190 : vector<8x1xf32> to vector<8x8xf32>
    %192 = arith.subf %188, %191 : vector<8x8xf32>
    %193 = math.exp %192 : vector<8x8xf32>
    %cst_74 = arith.constant dense<0.000000e+00> : vector<8xf32>
    %194 = vector.multi_reduction <add>, %193, %cst_74 [1] : vector<8x8xf32> to vector<8xf32>
    %195 = vector.shape_cast %194 : vector<8xf32> to vector<8x1xf32>
    %196 = tpu.reciprocal %195 {approx = true} : vector<8x1xf32> -> vector<8x1xf32>
    %197 = vector.broadcast %196 : vector<8x1xf32> to vector<8x8xf32>
    %198 = arith.mulf %193, %197 : vector<8x8xf32>
    %199 = arith.truncf %198 : vector<8x8xf32> to vector<8x8xbf16>
    %200 = vector.extract_strided_slice %157 {offsets = [0, 8], sizes = [8, 8], strides = [1, 1]} : vector<8x32xbf16> to vector<8x8xbf16>
    %cst_75 = arith.constant dense<0.000000e+00> : vector<8x8xf32>
    %201 = tpu.matmul %199, %200, %cst_75 {dimension_numbers = #tpu.dot_dimension_numbers<[1], [0], [0], [1], [0, 0, 1, 1], [], []>} : vector<8x8xbf16>, vector<8x8xbf16>, vector<8x8xf32> -> vector<8x8xf32>
    %202 = vector.extract_strided_slice %159 {offsets = [8, 0], sizes = [8, 32], strides = [1, 1]} : vector<32x32xf32> to vector<8x32xf32>
    %cst_76 = arith.constant dense<0.000000e+00> : vector<8x32xf32>
    %203 = tpu.matmul %201, %202, %cst_76 {dimension_numbers = #tpu.dot_dimension_numbers<[1], [0], [0], [1], [0, 0, 1, 1], [], []>} : vector<8x8xf32>, vector<8x32xf32>, vector<8x32xf32> -> vector<8x32xf32>
    %204 = arith.addf %182, %203 : vector<8x32xf32>
    %205 = vector.extract_strided_slice %155 {offsets = [0, 16], sizes = [8, 8], strides = [1, 1]} : vector<8x32xbf16> to vector<8x8xbf16>
    %206 = vector.extract_strided_slice %156 {offsets = [0, 16], sizes = [8, 8], strides = [1, 1]} : vector<8x32xbf16> to vector<8x8xbf16>
    %cst_77 = arith.constant dense<0.000000e+00> : vector<8x8xf32>
    %207 = tpu.matmul %205, %206, %cst_77 {dimension_numbers = #tpu.dot_dimension_numbers<[1], [1], [0], [0], [0, 0, 1, 0], [], []>} : vector<8x8xbf16>, vector<8x8xbf16>, vector<8x8xf32> -> vector<8x8xf32>
    %cst_78 = arith.constant 0.176776692 : f32
    %208 = vector.broadcast %cst_78 : f32 to vector<8x8xf32>
    %209 = arith.mulf %207, %208 : vector<8x8xf32>
    %210 = arith.addf %209, %11 : vector<8x8xf32>
    %cst_79 = arith.constant dense<0xFF800000> : vector<8xf32>
    %211 = vector.multi_reduction <maximumf>, %210, %cst_79 [1] : vector<8x8xf32> to vector<8xf32>
    %212 = vector.shape_cast %211 : vector<8xf32> to vector<8x1xf32>
    %213 = vector.broadcast %212 : vector<8x1xf32> to vector<8x8xf32>
    %214 = arith.subf %210, %213 : vector<8x8xf32>
    %215 = math.exp %214 : vector<8x8xf32>
    %cst_80 = arith.constant dense<0.000000e+00> : vector<8xf32>
    %216 = vector.multi_reduction <add>, %215, %cst_80 [1] : vector<8x8xf32> to vector<8xf32>
    %217 = vector.shape_cast %216 : vector<8xf32> to vector<8x1xf32>
    %218 = tpu.reciprocal %217 {approx = true} : vector<8x1xf32> -> vector<8x1xf32>
    %219 = vector.broadcast %218 : vector<8x1xf32> to vector<8x8xf32>
    %220 = arith.mulf %215, %219 : vector<8x8xf32>
    %221 = arith.truncf %220 : vector<8x8xf32> to vector<8x8xbf16>
    %222 = vector.extract_strided_slice %157 {offsets = [0, 16], sizes = [8, 8], strides = [1, 1]} : vector<8x32xbf16> to vector<8x8xbf16>
    %cst_81 = arith.constant dense<0.000000e+00> : vector<8x8xf32>
    %223 = tpu.matmul %221, %222, %cst_81 {dimension_numbers = #tpu.dot_dimension_numbers<[1], [0], [0], [1], [0, 0, 1, 1], [], []>} : vector<8x8xbf16>, vector<8x8xbf16>, vector<8x8xf32> -> vector<8x8xf32>
    %224 = vector.extract_strided_slice %159 {offsets = [16, 0], sizes = [8, 32], strides = [1, 1]} : vector<32x32xf32> to vector<8x32xf32>
    %cst_82 = arith.constant dense<0.000000e+00> : vector<8x32xf32>
    %225 = tpu.matmul %223, %224, %cst_82 {dimension_numbers = #tpu.dot_dimension_numbers<[1], [0], [0], [1], [0, 0, 1, 1], [], []>} : vector<8x8xf32>, vector<8x32xf32>, vector<8x32xf32> -> vector<8x32xf32>
    %226 = arith.addf %204, %225 : vector<8x32xf32>
    %227 = vector.extract_strided_slice %155 {offsets = [0, 24], sizes = [8, 8], strides = [1, 1]} : vector<8x32xbf16> to vector<8x8xbf16>
    %228 = vector.extract_strided_slice %156 {offsets = [0, 24], sizes = [8, 8], strides = [1, 1]} : vector<8x32xbf16> to vector<8x8xbf16>
    %cst_83 = arith.constant dense<0.000000e+00> : vector<8x8xf32>
    %229 = tpu.matmul %227, %228, %cst_83 {dimension_numbers = #tpu.dot_dimension_numbers<[1], [1], [0], [0], [0, 0, 1, 0], [], []>} : vector<8x8xbf16>, vector<8x8xbf16>, vector<8x8xf32> -> vector<8x8xf32>
    %cst_84 = arith.constant 0.176776692 : f32
    %230 = vector.broadcast %cst_84 : f32 to vector<8x8xf32>
    %231 = arith.mulf %229, %230 : vector<8x8xf32>
    %232 = arith.addf %231, %11 : vector<8x8xf32>
    %cst_85 = arith.constant dense<0xFF800000> : vector<8xf32>
    %233 = vector.multi_reduction <maximumf>, %232, %cst_85 [1] : vector<8x8xf32> to vector<8xf32>
    %234 = vector.shape_cast %233 : vector<8xf32> to vector<8x1xf32>
    %235 = vector.broadcast %234 : vector<8x1xf32> to vector<8x8xf32>
    %236 = arith.subf %232, %235 : vector<8x8xf32>
    %237 = math.exp %236 : vector<8x8xf32>
    %cst_86 = arith.constant dense<0.000000e+00> : vector<8xf32>
    %238 = vector.multi_reduction <add>, %237, %cst_86 [1] : vector<8x8xf32> to vector<8xf32>
    %239 = vector.shape_cast %238 : vector<8xf32> to vector<8x1xf32>
    %240 = tpu.reciprocal %239 {approx = true} : vector<8x1xf32> -> vector<8x1xf32>
    %241 = vector.broadcast %240 : vector<8x1xf32> to vector<8x8xf32>
    %242 = arith.mulf %237, %241 : vector<8x8xf32>
    %243 = arith.truncf %242 : vector<8x8xf32> to vector<8x8xbf16>
    %244 = vector.extract_strided_slice %157 {offsets = [0, 24], sizes = [8, 8], strides = [1, 1]} : vector<8x32xbf16> to vector<8x8xbf16>
    %cst_87 = arith.constant dense<0.000000e+00> : vector<8x8xf32>
    %245 = tpu.matmul %243, %244, %cst_87 {dimension_numbers = #tpu.dot_dimension_numbers<[1], [0], [0], [1], [0, 0, 1, 1], [], []>} : vector<8x8xbf16>, vector<8x8xbf16>, vector<8x8xf32> -> vector<8x8xf32>
    %246 = vector.extract_strided_slice %159 {offsets = [24, 0], sizes = [8, 32], strides = [1, 1]} : vector<32x32xf32> to vector<8x32xf32>
    %cst_88 = arith.constant dense<0.000000e+00> : vector<8x32xf32>
    %247 = tpu.matmul %245, %246, %cst_88 {dimension_numbers = #tpu.dot_dimension_numbers<[1], [0], [0], [1], [0, 0, 1, 1], [], []>} : vector<8x8xf32>, vector<8x32xf32>, vector<8x32xf32> -> vector<8x32xf32>
    %248 = arith.addf %226, %247 : vector<8x32xf32>
    %c0_89 = arith.constant 0 : index
    %c0_90 = arith.constant 0 : index
    %249 = vector.load %arg15[%c0_89, %c0_90] : memref<1x32xf32, #tpu.memory_space<vmem>>, vector<1x32xf32>
    %250 = vector.broadcast %249 : vector<1x32xf32> to vector<8x32xf32>
    %251 = arith.addf %248, %250 : vector<8x32xf32>
    %252 = arith.addf %140, %251 : vector<8x32xf32>
    %c0_91 = arith.constant 0 : index
    %c0_92 = arith.constant 0 : index
    %253 = vector.load %arg16[%c0_91, %c0_92] : memref<1x32xf32, #tpu.memory_space<vmem>>, vector<1x32xf32>
    %c0_93 = arith.constant 0 : index
    %c0_94 = arith.constant 0 : index
    %254 = vector.load %arg17[%c0_93, %c0_94] : memref<1x32xf32, #tpu.memory_space<vmem>>, vector<1x32xf32>
    %cst_95 = arith.constant dense<0.000000e+00> : vector<8xf32>
    %255 = vector.multi_reduction <add>, %252, %cst_95 [1] : vector<8x32xf32> to vector<8xf32>
    %256 = vector.shape_cast %255 : vector<8xf32> to vector<8x1xf32>
    %cst_96 = arith.constant 3.200000e+01 : f32
    %257 = vector.broadcast %cst_96 : f32 to vector<8x1xf32>
    %258 = arith.divf %256, %257 : vector<8x1xf32>
    %259 = vector.broadcast %258 : vector<8x1xf32> to vector<8x32xf32>
    %260 = arith.subf %252, %259 : vector<8x32xf32>
    %261 = arith.mulf %260, %260 : vector<8x32xf32>
    %cst_97 = arith.constant dense<0.000000e+00> : vector<8xf32>
    %262 = vector.multi_reduction <add>, %261, %cst_97 [1] : vector<8x32xf32> to vector<8xf32>
    %263 = vector.shape_cast %262 : vector<8xf32> to vector<8x1xf32>
    %cst_98 = arith.constant 3.200000e+01 : f32
    %264 = vector.broadcast %cst_98 : f32 to vector<8x1xf32>
    %265 = arith.divf %263, %264 : vector<8x1xf32>
    %cst_99 = arith.constant 9.99999974E-6 : f32
    %266 = vector.broadcast %cst_99 : f32 to vector<8x1xf32>
    %267 = arith.addf %265, %266 : vector<8x1xf32>
    %268 = math.rsqrt %267 : vector<8x1xf32>
    %269 = vector.broadcast %268 : vector<8x1xf32> to vector<8x32xf32>
    %270 = arith.mulf %260, %269 : vector<8x32xf32>
    %271 = vector.broadcast %253 : vector<1x32xf32> to vector<8x32xf32>
    %272 = arith.mulf %270, %271 : vector<8x32xf32>
    %273 = vector.broadcast %254 : vector<1x32xf32> to vector<8x32xf32>
    %274 = arith.addf %272, %273 : vector<8x32xf32>
    %275 = arith.truncf %274 : vector<8x32xf32> to vector<8x32xbf16>
    %c0_100 = arith.constant 0 : index
    %c0_101 = arith.constant 0 : index
    %276 = vector.load %arg18[%c0_100, %c0_101] : memref<32x32xbf16, #tpu.memory_space<vmem>>, vector<32x32xbf16>
    %cst_102 = arith.constant dense<0.000000e+00> : vector<8x32xf32>
    %277 = tpu.matmul %275, %276, %cst_102 {dimension_numbers = #tpu.dot_dimension_numbers<[1], [0], [0], [1], [0, 0, 1, 1], [], []>} : vector<8x32xbf16>, vector<32x32xbf16>, vector<8x32xf32> -> vector<8x32xf32>
    %c0_103 = arith.constant 0 : index
    %c0_104 = arith.constant 0 : index
    %278 = vector.load %arg19[%c0_103, %c0_104] : memref<1x32xf32, #tpu.memory_space<vmem>>, vector<1x32xf32>
    %279 = vector.broadcast %278 : vector<1x32xf32> to vector<8x32xf32>
    %280 = arith.addf %277, %279 : vector<8x32xf32>
    %281 = arith.truncf %5 : vector<8x32xf32> to vector<8x32xbf16>
    %c0_105 = arith.constant 0 : index
    %c0_106 = arith.constant 0 : index
    %282 = vector.load %arg20[%c0_105, %c0_106] : memref<32x64xbf16, #tpu.memory_space<vmem>>, vector<32x64xbf16>
    %cst_107 = arith.constant dense<0.000000e+00> : vector<8x64xf32>
    %283 = tpu.matmul %281, %282, %cst_107 {dimension_numbers = #tpu.dot_dimension_numbers<[1], [0], [0], [1], [0, 0, 1, 1], [], []>} : vector<8x32xbf16>, vector<32x64xbf16>, vector<8x64xf32> -> vector<8x64xf32>
    %c0_108 = arith.constant 0 : index
    %c0_109 = arith.constant 0 : index
    %284 = vector.load %arg21[%c0_108, %c0_109] : memref<1x64xf32, #tpu.memory_space<vmem>>, vector<1x64xf32>
    %285 = vector.broadcast %284 : vector<1x64xf32> to vector<8x64xf32>
    %286 = arith.addf %283, %285 : vector<8x64xf32>
    %287 = vector.extract_strided_slice %286 {offsets = [0, 0], sizes = [8, 32], strides = [1, 1]} : vector<8x64xf32> to vector<8x32xf32>
    %288 = vector.extract_strided_slice %286 {offsets = [0, 32], sizes = [8, 32], strides = [1, 1]} : vector<8x64xf32> to vector<8x32xf32>
    %289 = arith.truncf %280 : vector<8x32xf32> to vector<8x32xbf16>
    %290 = arith.truncf %287 : vector<8x32xf32> to vector<8x32xbf16>
    %291 = arith.truncf %288 : vector<8x32xf32> to vector<8x32xbf16>
    %c0_110 = arith.constant 0 : index
    %c0_111 = arith.constant 0 : index
    %292 = vector.load %arg22[%c0_110, %c0_111] : memref<32x32xbf16, #tpu.memory_space<vmem>>, vector<32x32xbf16>
    %293 = arith.extf %292 : vector<32x32xbf16> to vector<32x32xf32>
    %cst_112 = arith.constant 0.000000e+00 : f32
    %294 = vector.broadcast %cst_112 : f32 to vector<8x32xf32>
    %295 = vector.extract_strided_slice %289 {offsets = [0, 0], sizes = [8, 8], strides = [1, 1]} : vector<8x32xbf16> to vector<8x8xbf16>
    %296 = vector.extract_strided_slice %290 {offsets = [0, 0], sizes = [8, 8], strides = [1, 1]} : vector<8x32xbf16> to vector<8x8xbf16>
    %cst_113 = arith.constant dense<0.000000e+00> : vector<8x8xf32>
    %297 = tpu.matmul %295, %296, %cst_113 {dimension_numbers = #tpu.dot_dimension_numbers<[1], [1], [0], [0], [0, 0, 1, 0], [], []>} : vector<8x8xbf16>, vector<8x8xbf16>, vector<8x8xf32> -> vector<8x8xf32>
    %cst_114 = arith.constant 0.176776692 : f32
    %298 = vector.broadcast %cst_114 : f32 to vector<8x8xf32>
    %299 = arith.mulf %297, %298 : vector<8x8xf32>
    %cst_115 = arith.constant dense<0xFF800000> : vector<8xf32>
    %300 = vector.multi_reduction <maximumf>, %299, %cst_115 [1] : vector<8x8xf32> to vector<8xf32>
    %301 = vector.shape_cast %300 : vector<8xf32> to vector<8x1xf32>
    %302 = vector.broadcast %301 : vector<8x1xf32> to vector<8x8xf32>
    %303 = arith.subf %299, %302 : vector<8x8xf32>
    %304 = math.exp %303 : vector<8x8xf32>
    %cst_116 = arith.constant dense<0.000000e+00> : vector<8xf32>
    %305 = vector.multi_reduction <add>, %304, %cst_116 [1] : vector<8x8xf32> to vector<8xf32>
    %306 = vector.shape_cast %305 : vector<8xf32> to vector<8x1xf32>
    %307 = tpu.reciprocal %306 {approx = true} : vector<8x1xf32> -> vector<8x1xf32>
    %308 = vector.broadcast %307 : vector<8x1xf32> to vector<8x8xf32>
    %309 = arith.mulf %304, %308 : vector<8x8xf32>
    %310 = arith.truncf %309 : vector<8x8xf32> to vector<8x8xbf16>
    %311 = vector.extract_strided_slice %291 {offsets = [0, 0], sizes = [8, 8], strides = [1, 1]} : vector<8x32xbf16> to vector<8x8xbf16>
    %cst_117 = arith.constant dense<0.000000e+00> : vector<8x8xf32>
    %312 = tpu.matmul %310, %311, %cst_117 {dimension_numbers = #tpu.dot_dimension_numbers<[1], [0], [0], [1], [0, 0, 1, 1], [], []>} : vector<8x8xbf16>, vector<8x8xbf16>, vector<8x8xf32> -> vector<8x8xf32>
    %313 = vector.extract_strided_slice %293 {offsets = [0, 0], sizes = [8, 32], strides = [1, 1]} : vector<32x32xf32> to vector<8x32xf32>
    %cst_118 = arith.constant dense<0.000000e+00> : vector<8x32xf32>
    %314 = tpu.matmul %312, %313, %cst_118 {dimension_numbers = #tpu.dot_dimension_numbers<[1], [0], [0], [1], [0, 0, 1, 1], [], []>} : vector<8x8xf32>, vector<8x32xf32>, vector<8x32xf32> -> vector<8x32xf32>
    %315 = arith.addf %294, %314 : vector<8x32xf32>
    %316 = vector.extract_strided_slice %289 {offsets = [0, 8], sizes = [8, 8], strides = [1, 1]} : vector<8x32xbf16> to vector<8x8xbf16>
    %317 = vector.extract_strided_slice %290 {offsets = [0, 8], sizes = [8, 8], strides = [1, 1]} : vector<8x32xbf16> to vector<8x8xbf16>
    %cst_119 = arith.constant dense<0.000000e+00> : vector<8x8xf32>
    %318 = tpu.matmul %316, %317, %cst_119 {dimension_numbers = #tpu.dot_dimension_numbers<[1], [1], [0], [0], [0, 0, 1, 0], [], []>} : vector<8x8xbf16>, vector<8x8xbf16>, vector<8x8xf32> -> vector<8x8xf32>
    %cst_120 = arith.constant 0.176776692 : f32
    %319 = vector.broadcast %cst_120 : f32 to vector<8x8xf32>
    %320 = arith.mulf %318, %319 : vector<8x8xf32>
    %cst_121 = arith.constant dense<0xFF800000> : vector<8xf32>
    %321 = vector.multi_reduction <maximumf>, %320, %cst_121 [1] : vector<8x8xf32> to vector<8xf32>
    %322 = vector.shape_cast %321 : vector<8xf32> to vector<8x1xf32>
    %323 = vector.broadcast %322 : vector<8x1xf32> to vector<8x8xf32>
    %324 = arith.subf %320, %323 : vector<8x8xf32>
    %325 = math.exp %324 : vector<8x8xf32>
    %cst_122 = arith.constant dense<0.000000e+00> : vector<8xf32>
    %326 = vector.multi_reduction <add>, %325, %cst_122 [1] : vector<8x8xf32> to vector<8xf32>
    %327 = vector.shape_cast %326 : vector<8xf32> to vector<8x1xf32>
    %328 = tpu.reciprocal %327 {approx = true} : vector<8x1xf32> -> vector<8x1xf32>
    %329 = vector.broadcast %328 : vector<8x1xf32> to vector<8x8xf32>
    %330 = arith.mulf %325, %329 : vector<8x8xf32>
    %331 = arith.truncf %330 : vector<8x8xf32> to vector<8x8xbf16>
    %332 = vector.extract_strided_slice %291 {offsets = [0, 8], sizes = [8, 8], strides = [1, 1]} : vector<8x32xbf16> to vector<8x8xbf16>
    %cst_123 = arith.constant dense<0.000000e+00> : vector<8x8xf32>
    %333 = tpu.matmul %331, %332, %cst_123 {dimension_numbers = #tpu.dot_dimension_numbers<[1], [0], [0], [1], [0, 0, 1, 1], [], []>} : vector<8x8xbf16>, vector<8x8xbf16>, vector<8x8xf32> -> vector<8x8xf32>
    %334 = vector.extract_strided_slice %293 {offsets = [8, 0], sizes = [8, 32], strides = [1, 1]} : vector<32x32xf32> to vector<8x32xf32>
    %cst_124 = arith.constant dense<0.000000e+00> : vector<8x32xf32>
    %335 = tpu.matmul %333, %334, %cst_124 {dimension_numbers = #tpu.dot_dimension_numbers<[1], [0], [0], [1], [0, 0, 1, 1], [], []>} : vector<8x8xf32>, vector<8x32xf32>, vector<8x32xf32> -> vector<8x32xf32>
    %336 = arith.addf %315, %335 : vector<8x32xf32>
    %337 = vector.extract_strided_slice %289 {offsets = [0, 16], sizes = [8, 8], strides = [1, 1]} : vector<8x32xbf16> to vector<8x8xbf16>
    %338 = vector.extract_strided_slice %290 {offsets = [0, 16], sizes = [8, 8], strides = [1, 1]} : vector<8x32xbf16> to vector<8x8xbf16>
    %cst_125 = arith.constant dense<0.000000e+00> : vector<8x8xf32>
    %339 = tpu.matmul %337, %338, %cst_125 {dimension_numbers = #tpu.dot_dimension_numbers<[1], [1], [0], [0], [0, 0, 1, 0], [], []>} : vector<8x8xbf16>, vector<8x8xbf16>, vector<8x8xf32> -> vector<8x8xf32>
    %cst_126 = arith.constant 0.176776692 : f32
    %340 = vector.broadcast %cst_126 : f32 to vector<8x8xf32>
    %341 = arith.mulf %339, %340 : vector<8x8xf32>
    %cst_127 = arith.constant dense<0xFF800000> : vector<8xf32>
    %342 = vector.multi_reduction <maximumf>, %341, %cst_127 [1] : vector<8x8xf32> to vector<8xf32>
    %343 = vector.shape_cast %342 : vector<8xf32> to vector<8x1xf32>
    %344 = vector.broadcast %343 : vector<8x1xf32> to vector<8x8xf32>
    %345 = arith.subf %341, %344 : vector<8x8xf32>
    %346 = math.exp %345 : vector<8x8xf32>
    %cst_128 = arith.constant dense<0.000000e+00> : vector<8xf32>
    %347 = vector.multi_reduction <add>, %346, %cst_128 [1] : vector<8x8xf32> to vector<8xf32>
    %348 = vector.shape_cast %347 : vector<8xf32> to vector<8x1xf32>
    %349 = tpu.reciprocal %348 {approx = true} : vector<8x1xf32> -> vector<8x1xf32>
    %350 = vector.broadcast %349 : vector<8x1xf32> to vector<8x8xf32>
    %351 = arith.mulf %346, %350 : vector<8x8xf32>
    %352 = arith.truncf %351 : vector<8x8xf32> to vector<8x8xbf16>
    %353 = vector.extract_strided_slice %291 {offsets = [0, 16], sizes = [8, 8], strides = [1, 1]} : vector<8x32xbf16> to vector<8x8xbf16>
    %cst_129 = arith.constant dense<0.000000e+00> : vector<8x8xf32>
    %354 = tpu.matmul %352, %353, %cst_129 {dimension_numbers = #tpu.dot_dimension_numbers<[1], [0], [0], [1], [0, 0, 1, 1], [], []>} : vector<8x8xbf16>, vector<8x8xbf16>, vector<8x8xf32> -> vector<8x8xf32>
    %355 = vector.extract_strided_slice %293 {offsets = [16, 0], sizes = [8, 32], strides = [1, 1]} : vector<32x32xf32> to vector<8x32xf32>
    %cst_130 = arith.constant dense<0.000000e+00> : vector<8x32xf32>
    %356 = tpu.matmul %354, %355, %cst_130 {dimension_numbers = #tpu.dot_dimension_numbers<[1], [0], [0], [1], [0, 0, 1, 1], [], []>} : vector<8x8xf32>, vector<8x32xf32>, vector<8x32xf32> -> vector<8x32xf32>
    %357 = arith.addf %336, %356 : vector<8x32xf32>
    %358 = vector.extract_strided_slice %289 {offsets = [0, 24], sizes = [8, 8], strides = [1, 1]} : vector<8x32xbf16> to vector<8x8xbf16>
    %359 = vector.extract_strided_slice %290 {offsets = [0, 24], sizes = [8, 8], strides = [1, 1]} : vector<8x32xbf16> to vector<8x8xbf16>
    %cst_131 = arith.constant dense<0.000000e+00> : vector<8x8xf32>
    %360 = tpu.matmul %358, %359, %cst_131 {dimension_numbers = #tpu.dot_dimension_numbers<[1], [1], [0], [0], [0, 0, 1, 0], [], []>} : vector<8x8xbf16>, vector<8x8xbf16>, vector<8x8xf32> -> vector<8x8xf32>
    %cst_132 = arith.constant 0.176776692 : f32
    %361 = vector.broadcast %cst_132 : f32 to vector<8x8xf32>
    %362 = arith.mulf %360, %361 : vector<8x8xf32>
    %cst_133 = arith.constant dense<0xFF800000> : vector<8xf32>
    %363 = vector.multi_reduction <maximumf>, %362, %cst_133 [1] : vector<8x8xf32> to vector<8xf32>
    %364 = vector.shape_cast %363 : vector<8xf32> to vector<8x1xf32>
    %365 = vector.broadcast %364 : vector<8x1xf32> to vector<8x8xf32>
    %366 = arith.subf %362, %365 : vector<8x8xf32>
    %367 = math.exp %366 : vector<8x8xf32>
    %cst_134 = arith.constant dense<0.000000e+00> : vector<8xf32>
    %368 = vector.multi_reduction <add>, %367, %cst_134 [1] : vector<8x8xf32> to vector<8xf32>
    %369 = vector.shape_cast %368 : vector<8xf32> to vector<8x1xf32>
    %370 = tpu.reciprocal %369 {approx = true} : vector<8x1xf32> -> vector<8x1xf32>
    %371 = vector.broadcast %370 : vector<8x1xf32> to vector<8x8xf32>
    %372 = arith.mulf %367, %371 : vector<8x8xf32>
    %373 = arith.truncf %372 : vector<8x8xf32> to vector<8x8xbf16>
    %374 = vector.extract_strided_slice %291 {offsets = [0, 24], sizes = [8, 8], strides = [1, 1]} : vector<8x32xbf16> to vector<8x8xbf16>
    %cst_135 = arith.constant dense<0.000000e+00> : vector<8x8xf32>
    %375 = tpu.matmul %373, %374, %cst_135 {dimension_numbers = #tpu.dot_dimension_numbers<[1], [0], [0], [1], [0, 0, 1, 1], [], []>} : vector<8x8xbf16>, vector<8x8xbf16>, vector<8x8xf32> -> vector<8x8xf32>
    %376 = vector.extract_strided_slice %293 {offsets = [24, 0], sizes = [8, 32], strides = [1, 1]} : vector<32x32xf32> to vector<8x32xf32>
    %cst_136 = arith.constant dense<0.000000e+00> : vector<8x32xf32>
    %377 = tpu.matmul %375, %376, %cst_136 {dimension_numbers = #tpu.dot_dimension_numbers<[1], [0], [0], [1], [0, 0, 1, 1], [], []>} : vector<8x8xf32>, vector<8x32xf32>, vector<8x32xf32> -> vector<8x32xf32>
    %378 = arith.addf %357, %377 : vector<8x32xf32>
    %c0_137 = arith.constant 0 : index
    %c0_138 = arith.constant 0 : index
    %379 = vector.load %arg23[%c0_137, %c0_138] : memref<1x32xf32, #tpu.memory_space<vmem>>, vector<1x32xf32>
    %380 = vector.broadcast %379 : vector<1x32xf32> to vector<8x32xf32>
    %381 = arith.addf %378, %380 : vector<8x32xf32>
    %382 = arith.addf %274, %381 : vector<8x32xf32>
    %c0_139 = arith.constant 0 : index
    %c0_140 = arith.constant 0 : index
    %383 = vector.load %arg24[%c0_139, %c0_140] : memref<1x32xf32, #tpu.memory_space<vmem>>, vector<1x32xf32>
    %c0_141 = arith.constant 0 : index
    %c0_142 = arith.constant 0 : index
    %384 = vector.load %arg25[%c0_141, %c0_142] : memref<1x32xf32, #tpu.memory_space<vmem>>, vector<1x32xf32>
    %cst_143 = arith.constant dense<0.000000e+00> : vector<8xf32>
    %385 = vector.multi_reduction <add>, %382, %cst_143 [1] : vector<8x32xf32> to vector<8xf32>
    %386 = vector.shape_cast %385 : vector<8xf32> to vector<8x1xf32>
    %cst_144 = arith.constant 3.200000e+01 : f32
    %387 = vector.broadcast %cst_144 : f32 to vector<8x1xf32>
    %388 = arith.divf %386, %387 : vector<8x1xf32>
    %389 = vector.broadcast %388 : vector<8x1xf32> to vector<8x32xf32>
    %390 = arith.subf %382, %389 : vector<8x32xf32>
    %391 = arith.mulf %390, %390 : vector<8x32xf32>
    %cst_145 = arith.constant dense<0.000000e+00> : vector<8xf32>
    %392 = vector.multi_reduction <add>, %391, %cst_145 [1] : vector<8x32xf32> to vector<8xf32>
    %393 = vector.shape_cast %392 : vector<8xf32> to vector<8x1xf32>
    %cst_146 = arith.constant 3.200000e+01 : f32
    %394 = vector.broadcast %cst_146 : f32 to vector<8x1xf32>
    %395 = arith.divf %393, %394 : vector<8x1xf32>
    %cst_147 = arith.constant 9.99999974E-6 : f32
    %396 = vector.broadcast %cst_147 : f32 to vector<8x1xf32>
    %397 = arith.addf %395, %396 : vector<8x1xf32>
    %398 = math.rsqrt %397 : vector<8x1xf32>
    %399 = vector.broadcast %398 : vector<8x1xf32> to vector<8x32xf32>
    %400 = arith.mulf %390, %399 : vector<8x32xf32>
    %401 = vector.broadcast %383 : vector<1x32xf32> to vector<8x32xf32>
    %402 = arith.mulf %400, %401 : vector<8x32xf32>
    %403 = vector.broadcast %384 : vector<1x32xf32> to vector<8x32xf32>
    %404 = arith.addf %402, %403 : vector<8x32xf32>
    %405 = arith.truncf %404 : vector<8x32xf32> to vector<8x32xbf16>
    %c0_148 = arith.constant 0 : index
    %c0_149 = arith.constant 0 : index
    %406 = vector.load %arg26[%c0_148, %c0_149] : memref<32x64xbf16, #tpu.memory_space<vmem>>, vector<32x64xbf16>
    %cst_150 = arith.constant dense<0.000000e+00> : vector<8x64xf32>
    %407 = tpu.matmul %405, %406, %cst_150 {dimension_numbers = #tpu.dot_dimension_numbers<[1], [0], [0], [1], [0, 0, 1, 1], [], []>} : vector<8x32xbf16>, vector<32x64xbf16>, vector<8x64xf32> -> vector<8x64xf32>
    %c0_151 = arith.constant 0 : index
    %c0_152 = arith.constant 0 : index
    %408 = vector.load %arg27[%c0_151, %c0_152] : memref<1x64xf32, #tpu.memory_space<vmem>>, vector<1x64xf32>
    %409 = vector.broadcast %408 : vector<1x64xf32> to vector<8x64xf32>
    %410 = arith.addf %407, %409 : vector<8x64xf32>
    %cst_153 = arith.constant 0.000000e+00 : f32
    %411 = vector.broadcast %cst_153 : f32 to vector<8x64xf32>
    %412 = arith.cmpf oge, %410, %411 : vector<8x64xf32>
    %cst_154 = arith.constant 0.00999999977 : f32
    %413 = vector.broadcast %cst_154 : f32 to vector<8x64xf32>
    %414 = arith.mulf %413, %410 : vector<8x64xf32>
    %415 = arith.select %412, %410, %414 : vector<8x64xi1>, vector<8x64xf32>
    %416 = arith.truncf %415 : vector<8x64xf32> to vector<8x64xbf16>
    %c0_155 = arith.constant 0 : index
    %c0_156 = arith.constant 0 : index
    %417 = vector.load %arg28[%c0_155, %c0_156] : memref<64x32xbf16, #tpu.memory_space<vmem>>, vector<64x32xbf16>
    %cst_157 = arith.constant dense<0.000000e+00> : vector<8x32xf32>
    %418 = tpu.matmul %416, %417, %cst_157 {dimension_numbers = #tpu.dot_dimension_numbers<[1], [0], [0], [1], [0, 0, 1, 1], [], []>} : vector<8x64xbf16>, vector<64x32xbf16>, vector<8x32xf32> -> vector<8x32xf32>
    %c0_158 = arith.constant 0 : index
    %c0_159 = arith.constant 0 : index
    %419 = vector.load %arg29[%c0_158, %c0_159] : memref<1x32xf32, #tpu.memory_space<vmem>>, vector<1x32xf32>
    %420 = vector.broadcast %419 : vector<1x32xf32> to vector<8x32xf32>
    %421 = arith.addf %418, %420 : vector<8x32xf32>
    %c0_160 = arith.constant 0 : index
    %c0_161 = arith.constant 0 : index
    %422 = vector.load %arg30[%c0_160, %c0_161] : memref<1x32xf32, #tpu.memory_space<vmem>>, vector<1x32xf32>
    %423 = vector.broadcast %422 : vector<1x32xf32> to vector<8x32xf32>
    %424 = arith.mulf %404, %423 : vector<8x32xf32>
    %cst_162 = arith.constant dense<0.000000e+00> : vector<8xf32>
    %425 = vector.multi_reduction <add>, %424, %cst_162 [1] : vector<8x32xf32> to vector<8xf32>
    %426 = vector.shape_cast %425 : vector<8xf32> to vector<8x1xf32>
    %c0_163 = arith.constant 0 : index
    %c0_164 = arith.constant 0 : index
    %427 = vector.load %arg31[%c0_163, %c0_164] : memref<1x1xf32, #tpu.memory_space<vmem>>, vector<1x1xf32>
    %428 = vector.broadcast %427 : vector<1x1xf32> to vector<8x1xf32>
    %429 = arith.addf %426, %428 : vector<8x1xf32>
    %cst_165 = arith.constant 0.000000e+00 : f32
    %430 = vector.broadcast %cst_165 : f32 to vector<8x1xf32>
    %431 = arith.cmpf oge, %429, %430 : vector<8x1xf32>
    %cst_166 = arith.constant 0.00999999977 : f32
    %432 = vector.broadcast %cst_166 : f32 to vector<8x1xf32>
    %433 = arith.mulf %432, %429 : vector<8x1xf32>
    %434 = arith.select %431, %429, %433 : vector<8x1xi1>, vector<8x1xf32>
    %c0_167 = arith.constant 0 : index
    %c0_168 = arith.constant 0 : index
    %435 = vector.load %arg32[%c0_167, %c0_168] : memref<1x32xf32, #tpu.memory_space<vmem>>, vector<1x32xf32>
    %436 = vector.broadcast %434 : vector<8x1xf32> to vector<8x32xf32>
    %437 = vector.broadcast %435 : vector<1x32xf32> to vector<8x32xf32>
    %438 = arith.mulf %436, %437 : vector<8x32xf32>
    %c0_169 = arith.constant 0 : index
    %c0_170 = arith.constant 0 : index
    %439 = vector.load %arg33[%c0_169, %c0_170] : memref<1x32xf32, #tpu.memory_space<vmem>>, vector<1x32xf32>
    %440 = vector.broadcast %439 : vector<1x32xf32> to vector<8x32xf32>
    %441 = arith.addf %438, %440 : vector<8x32xf32>
    %cst_171 = arith.constant 0.000000e+00 : f32
    %442 = vector.broadcast %cst_171 : f32 to vector<8x32xf32>
    %443 = arith.subf %442, %441 : vector<8x32xf32>
    %444 = math.exp %443 : vector<8x32xf32>
    %cst_172 = arith.constant 1.000000e+00 : f32
    %445 = vector.broadcast %cst_172 : f32 to vector<8x32xf32>
    %446 = arith.addf %445, %444 : vector<8x32xf32>
    %cst_173 = arith.constant 1.000000e+00 : f32
    %447 = vector.broadcast %cst_173 : f32 to vector<8x32xf32>
    %448 = arith.divf %447, %446 : vector<8x32xf32>
    %449 = arith.mulf %404, %448 : vector<8x32xf32>
    %cst_174 = arith.constant 1.000000e+00 : f32
    %450 = vector.broadcast %cst_174 : f32 to vector<8x32xf32>
    %451 = arith.subf %450, %448 : vector<8x32xf32>
    %452 = arith.mulf %421, %451 : vector<8x32xf32>
    %453 = arith.addf %449, %452 : vector<8x32xf32>
    %c0_175 = arith.constant 0 : index
    %c0_176 = arith.constant 0 : index
    %454 = vector.load %arg34[%c0_175, %c0_176] : memref<1x32xf32, #tpu.memory_space<vmem>>, vector<1x32xf32>
    %c0_177 = arith.constant 0 : index
    %c0_178 = arith.constant 0 : index
    %455 = vector.load %arg35[%c0_177, %c0_178] : memref<1x32xf32, #tpu.memory_space<vmem>>, vector<1x32xf32>
    %cst_179 = arith.constant dense<0.000000e+00> : vector<8xf32>
    %456 = vector.multi_reduction <add>, %453, %cst_179 [1] : vector<8x32xf32> to vector<8xf32>
    %457 = vector.shape_cast %456 : vector<8xf32> to vector<8x1xf32>
    %cst_180 = arith.constant 3.200000e+01 : f32
    %458 = vector.broadcast %cst_180 : f32 to vector<8x1xf32>
    %459 = arith.divf %457, %458 : vector<8x1xf32>
    %460 = vector.broadcast %459 : vector<8x1xf32> to vector<8x32xf32>
    %461 = arith.subf %453, %460 : vector<8x32xf32>
    %462 = arith.mulf %461, %461 : vector<8x32xf32>
    %cst_181 = arith.constant dense<0.000000e+00> : vector<8xf32>
    %463 = vector.multi_reduction <add>, %462, %cst_181 [1] : vector<8x32xf32> to vector<8xf32>
    %464 = vector.shape_cast %463 : vector<8xf32> to vector<8x1xf32>
    %cst_182 = arith.constant 3.200000e+01 : f32
    %465 = vector.broadcast %cst_182 : f32 to vector<8x1xf32>
    %466 = arith.divf %464, %465 : vector<8x1xf32>
    %cst_183 = arith.constant 9.99999974E-6 : f32
    %467 = vector.broadcast %cst_183 : f32 to vector<8x1xf32>
    %468 = arith.addf %466, %467 : vector<8x1xf32>
    %469 = math.rsqrt %468 : vector<8x1xf32>
    %470 = vector.broadcast %469 : vector<8x1xf32> to vector<8x32xf32>
    %471 = arith.mulf %461, %470 : vector<8x32xf32>
    %472 = vector.broadcast %454 : vector<1x32xf32> to vector<8x32xf32>
    %473 = arith.mulf %471, %472 : vector<8x32xf32>
    %474 = vector.broadcast %455 : vector<1x32xf32> to vector<8x32xf32>
    %475 = arith.addf %473, %474 : vector<8x32xf32>
    %c0_184 = arith.constant 0 : index
    %c0_185 = arith.constant 0 : index
    %c0_186 = arith.constant 0 : index
    %476 = vector.load %arg36[%c0_184, %c0_185, %c0_186] : memref<1x8x32xf32, #tpu.memory_space<vmem>>, vector<1x8x32xf32>
    %477 = vector.shape_cast %476 : vector<1x8x32xf32> to vector<8x32xf32>
    %478 = vector.shape_cast %475 : vector<8x32xf32> to vector<1x8x32xf32>
    tpu.vector_store %arg36[%c0_184, %c0_185, %c0_186], %478 {strides = array<i32>} : memref<1x8x32xf32, #tpu.memory_space<vmem>>, vector<1x8x32xf32>,
    return
  }
  func.func @transform_0(%arg0: i32) -> (i32, i32, i32) {
    %c0_i32 = arith.constant 0 : i32
    %c0_i32_0 = arith.constant 0 : i32
    %c0_i32_1 = arith.constant 0 : i32
    %c0_i32_2 = arith.constant 0 : i32
    return %c0_i32, %c0_i32_0, %c0_i32_1 : i32, i32, i32
  }
  func.func @transform_1(%arg0: i32) -> (i32, i32, i32) {
    %c0_i32 = arith.constant 0 : i32
    %c0_i32_0 = arith.constant 0 : i32
    %c0_i32_1 = arith.constant 0 : i32
    return %arg0, %c0_i32, %c0_i32_0 : i32, i32, i32
  }
  func.func @transform_2(%arg0: i32) -> (i32, i32, i32) {
    %c0_i32 = arith.constant 0 : i32
    %c0_i32_0 = arith.constant 0 : i32
    %c0_i32_1 = arith.constant 0 : i32
    return %arg0, %c0_i32, %c0_i32_0 : i32, i32, i32
  }
  func.func @transform_3(%arg0: i32) -> (i32, i32) {
    %c0_i32 = arith.constant 0 : i32
    %c0_i32_0 = arith.constant 0 : i32
    %c0_i32_1 = arith.constant 0 : i32
    return %c0_i32, %c0_i32_0 : i32, i32
  }
  func.func @transform_4(%arg0: i32) -> (i32, i32) {
    %c0_i32 = arith.constant 0 : i32
    %c0_i32_0 = arith.constant 0 : i32
    %c0_i32_1 = arith.constant 0 : i32
    return %c0_i32, %c0_i32_0 : i32, i32
  }
  func.func @transform_5(%arg0: i32) -> (i32, i32) {
    %c0_i32 = arith.constant 0 : i32
    %c0_i32_0 = arith.constant 0 : i32
    %c0_i32_1 = arith.constant 0 : i32
    return %c0_i32, %c0_i32_0 : i32, i32
  }
  func.func @transform_6(%arg0: i32) -> (i32, i32) {
    %c0_i32 = arith.constant 0 : i32
    %c0_i32_0 = arith.constant 0 : i32
    %c0_i32_1 = arith.constant 0 : i32
    return %c0_i32, %c0_i32_0 : i32, i32
  }
  func.func @transform_7(%arg0: i32) -> (i32, i32) {
    %c0_i32 = arith.constant 0 : i32
    %c0_i32_0 = arith.constant 0 : i32
    %c0_i32_1 = arith.constant 0 : i32
    return %c0_i32, %c0_i32_0 : i32, i32
  }
  func.func @transform_8(%arg0: i32) -> (i32, i32) {
    %c0_i32 = arith.constant 0 : i32
    %c0_i32_0 = arith.constant 0 : i32
    %c0_i32_1 = arith.constant 0 : i32
    return %c0_i32, %c0_i32_0 : i32, i32
  }
  func.func @transform_9(%arg0: i32) -> (i32, i32) {
    %c0_i32 = arith.constant 0 : i32
    %c0_i32_0 = arith.constant 0 : i32
    %c0_i32_1 = arith.constant 0 : i32
    return %c0_i32, %c0_i32_0 : i32, i32
  }
  func.func @transform_10(%arg0: i32) -> (i32, i32) {
    %c0_i32 = arith.constant 0 : i32
    %c0_i32_0 = arith.constant 0 : i32
    %c0_i32_1 = arith.constant 0 : i32
    return %c0_i32, %c0_i32_0 : i32, i32
  }
  func.func @transform_11(%arg0: i32) -> (i32, i32) {
    %c0_i32 = arith.constant 0 : i32
    %c0_i32_0 = arith.constant 0 : i32
    %c0_i32_1 = arith.constant 0 : i32
    return %c0_i32, %c0_i32_0 : i32, i32
  }
  func.func @transform_12(%arg0: i32) -> (i32, i32) {
    %c0_i32 = arith.constant 0 : i32
    %c0_i32_0 = arith.constant 0 : i32
    %c0_i32_1 = arith.constant 0 : i32
    return %c0_i32, %c0_i32_0 : i32, i32
  }
  func.func @transform_13(%arg0: i32) -> (i32, i32) {
    %c0_i32 = arith.constant 0 : i32
    %c0_i32_0 = arith.constant 0 : i32
    %c0_i32_1 = arith.constant 0 : i32
    return %c0_i32, %c0_i32_0 : i32, i32
  }
  func.func @transform_14(%arg0: i32) -> (i32, i32) {
    %c0_i32 = arith.constant 0 : i32
    %c0_i32_0 = arith.constant 0 : i32
    %c0_i32_1 = arith.constant 0 : i32
    return %c0_i32, %c0_i32_0 : i32, i32
  }
  func.func @transform_15(%arg0: i32) -> (i32, i32) {
    %c0_i32 = arith.constant 0 : i32
    %c0_i32_0 = arith.constant 0 : i32
    %c0_i32_1 = arith.constant 0 : i32
    return %c0_i32, %c0_i32_0 : i32, i32
  }
  func.func @transform_16(%arg0: i32) -> (i32, i32) {
    %c0_i32 = arith.constant 0 : i32
    %c0_i32_0 = arith.constant 0 : i32
    %c0_i32_1 = arith.constant 0 : i32
    return %c0_i32, %c0_i32_0 : i32, i32
  }
  func.func @transform_17(%arg0: i32) -> (i32, i32) {
    %c0_i32 = arith.constant 0 : i32
    %c0_i32_0 = arith.constant 0 : i32
    %c0_i32_1 = arith.constant 0 : i32
    return %c0_i32, %c0_i32_0 : i32, i32
  }
  func.func @transform_18(%arg0: i32) -> (i32, i32) {
    %c0_i32 = arith.constant 0 : i32
    %c0_i32_0 = arith.constant 0 : i32
    %c0_i32_1 = arith.constant 0 : i32
    return %c0_i32, %c0_i32_0 : i32, i32
  }
  func.func @transform_19(%arg0: i32) -> (i32, i32) {
    %c0_i32 = arith.constant 0 : i32
    %c0_i32_0 = arith.constant 0 : i32
    %c0_i32_1 = arith.constant 0 : i32
    return %c0_i32, %c0_i32_0 : i32, i32
  }
  func.func @transform_20(%arg0: i32) -> (i32, i32) {
    %c0_i32 = arith.constant 0 : i32
    %c0_i32_0 = arith.constant 0 : i32
    %c0_i32_1 = arith.constant 0 : i32
    return %c0_i32, %c0_i32_0 : i32, i32
  }
  func.func @transform_21(%arg0: i32) -> (i32, i32) {
    %c0_i32 = arith.constant 0 : i32
    %c0_i32_0 = arith.constant 0 : i32
    %c0_i32_1 = arith.constant 0 : i32
    return %c0_i32, %c0_i32_0 : i32, i32
  }
  func.func @transform_22(%arg0: i32) -> (i32, i32) {
    %c0_i32 = arith.constant 0 : i32
    %c0_i32_0 = arith.constant 0 : i32
    %c0_i32_1 = arith.constant 0 : i32
    return %c0_i32, %c0_i32_0 : i32, i32
  }
  func.func @transform_23(%arg0: i32) -> (i32, i32) {
    %c0_i32 = arith.constant 0 : i32
    %c0_i32_0 = arith.constant 0 : i32
    %c0_i32_1 = arith.constant 0 : i32
    return %c0_i32, %c0_i32_0 : i32, i32
  }
  func.func @transform_24(%arg0: i32) -> (i32, i32) {
    %c0_i32 = arith.constant 0 : i32
    %c0_i32_0 = arith.constant 0 : i32
    %c0_i32_1 = arith.constant 0 : i32
    return %c0_i32, %c0_i32_0 : i32, i32
  }
  func.func @transform_25(%arg0: i32) -> (i32, i32) {
    %c0_i32 = arith.constant 0 : i32
    %c0_i32_0 = arith.constant 0 : i32
    %c0_i32_1 = arith.constant 0 : i32
    return %c0_i32, %c0_i32_0 : i32, i32
  }
  func.func @transform_26(%arg0: i32) -> (i32, i32) {
    %c0_i32 = arith.constant 0 : i32
    %c0_i32_0 = arith.constant 0 : i32
    %c0_i32_1 = arith.constant 0 : i32
    return %c0_i32, %c0_i32_0 : i32, i32
  }
  func.func @transform_27(%arg0: i32) -> (i32, i32) {
    %c0_i32 = arith.constant 0 : i32
    %c0_i32_0 = arith.constant 0 : i32
    %c0_i32_1 = arith.constant 0 : i32
    return %c0_i32, %c0_i32_0 : i32, i32
  }
  func.func @transform_28(%arg0: i32) -> (i32, i32) {
    %c0_i32 = arith.constant 0 : i32
    %c0_i32_0 = arith.constant 0 : i32
    %c0_i32_1 = arith.constant 0 : i32
    return %c0_i32, %c0_i32_0 : i32, i32
  }
  func.func @transform_29(%arg0: i32) -> (i32, i32) {
    %c0_i32 = arith.constant 0 : i32
    %c0_i32_0 = arith.constant 0 : i32
    %c0_i32_1 = arith.constant 0 : i32
    return %c0_i32, %c0_i32_0 : i32, i32
  }
  func.func @transform_30(%arg0: i32) -> (i32, i32) {
    %c0_i32 = arith.constant 0 : i32
    %c0_i32_0 = arith.constant 0 : i32
    %c0_i32_1 = arith.constant 0 : i32
    return %c0_i32, %c0_i32_0 : i32, i32
  }
  func.func @transform_31(%arg0: i32) -> (i32, i32) {
    %c0_i32 = arith.constant 0 : i32
    %c0_i32_0 = arith.constant 0 : i32
    %c0_i32_1 = arith.constant 0 : i32
    return %c0_i32, %c0_i32_0 : i32, i32
  }
  func.func @transform_32(%arg0: i32) -> (i32, i32) {
    %c0_i32 = arith.constant 0 : i32
    %c0_i32_0 = arith.constant 0 : i32
    %c0_i32_1 = arith.constant 0 : i32
    return %c0_i32, %c0_i32_0 : i32, i32
  }
  func.func @transform_33(%arg0: i32) -> (i32, i32) {
    %c0_i32 = arith.constant 0 : i32
    %c0_i32_0 = arith.constant 0 : i32
    %c0_i32_1 = arith.constant 0 : i32
    return %c0_i32, %c0_i32_0 : i32, i32
  }
  func.func @transform_34(%arg0: i32) -> (i32, i32) {
    %c0_i32 = arith.constant 0 : i32
    %c0_i32_0 = arith.constant 0 : i32
    %c0_i32_1 = arith.constant 0 : i32
    return %c0_i32, %c0_i32_0 : i32, i32
  }
  func.func @transform_35(%arg0: i32) -> (i32, i32, i32) {
    %c0_i32 = arith.constant 0 : i32
    %c0_i32_0 = arith.constant 0 : i32
    %c0_i32_1 = arith.constant 0 : i32
    return %arg0, %c0_i32, %c0_i32_0 : i32, i32, i32
  }
}

module attributes {stable_mosaic.version = 11 : i64} {
  func.func @_decoder_layer_kernel(%arg0: i32, %arg1: memref<1x8x32xf32, #tpu.memory_space<vmem>>, %arg2: memref<1x8x32xf32, #tpu.memory_space<vmem>>, %arg3: memref<1x8x32xf32, #tpu.memory_space<vmem>>, %arg4: memref<32x96xbf16, #tpu.memory_space<vmem>>, %arg5: memref<1x96xf32, #tpu.memory_space<vmem>>, %arg6: memref<32x32xbf16, #tpu.memory_space<vmem>>, %arg7: memref<1x32xf32, #tpu.memory_space<vmem>>, %arg8: memref<1x32xf32, #tpu.memory_space<vmem>>, %arg9: memref<1x32xf32, #tpu.memory_space<vmem>>, %arg10: memref<32x64xbf16, #tpu.memory_space<vmem>>, %arg11: memref<1x64xf32, #tpu.memory_space<vmem>>, %arg12: memref<32x32xbf16, #tpu.memory_space<vmem>>, %arg13: memref<1x32xf32, #tpu.memory_space<vmem>>, %arg14: memref<32x32xbf16, #tpu.memory_space<vmem>>, %arg15: memref<1x32xf32, #tpu.memory_space<vmem>>, %arg16: memref<1x32xf32, #tpu.memory_space<vmem>>, %arg17: memref<1x32xf32, #tpu.memory_space<vmem>>, %arg18: memref<32x32xbf16, #tpu.memory_space<vmem>>, %arg19: memref<1x32xf32, #tpu.memory_space<vmem>>, %arg20: memref<32x64xbf16, #tpu.memory_space<vmem>>, %arg21: memref<1x64xf32, #tpu.memory_space<vmem>>, %arg22: memref<32x32xbf16, #tpu.memory_space<vmem>>, %arg23: memref<1x32xf32, #tpu.memory_space<vmem>>, %arg24: memref<1x32xf32, #tpu.memory_space<vmem>>, %arg25: memref<1x32xf32, #tpu.memory_space<vmem>>, %arg26: memref<32x64xbf16, #tpu.memory_space<vmem>>, %arg27: memref<1x64xf32, #tpu.memory_space<vmem>>, %arg28: memref<64x32xbf16, #tpu.memory_space<vmem>>, %arg29: memref<1x32xf32, #tpu.memory_space<vmem>>, %arg30: memref<1x32xf32, #tpu.memory_space<vmem>>, %arg31: memref<1x1xf32, #tpu.memory_space<vmem>>, %arg32: memref<1x32xf32, #tpu.memory_space<vmem>>, %arg33: memref<1x32xf32, #tpu.memory_space<vmem>>, %arg34: memref<1x32xf32, #tpu.memory_space<vmem>>, %arg35: memref<1x32xf32, #tpu.memory_space<vmem>>, %arg36: memref<1x8x32xf32, #tpu.memory_space<vmem>>) attributes {dimension_semantics = [#tpu.dimension_semantics<parallel>], iteration_bounds = array<i64: 2>, scalar_prefetch = 0 : i64, scratch_operands = 0 : i64, tpu.core_type = #tpu.core_type<tc>, window_params = [{pipeline_mode = #tpu.pipeline_mode<synchronous>, transform_indices = @transform_0, window_bounds = array<i64: 1, 8, 32>}, {transform_indices = @transform_1, window_bounds = array<i64: 1, 8, 32>}, {transform_indices = @transform_2, window_bounds = array<i64: 1, 8, 32>}, {pipeline_mode = #tpu.pipeline_mode<synchronous>, transform_indices = @transform_3, window_bounds = array<i64: 32, 96>}, {pipeline_mode = #tpu.pipeline_mode<synchronous>, transform_indices = @transform_4, window_bounds = array<i64: 1, 96>}, {pipeline_mode = #tpu.pipeline_mode<synchronous>, transform_indices = @transform_5, window_bounds = array<i64: 32, 32>}, {pipeline_mode = #tpu.pipeline_mode<synchronous>, transform_indices = @transform_6, window_bounds = array<i64: 1, 32>}, {pipeline_mode = #tpu.pipeline_mode<synchronous>, transform_indices = @transform_7, window_bounds = array<i64: 1, 32>}, {pipeline_mode = #tpu.pipeline_mode<synchronous>, transform_indices = @transform_8, window_bounds = array<i64: 1, 32>}, {pipeline_mode = #tpu.pipeline_mode<synchronous>, transform_indices = @transform_9, window_bounds = array<i64: 32, 64>}, {pipeline_mode = #tpu.pipeline_mode<synchronous>, transform_indices = @transform_10, window_bounds = array<i64: 1, 64>}, {pipeline_mode = #tpu.pipeline_mode<synchronous>, transform_indices = @transform_11, window_bounds = array<i64: 32, 32>}, {pipeline_mode = #tpu.pipeline_mode<synchronous>, transform_indices = @transform_12, window_bounds = array<i64: 1, 32>}, {pipeline_mode = #tpu.pipeline_mode<synchronous>, transform_indices = @transform_13, window_bounds = array<i64: 32, 32>}, {pipeline_mode = #tpu.pipeline_mode<synchronous>, transform_indices = @transform_14, window_bounds = array<i64: 1, 32>}, {pipeline_mode = #tpu.pipeline_mode<synchronous>, transform_indices = @transform_15, window_bounds = array<i64: 1, 32>}, {pipeline_mode = #tpu.pipeline_mode<synchronous>, transform_indices = @transform_16, window_bounds = array<i64: 1, 32>}, {pipeline_mode = #tpu.pipeline_mode<synchronous>, transform_indices = @transform_17, window_bounds = array<i64: 32, 32>}, {pipeline_mode = #tpu.pipeline_mode<synchronous>, transform_indices = @transform_18, window_bounds = array<i64: 1, 32>}, {pipeline_mode = #tpu.pipeline_mode<synchronous>, transform_indices = @transform_19, window_bounds = array<i64: 32, 64>}, {pipeline_mode = #tpu.pipeline_mode<synchronous>, transform_indices = @transform_20, window_bounds = array<i64: 1, 64>}, {pipeline_mode = #tpu.pipeline_mode<synchronous>, transform_indices = @transform_21, window_bounds = array<i64: 32, 32>}, {pipeline_mode = #tpu.pipeline_mode<synchronous>, transform_indices = @transform_22, window_bounds = array<i64: 1, 32>}, {pipeline_mode = #tpu.pipeline_mode<synchronous>, transform_indices = @transform_23, window_bounds = array<i64: 1, 32>}, {pipeline_mode = #tpu.pipeline_mode<synchronous>, transform_indices = @transform_24, window_bounds = array<i64: 1, 32>}, {pipeline_mode = #tpu.pipeline_mode<synchronous>, transform_indices = @transform_25, window_bounds = array<i64: 32, 64>}, {pipeline_mode = #tpu.pipeline_mode<synchronous>, transform_indices = @transform_26, window_bounds = array<i64: 1, 64>}, {pipeline_mode = #tpu.pipeline_mode<synchronous>, transform_indices = @transform_27, window_bounds = array<i64: 64, 32>}, {pipeline_mode = #tpu.pipeline_mode<synchronous>, transform_indices = @transform_28, window_bounds = array<i64: 1, 32>}, {pipeline_mode = #tpu.pipeline_mode<synchronous>, transform_indices = @transform_29, window_bounds = array<i64: 1, 32>}, {pipeline_mode = #tpu.pipeline_mode<synchronous>, transform_indices = @transform_30, window_bounds = array<i64: 1, 1>}, {pipeline_mode = #tpu.pipeline_mode<synchronous>, transform_indices = @transform_31, window_bounds = array<i64: 1, 32>}, {pipeline_mode = #tpu.pipeline_mode<synchronous>, transform_indices = @transform_32, window_bounds = array<i64: 1, 32>}, {pipeline_mode = #tpu.pipeline_mode<synchronous>, transform_indices = @transform_33, window_bounds = array<i64: 1, 32>}, {pipeline_mode = #tpu.pipeline_mode<synchronous>, transform_indices = @transform_34, window_bounds = array<i64: 1, 32>}, {transform_indices = @transform_35, window_bounds = array<i64: 1, 8, 32>}]} {
    %c0 = arith.constant 0 : index
    %c0_0 = arith.constant 0 : index
    %c0_1 = arith.constant 0 : index
    %0 = vector.load %arg2[%c0, %c0_0, %c0_1] : memref<1x8x32xf32, #tpu.memory_space<vmem>>, vector<1x8x32xf32>
    %1 = vector.shape_cast %0 : vector<1x8x32xf32> to vector<8x32xf32>
    %c0_2 = arith.constant 0 : index
    %c0_3 = arith.constant 0 : index
    %c0_4 = arith.constant 0 : index
    %2 = vector.load %arg1[%c0_2, %c0_3, %c0_4] : memref<1x8x32xf32, #tpu.memory_space<vmem>>, vector<1x8x32xf32>
    %3 = vector.shape_cast %2 : vector<1x8x32xf32> to vector<8x32xf32>
    %c0_5 = arith.constant 0 : index
    %c0_6 = arith.constant 0 : index
    %c0_7 = arith.constant 0 : index
    %4 = vector.load %arg3[%c0_5, %c0_6, %c0_7] : memref<1x8x32xf32, #tpu.memory_space<vmem>>, vector<1x8x32xf32>
    %5 = vector.shape_cast %4 : vector<1x8x32xf32> to vector<8x32xf32>
    %6 = tpu.iota {dimensions = array<i32: 0>} : vector<8x8xi32>
    %7 = tpu.iota {dimensions = array<i32: 1>} : vector<8x8xi32>
    %8 = arith.cmpi sgt, %7, %6 : vector<8x8xi32>
    %cst = arith.constant 0xCD28965F : f32
    %cst_8 = arith.constant 0.000000e+00 : f32
    %9 = vector.broadcast %cst : f32 to vector<8x8xf32>
    %10 = vector.broadcast %cst_8 : f32 to vector<8x8xf32>
    %11 = arith.select %8, %9, %10 : vector<8x8xi1>, vector<8x8xf32>
    %12 = arith.truncf %1 : vector<8x32xf32> to vector<8x32xbf16>
    %c0_9 = arith.constant 0 : index
    %c0_10 = arith.constant 0 : index
    %13 = vector.load %arg4[%c0_9, %c0_10] : memref<32x96xbf16, #tpu.memory_space<vmem>>, vector<32x96xbf16>
    %cst_11 = arith.constant dense<0.000000e+00> : vector<8x96xf32>
    %14 = tpu.matmul %12, %13, %cst_11 {dimension_numbers = #tpu.dot_dimension_numbers<[1], [0], [0], [1], [0, 0, 1, 1], [], []>} : vector<8x32xbf16>, vector<32x96xbf16>, vector<8x96xf32> -> vector<8x96xf32>
    %c0_12 = arith.constant 0 : index
    %c0_13 = arith.constant 0 : index
    %15 = vector.load %arg5[%c0_12, %c0_13] : memref<1x96xf32, #tpu.memory_space<vmem>>, vector<1x96xf32>
    %16 = vector.broadcast %15 : vector<1x96xf32> to vector<8x96xf32>
    %17 = arith.addf %14, %16 : vector<8x96xf32>
    %18 = vector.extract_strided_slice %17 {offsets = [0, 0], sizes = [8, 32], strides = [1, 1]} : vector<8x96xf32> to vector<8x32xf32>
    %19 = vector.extract_strided_slice %17 {offsets = [0, 32], sizes = [8, 32], strides = [1, 1]} : vector<8x96xf32> to vector<8x32xf32>
    %20 = vector.extract_strided_slice %17 {offsets = [0, 64], sizes = [8, 32], strides = [1, 1]} : vector<8x96xf32> to vector<8x32xf32>
    %21 = arith.truncf %18 : vector<8x32xf32> to vector<8x32xbf16>
    %22 = arith.truncf %19 : vector<8x32xf32> to vector<8x32xbf16>
    %23 = arith.truncf %20 : vector<8x32xf32> to vector<8x32xbf16>
    %c0_14 = arith.constant 0 : index
    %c0_15 = arith.constant 0 : index
    %24 = vector.load %arg6[%c0_14, %c0_15] : memref<32x32xbf16, #tpu.memory_space<vmem>>, vector<32x32xbf16>
    %25 = arith.extf %24 : vector<32x32xbf16> to vector<32x32xf32>
    %cst_16 = arith.constant 0.000000e+00 : f32
    %26 = vector.broadcast %cst_16 : f32 to vector<8x32xf32>
    %27 = vector.extract_strided_slice %21 {offsets = [0, 0], sizes = [8, 8], strides = [1, 1]} : vector<8x32xbf16> to vector<8x8xbf16>
    %28 = vector.extract_strided_slice %22 {offsets = [0, 0], sizes = [8, 8], strides = [1, 1]} : vector<8x32xbf16> to vector<8x8xbf16>
    %cst_17 = arith.constant dense<0.000000e+00> : vector<8x8xf32>
    %29 = tpu.matmul %27, %28, %cst_17 {dimension_numbers = #tpu.dot_dimension_numbers<[1], [1], [0], [0], [0, 0, 1, 0], [], []>} : vector<8x8xbf16>, vector<8x8xbf16>, vector<8x8xf32> -> vector<8x8xf32>
    %cst_18 = arith.constant 0.176776692 : f32
    %30 = vector.broadcast %cst_18 : f32 to vector<8x8xf32>
    %31 = arith.mulf %29, %30 : vector<8x8xf32>
    %32 = arith.addf %31, %11 : vector<8x8xf32>
    %cst_19 = arith.constant dense<0xFF800000> : vector<8xf32>
    %33 = vector.multi_reduction <maximumf>, %32, %cst_19 [1] : vector<8x8xf32> to vector<8xf32>
    %34 = vector.shape_cast %33 : vector<8xf32> to vector<8x1xf32>
    %35 = vector.broadcast %34 : vector<8x1xf32> to vector<8x8xf32>
    %36 = arith.subf %32, %35 : vector<8x8xf32>
    %37 = math.exp %36 : vector<8x8xf32>
    %cst_20 = arith.constant dense<0.000000e+00> : vector<8xf32>
    %38 = vector.multi_reduction <add>, %37, %cst_20 [1] : vector<8x8xf32> to vector<8xf32>
    %39 = vector.shape_cast %38 : vector<8xf32> to vector<8x1xf32>
    %40 = tpu.reciprocal %39 {approx = true} : vector<8x1xf32> -> vector<8x1xf32>
    %41 = vector.broadcast %40 : vector<8x1xf32> to vector<8x8xf32>
    %42 = arith.mulf %37, %41 : vector<8x8xf32>
    %43 = arith.truncf %42 : vector<8x8xf32> to vector<8x8xbf16>
    %44 = vector.extract_strided_slice %23 {offsets = [0, 0], sizes = [8, 8], strides = [1, 1]} : vector<8x32xbf16> to vector<8x8xbf16>
    %cst_21 = arith.constant dense<0.000000e+00> : vector<8x8xf32>
    %45 = tpu.matmul %43, %44, %cst_21 {dimension_numbers = #tpu.dot_dimension_numbers<[1], [0], [0], [1], [0, 0, 1, 1], [], []>} : vector<8x8xbf16>, vector<8x8xbf16>, vector<8x8xf32> -> vector<8x8xf32>
    %46 = vector.extract_strided_slice %25 {offsets = [0, 0], sizes = [8, 32], strides = [1, 1]} : vector<32x32xf32> to vector<8x32xf32>
    %cst_22 = arith.constant dense<0.000000e+00> : vector<8x32xf32>
    %47 = tpu.matmul %45, %46, %cst_22 {dimension_numbers = #tpu.dot_dimension_numbers<[1], [0], [0], [1], [0, 0, 1, 1], [], []>} : vector<8x8xf32>, vector<8x32xf32>, vector<8x32xf32> -> vector<8x32xf32>
    %48 = arith.addf %26, %47 : vector<8x32xf32>
    %49 = vector.extract_strided_slice %21 {offsets = [0, 8], sizes = [8, 8], strides = [1, 1]} : vector<8x32xbf16> to vector<8x8xbf16>
    %50 = vector.extract_strided_slice %22 {offsets = [0, 8], sizes = [8, 8], strides = [1, 1]} : vector<8x32xbf16> to vector<8x8xbf16>
    %cst_23 = arith.constant dense<0.000000e+00> : vector<8x8xf32>
    %51 = tpu.matmul %49, %50, %cst_23 {dimension_numbers = #tpu.dot_dimension_numbers<[1], [1], [0], [0], [0, 0, 1, 0], [], []>} : vector<8x8xbf16>, vector<8x8xbf16>, vector<8x8xf32> -> vector<8x8xf32>
    %cst_24 = arith.constant 0.176776692 : f32
    %52 = vector.broadcast %cst_24 : f32 to vector<8x8xf32>
    %53 = arith.mulf %51, %52 : vector<8x8xf32>
    %54 = arith.addf %53, %11 : vector<8x8xf32>
    %cst_25 = arith.constant dense<0xFF800000> : vector<8xf32>
    %55 = vector.multi_reduction <maximumf>, %54, %cst_25 [1] : vector<8x8xf32> to vector<8xf32>
    %56 = vector.shape_cast %55 : vector<8xf32> to vector<8x1xf32>
    %57 = vector.broadcast %56 : vector<8x1xf32> to vector<8x8xf32>
    %58 = arith.subf %54, %57 : vector<8x8xf32>
    %59 = math.exp %58 : vector<8x8xf32>
    %cst_26 = arith.constant dense<0.000000e+00> : vector<8xf32>
    %60 = vector.multi_reduction <add>, %59, %cst_26 [1] : vector<8x8xf32> to vector<8xf32>
    %61 = vector.shape_cast %60 : vector<8xf32> to vector<8x1xf32>
    %62 = tpu.reciprocal %61 {approx = true} : vector<8x1xf32> -> vector<8x1xf32>
    %63 = vector.broadcast %62 : vector<8x1xf32> to vector<8x8xf32>
    %64 = arith.mulf %59, %63 : vector<8x8xf32>
    %65 = arith.truncf %64 : vector<8x8xf32> to vector<8x8xbf16>
    %66 = vector.extract_strided_slice %23 {offsets = [0, 8], sizes = [8, 8], strides = [1, 1]} : vector<8x32xbf16> to vector<8x8xbf16>
    %cst_27 = arith.constant dense<0.000000e+00> : vector<8x8xf32>
    %67 = tpu.matmul %65, %66, %cst_27 {dimension_numbers = #tpu.dot_dimension_numbers<[1], [0], [0], [1], [0, 0, 1, 1], [], []>} : vector<8x8xbf16>, vector<8x8xbf16>, vector<8x8xf32> -> vector<8x8xf32>
    %68 = vector.extract_strided_slice %25 {offsets = [8, 0], sizes = [8, 32], strides = [1, 1]} : vector<32x32xf32> to vector<8x32xf32>
    %cst_28 = arith.constant dense<0.000000e+00> : vector<8x32xf32>
    %69 = tpu.matmul %67, %68, %cst_28 {dimension_numbers = #tpu.dot_dimension_numbers<[1], [0], [0], [1], [0, 0, 1, 1], [], []>} : vector<8x8xf32>, vector<8x32xf32>, vector<8x32xf32> -> vector<8x32xf32>
    %70 = arith.addf %48, %69 : vector<8x32xf32>
    %71 = vector.extract_strided_slice %21 {offsets = [0, 16], sizes = [8, 8], strides = [1, 1]} : vector<8x32xbf16> to vector<8x8xbf16>
    %72 = vector.extract_strided_slice %22 {offsets = [0, 16], sizes = [8, 8], strides = [1, 1]} : vector<8x32xbf16> to vector<8x8xbf16>
    %cst_29 = arith.constant dense<0.000000e+00> : vector<8x8xf32>
    %73 = tpu.matmul %71, %72, %cst_29 {dimension_numbers = #tpu.dot_dimension_numbers<[1], [1], [0], [0], [0, 0, 1, 0], [], []>} : vector<8x8xbf16>, vector<8x8xbf16>, vector<8x8xf32> -> vector<8x8xf32>
    %cst_30 = arith.constant 0.176776692 : f32
    %74 = vector.broadcast %cst_30 : f32 to vector<8x8xf32>
    %75 = arith.mulf %73, %74 : vector<8x8xf32>
    %76 = arith.addf %75, %11 : vector<8x8xf32>
    %cst_31 = arith.constant dense<0xFF800000> : vector<8xf32>
    %77 = vector.multi_reduction <maximumf>, %76, %cst_31 [1] : vector<8x8xf32> to vector<8xf32>
    %78 = vector.shape_cast %77 : vector<8xf32> to vector<8x1xf32>
    %79 = vector.broadcast %78 : vector<8x1xf32> to vector<8x8xf32>
    %80 = arith.subf %76, %79 : vector<8x8xf32>
    %81 = math.exp %80 : vector<8x8xf32>
    %cst_32 = arith.constant dense<0.000000e+00> : vector<8xf32>
    %82 = vector.multi_reduction <add>, %81, %cst_32 [1] : vector<8x8xf32> to vector<8xf32>
    %83 = vector.shape_cast %82 : vector<8xf32> to vector<8x1xf32>
    %84 = tpu.reciprocal %83 {approx = true} : vector<8x1xf32> -> vector<8x1xf32>
    %85 = vector.broadcast %84 : vector<8x1xf32> to vector<8x8xf32>
    %86 = arith.mulf %81, %85 : vector<8x8xf32>
    %87 = arith.truncf %86 : vector<8x8xf32> to vector<8x8xbf16>
    %88 = vector.extract_strided_slice %23 {offsets = [0, 16], sizes = [8, 8], strides = [1, 1]} : vector<8x32xbf16> to vector<8x8xbf16>
    %cst_33 = arith.constant dense<0.000000e+00> : vector<8x8xf32>
    %89 = tpu.matmul %87, %88, %cst_33 {dimension_numbers = #tpu.dot_dimension_numbers<[1], [0], [0], [1], [0, 0, 1, 1], [], []>} : vector<8x8xbf16>, vector<8x8xbf16>, vector<8x8xf32> -> vector<8x8xf32>
    %90 = vector.extract_strided_slice %25 {offsets = [16, 0], sizes = [8, 32], strides = [1, 1]} : vector<32x32xf32> to vector<8x32xf32>
    %cst_34 = arith.constant dense<0.000000e+00> : vector<8x32xf32>
    %91 = tpu.matmul %89, %90, %cst_34 {dimension_numbers = #tpu.dot_dimension_numbers<[1], [0], [0], [1], [0, 0, 1, 1], [], []>} : vector<8x8xf32>, vector<8x32xf32>, vector<8x32xf32> -> vector<8x32xf32>
    %92 = arith.addf %70, %91 : vector<8x32xf32>
    %93 = vector.extract_strided_slice %21 {offsets = [0, 24], sizes = [8, 8], strides = [1, 1]} : vector<8x32xbf16> to vector<8x8xbf16>
    %94 = vector.extract_strided_slice %22 {offsets = [0, 24], sizes = [8, 8], strides = [1, 1]} : vector<8x32xbf16> to vector<8x8xbf16>
    %cst_35 = arith.constant dense<0.000000e+00> : vector<8x8xf32>
    %95 = tpu.matmul %93, %94, %cst_35 {dimension_numbers = #tpu.dot_dimension_numbers<[1], [1], [0], [0], [0, 0, 1, 0], [], []>} : vector<8x8xbf16>, vector<8x8xbf16>, vector<8x8xf32> -> vector<8x8xf32>
    %cst_36 = arith.constant 0.176776692 : f32
    %96 = vector.broadcast %cst_36 : f32 to vector<8x8xf32>
    %97 = arith.mulf %95, %96 : vector<8x8xf32>
    %98 = arith.addf %97, %11 : vector<8x8xf32>
    %cst_37 = arith.constant dense<0xFF800000> : vector<8xf32>
    %99 = vector.multi_reduction <maximumf>, %98, %cst_37 [1] : vector<8x8xf32> to vector<8xf32>
    %100 = vector.shape_cast %99 : vector<8xf32> to vector<8x1xf32>
    %101 = vector.broadcast %100 : vector<8x1xf32> to vector<8x8xf32>
    %102 = arith.subf %98, %101 : vector<8x8xf32>
    %103 = math.exp %102 : vector<8x8xf32>
    %cst_38 = arith.constant dense<0.000000e+00> : vector<8xf32>
    %104 = vector.multi_reduction <add>, %103, %cst_38 [1] : vector<8x8xf32> to vector<8xf32>
    %105 = vector.shape_cast %104 : vector<8xf32> to vector<8x1xf32>
    %106 = tpu.reciprocal %105 {approx = true} : vector<8x1xf32> -> vector<8x1xf32>
    %107 = vector.broadcast %106 : vector<8x1xf32> to vector<8x8xf32>
    %108 = arith.mulf %103, %107 : vector<8x8xf32>
    %109 = arith.truncf %108 : vector<8x8xf32> to vector<8x8xbf16>
    %110 = vector.extract_strided_slice %23 {offsets = [0, 24], sizes = [8, 8], strides = [1, 1]} : vector<8x32xbf16> to vector<8x8xbf16>
    %cst_39 = arith.constant dense<0.000000e+00> : vector<8x8xf32>
    %111 = tpu.matmul %109, %110, %cst_39 {dimension_numbers = #tpu.dot_dimension_numbers<[1], [0], [0], [1], [0, 0, 1, 1], [], []>} : vector<8x8xbf16>, vector<8x8xbf16>, vector<8x8xf32> -> vector<8x8xf32>
    %112 = vector.extract_strided_slice %25 {offsets = [24, 0], sizes = [8, 32], strides = [1, 1]} : vector<32x32xf32> to vector<8x32xf32>
    %cst_40 = arith.constant dense<0.000000e+00> : vector<8x32xf32>
    %113 = tpu.matmul %111, %112, %cst_40 {dimension_numbers = #tpu.dot_dimension_numbers<[1], [0], [0], [1], [0, 0, 1, 1], [], []>} : vector<8x8xf32>, vector<8x32xf32>, vector<8x32xf32> -> vector<8x32xf32>
    %114 = arith.addf %92, %113 : vector<8x32xf32>
    %c0_41 = arith.constant 0 : index
    %c0_42 = arith.constant 0 : index
    %115 = vector.load %arg7[%c0_41, %c0_42] : memref<1x32xf32, #tpu.memory_space<vmem>>, vector<1x32xf32>
    %116 = vector.broadcast %115 : vector<1x32xf32> to vector<8x32xf32>
    %117 = arith.addf %114, %116 : vector<8x32xf32>
    %118 = arith.addf %1, %117 : vector<8x32xf32>
    %c0_43 = arith.constant 0 : index
    %c0_44 = arith.constant 0 : index
    %119 = vector.load %arg8[%c0_43, %c0_44] : memref<1x32xf32, #tpu.memory_space<vmem>>, vector<1x32xf32>
    %c0_45 = arith.constant 0 : index
    %c0_46 = arith.constant 0 : index
    %120 = vector.load %arg9[%c0_45, %c0_46] : memref<1x32xf32, #tpu.memory_space<vmem>>, vector<1x32xf32>
    %cst_47 = arith.constant dense<0.000000e+00> : vector<8xf32>
    %121 = vector.multi_reduction <add>, %118, %cst_47 [1] : vector<8x32xf32> to vector<8xf32>
    %122 = vector.shape_cast %121 : vector<8xf32> to vector<8x1xf32>
    %cst_48 = arith.constant 3.200000e+01 : f32
    %123 = vector.broadcast %cst_48 : f32 to vector<8x1xf32>
    %124 = arith.divf %122, %123 : vector<8x1xf32>
    %125 = vector.broadcast %124 : vector<8x1xf32> to vector<8x32xf32>
    %126 = arith.subf %118, %125 : vector<8x32xf32>
    %127 = arith.mulf %126, %126 : vector<8x32xf32>
    %cst_49 = arith.constant dense<0.000000e+00> : vector<8xf32>
    %128 = vector.multi_reduction <add>, %127, %cst_49 [1] : vector<8x32xf32> to vector<8xf32>
    %129 = vector.shape_cast %128 : vector<8xf32> to vector<8x1xf32>
    %cst_50 = arith.constant 3.200000e+01 : f32
    %130 = vector.broadcast %cst_50 : f32 to vector<8x1xf32>
    %131 = arith.divf %129, %130 : vector<8x1xf32>
    %cst_51 = arith.constant 9.99999974E-6 : f32
    %132 = vector.broadcast %cst_51 : f32 to vector<8x1xf32>
    %133 = arith.addf %131, %132 : vector<8x1xf32>
    %134 = math.rsqrt %133 : vector<8x1xf32>
    %135 = vector.broadcast %134 : vector<8x1xf32> to vector<8x32xf32>
    %136 = arith.mulf %126, %135 : vector<8x32xf32>
    %137 = vector.broadcast %119 : vector<1x32xf32> to vector<8x32xf32>
    %138 = arith.mulf %136, %137 : vector<8x32xf32>
    %139 = vector.broadcast %120 : vector<1x32xf32> to vector<8x32xf32>
    %140 = arith.addf %138, %139 : vector<8x32xf32>
    %141 = arith.truncf %3 : vector<8x32xf32> to vector<8x32xbf16>
    %c0_52 = arith.constant 0 : index
    %c0_53 = arith.constant 0 : index
    %142 = vector.load %arg10[%c0_52, %c0_53] : memref<32x64xbf16, #tpu.memory_space<vmem>>, vector<32x64xbf16>
    %cst_54 = arith.constant dense<0.000000e+00> : vector<8x64xf32>
    %143 = tpu.matmul %141, %142, %cst_54 {dimension_numbers = #tpu.dot_dimension_numbers<[1], [0], [0], [1], [0, 0, 1, 1], [], []>} : vector<8x32xbf16>, vector<32x64xbf16>, vector<8x64xf32> -> vector<8x64xf32>
    %c0_55 = arith.constant 0 : index
    %c0_56 = arith.constant 0 : index
    %144 = vector.load %arg11[%c0_55, %c0_56] : memref<1x64xf32, #tpu.memory_space<vmem>>, vector<1x64xf32>
    %145 = vector.broadcast %144 : vector<1x64xf32> to vector<8x64xf32>
    %146 = arith.addf %143, %145 : vector<8x64xf32>
    %147 = vector.extract_strided_slice %146 {offsets = [0, 0], sizes = [8, 32], strides = [1, 1]} : vector<8x64xf32> to vector<8x32xf32>
    %148 = vector.extract_strided_slice %146 {offsets = [0, 32], sizes = [8, 32], strides = [1, 1]} : vector<8x64xf32> to vector<8x32xf32>
    %149 = arith.truncf %140 : vector<8x32xf32> to vector<8x32xbf16>
    %c0_57 = arith.constant 0 : index
    %c0_58 = arith.constant 0 : index
    %150 = vector.load %arg12[%c0_57, %c0_58] : memref<32x32xbf16, #tpu.memory_space<vmem>>, vector<32x32xbf16>
    %cst_59 = arith.constant dense<0.000000e+00> : vector<8x32xf32>
    %151 = tpu.matmul %149, %150, %cst_59 {dimension_numbers = #tpu.dot_dimension_numbers<[1], [0], [0], [1], [0, 0, 1, 1], [], []>} : vector<8x32xbf16>, vector<32x32xbf16>, vector<8x32xf32> -> vector<8x32xf32>
    %c0_60 = arith.constant 0 : index
    %c0_61 = arith.constant 0 : index
    %152 = vector.load %arg13[%c0_60, %c0_61] : memref<1x32xf32, #tpu.memory_space<vmem>>, vector<1x32xf32>
    %153 = vector.broadcast %152 : vector<1x32xf32> to vector<8x32xf32>
    %154 = arith.addf %151, %153 : vector<8x32xf32>
    %155 = arith.truncf %147 : vector<8x32xf32> to vector<8x32xbf16>
    %156 = arith.truncf %148 : vector<8x32xf32> to vector<8x32xbf16>
    %157 = arith.truncf %154 : vector<8x32xf32> to vector<8x32xbf16>
    %c0_62 = arith.constant 0 : index
    %c0_63 = arith.constant 0 : index
    %158 = vector.load %arg14[%c0_62, %c0_63] : memref<32x32xbf16, #tpu.memory_space<vmem>>, vector<32x32xbf16>
    %159 = arith.extf %158 : vector<32x32xbf16> to vector<32x32xf32>
    %cst_64 = arith.constant 0.000000e+00 : f32
    %160 = vector.broadcast %cst_64 : f32 to vector<8x32xf32>
    %161 = vector.extract_strided_slice %155 {offsets = [0, 0], sizes = [8, 8], strides = [1, 1]} : vector<8x32xbf16> to vector<8x8xbf16>
    %162 = vector.extract_strided_slice %156 {offsets = [0, 0], sizes = [8, 8], strides = [1, 1]} : vector<8x32xbf16> to vector<8x8xbf16>
    %cst_65 = arith.constant dense<0.000000e+00> : vector<8x8xf32>
    %163 = tpu.matmul %161, %162, %cst_65 {dimension_numbers = #tpu.dot_dimension_numbers<[1], [1], [0], [0], [0, 0, 1, 0], [], []>} : vector<8x8xbf16>, vector<8x8xbf16>, vector<8x8xf32> -> vector<8x8xf32>
    %cst_66 = arith.constant 0.176776692 : f32
    %164 = vector.broadcast %cst_66 : f32 to vector<8x8xf32>
    %165 = arith.mulf %163, %164 : vector<8x8xf32>
    %166 = arith.addf %165, %11 : vector<8x8xf32>
    %cst_67 = arith.constant dense<0xFF800000> : vector<8xf32>
    %167 = vector.multi_reduction <maximumf>, %166, %cst_67 [1] : vector<8x8xf32> to vector<8xf32>
    %168 = vector.shape_cast %167 : vector<8xf32> to vector<8x1xf32>
    %169 = vector.broadcast %168 : vector<8x1xf32> to vector<8x8xf32>
    %170 = arith.subf %166, %169 : vector<8x8xf32>
    %171 = math.exp %170 : vector<8x8xf32>
    %cst_68 = arith.constant dense<0.000000e+00> : vector<8xf32>
    %172 = vector.multi_reduction <add>, %171, %cst_68 [1] : vector<8x8xf32> to vector<8xf32>
    %173 = vector.shape_cast %172 : vector<8xf32> to vector<8x1xf32>
    %174 = tpu.reciprocal %173 {approx = true} : vector<8x1xf32> -> vector<8x1xf32>
    %175 = vector.broadcast %174 : vector<8x1xf32> to vector<8x8xf32>
    %176 = arith.mulf %171, %175 : vector<8x8xf32>
    %177 = arith.truncf %176 : vector<8x8xf32> to vector<8x8xbf16>
    %178 = vector.extract_strided_slice %157 {offsets = [0, 0], sizes = [8, 8], strides = [1, 1]} : vector<8x32xbf16> to vector<8x8xbf16>
    %cst_69 = arith.constant dense<0.000000e+00> : vector<8x8xf32>
    %179 = tpu.matmul %177, %178, %cst_69 {dimension_numbers = #tpu.dot_dimension_numbers<[1], [0], [0], [1], [0, 0, 1, 1], [], []>} : vector<8x8xbf16>, vector<8x8xbf16>, vector<8x8xf32> -> vector<8x8xf32>
    %180 = vector.extract_strided_slice %159 {offsets = [0, 0], sizes = [8, 32], strides = [1, 1]} : vector<32x32xf32> to vector<8x32xf32>
    %cst_70 = arith.constant dense<0.000000e+00> : vector<8x32xf32>
    %181 = tpu.matmul %179, %180, %cst_70 {dimension_numbers = #tpu.dot_dimension_numbers<[1], [0], [0], [1], [0, 0, 1, 1], [], []>} : vector<8x8xf32>, vector<8x32xf32>, vector<8x32xf32> -> vector<8x32xf32>
    %182 = arith.addf %160, %181 : vector<8x32xf32>
    %183 = vector.extract_strided_slice %155 {offsets = [0, 8], sizes = [8, 8], strides = [1, 1]} : vector<8x32xbf16> to vector<8x8xbf16>
    %184 = vector.extract_strided_slice %156 {offsets = [0, 8], sizes = [8, 8], strides = [1, 1]} : vector<8x32xbf16> to vector<8x8xbf16>
    %cst_71 = arith.constant dense<0.000000e+00> : vector<8x8xf32>
    %185 = tpu.matmul %183, %184, %cst_71 {dimension_numbers = #tpu.dot_dimension_numbers<[1], [1], [0], [0], [0, 0, 1, 0], [], []>} : vector<8x8xbf16>, vector<8x8xbf16>, vector<8x8xf32> -> vector<8x8xf32>
    %cst_72 = arith.constant 0.176776692 : f32
    %186 = vector.broadcast %cst_72 : f32 to vector<8x8xf32>
    %187 = arith.mulf %185, %186 : vector<8x8xf32>
    %188 = arith.addf %187, %11 : vector<8x8xf32>
    %cst_73 = arith.constant dense<0xFF800000> : vector<8xf32>
    %189 = vector.multi_reduction <maximumf>, %188, %cst_73 [1] : vector<8x8xf32> to vector<8xf32>
    %190 = vector.shape_cast %189 : vector<8xf32> to vector<8x1xf32>
    %191 = vector.broadcast %190 : vector<8x1xf32> to vector<8x8xf32>
    %192 = arith.subf %188, %191 : vector<8x8xf32>
    %193 = math.exp %192 : vector<8x8xf32>
    %cst_74 = arith.constant dense<0.000000e+00> : vector<8xf32>
    %194 = vector.multi_reduction <add>, %193, %cst_74 [1] : vector<8x8xf32> to vector<8xf32>
    %195 = vector.shape_cast %194 : vector<8xf32> to vector<8x1xf32>
    %196 = tpu.reciprocal %195 {approx = true} : vector<8x1xf32> -> vector<8x1xf32>
    %197 = vector.broadcast %196 : vector<8x1xf32> to vector<8x8xf32>
    %198 = arith.mulf %193, %197 : vector<8x8xf32>
    %199 = arith.truncf %198 : vector<8x8xf32> to vector<8x8xbf16>
    %200 = vector.extract_strided_slice %157 {offsets = [0, 8], sizes = [8, 8], strides = [1, 1]} : vector<8x32xbf16> to vector<8x8xbf16>
    %cst_75 = arith.constant dense<0.000000e+00> : vector<8x8xf32>
    %201 = tpu.matmul %199, %200, %cst_75 {dimension_numbers = #tpu.dot_dimension_numbers<[1], [0], [0], [1], [0, 0, 1, 1], [], []>} : vector<8x8xbf16>, vector<8x8xbf16>, vector<8x8xf32> -> vector<8x8xf32>
    %202 = vector.extract_strided_slice %159 {offsets = [8, 0], sizes = [8, 32], strides = [1, 1]} : vector<32x32xf32> to vector<8x32xf32>
    %cst_76 = arith.constant dense<0.000000e+00> : vector<8x32xf32>
    %203 = tpu.matmul %201, %202, %cst_76 {dimension_numbers = #tpu.dot_dimension_numbers<[1], [0], [0], [1], [0, 0, 1, 1], [], []>} : vector<8x8xf32>, vector<8x32xf32>, vector<8x32xf32> -> vector<8x32xf32>
    %204 = arith.addf %182, %203 : vector<8x32xf32>
    %205 = vector.extract_strided_slice %155 {offsets = [0, 16], sizes = [8, 8], strides = [1, 1]} : vector<8x32xbf16> to vector<8x8xbf16>
    %206 = vector.extract_strided_slice %156 {offsets = [0, 16], sizes = [8, 8], strides = [1, 1]} : vector<8x32xbf16> to vector<8x8xbf16>
    %cst_77 = arith.constant dense<0.000000e+00> : vector<8x8xf32>
    %207 = tpu.matmul %205, %206, %cst_77 {dimension_numbers = #tpu.dot_dimension_numbers<[1], [1], [0], [0], [0, 0, 1, 0], [], []>} : vector<8x8xbf16>, vector<8x8xbf16>, vector<8x8xf32> -> vector<8x8xf32>
    %cst_78 = arith.constant 0.176776692 : f32
    %208 = vector.broadcast %cst_78 : f32 to vector<8x8xf32>
    %209 = arith.mulf %207, %208 : vector<8x8xf32>
    %210 = arith.addf %209, %11 : vector<8x8xf32>
    %cst_79 = arith.constant dense<0xFF800000> : vector<8xf32>
    %211 = vector.multi_reduction <maximumf>, %210, %cst_79 [1] : vector<8x8xf32> to vector<8xf32>
    %212 = vector.shape_cast %211 : vector<8xf32> to vector<8x1xf32>
    %213 = vector.broadcast %212 : vector<8x1xf32> to vector<8x8xf32>
    %214 = arith.subf %210, %213 : vector<8x8xf32>
    %215 = math.exp %214 : vector<8x8xf32>
    %cst_80 = arith.constant dense<0.000000e+00> : vector<8xf32>
    %216 = vector.multi_reduction <add>, %215, %cst_80 [1] : vector<8x8xf32> to vector<8xf32>
    %217 = vector.shape_cast %216 : vector<8xf32> to vector<8x1xf32>
    %218 = tpu.reciprocal %217 {approx = true} : vector<8x1xf32> -> vector<8x1xf32>
    %219 = vector.broadcast %218 : vector<8x1xf32> to vector<8x8xf32>
    %220 = arith.mulf %215, %219 : vector<8x8xf32>
    %221 = arith.truncf %220 : vector<8x8xf32> to vector<8x8xbf16>
    %222 = vector.extract_strided_slice %157 {offsets = [0, 16], sizes = [8, 8], strides = [1, 1]} : vector<8x32xbf16> to vector<8x8xbf16>
    %cst_81 = arith.constant dense<0.000000e+00> : vector<8x8xf32>
    %223 = tpu.matmul %221, %222, %cst_81 {dimension_numbers = #tpu.dot_dimension_numbers<[1], [0], [0], [1], [0, 0, 1, 1], [], []>} : vector<8x8xbf16>, vector<8x8xbf16>, vector<8x8xf32> -> vector<8x8xf32>
    %224 = vector.extract_strided_slice %159 {offsets = [16, 0], sizes = [8, 32], strides = [1, 1]} : vector<32x32xf32> to vector<8x32xf32>
    %cst_82 = arith.constant dense<0.000000e+00> : vector<8x32xf32>
    %225 = tpu.matmul %223, %224, %cst_82 {dimension_numbers = #tpu.dot_dimension_numbers<[1], [0], [0], [1], [0, 0, 1, 1], [], []>} : vector<8x8xf32>, vector<8x32xf32>, vector<8x32xf32> -> vector<8x32xf32>
    %226 = arith.addf %204, %225 : vector<8x32xf32>
    %227 = vector.extract_strided_slice %155 {offsets = [0, 24], sizes = [8, 8], strides = [1, 1]} : vector<8x32xbf16> to vector<8x8xbf16>
    %228 = vector.extract_strided_slice %156 {offsets = [0, 24], sizes = [8, 8], strides = [1, 1]} : vector<8x32xbf16> to vector<8x8xbf16>
    %cst_83 = arith.constant dense<0.000000e+00> : vector<8x8xf32>
    %229 = tpu.matmul %227, %228, %cst_83 {dimension_numbers = #tpu.dot_dimension_numbers<[1], [1], [0], [0], [0, 0, 1, 0], [], []>} : vector<8x8xbf16>, vector<8x8xbf16>, vector<8x8xf32> -> vector<8x8xf32>
    %cst_84 = arith.constant 0.176776692 : f32
    %230 = vector.broadcast %cst_84 : f32 to vector<8x8xf32>
    %231 = arith.mulf %229, %230 : vector<8x8xf32>
    %232 = arith.addf %231, %11 : vector<8x8xf32>
    %cst_85 = arith.constant dense<0xFF800000> : vector<8xf32>
    %233 = vector.multi_reduction <maximumf>, %232, %cst_85 [1] : vector<8x8xf32> to vector<8xf32>
    %234 = vector.shape_cast %233 : vector<8xf32> to vector<8x1xf32>
    %235 = vector.broadcast %234 : vector<8x1xf32> to vector<8x8xf32>
    %236 = arith.subf %232, %235 : vector<8x8xf32>
    %237 = math.exp %236 : vector<8x8xf32>
    %cst_86 = arith.constant dense<0.000000e+00> : vector<8xf32>
    %238 = vector.multi_reduction <add>, %237, %cst_86 [1] : vector<8x8xf32> to vector<8xf32>
    %239 = vector.shape_cast %238 : vector<8xf32> to vector<8x1xf32>
    %240 = tpu.reciprocal %239 {approx = true} : vector<8x1xf32> -> vector<8x1xf32>
    %241 = vector.broadcast %240 : vector<8x1xf32> to vector<8x8xf32>
    %242 = arith.mulf %237, %241 : vector<8x8xf32>
    %243 = arith.truncf %242 : vector<8x8xf32> to vector<8x8xbf16>
    %244 = vector.extract_strided_slice %157 {offsets = [0, 24], sizes = [8, 8], strides = [1, 1]} : vector<8x32xbf16> to vector<8x8xbf16>
    %cst_87 = arith.constant dense<0.000000e+00> : vector<8x8xf32>
    %245 = tpu.matmul %243, %244, %cst_87 {dimension_numbers = #tpu.dot_dimension_numbers<[1], [0], [0], [1], [0, 0, 1, 1], [], []>} : vector<8x8xbf16>, vector<8x8xbf16>, vector<8x8xf32> -> vector<8x8xf32>
    %246 = vector.extract_strided_slice %159 {offsets = [24, 0], sizes = [8, 32], strides = [1, 1]} : vector<32x32xf32> to vector<8x32xf32>
    %cst_88 = arith.constant dense<0.000000e+00> : vector<8x32xf32>
    %247 = tpu.matmul %245, %246, %cst_88 {dimension_numbers = #tpu.dot_dimension_numbers<[1], [0], [0], [1], [0, 0, 1, 1], [], []>} : vector<8x8xf32>, vector<8x32xf32>, vector<8x32xf32> -> vector<8x32xf32>
    %248 = arith.addf %226, %247 : vector<8x32xf32>
    %c0_89 = arith.constant 0 : index
    %c0_90 = arith.constant 0 : index
    %249 = vector.load %arg15[%c0_89, %c0_90] : memref<1x32xf32, #tpu.memory_space<vmem>>, vector<1x32xf32>
    %250 = vector.broadcast %249 : vector<1x32xf32> to vector<8x32xf32>
    %251 = arith.addf %248, %250 : vector<8x32xf32>
    %252 = arith.addf %140, %251 : vector<8x32xf32>
    %c0_91 = arith.constant 0 : index
    %c0_92 = arith.constant 0 : index
    %253 = vector.load %arg16[%c0_91, %c0_92] : memref<1x32xf32, #tpu.memory_space<vmem>>, vector<1x32xf32>
    %c0_93 = arith.constant 0 : index
    %c0_94 = arith.constant 0 : index
    %254 = vector.load %arg17[%c0_93, %c0_94] : memref<1x32xf32, #tpu.memory_space<vmem>>, vector<1x32xf32>
    %cst_95 = arith.constant dense<0.000000e+00> : vector<8xf32>
    %255 = vector.multi_reduction <add>, %252, %cst_95 [1] : vector<8x32xf32> to vector<8xf32>
    %256 = vector.shape_cast %255 : vector<8xf32> to vector<8x1xf32>
    %cst_96 = arith.constant 3.200000e+01 : f32
    %257 = vector.broadcast %cst_96 : f32 to vector<8x1xf32>
    %258 = arith.divf %256, %257 : vector<8x1xf32>
    %259 = vector.broadcast %258 : vector<8x1xf32> to vector<8x32xf32>
    %260 = arith.subf %252, %259 : vector<8x32xf32>
    %261 = arith.mulf %260, %260 : vector<8x32xf32>
    %cst_97 = arith.constant dense<0.000000e+00> : vector<8xf32>
    %262 = vector.multi_reduction <add>, %261, %cst_97 [1] : vector<8x32xf32> to vector<8xf32>
    %263 = vector.shape_cast %262 : vector<8xf32> to vector<8x1xf32>
    %cst_98 = arith.constant 3.200000e+01 : f32
    %264 = vector.broadcast %cst_98 : f32 to vector<8x1xf32>
    %265 = arith.divf %263, %264 : vector<8x1xf32>
    %cst_99 = arith.constant 9.99999974E-6 : f32
    %266 = vector.broadcast %cst_99 : f32 to vector<8x1xf32>
    %267 = arith.addf %265, %266 : vector<8x1xf32>
    %268 = math.rsqrt %267 : vector<8x1xf32>
    %269 = vector.broadcast %268 : vector<8x1xf32> to vector<8x32xf32>
    %270 = arith.mulf %260, %269 : vector<8x32xf32>
    %271 = vector.broadcast %253 : vector<1x32xf32> to vector<8x32xf32>
    %272 = arith.mulf %270, %271 : vector<8x32xf32>
    %273 = vector.broadcast %254 : vector<1x32xf32> to vector<8x32xf32>
    %274 = arith.addf %272, %273 : vector<8x32xf32>
    %275 = arith.truncf %274 : vector<8x32xf32> to vector<8x32xbf16>
    %c0_100 = arith.constant 0 : index
    %c0_101 = arith.constant 0 : index
    %276 = vector.load %arg18[%c0_100, %c0_101] : memref<32x32xbf16, #tpu.memory_space<vmem>>, vector<32x32xbf16>
    %cst_102 = arith.constant dense<0.000000e+00> : vector<8x32xf32>
    %277 = tpu.matmul %275, %276, %cst_102 {dimension_numbers = #tpu.dot_dimension_numbers<[1], [0], [0], [1], [0, 0, 1, 1], [], []>} : vector<8x32xbf16>, vector<32x32xbf16>, vector<8x32xf32> -> vector<8x32xf32>
    %c0_103 = arith.constant 0 : index
    %c0_104 = arith.constant 0 : index
    %278 = vector.load %arg19[%c0_103, %c0_104] : memref<1x32xf32, #tpu.memory_space<vmem>>, vector<1x32xf32>
    %279 = vector.broadcast %278 : vector<1x32xf32> to vector<8x32xf32>
    %280 = arith.addf %277, %279 : vector<8x32xf32>
    %281 = arith.truncf %5 : vector<8x32xf32> to vector<8x32xbf16>
    %c0_105 = arith.constant 0 : index
    %c0_106 = arith.constant 0 : index
    %282 = vector.load %arg20[%c0_105, %c0_106] : memref<32x64xbf16, #tpu.memory_space<vmem>>, vector<32x64xbf16>
    %cst_107 = arith.constant dense<0.000000e+00> : vector<8x64xf32>
    %283 = tpu.matmul %281, %282, %cst_107 {dimension_numbers = #tpu.dot_dimension_numbers<[1], [0], [0], [1], [0, 0, 1, 1], [], []>} : vector<8x32xbf16>, vector<32x64xbf16>, vector<8x64xf32> -> vector<8x64xf32>
    %c0_108 = arith.constant 0 : index
    %c0_109 = arith.constant 0 : index
    %284 = vector.load %arg21[%c0_108, %c0_109] : memref<1x64xf32, #tpu.memory_space<vmem>>, vector<1x64xf32>
    %285 = vector.broadcast %284 : vector<1x64xf32> to vector<8x64xf32>
    %286 = arith.addf %283, %285 : vector<8x64xf32>
    %287 = vector.extract_strided_slice %286 {offsets = [0, 0], sizes = [8, 32], strides = [1, 1]} : vector<8x64xf32> to vector<8x32xf32>
    %288 = vector.extract_strided_slice %286 {offsets = [0, 32], sizes = [8, 32], strides = [1, 1]} : vector<8x64xf32> to vector<8x32xf32>
    %289 = arith.truncf %280 : vector<8x32xf32> to vector<8x32xbf16>
    %290 = arith.truncf %287 : vector<8x32xf32> to vector<8x32xbf16>
    %291 = arith.truncf %288 : vector<8x32xf32> to vector<8x32xbf16>
    %c0_110 = arith.constant 0 : index
    %c0_111 = arith.constant 0 : index
    %292 = vector.load %arg22[%c0_110, %c0_111] : memref<32x32xbf16, #tpu.memory_space<vmem>>, vector<32x32xbf16>
    %293 = arith.extf %292 : vector<32x32xbf16> to vector<32x32xf32>
    %cst_112 = arith.constant 0.000000e+00 : f32
    %294 = vector.broadcast %cst_112 : f32 to vector<8x32xf32>
    %295 = vector.extract_strided_slice %289 {offsets = [0, 0], sizes = [8, 8], strides = [1, 1]} : vector<8x32xbf16> to vector<8x8xbf16>
    %296 = vector.extract_strided_slice %290 {offsets = [0, 0], sizes = [8, 8], strides = [1, 1]} : vector<8x32xbf16> to vector<8x8xbf16>
    %cst_113 = arith.constant dense<0.000000e+00> : vector<8x8xf32>
    %297 = tpu.matmul %295, %296, %cst_113 {dimension_numbers = #tpu.dot_dimension_numbers<[1], [1], [0], [0], [0, 0, 1, 0], [], []>} : vector<8x8xbf16>, vector<8x8xbf16>, vector<8x8xf32> -> vector<8x8xf32>
    %cst_114 = arith.constant 0.176776692 : f32
    %298 = vector.broadcast %cst_114 : f32 to vector<8x8xf32>
    %299 = arith.mulf %297, %298 : vector<8x8xf32>
    %cst_115 = arith.constant dense<0xFF800000> : vector<8xf32>
    %300 = vector.multi_reduction <maximumf>, %299, %cst_115 [1] : vector<8x8xf32> to vector<8xf32>
    %301 = vector.shape_cast %300 : vector<8xf32> to vector<8x1xf32>
    %302 = vector.broadcast %301 : vector<8x1xf32> to vector<8x8xf32>
    %303 = arith.subf %299, %302 : vector<8x8xf32>
    %304 = math.exp %303 : vector<8x8xf32>
    %cst_116 = arith.constant dense<0.000000e+00> : vector<8xf32>
    %305 = vector.multi_reduction <add>, %304, %cst_116 [1] : vector<8x8xf32> to vector<8xf32>
    %306 = vector.shape_cast %305 : vector<8xf32> to vector<8x1xf32>
    %307 = tpu.reciprocal %306 {approx = true} : vector<8x1xf32> -> vector<8x1xf32>
    %308 = vector.broadcast %307 : vector<8x1xf32> to vector<8x8xf32>
    %309 = arith.mulf %304, %308 : vector<8x8xf32>
    %310 = arith.truncf %309 : vector<8x8xf32> to vector<8x8xbf16>
    %311 = vector.extract_strided_slice %291 {offsets = [0, 0], sizes = [8, 8], strides = [1, 1]} : vector<8x32xbf16> to vector<8x8xbf16>
    %cst_117 = arith.constant dense<0.000000e+00> : vector<8x8xf32>
    %312 = tpu.matmul %310, %311, %cst_117 {dimension_numbers = #tpu.dot_dimension_numbers<[1], [0], [0], [1], [0, 0, 1, 1], [], []>} : vector<8x8xbf16>, vector<8x8xbf16>, vector<8x8xf32> -> vector<8x8xf32>
    %313 = vector.extract_strided_slice %293 {offsets = [0, 0], sizes = [8, 32], strides = [1, 1]} : vector<32x32xf32> to vector<8x32xf32>
    %cst_118 = arith.constant dense<0.000000e+00> : vector<8x32xf32>
    %314 = tpu.matmul %312, %313, %cst_118 {dimension_numbers = #tpu.dot_dimension_numbers<[1], [0], [0], [1], [0, 0, 1, 1], [], []>} : vector<8x8xf32>, vector<8x32xf32>, vector<8x32xf32> -> vector<8x32xf32>
    %315 = arith.addf %294, %314 : vector<8x32xf32>
    %316 = vector.extract_strided_slice %289 {offsets = [0, 8], sizes = [8, 8], strides = [1, 1]} : vector<8x32xbf16> to vector<8x8xbf16>
    %317 = vector.extract_strided_slice %290 {offsets = [0, 8], sizes = [8, 8], strides = [1, 1]} : vector<8x32xbf16> to vector<8x8xbf16>
    %cst_119 = arith.constant dense<0.000000e+00> : vector<8x8xf32>
    %318 = tpu.matmul %316, %317, %cst_119 {dimension_numbers = #tpu.dot_dimension_numbers<[1], [1], [0], [0], [0, 0, 1, 0], [], []>} : vector<8x8xbf16>, vector<8x8xbf16>, vector<8x8xf32> -> vector<8x8xf32>
    %cst_120 = arith.constant 0.176776692 : f32
    %319 = vector.broadcast %cst_120 : f32 to vector<8x8xf32>
    %320 = arith.mulf %318, %319 : vector<8x8xf32>
    %cst_121 = arith.constant dense<0xFF800000> : vector<8xf32>
    %321 = vector.multi_reduction <maximumf>, %320, %cst_121 [1] : vector<8x8xf32> to vector<8xf32>
    %322 = vector.shape_cast %321 : vector<8xf32> to vector<8x1xf32>
    %323 = vector.broadcast %322 : vector<8x1xf32> to vector<8x8xf32>
    %324 = arith.subf %320, %323 : vector<8x8xf32>
    %325 = math.exp %324 : vector<8x8xf32>
    %cst_122 = arith.constant dense<0.000000e+00> : vector<8xf32>
    %326 = vector.multi_reduction <add>, %325, %cst_122 [1] : vector<8x8xf32> to vector<8xf32>
    %327 = vector.shape_cast %326 : vector<8xf32> to vector<8x1xf32>
    %328 = tpu.reciprocal %327 {approx = true} : vector<8x1xf32> -> vector<8x1xf32>
    %329 = vector.broadcast %328 : vector<8x1xf32> to vector<8x8xf32>
    %330 = arith.mulf %325, %329 : vector<8x8xf32>
    %331 = arith.truncf %330 : vector<8x8xf32> to vector<8x8xbf16>
    %332 = vector.extract_strided_slice %291 {offsets = [0, 8], sizes = [8, 8], strides = [1, 1]} : vector<8x32xbf16> to vector<8x8xbf16>
    %cst_123 = arith.constant dense<0.000000e+00> : vector<8x8xf32>
    %333 = tpu.matmul %331, %332, %cst_123 {dimension_numbers = #tpu.dot_dimension_numbers<[1], [0], [0], [1], [0, 0, 1, 1], [], []>} : vector<8x8xbf16>, vector<8x8xbf16>, vector<8x8xf32> -> vector<8x8xf32>
    %334 = vector.extract_strided_slice %293 {offsets = [8, 0], sizes = [8, 32], strides = [1, 1]} : vector<32x32xf32> to vector<8x32xf32>
    %cst_124 = arith.constant dense<0.000000e+00> : vector<8x32xf32>
    %335 = tpu.matmul %333, %334, %cst_124 {dimension_numbers = #tpu.dot_dimension_numbers<[1], [0], [0], [1], [0, 0, 1, 1], [], []>} : vector<8x8xf32>, vector<8x32xf32>, vector<8x32xf32> -> vector<8x32xf32>
    %336 = arith.addf %315, %335 : vector<8x32xf32>
    %337 = vector.extract_strided_slice %289 {offsets = [0, 16], sizes = [8, 8], strides = [1, 1]} : vector<8x32xbf16> to vector<8x8xbf16>
    %338 = vector.extract_strided_slice %290 {offsets = [0, 16], sizes = [8, 8], strides = [1, 1]} : vector<8x32xbf16> to vector<8x8xbf16>
    %cst_125 = arith.constant dense<0.000000e+00> : vector<8x8xf32>
    %339 = tpu.matmul %337, %338, %cst_125 {dimension_numbers = #tpu.dot_dimension_numbers<[1], [1], [0], [0], [0, 0, 1, 0], [], []>} : vector<8x8xbf16>, vector<8x8xbf16>, vector<8x8xf32> -> vector<8x8xf32>
    %cst_126 = arith.constant 0.176776692 : f32
    %340 = vector.broadcast %cst_126 : f32 to vector<8x8xf32>
    %341 = arith.mulf %339, %340 : vector<8x8xf32>
    %cst_127 = arith.constant dense<0xFF800000> : vector<8xf32>
    %342 = vector.multi_reduction <maximumf>, %341, %cst_127 [1] : vector<8x8xf32> to vector<8xf32>
    %343 = vector.shape_cast %342 : vector<8xf32> to vector<8x1xf32>
    %344 = vector.broadcast %343 : vector<8x1xf32> to vector<8x8xf32>
    %345 = arith.subf %341, %344 : vector<8x8xf32>
    %346 = math.exp %345 : vector<8x8xf32>
    %cst_128 = arith.constant dense<0.000000e+00> : vector<8xf32>
    %347 = vector.multi_reduction <add>, %346, %cst_128 [1] : vector<8x8xf32> to vector<8xf32>
    %348 = vector.shape_cast %347 : vector<8xf32> to vector<8x1xf32>
    %349 = tpu.reciprocal %348 {approx = true} : vector<8x1xf32> -> vector<8x1xf32>
    %350 = vector.broadcast %349 : vector<8x1xf32> to vector<8x8xf32>
    %351 = arith.mulf %346, %350 : vector<8x8xf32>
    %352 = arith.truncf %351 : vector<8x8xf32> to vector<8x8xbf16>
    %353 = vector.extract_strided_slice %291 {offsets = [0, 16], sizes = [8, 8], strides = [1, 1]} : vector<8x32xbf16> to vector<8x8xbf16>
    %cst_129 = arith.constant dense<0.000000e+00> : vector<8x8xf32>
    %354 = tpu.matmul %352, %353, %cst_129 {dimension_numbers = #tpu.dot_dimension_numbers<[1], [0], [0], [1], [0, 0, 1, 1], [], []>} : vector<8x8xbf16>, vector<8x8xbf16>, vector<8x8xf32> -> vector<8x8xf32>
    %355 = vector.extract_strided_slice %293 {offsets = [16, 0], sizes = [8, 32], strides = [1, 1]} : vector<32x32xf32> to vector<8x32xf32>
    %cst_130 = arith.constant dense<0.000000e+00> : vector<8x32xf32>
    %356 = tpu.matmul %354, %355, %cst_130 {dimension_numbers = #tpu.dot_dimension_numbers<[1], [0], [0], [1], [0, 0, 1, 1], [], []>} : vector<8x8xf32>, vector<8x32xf32>, vector<8x32xf32> -> vector<8x32xf32>
    %357 = arith.addf %336, %356 : vector<8x32xf32>
    %358 = vector.extract_strided_slice %289 {offsets = [0, 24], sizes = [8, 8], strides = [1, 1]} : vector<8x32xbf16> to vector<8x8xbf16>
    %359 = vector.extract_strided_slice %290 {offsets = [0, 24], sizes = [8, 8], strides = [1, 1]} : vector<8x32xbf16> to vector<8x8xbf16>
    %cst_131 = arith.constant dense<0.000000e+00> : vector<8x8xf32>
    %360 = tpu.matmul %358, %359, %cst_131 {dimension_numbers = #tpu.dot_dimension_numbers<[1], [1], [0], [0], [0, 0, 1, 0], [], []>} : vector<8x8xbf16>, vector<8x8xbf16>, vector<8x8xf32> -> vector<8x8xf32>
    %cst_132 = arith.constant 0.176776692 : f32
    %361 = vector.broadcast %cst_132 : f32 to vector<8x8xf32>
    %362 = arith.mulf %360, %361 : vector<8x8xf32>
    %cst_133 = arith.constant dense<0xFF800000> : vector<8xf32>
    %363 = vector.multi_reduction <maximumf>, %362, %cst_133 [1] : vector<8x8xf32> to vector<8xf32>
    %364 = vector.shape_cast %363 : vector<8xf32> to vector<8x1xf32>
    %365 = vector.broadcast %364 : vector<8x1xf32> to vector<8x8xf32>
    %366 = arith.subf %362, %365 : vector<8x8xf32>
    %367 = math.exp %366 : vector<8x8xf32>
    %cst_134 = arith.constant dense<0.000000e+00> : vector<8xf32>
    %368 = vector.multi_reduction <add>, %367, %cst_134 [1] : vector<8x8xf32> to vector<8xf32>
    %369 = vector.shape_cast %368 : vector<8xf32> to vector<8x1xf32>
    %370 = tpu.reciprocal %369 {approx = true} : vector<8x1xf32> -> vector<8x1xf32>
    %371 = vector.broadcast %370 : vector<8x1xf32> to vector<8x8xf32>
    %372 = arith.mulf %367, %371 : vector<8x8xf32>
    %373 = arith.truncf %372 : vector<8x8xf32> to vector<8x8xbf16>
    %374 = vector.extract_strided_slice %291 {offsets = [0, 24], sizes = [8, 8], strides = [1, 1]} : vector<8x32xbf16> to vector<8x8xbf16>
    %cst_135 = arith.constant dense<0.000000e+00> : vector<8x8xf32>
    %375 = tpu.matmul %373, %374, %cst_135 {dimension_numbers = #tpu.dot_dimension_numbers<[1], [0], [0], [1], [0, 0, 1, 1], [], []>} : vector<8x8xbf16>, vector<8x8xbf16>, vector<8x8xf32> -> vector<8x8xf32>
    %376 = vector.extract_strided_slice %293 {offsets = [24, 0], sizes = [8, 32], strides = [1, 1]} : vector<32x32xf32> to vector<8x32xf32>
    %cst_136 = arith.constant dense<0.000000e+00> : vector<8x32xf32>
    %377 = tpu.matmul %375, %376, %cst_136 {dimension_numbers = #tpu.dot_dimension_numbers<[1], [0], [0], [1], [0, 0, 1, 1], [], []>} : vector<8x8xf32>, vector<8x32xf32>, vector<8x32xf32> -> vector<8x32xf32>
    %378 = arith.addf %357, %377 : vector<8x32xf32>
    %c0_137 = arith.constant 0 : index
    %c0_138 = arith.constant 0 : index
    %379 = vector.load %arg23[%c0_137, %c0_138] : memref<1x32xf32, #tpu.memory_space<vmem>>, vector<1x32xf32>
    %380 = vector.broadcast %379 : vector<1x32xf32> to vector<8x32xf32>
    %381 = arith.addf %378, %380 : vector<8x32xf32>
    %382 = arith.addf %274, %381 : vector<8x32xf32>
    %c0_139 = arith.constant 0 : index
    %c0_140 = arith.constant 0 : index
    %383 = vector.load %arg24[%c0_139, %c0_140] : memref<1x32xf32, #tpu.memory_space<vmem>>, vector<1x32xf32>
    %c0_141 = arith.constant 0 : index
    %c0_142 = arith.constant 0 : index
    %384 = vector.load %arg25[%c0_141, %c0_142] : memref<1x32xf32, #tpu.memory_space<vmem>>, vector<1x32xf32>
    %cst_143 = arith.constant dense<0.000000e+00> : vector<8xf32>
    %385 = vector.multi_reduction <add>, %382, %cst_143 [1] : vector<8x32xf32> to vector<8xf32>
    %386 = vector.shape_cast %385 : vector<8xf32> to vector<8x1xf32>
    %cst_144 = arith.constant 3.200000e+01 : f32
    %387 = vector.broadcast %cst_144 : f32 to vector<8x1xf32>
    %388 = arith.divf %386, %387 : vector<8x1xf32>
    %389 = vector.broadcast %388 : vector<8x1xf32> to vector<8x32xf32>
    %390 = arith.subf %382, %389 : vector<8x32xf32>
    %391 = arith.mulf %390, %390 : vector<8x32xf32>
    %cst_145 = arith.constant dense<0.000000e+00> : vector<8xf32>
    %392 = vector.multi_reduction <add>, %391, %cst_145 [1] : vector<8x32xf32> to vector<8xf32>
    %393 = vector.shape_cast %392 : vector<8xf32> to vector<8x1xf32>
    %cst_146 = arith.constant 3.200000e+01 : f32
    %394 = vector.broadcast %cst_146 : f32 to vector<8x1xf32>
    %395 = arith.divf %393, %394 : vector<8x1xf32>
    %cst_147 = arith.constant 9.99999974E-6 : f32
    %396 = vector.broadcast %cst_147 : f32 to vector<8x1xf32>
    %397 = arith.addf %395, %396 : vector<8x1xf32>
    %398 = math.rsqrt %397 : vector<8x1xf32>
    %399 = vector.broadcast %398 : vector<8x1xf32> to vector<8x32xf32>
    %400 = arith.mulf %390, %399 : vector<8x32xf32>
    %401 = vector.broadcast %383 : vector<1x32xf32> to vector<8x32xf32>
    %402 = arith.mulf %400, %401 : vector<8x32xf32>
    %403 = vector.broadcast %384 : vector<1x32xf32> to vector<8x32xf32>
    %404 = arith.addf %402, %403 : vector<8x32xf32>
    %405 = arith.truncf %404 : vector<8x32xf32> to vector<8x32xbf16>
    %c0_148 = arith.constant 0 : index
    %c0_149 = arith.constant 0 : index
    %406 = vector.load %arg26[%c0_148, %c0_149] : memref<32x64xbf16, #tpu.memory_space<vmem>>, vector<32x64xbf16>
    %cst_150 = arith.constant dense<0.000000e+00> : vector<8x64xf32>
    %407 = tpu.matmul %405, %406, %cst_150 {dimension_numbers = #tpu.dot_dimension_numbers<[1], [0], [0], [1], [0, 0, 1, 1], [], []>} : vector<8x32xbf16>, vector<32x64xbf16>, vector<8x64xf32> -> vector<8x64xf32>
    %c0_151 = arith.constant 0 : index
    %c0_152 = arith.constant 0 : index
    %408 = vector.load %arg27[%c0_151, %c0_152] : memref<1x64xf32, #tpu.memory_space<vmem>>, vector<1x64xf32>
    %409 = vector.broadcast %408 : vector<1x64xf32> to vector<8x64xf32>
    %410 = arith.addf %407, %409 : vector<8x64xf32>
    %cst_153 = arith.constant 0.000000e+00 : f32
    %411 = vector.broadcast %cst_153 : f32 to vector<8x64xf32>
    %412 = arith.cmpf oge, %410, %411 : vector<8x64xf32>
    %cst_154 = arith.constant 0.00999999977 : f32
    %413 = vector.broadcast %cst_154 : f32 to vector<8x64xf32>
    %414 = arith.mulf %413, %410 : vector<8x64xf32>
    %415 = arith.select %412, %410, %414 : vector<8x64xi1>, vector<8x64xf32>
    %416 = arith.truncf %415 : vector<8x64xf32> to vector<8x64xbf16>
    %c0_155 = arith.constant 0 : index
    %c0_156 = arith.constant 0 : index
    %417 = vector.load %arg28[%c0_155, %c0_156] : memref<64x32xbf16, #tpu.memory_space<vmem>>, vector<64x32xbf16>
    %cst_157 = arith.constant dense<0.000000e+00> : vector<8x32xf32>
    %418 = tpu.matmul %416, %417, %cst_157 {dimension_numbers = #tpu.dot_dimension_numbers<[1], [0], [0], [1], [0, 0, 1, 1], [], []>} : vector<8x64xbf16>, vector<64x32xbf16>, vector<8x32xf32> -> vector<8x32xf32>
    %c0_158 = arith.constant 0 : index
    %c0_159 = arith.constant 0 : index
    %419 = vector.load %arg29[%c0_158, %c0_159] : memref<1x32xf32, #tpu.memory_space<vmem>>, vector<1x32xf32>
    %420 = vector.broadcast %419 : vector<1x32xf32> to vector<8x32xf32>
    %421 = arith.addf %418, %420 : vector<8x32xf32>
    %c0_160 = arith.constant 0 : index
    %c0_161 = arith.constant 0 : index
    %422 = vector.load %arg30[%c0_160, %c0_161] : memref<1x32xf32, #tpu.memory_space<vmem>>, vector<1x32xf32>
    %423 = vector.broadcast %422 : vector<1x32xf32> to vector<8x32xf32>
    %424 = arith.mulf %404, %423 : vector<8x32xf32>
    %cst_162 = arith.constant dense<0.000000e+00> : vector<8xf32>
    %425 = vector.multi_reduction <add>, %424, %cst_162 [1] : vector<8x32xf32> to vector<8xf32>
    %426 = vector.shape_cast %425 : vector<8xf32> to vector<8x1xf32>
    %c0_163 = arith.constant 0 : index
    %c0_164 = arith.constant 0 : index
    %427 = vector.load %arg31[%c0_163, %c0_164] : memref<1x1xf32, #tpu.memory_space<vmem>>, vector<1x1xf32>
    %428 = vector.broadcast %427 : vector<1x1xf32> to vector<8x1xf32>
    %429 = arith.addf %426, %428 : vector<8x1xf32>
    %cst_165 = arith.constant 0.000000e+00 : f32
    %430 = vector.broadcast %cst_165 : f32 to vector<8x1xf32>
    %431 = arith.cmpf oge, %429, %430 : vector<8x1xf32>
    %cst_166 = arith.constant 0.00999999977 : f32
    %432 = vector.broadcast %cst_166 : f32 to vector<8x1xf32>
    %433 = arith.mulf %432, %429 : vector<8x1xf32>
    %434 = arith.select %431, %429, %433 : vector<8x1xi1>, vector<8x1xf32>
    %c0_167 = arith.constant 0 : index
    %c0_168 = arith.constant 0 : index
    %435 = vector.load %arg32[%c0_167, %c0_168] : memref<1x32xf32, #tpu.memory_space<vmem>>, vector<1x32xf32>
    %436 = vector.broadcast %434 : vector<8x1xf32> to vector<8x32xf32>
    %437 = vector.broadcast %435 : vector<1x32xf32> to vector<8x32xf32>
    %438 = arith.mulf %436, %437 : vector<8x32xf32>
    %c0_169 = arith.constant 0 : index
    %c0_170 = arith.constant 0 : index
    %439 = vector.load %arg33[%c0_169, %c0_170] : memref<1x32xf32, #tpu.memory_space<vmem>>, vector<1x32xf32>
    %440 = vector.broadcast %439 : vector<1x32xf32> to vector<8x32xf32>
    %441 = arith.addf %438, %440 : vector<8x32xf32>
    %cst_171 = arith.constant 0.000000e+00 : f32
    %442 = vector.broadcast %cst_171 : f32 to vector<8x32xf32>
    %443 = arith.subf %442, %441 : vector<8x32xf32>
    %444 = math.exp %443 : vector<8x32xf32>
    %cst_172 = arith.constant 1.000000e+00 : f32
    %445 = vector.broadcast %cst_172 : f32 to vector<8x32xf32>
    %446 = arith.addf %445, %444 : vector<8x32xf32>
    %cst_173 = arith.constant 1.000000e+00 : f32
    %447 = vector.broadcast %cst_173 : f32 to vector<8x32xf32>
    %448 = arith.divf %447, %446 : vector<8x32xf32>
    %449 = arith.mulf %404, %448 : vector<8x32xf32>
    %cst_174 = arith.constant 1.000000e+00 : f32
    %450 = vector.broadcast %cst_174 : f32 to vector<8x32xf32>
    %451 = arith.subf %450, %448 : vector<8x32xf32>
    %452 = arith.mulf %421, %451 : vector<8x32xf32>
    %453 = arith.addf %449, %452 : vector<8x32xf32>
    %c0_175 = arith.constant 0 : index
    %c0_176 = arith.constant 0 : index
    %454 = vector.load %arg34[%c0_175, %c0_176] : memref<1x32xf32, #tpu.memory_space<vmem>>, vector<1x32xf32>
    %c0_177 = arith.constant 0 : index
    %c0_178 = arith.constant 0 : index
    %455 = vector.load %arg35[%c0_177, %c0_178] : memref<1x32xf32, #tpu.memory_space<vmem>>, vector<1x32xf32>
    %cst_179 = arith.constant dense<0.000000e+00> : vector<8xf32>
    %456 = vector.multi_reduction <add>, %453, %cst_179 [1] : vector<8x32xf32> to vector<8xf32>
    %457 = vector.shape_cast %456 : vector<8xf32> to vector<8x1xf32>
    %cst_180 = arith.constant 3.200000e+01 : f32
    %458 = vector.broadcast %cst_180 : f32 to vector<8x1xf32>
    %459 = arith.divf %457, %458 : vector<8x1xf32>
    %460 = vector.broadcast %459 : vector<8x1xf32> to vector<8x32xf32>
    %461 = arith.subf %453, %460 : vector<8x32xf32>
    %462 = arith.mulf %461, %461 : vector<8x32xf32>
    %cst_181 = arith.constant dense<0.000000e+00> : vector<8xf32>
    %463 = vector.multi_reduction <add>, %462, %cst_181 [1] : vector<8x32xf32> to vector<8xf32>
    %464 = vector.shape_cast %463 : vector<8xf32> to vector<8x1xf32>
    %cst_182 = arith.constant 3.200000e+01 : f32
    %465 = vector.broadcast %cst_182 : f32 to vector<8x1xf32>
    %466 = arith.divf %464, %465 : vector<8x1xf32>
    %cst_183 = arith.constant 9.99999974E-6 : f32
    %467 = vector.broadcast %cst_183 : f32 to vector<8x1xf32>
    %468 = arith.addf %466, %467 : vector<8x1xf32>
    %469 = math.rsqrt %468 : vector<8x1xf32>
    %470 = vector.broadcast %469 : vector<8x1xf32> to vector<8x32xf32>
    %471 = arith.mulf %461, %470 : vector<8x32xf32>
    %472 = vector.broadcast %454 : vector<1x32xf32> to vector<8x32xf32>
    %473 = arith.mulf %471, %472 : vector<8x32xf32>
    %474 = vector.broadcast %455 : vector<1x32xf32> to vector<8x32xf32>
    %475 = arith.addf %473, %474 : vector<8x32xf32>
    %c0_184 = arith.constant 0 : index
    %c0_185 = arith.constant 0 : index
    %c0_186 = arith.constant 0 : index
    %476 = vector.load %arg36[%c0_184, %c0_185, %c0_186] : memref<1x8x32xf32, #tpu.memory_space<vmem>>, vector<1x8x32xf32>
    %477 = vector.shape_cast %476 : vector<1x8x32xf32> to vector<8x32xf32>
    %478 = vector.shape_cast %475 : vector<8x32xf32> to vector<1x8x32xf32>
    tpu.vector_store %arg36[%c0_184, %c0_185, %c0_186], %478 {strides = array<i32>} : memref<1x8x32xf32, #tpu.memory_space<vmem>>, vector<1x8x32xf32>,
    return
  }
  func.func @transform_0(%arg0: i32) -> (i32, i32, i32) {
    %c0_i32 = arith.constant 0 : i32
    %c0_i32_0 = arith.constant 0 : i32
    %c0_i32_1 = arith.constant 0 : i32
    %c0_i32_2 = arith.constant 0 : i32
    return %c0_i32, %c0_i32_0, %c0_i32_1 : i32, i32, i32
  }
  func.func @transform_1(%arg0: i32) -> (i32, i32, i32) {
    %c0_i32 = arith.constant 0 : i32
    %c0_i32_0 = arith.constant 0 : i32
    %c0_i32_1 = arith.constant 0 : i32
    return %arg0, %c0_i32, %c0_i32_0 : i32, i32, i32
  }
  func.func @transform_2(%arg0: i32) -> (i32, i32, i32) {
    %c0_i32 = arith.constant 0 : i32
    %c0_i32_0 = arith.constant 0 : i32
    %c0_i32_1 = arith.constant 0 : i32
    return %arg0, %c0_i32, %c0_i32_0 : i32, i32, i32
  }
  func.func @transform_3(%arg0: i32) -> (i32, i32) {
    %c0_i32 = arith.constant 0 : i32
    %c0_i32_0 = arith.constant 0 : i32
    %c0_i32_1 = arith.constant 0 : i32
    return %c0_i32, %c0_i32_0 : i32, i32
  }
  func.func @transform_4(%arg0: i32) -> (i32, i32) {
    %c0_i32 = arith.constant 0 : i32
    %c0_i32_0 = arith.constant 0 : i32
    %c0_i32_1 = arith.constant 0 : i32
    return %c0_i32, %c0_i32_0 : i32, i32
  }
  func.func @transform_5(%arg0: i32) -> (i32, i32) {
    %c0_i32 = arith.constant 0 : i32
    %c0_i32_0 = arith.constant 0 : i32
    %c0_i32_1 = arith.constant 0 : i32
    return %c0_i32, %c0_i32_0 : i32, i32
  }
  func.func @transform_6(%arg0: i32) -> (i32, i32) {
    %c0_i32 = arith.constant 0 : i32
    %c0_i32_0 = arith.constant 0 : i32
    %c0_i32_1 = arith.constant 0 : i32
    return %c0_i32, %c0_i32_0 : i32, i32
  }
  func.func @transform_7(%arg0: i32) -> (i32, i32) {
    %c0_i32 = arith.constant 0 : i32
    %c0_i32_0 = arith.constant 0 : i32
    %c0_i32_1 = arith.constant 0 : i32
    return %c0_i32, %c0_i32_0 : i32, i32
  }
  func.func @transform_8(%arg0: i32) -> (i32, i32) {
    %c0_i32 = arith.constant 0 : i32
    %c0_i32_0 = arith.constant 0 : i32
    %c0_i32_1 = arith.constant 0 : i32
    return %c0_i32, %c0_i32_0 : i32, i32
  }
  func.func @transform_9(%arg0: i32) -> (i32, i32) {
    %c0_i32 = arith.constant 0 : i32
    %c0_i32_0 = arith.constant 0 : i32
    %c0_i32_1 = arith.constant 0 : i32
    return %c0_i32, %c0_i32_0 : i32, i32
  }
  func.func @transform_10(%arg0: i32) -> (i32, i32) {
    %c0_i32 = arith.constant 0 : i32
    %c0_i32_0 = arith.constant 0 : i32
    %c0_i32_1 = arith.constant 0 : i32
    return %c0_i32, %c0_i32_0 : i32, i32
  }
  func.func @transform_11(%arg0: i32) -> (i32, i32) {
    %c0_i32 = arith.constant 0 : i32
    %c0_i32_0 = arith.constant 0 : i32
    %c0_i32_1 = arith.constant 0 : i32
    return %c0_i32, %c0_i32_0 : i32, i32
  }
  func.func @transform_12(%arg0: i32) -> (i32, i32) {
    %c0_i32 = arith.constant 0 : i32
    %c0_i32_0 = arith.constant 0 : i32
    %c0_i32_1 = arith.constant 0 : i32
    return %c0_i32, %c0_i32_0 : i32, i32
  }
  func.func @transform_13(%arg0: i32) -> (i32, i32) {
    %c0_i32 = arith.constant 0 : i32
    %c0_i32_0 = arith.constant 0 : i32
    %c0_i32_1 = arith.constant 0 : i32
    return %c0_i32, %c0_i32_0 : i32, i32
  }
  func.func @transform_14(%arg0: i32) -> (i32, i32) {
    %c0_i32 = arith.constant 0 : i32
    %c0_i32_0 = arith.constant 0 : i32
    %c0_i32_1 = arith.constant 0 : i32
    return %c0_i32, %c0_i32_0 : i32, i32
  }
  func.func @transform_15(%arg0: i32) -> (i32, i32) {
    %c0_i32 = arith.constant 0 : i32
    %c0_i32_0 = arith.constant 0 : i32
    %c0_i32_1 = arith.constant 0 : i32
    return %c0_i32, %c0_i32_0 : i32, i32
  }
  func.func @transform_16(%arg0: i32) -> (i32, i32) {
    %c0_i32 = arith.constant 0 : i32
    %c0_i32_0 = arith.constant 0 : i32
    %c0_i32_1 = arith.constant 0 : i32
    return %c0_i32, %c0_i32_0 : i32, i32
  }
  func.func @transform_17(%arg0: i32) -> (i32, i32) {
    %c0_i32 = arith.constant 0 : i32
    %c0_i32_0 = arith.constant 0 : i32
    %c0_i32_1 = arith.constant 0 : i32
    return %c0_i32, %c0_i32_0 : i32, i32
  }
  func.func @transform_18(%arg0: i32) -> (i32, i32) {
    %c0_i32 = arith.constant 0 : i32
    %c0_i32_0 = arith.constant 0 : i32
    %c0_i32_1 = arith.constant 0 : i32
    return %c0_i32, %c0_i32_0 : i32, i32
  }
  func.func @transform_19(%arg0: i32) -> (i32, i32) {
    %c0_i32 = arith.constant 0 : i32
    %c0_i32_0 = arith.constant 0 : i32
    %c0_i32_1 = arith.constant 0 : i32
    return %c0_i32, %c0_i32_0 : i32, i32
  }
  func.func @transform_20(%arg0: i32) -> (i32, i32) {
    %c0_i32 = arith.constant 0 : i32
    %c0_i32_0 = arith.constant 0 : i32
    %c0_i32_1 = arith.constant 0 : i32
    return %c0_i32, %c0_i32_0 : i32, i32
  }
  func.func @transform_21(%arg0: i32) -> (i32, i32) {
    %c0_i32 = arith.constant 0 : i32
    %c0_i32_0 = arith.constant 0 : i32
    %c0_i32_1 = arith.constant 0 : i32
    return %c0_i32, %c0_i32_0 : i32, i32
  }
  func.func @transform_22(%arg0: i32) -> (i32, i32) {
    %c0_i32 = arith.constant 0 : i32
    %c0_i32_0 = arith.constant 0 : i32
    %c0_i32_1 = arith.constant 0 : i32
    return %c0_i32, %c0_i32_0 : i32, i32
  }
  func.func @transform_23(%arg0: i32) -> (i32, i32) {
    %c0_i32 = arith.constant 0 : i32
    %c0_i32_0 = arith.constant 0 : i32
    %c0_i32_1 = arith.constant 0 : i32
    return %c0_i32, %c0_i32_0 : i32, i32
  }
  func.func @transform_24(%arg0: i32) -> (i32, i32) {
    %c0_i32 = arith.constant 0 : i32
    %c0_i32_0 = arith.constant 0 : i32
    %c0_i32_1 = arith.constant 0 : i32
    return %c0_i32, %c0_i32_0 : i32, i32
  }
  func.func @transform_25(%arg0: i32) -> (i32, i32) {
    %c0_i32 = arith.constant 0 : i32
    %c0_i32_0 = arith.constant 0 : i32
    %c0_i32_1 = arith.constant 0 : i32
    return %c0_i32, %c0_i32_0 : i32, i32
  }
  func.func @transform_26(%arg0: i32) -> (i32, i32) {
    %c0_i32 = arith.constant 0 : i32
    %c0_i32_0 = arith.constant 0 : i32
    %c0_i32_1 = arith.constant 0 : i32
    return %c0_i32, %c0_i32_0 : i32, i32
  }
  func.func @transform_27(%arg0: i32) -> (i32, i32) {
    %c0_i32 = arith.constant 0 : i32
    %c0_i32_0 = arith.constant 0 : i32
    %c0_i32_1 = arith.constant 0 : i32
    return %c0_i32, %c0_i32_0 : i32, i32
  }
  func.func @transform_28(%arg0: i32) -> (i32, i32) {
    %c0_i32 = arith.constant 0 : i32
    %c0_i32_0 = arith.constant 0 : i32
    %c0_i32_1 = arith.constant 0 : i32
    return %c0_i32, %c0_i32_0 : i32, i32
  }
  func.func @transform_29(%arg0: i32) -> (i32, i32) {
    %c0_i32 = arith.constant 0 : i32
    %c0_i32_0 = arith.constant 0 : i32
    %c0_i32_1 = arith.constant 0 : i32
    return %c0_i32, %c0_i32_0 : i32, i32
  }
  func.func @transform_30(%arg0: i32) -> (i32, i32) {
    %c0_i32 = arith.constant 0 : i32
    %c0_i32_0 = arith.constant 0 : i32
    %c0_i32_1 = arith.constant 0 : i32
    return %c0_i32, %c0_i32_0 : i32, i32
  }
  func.func @transform_31(%arg0: i32) -> (i32, i32) {
    %c0_i32 = arith.constant 0 : i32
    %c0_i32_0 = arith.constant 0 : i32
    %c0_i32_1 = arith.constant 0 : i32
    return %c0_i32, %c0_i32_0 : i32, i32
  }
  func.func @transform_32(%arg0: i32) -> (i32, i32) {
    %c0_i32 = arith.constant 0 : i32
    %c0_i32_0 = arith.constant 0 : i32
    %c0_i32_1 = arith.constant 0 : i32
    return %c0_i32, %c0_i32_0 : i32, i32
  }
  func.func @transform_33(%arg0: i32) -> (i32, i32) {
    %c0_i32 = arith.constant 0 : i32
    %c0_i32_0 = arith.constant 0 : i32
    %c0_i32_1 = arith.constant 0 : i32
    return %c0_i32, %c0_i32_0 : i32, i32
  }
  func.func @transform_34(%arg0: i32) -> (i32, i32) {
    %c0_i32 = arith.constant 0 : i32
    %c0_i32_0 = arith.constant 0 : i32
    %c0_i32_1 = arith.constant 0 : i32
    return %c0_i32, %c0_i32_0 : i32, i32
  }
  func.func @transform_35(%arg0: i32) -> (i32, i32, i32) {
    %c0_i32 = arith.constant 0 : i32
    %c0_i32_0 = arith.constant 0 : i32
    %c0_i32_1 = arith.constant 0 : i32
    return %arg0, %c0_i32, %c0_i32_0 : i32, i32, i32
  }
}

</mosaic_0001>

<bundles_post_ra>
// kernel: transformer_decoder_forward.2
= control target key start
LH: loop header
LB: loop body
LE: loop exit
PB: predicated region body
PF: predicated region fallthrough
CT: control target
= control target key end

     0   :  { %s5469_s6 = smov 1   ;;  %s5470_s10 = smov 2   ;;  %s6300_s0 = inlined_call_operand.smem [shape: u32[36], index: -1, kind: input, shape index: {}] }
   0x1   :  { %s5539_s5 = sld [smem:[%s6300_s0]]   ;;  %s5471_s14 = smov 3  }
   0x2   :  { %s5544_s9 = sld [smem:[%s6300_s0 + %s5469_s6]]   ;;  %s5472_s18 = smov 4  }
   0x3   :  { %s5549_s13 = sld [smem:[%s6300_s0 + %s5470_s10]]   ;;  %s5473_s22 = smov 5  }
   0x4   :  { %s5554_s17 = sld [smem:[%s6300_s0 + %s5471_s14]]   ;;  %s5474_s26 = smov 6  }
   0x5   :  { %s5559_s21 = sld [smem:[%s6300_s0 + %s5472_s18]]   ;;  %s5475_s30 = smov 7  }
   0x6   :  { %s5564_s25 = sld [smem:[%s6300_s0 + %s5473_s22]]   ;;  %s5476_s4 = smov 8  }
   0x7   :  { %6312 = sst [smem:[#allocation26_spill]] %s5539_s5  ;;  %s5477_s10 = smov 9  }
   0x8   :  { %s5569_s29 = sld [smem:[%s6300_s0 + %s5474_s26]]   ;;  %s5478_s15 = smov 10  }
   0x9   :  { %6313 = sst [smem:[#allocation27_spill]] %s5549_s13  ;;  %s5479_s20 = smov 11  }
   0xa   :  { %s5574_s3 = sld [smem:[%s6300_s0 + %s5475_s30]]   ;;  %s5480_s26 = smov 12  }
   0xb   :  { %s5579_s8 = sld [smem:[%s6300_s0 + %s5476_s4]]   ;;  %s5481_s1 = smov 13  }
   0xc   :  { %6314 = sst [smem:[#allocation28_spill]] %s5564_s25  ;;  %s5482_s7 = smov 14  }
   0xd   :  { %s5584_s14 = sld [smem:[%s6300_s0 + %s5477_s10]]   ;;  %s5484_s22 = smov 16  }
   0xe   :  { %6315 = sst [smem:[#allocation29_spill]] %s5569_s29  ;;  %s5485_s28 = smov 17  }
   0xf   :  { %s5589_s19 = sld [smem:[%s6300_s0 + %s5478_s15]]   ;;  %s5483_s15 = smov 15  }
  0x10   :  { %6316 = sst [smem:[#allocation30_spill]] %s5574_s3  ;;  %s5499_s16 = smov 31  }
  0x11   :  { %6317 = sst [smem:[#allocation31_spill]] %s5579_s8  ;;  %s5500_s23 = smov 32  }
  0x12   :  { %s5594_s24 = sld [smem:[%s6300_s0 + %s5479_s20]]   ;;  %s5502_s10 = smov 34  }
  0x13   :  { %6318 = sst [smem:[#allocation32_spill]] %s5584_s14 }
  0x14   :  { %s5599_s30 = sld [smem:[%s6300_s0 + %s5480_s26]]  }
  0x15   :  { %6319 = sst [smem:[#allocation33_spill]] %s5589_s19 }
  0x16   :  { %s5604_s6 = sld [smem:[%s6300_s0 + %s5481_s1]]   ;;  %s5501_s1 = smov 33  }
  0x17   :  { %s5609_s12 = sld [smem:[%s6300_s0 + %s5482_s7]]   ;;  %s5486_s7 = smov 18  }
  0x18   :  { %6320 = sst [smem:[#allocation34_spill]] %s5594_s24 }
  0x19   :  { %s5614_s20 = sld [smem:[%s6300_s0 + %s5483_s15]]   ;;  %s5487_s15 = smov 19  }
  0x1a   :  { %6321 = sst [smem:[#allocation35_spill]] %s5599_s30 }
  0x1b   :  { %s5619_s27 = sld [smem:[%s6300_s0 + %s5484_s22]]   ;;  %s5488_s22 = smov 20  }
  0x1c   :  { %6322 = sst [smem:[#allocation36_spill]] %s5604_s6 }
  0x1d   :  { %6323 = sst [smem:[#allocation37_spill]] %s5609_s12 }
  0x1e   :  { %s5624_s4 = sld [smem:[%s6300_s0 + %s5485_s28]]   ;;  %s5489_s28 = smov 21  }
  0x1f   :  { %6324 = sst [smem:[#allocation38_spill]] %s5614_s20 }
  0x20   :  { %s5629_s13 = sld [smem:[%s6300_s0 + %s5486_s7]]   ;;  %s5490_s7 = smov 22  }
  0x21   :  { %6325 = sst [smem:[#allocation39_spill]] %s5619_s27 }
  0x22   :  { %s5634_s20 = sld [smem:[%s6300_s0 + %s5487_s15]]   ;;  %s5491_s15 = smov 23  }
  0x23   :  { %s5639_s27 = sld [smem:[%s6300_s0 + %s5488_s22]]   ;;  %s5492_s22 = smov 24  }
  0x24   :  { %s5644_s12 = sld [smem:[%s6300_s0 + %s5489_s28]]   ;;  %s5493_s28 = smov 25  }
  0x25   :  { %s5649_s6 = sld [smem:[%s6300_s0 + %s5490_s7]]   ;;  %s5494_s7 = smov 26  }
  0x26   :  { %s5654_s30 = sld [smem:[%s6300_s0 + %s5491_s15]]   ;;  %s5495_s15 = smov 27  }
  0x27   :  { %s5659_s8 = sld [smem:[%s6300_s0 + %s5492_s22]]   ;;  %s5496_s22 = smov 28  }
  0x28   :  { %s5664_s3 = sld [smem:[%s6300_s0 + %s5493_s28]]   ;;  %s5497_s28 = smov 29  }
  0x29   :  { %s5669_s24 = sld [smem:[%s6300_s0 + %s5494_s7]]   ;;  %s5498_s7 = smov 30  }
  0x2a   :  { %s5674_s29 = sld [smem:[%s6300_s0 + %s5495_s15]]  }
  0x2b   :  { %s5679_s19 = sld [smem:[%s6300_s0 + %s5496_s22]]  }
  0x2c   :  { %s4376_s5 = sld [smem:[%s6300_s0 + %s5498_s7]]  }
  0x2d   :  { %s5697_s14 = sld [smem:[%s6300_s0 + %s5500_s23]]  }
  0x2e   :  { %6326 = sst [smem:[#allocation40_spill]] %s5664_s3 }
  0x2f   :  { %s5684_s3 = sld [smem:[%s6300_s0 + %s5497_s28]]  }
  0x30   :  { %6327 = sst [smem:[#allocation41_spill]] %s5674_s29 }
  0x31   :  { %s5692_s29 = sld [smem:[%s6300_s0 + %s5499_s16]]   ;;  %s5503_s16 = smov 35  }
  0x32   :  { %s5707_s25 = sld [smem:[%s6300_s0 + %s5502_s10]]   ;;  %v76_v0 = vstv %s4376_s5 }
  0x33   :  { %77 = vst [vmem:[#allocation2] sm:$0x1] %v76_v0 }
  0x35   :  { %6328 = sst [smem:[#allocation42_spill]] %s5684_s3 }
  0x36   :  { %s5702_s3 = sld [smem:[%s6300_s0 + %s5501_s1]]  }
  0x37   :  { %6329 = sst [smem:[#allocation43_spill]] %s5692_s29 }
  0x38   :  { %s5712_s29 = sld [smem:[%s6300_s0 + %s5503_s16]]  }
  0x39   :  { %78 = vsyncpa [#allocation4], 0 }
  0x3a   :  { %79 = vsyncpa [#allocation6], 0 }
  0x3b   :  { %80 = vsyncpa [#allocation9], 0 }
  0x3c   :  { %81 = vsyncpa [#allocation12], 0 }
  0x3d   :  { %82 = vsyncpa [#allocation15], 0 }
  0x3e   :  { %83 = vsyncpa [#allocation18], 0  ;;  %s5714_s23 = smov 0  }
  0x3f LB: > { %s5504_s0 = smov [#allocation5]   ;;  %s5720_s5 = sadd.s32 4294967295, %s5467_s23   ;;  %s5467_s23 = sphi %s5714_s23, %s89_s23  }
  0x40   : > { %s936_s22 = sshll.u32 %s5504_s0, 4  ;;  %p4384_p0 = scmp.ge.s32.totalorder %s5467_s23, 1  ;;  %s5725_s22 = int_to_ptr.vmem [resolvable:$true] %s936_s22 }
  0x41   : > { %p865_p1 = scmp.lt.s32.totalorder %s5467_s23, 3  ;;  %p6307_p2 = scmp.eq.s32.totalorder %s5720_s5, 0 }
  0x42   : > { %s5505_s1 = smov [#allocation8]   ;;  %s5506_s2 = smov [#allocation11]  }
  0x43   : > { %p5727_p3 = pnand %p4384_p0, %p865_p1  ;;  %s960_s28 = sshll.u32 %s5505_s1, 4  ;;  %s5733_s28 = int_to_ptr.vmem [resolvable:$true] %s960_s28 }
  0x44   : > { %s984_s10 = sshll.u32 %s5506_s2, 4  ;;  %s5507_s11 = smov [#allocation14]   ;;  %s5741_s10 = int_to_ptr.vmem [resolvable:$true] %s984_s10 }
  0x45   : > { %s6330_s26 = scalar_select %p5727_p3, 1, 0 }
  0x46   : > { %p4925_p4 = pneg %p5727_p3  ;;  %s1006_s16 = sshll.u32 %s5507_s11, 4  ;;  %s5743_s16 = int_to_ptr.vmem [resolvable:$true] %s1006_s16 }
  0x47   : > { %s5129_s15 = scalar_lea.hbm %s5629_s13, 16 }
  0x48   : > { %p5737_p5 = pnand %p6307_p2, %p4925_p4  ;;  %p5130_p6 = scmp.ne.s32.totalorder %s5629_s13, %s5129_s15 }
  0x49   : > { %p5136_p10 = scmp.lt.u32.totalorder %s5129_s15, %s5629_s13 }
  0x4a   : > { %p5749_p7 = pneg %p5737_p5 }
  0x4c   : > { %p5132_p8 = pnand %p5749_p7, %p5130_p6 }
  0x4e   : > { %p5133_p9 = pneg %p5132_p8 }
  0x50   : > { %p5138_p11 = pnand %p5136_p10, %p5133_p9 }
  0x52   : > { %5141 = shalt.err (!%p5138_p11)
}
  0x53   : > { %s5142_s0 = scalar_lea.vmem %s5725_s22, 16  ;;  %s5149_s1 = scalar_lea.vmem %s5725_s22, 32 }
  0x54   : > { %p5143_p12 = scmp.ne.s32.totalorder %s5725_s22, %s5142_s0  ;;  %p5150_p1 = scmp.lt.s32.totalorder %s5725_s22, %s5725_s22 }
  0x55   : > { %p5151_p4 = scmp.lt.s32.totalorder %s5149_s1, %s5142_s0 }
  0x56   : > { %p5145_p13 = pnand %p5143_p12, %p5749_p7 }
  0x57   : > { %p5152_p2 = por %p5151_p4, %p5150_p1 }
  0x58   : > { %p5146_p0 = pneg %p5145_p13 }
  0x5a   : > { %p5153_p6 = pnand %p5152_p2, %p5146_p0 }
  0x5c   : > { %5156 = shalt.err (!%p5153_p6)
}
  0x5d   : > { %4931 = dma.hbm_to_vmem [thread:$0]  (!%p5737_p5), %s5629_s13, 16, %s5725_s22, [#allocation6]  }
  0x5e   : > { %s5157_s2 = scalar_lea.hbm %s5639_s27, 16 }
  0x5f   : > { %p5158_p8 = scmp.ne.s32.totalorder %s5639_s27, %s5157_s2  ;;  %p5164_p11 = scmp.lt.u32.totalorder %s5157_s2, %s5639_s27 }
  0x61   : > { %p5160_p9 = pnand %p5158_p8, %p5749_p7 }
  0x63   : > { %p5161_p10 = pneg %p5160_p9 }
  0x65   : > { %p5166_p12 = pnand %p5164_p11, %p5161_p10 }
  0x67   : > { %5169 = shalt.err (!%p5166_p12)
}
  0x68   : > { %s5170_s11 = scalar_lea.vmem %s5733_s28, 16  ;;  %s5177_s15 = scalar_lea.vmem %s5733_s28, 32 }
  0x69   : > { %p5171_p2 = scmp.ne.s32.totalorder %s5733_s28, %s5170_s11  ;;  %p5178_p1 = scmp.lt.s32.totalorder %s5733_s28, %s5733_s28 }
  0x6a   : > { %p5179_p4 = scmp.lt.s32.totalorder %s5177_s15, %s5170_s11 }
  0x6b   : > { %p5173_p13 = pnand %p5171_p2, %p5749_p7 }
  0x6c   : > { %p5180_p6 = por %p5179_p4, %p5178_p1 }
  0x6d   : > { %p5174_p0 = pneg %p5173_p13 }
  0x6f   : > { %p5181_p8 = pnand %p5180_p6, %p5174_p0 }
  0x71   : > { %5184 = shalt.err (!%p5181_p8)
}
  0x72   : > { %4937 = dma.hbm_to_vmem [thread:$0]  (!%p5737_p5), %s5639_s27, 16, %s5733_s28, [#allocation9]  }
  0x73   : > { %s5185_s22 = scalar_lea.hbm %s5649_s6, 16 }
  0x74   : > { %p5186_p9 = scmp.ne.s32.totalorder %s5649_s6, %s5185_s22  ;;  %p5192_p12 = scmp.lt.u32.totalorder %s5185_s22, %s5649_s6 }
  0x76   : > { %p5188_p10 = pnand %p5186_p9, %p5749_p7 }
  0x78   : > { %p5189_p11 = pneg %p5188_p10 }
  0x7a   : > { %p5194_p2 = pnand %p5192_p12, %p5189_p11 }
  0x7c   : > { %5197 = shalt.err (!%p5194_p2)
}
  0x7d   : > { %s5198_s0 = scalar_lea.vmem %s5741_s10, 16  ;;  %s5205_s1 = scalar_lea.vmem %s5741_s10, 32 }
  0x7e   : > { %p5199_p13 = scmp.ne.s32.totalorder %s5741_s10, %s5198_s0  ;;  %p5206_p4 = scmp.lt.s32.totalorder %s5741_s10, %s5741_s10 }
  0x7f   : > { %p5207_p6 = scmp.lt.s32.totalorder %s5205_s1, %s5198_s0 }
  0x80   : > { %p5201_p0 = pnand %p5199_p13, %p5749_p7 }
  0x81   : > { %p5208_p8 = por %p5207_p6, %p5206_p4 }
  0x82   : > { %p5202_p1 = pneg %p5201_p0 }
  0x84   : > { %p5209_p9 = pnand %p5208_p8, %p5202_p1 }
  0x86   : > { %5212 = shalt.err (!%p5209_p9)
}
  0x87   : > { %4943 = dma.hbm_to_vmem [thread:$0]  (!%p5737_p5), %s5649_s6, 16, %s5741_s10, [#allocation12]  }
  0x88   : > { %s5213_s28 = scalar_lea.hbm %s5659_s8, 16 }
  0x89   : > { %p5214_p10 = scmp.ne.s32.totalorder %s5659_s8, %s5213_s28  ;;  %p5220_p2 = scmp.lt.u32.totalorder %s5213_s28, %s5659_s8 }
  0x8b   : > { %p5216_p11 = pnand %p5214_p10, %p5749_p7 }
  0x8d   : > { %p5217_p12 = pneg %p5216_p11 }
  0x8f   : > { %p5222_p13 = pnand %p5220_p2, %p5217_p12 }
  0x91   : > { %5225 = shalt.err (!%p5222_p13)
}
  0x92   : > { %s5226_s2 = scalar_lea.vmem %s5743_s16, 16  ;;  %s5233_s11 = scalar_lea.vmem %s5743_s16, 32 }
  0x93   : > { %p5227_p0 = scmp.ne.s32.totalorder %s5743_s16, %s5226_s2  ;;  %p5234_p6 = scmp.lt.s32.totalorder %s5743_s16, %s5743_s16 }
  0x94   : > { %p5235_p8 = scmp.lt.s32.totalorder %s5233_s11, %s5226_s2 }
  0x95   : > { %p5229_p1 = pnand %p5227_p0, %p5749_p7 }
  0x96   : > { %p5236_p9 = por %p5235_p8, %p5234_p6 }
  0x97   : > { %p5230_p4 = pneg %p5229_p1 }
  0x99   : > { %p5237_p10 = pnand %p5236_p9, %p5230_p4 }
  0x9b   : > { %5240 = shalt.err (!%p5237_p10)
}
  0x9c   : > { %4949 = dma.hbm_to_vmem [thread:$0]  (!%p5737_p5), %s5659_s8, 16, %s5743_s16, [#allocation15]  }
  0x9d   : > { %s5508_s10 = smov [#allocation17]   ;;  %s5509_s22 = smov [#allocation3]  }
  0x9e   : > { %s1034_s15 = sshll.u32 %s5508_s10, 4  ;;  %s922_s0 = sshll.u32 %s5509_s22, 4  ;;  %s1035_s15 = int_to_ptr.vmem [resolvable:$true] %s1034_s15  ;;  %s923_s0 = int_to_ptr.vmem [resolvable:$true] %s922_s0 }
  0x9f   : > { %s5241_s1 = scalar_lea.hbm %s5679_s19, 16 }
  0xa0   : > { %p5242_p11 = scmp.ne.s32.totalorder %s5679_s19, %s5241_s1  ;;  %p5248_p13 = scmp.lt.u32.totalorder %s5241_s1, %s5679_s19 }
  0xa2   : > { %p5244_p12 = pnand %p5242_p11, %p5749_p7 }
  0xa4   : > { %p5245_p2 = pneg %p5244_p12 }
  0xa6   : > { %p5250_p0 = pnand %p5248_p13, %p5245_p2 }
  0xa8   : > { %5253 = shalt.err (!%p5250_p0)
}
  0xa9   : > { %s5254_s28 = scalar_lea.vmem %s1035_s15, 16  ;;  %s5261_s16 = scalar_lea.vmem %s1035_s15, 32 }
  0xaa   : > { %p5255_p1 = scmp.ne.s32.totalorder %s1035_s15, %s5254_s28  ;;  %p5262_p8 = scmp.lt.s32.totalorder %s1035_s15, %s1035_s15 }
  0xab   : > { %p5263_p9 = scmp.lt.s32.totalorder %s5261_s16, %s5254_s28 }
  0xac   : > { %p5257_p4 = pnand %p5255_p1, %p5749_p7 }
  0xad   : > { %p5264_p10 = por %p5263_p9, %p5262_p8 }
  0xae   : > { %p5258_p6 = pneg %p5257_p4 }
  0xb0   : > { %p5265_p3 = pnand %p5264_p10, %p5258_p6 }
  0xb2   : > { %5268 = shalt.err (!%p5265_p3)
}
  0xb3   : > { %4955 = dma.hbm_to_vmem [thread:$0]  (!%p5737_p5), %s5679_s19, 16, %s1035_s15, [#allocation18]  }
  0xb4   : > { %s5269_s2 = scalar_lea.hbm %s5624_s4, 256 }
  0xb5   : > { %p5270_p11 = scmp.ne.s32.totalorder %s5624_s4, %s5269_s2  ;;  %p5276_p13 = scmp.lt.u32.totalorder %s5269_s2, %s5624_s4 }
  0xb7   : > { %p5272_p12 = pnand %p5270_p11, %p5749_p7 }
  0xb9   : > { %p5273_p2 = pneg %p5272_p12 }
  0xbb   : > { %p5278_p0 = pnand %p5276_p13, %p5273_p2 }
  0xbd   : > { %5281 = shalt.err (!%p5278_p0)
}
  0xbe   : > { %s5282_s11 = scalar_lea.vmem %s923_s0, 256  ;;  %p5290_p6 = scmp.lt.s32.totalorder %s923_s0, %s923_s0 }
  0xbf   : > { %p5283_p3 = scmp.ne.s32.totalorder %s923_s0, %s5282_s11  ;;  %p5291_p8 = scmp.lt.s32.totalorder %s5282_s11, %s5282_s11 }
  0xc1   : > { %p5285_p1 = pnand %p5283_p3, %p5749_p7  ;;  %p5292_p9 = por %p5291_p8, %p5290_p6 }
  0xc3   : > { %p5286_p4 = pneg %p5285_p1 }
  0xc5   : > { %p5293_p10 = pnand %p5292_p9, %p5286_p4 }
  0xc7   : > { %5296 = shalt.err (!%p5293_p10)
}
  0xc8   : > { %s5510_s10 = smov 64   ;;  %s5511_s15 = smov 4  }
  0xc9   : > { %4928 = dma.hbm_to_vmem [thread:$0]  (!%p5737_p5), %s5624_s4, 256, %s923_s0, [#allocation4], %s5510_s10, %s5510_s10, %s5511_s15  }
  0xca   : > { %s5512_s22 = smov [#allocation7]   ;;  %s5513_s28 = smov [#allocation10]  }
  0xcb   : > { %s946_s1 = sshll.u32 %s5512_s22, 4  ;;  %s970_s16 = sshll.u32 %s5513_s28, 4  ;;  %s947_s1 = int_to_ptr.vmem [resolvable:$true] %s946_s1  ;;  %s971_s16 = int_to_ptr.vmem [resolvable:$true] %s970_s16 }
  0xcc   : > { %s5297_s2 = scalar_lea.hbm %s5634_s20, 256 }
  0xcd   : > { %p5298_p11 = scmp.ne.s32.totalorder %s5634_s20, %s5297_s2  ;;  %p5304_p13 = scmp.lt.u32.totalorder %s5297_s2, %s5634_s20 }
  0xcf   : > { %p5300_p12 = pnand %p5298_p11, %p5749_p7 }
  0xd1   : > { %p5301_p2 = pneg %p5300_p12 }
  0xd3   : > { %p5306_p0 = pnand %p5304_p13, %p5301_p2 }
  0xd5   : > { %5309 = shalt.err (!%p5306_p0)
}
  0xd6   : > { %s5310_s11 = scalar_lea.vmem %s947_s1, 256  ;;  %p5318_p6 = scmp.lt.s32.totalorder %s947_s1, %s947_s1 }
  0xd7   : > { %p5311_p3 = scmp.ne.s32.totalorder %s947_s1, %s5310_s11  ;;  %p5319_p8 = scmp.lt.s32.totalorder %s5310_s11, %s5310_s11 }
  0xd9   : > { %p5313_p1 = pnand %p5311_p3, %p5749_p7  ;;  %p5320_p9 = por %p5319_p8, %p5318_p6 }
  0xdb   : > { %p5314_p4 = pneg %p5313_p1 }
  0xdd   : > { %p5321_p10 = pnand %p5320_p9, %p5314_p4 }
  0xdf   : > { %5324 = shalt.err (!%p5321_p10)
}
  0xe0   : > { %4934 = dma.hbm_to_vmem [thread:$0]  (!%p5737_p5), %s5634_s20, 256, %s947_s1, [#allocation6], %s5510_s10, %s5510_s10, %s5511_s15  }
  0xe1   : > { %s5325_s0 = scalar_lea.hbm %s5644_s12, 256 }
  0xe2   : > { %p5326_p11 = scmp.ne.s32.totalorder %s5644_s12, %s5325_s0  ;;  %p5332_p13 = scmp.lt.u32.totalorder %s5325_s0, %s5644_s12 }
  0xe4   : > { %p5328_p12 = pnand %p5326_p11, %p5749_p7 }
  0xe6   : > { %p5329_p2 = pneg %p5328_p12 }
  0xe8   : > { %p5334_p0 = pnand %p5332_p13, %p5329_p2 }
  0xea   : > { %5337 = shalt.err (!%p5334_p0)
}
  0xeb   : > { %s5338_s22 = scalar_lea.vmem %s971_s16, 256  ;;  %p5346_p6 = scmp.lt.s32.totalorder %s971_s16, %s971_s16 }
  0xec   : > { %p5339_p3 = scmp.ne.s32.totalorder %s971_s16, %s5338_s22  ;;  %p5347_p8 = scmp.lt.s32.totalorder %s5338_s22, %s5338_s22 }
  0xee   : > { %p5341_p1 = pnand %p5339_p3, %p5749_p7  ;;  %p5348_p9 = por %p5347_p8, %p5346_p6 }
  0xf0   : > { %p5342_p4 = pneg %p5341_p1 }
  0xf2   : > { %p5349_p10 = pnand %p5348_p9, %p5342_p4 }
  0xf4   : > { %5352 = shalt.err (!%p5349_p10)
}
  0xf5   : > { %4940 = dma.hbm_to_vmem [thread:$0]  (!%p5737_p5), %s5644_s12, 256, %s971_s16, [#allocation9], %s5510_s10, %s5510_s10, %s5511_s15  }
  0xf6   : > { %s5514_s1 = smov [#allocation13]   ;;  %s5515_s2 = smov [#allocation16]  }
  0xf7   : > { %s995_s28 = sshll.u32 %s5514_s1, 4  ;;  %s1020_s11 = sshll.u32 %s5515_s2, 4  ;;  %s996_s28 = int_to_ptr.vmem [resolvable:$true] %s995_s28  ;;  %s1021_s11 = int_to_ptr.vmem [resolvable:$true] %s1020_s11 }
  0xf8   : > { %s5353_s0 = scalar_lea.hbm %s5654_s30, 16 }
  0xf9   : > { %p5354_p11 = scmp.ne.s32.totalorder %s5654_s30, %s5353_s0  ;;  %p5360_p13 = scmp.lt.u32.totalorder %s5353_s0, %s5654_s30 }
  0xfb   : > { %p5356_p12 = pnand %p5354_p11, %p5749_p7 }
  0xfd   : > { %p5357_p2 = pneg %p5356_p12 }
  0xff   : > { %p5362_p0 = pnand %p5360_p13, %p5357_p2 }
 0x101   : > { %5365 = shalt.err (!%p5362_p0)
}
 0x102   : > { %s5366_s22 = scalar_lea.vmem %s996_s28, 16  ;;  %s5373_s10 = scalar_lea.vmem %s996_s28, 32 }
 0x103   : > { %p5367_p3 = scmp.ne.s32.totalorder %s996_s28, %s5366_s22  ;;  %p5374_p6 = scmp.lt.s32.totalorder %s996_s28, %s996_s28 }
 0x104   : > { %p5375_p8 = scmp.lt.s32.totalorder %s5373_s10, %s5366_s22 }
 0x105   : > { %p5369_p1 = pnand %p5367_p3, %p5749_p7 }
 0x106   : > { %p5376_p9 = por %p5375_p8, %p5374_p6 }
 0x107   : > { %p5370_p4 = pneg %p5369_p1 }
 0x109   : > { %p5377_p10 = pnand %p5376_p9, %p5370_p4 }
 0x10b   : > { %5380 = shalt.err (!%p5377_p10)
}
 0x10c   : > { %4946 = dma.hbm_to_vmem [thread:$0]  (!%p5737_p5), %s5654_s30, 16, %s996_s28, [#allocation12]  }
 0x10d   : > { %s5381_s15 = scalar_lea.hbm %s5669_s24, 16 }
 0x10e   : > { %p5382_p11 = scmp.ne.s32.totalorder %s5669_s24, %s5381_s15  ;;  %p5388_p13 = scmp.lt.u32.totalorder %s5381_s15, %s5669_s24 }
 0x110   : > { %p5384_p12 = pnand %p5382_p11, %p5749_p7 }
 0x112   : > { %p5385_p2 = pneg %p5384_p12 }
 0x114   : > { %p5390_p0 = pnand %p5388_p13, %p5385_p2 }
 0x116   : > { %5393 = shalt.err (!%p5390_p0)
}
 0x117   : > { %s5394_s16 = scalar_lea.vmem %s1021_s11, 16  ;;  %s5401_s1 = scalar_lea.vmem %s1021_s11, 32 }
 0x118   : > { %p5395_p3 = scmp.ne.s32.totalorder %s1021_s11, %s5394_s16  ;;  %p5402_p6 = scmp.lt.s32.totalorder %s1021_s11, %s1021_s11 }
 0x119   : > { %p5403_p8 = scmp.lt.s32.totalorder %s5401_s1, %s5394_s16 }
 0x11a   : > { %p5397_p1 = pnand %p5395_p3, %p5749_p7 }
 0x11b   : > { %p5404_p9 = por %p5403_p8, %p5402_p6 }
 0x11c   : > { %p5398_p4 = pneg %p5397_p1 }
 0x11e   : > { %p5405_p10 = pnand %p5404_p9, %p5398_p4 }
 0x120   : > { %5408 = shalt.err (!%p5405_p10)
}
 0x121   : > { %4952 = dma.hbm_to_vmem [thread:$0]  (!%p5737_p5), %s5669_s24, 16, %s1021_s11, [#allocation15]  }
 0x122   : > { %s5516_s28 = smov [#allocation19]   ;;  %s5409_s0 = scalar_lea.hbm %s5697_s14, 16 }
 0x123   : > { %s1054_s2 = sshll.u32 %s5516_s28, 4  ;;  %p5410_p11 = scmp.ne.s32.totalorder %s5697_s14, %s5409_s0  ;;  %s1055_s2 = int_to_ptr.vmem [resolvable:$true] %s1054_s2 }
 0x124   : > { %p5416_p13 = scmp.lt.u32.totalorder %s5409_s0, %s5697_s14 }
 0x125   : > { %p5412_p12 = pnand %p5410_p11, %p5749_p7 }
 0x127   : > { %p5413_p2 = pneg %p5412_p12 }
 0x129   : > { %p5418_p0 = pnand %p5416_p13, %p5413_p2 }
 0x12b   : > { %5421 = shalt.err (!%p5418_p0)
}
 0x12c   : > { %s5422_s22 = scalar_lea.vmem %s1055_s2, 16  ;;  %s5429_s10 = scalar_lea.vmem %s1055_s2, 32 }
 0x12d   : > { %p5423_p3 = scmp.ne.s32.totalorder %s1055_s2, %s5422_s22  ;;  %p5430_p6 = scmp.lt.s32.totalorder %s1055_s2, %s1055_s2 }
 0x12e   : > { %p5431_p8 = scmp.lt.s32.totalorder %s5429_s10, %s5422_s22 }
 0x12f   : > { %p5425_p1 = pnand %p5423_p3, %p5749_p7 }
 0x130   : > { %p5432_p9 = por %p5431_p8, %p5430_p6 }
 0x131   : > { %p5426_p4 = pneg %p5425_p1 }
 0x133   : > { %p5433_p10 = pnand %p5432_p9, %p5426_p4 }
 0x135   : > { %5436 = shalt.err (!%p5433_p10)
}
 0x136   : > { %4958 = dma.hbm_to_vmem [thread:$0]  (!%p5737_p5), %s5697_s14, 16, %s1055_s2, [#allocation18]  }
 0x137   : > { %p6333_p11 = scmp.ne.s32.totalorder %s6330_s26, 0 }
 0x138   : > { %p6334_p12 = scmp.eq.s32.totalorder (!%p6333_p11), %s5720_s5, 0 }
 0x139   : > { %1087 = sbr.rel (%p6333_p11) target bundleno = 8652 (0x21cc), region = 160 }
 0x140   : > { %5442 = dma.done.wait (%p6334_p12), [#allocation4], 256   ;;  %p6335_p2 = pmov %p6334_p12 }
 0x142   : > { %5444 = vsyncadd (%p6335_p2), [#allocation4], 4294967040  ;;  %p6336_p7 = pmov %p6335_p2 }
 0x143   : > { %p6337_p13 = pmov %p6335_p2 }
 0x144   : > { %5446 = dma.done.wait (%p6336_p7), [#allocation6], 272  }
 0x145   : > { %5448 = vsyncadd (%p6337_p13), [#allocation6], 4294967024  ;;  %p6338_p0 = pmov %p6335_p2 }
 0x147   : > { %5450 = dma.done.wait (%p6338_p0), [#allocation9], 272   ;;  %p6339_p5 = pmov %p6338_p0 }
 0x148   : > { %p6340_p3 = pmov %p6338_p0 }
 0x149   : > { %5452 = vsyncadd (%p6339_p5), [#allocation9], 4294967024 }
 0x14a   : > { %5454 = dma.done.wait (%p6340_p3), [#allocation12], 32   ;;  %p6341_p1 = pmov %p6338_p0 }
 0x14b   : > { %p6342_p4 = pmov %p6338_p0 }
 0x14c   : > { %5456 = vsyncadd (%p6341_p1), [#allocation12], 4294967264 }
 0x14d   : > { %5458 = dma.done.wait (%p6342_p4), [#allocation15], 32   ;;  %p6343_p6 = pmov %p6338_p0 }
 0x14e   : > { %p6344_p8 = pmov %p6338_p0 }
 0x14f   : > { %5460 = vsyncadd (%p6343_p6), [#allocation15], 4294967264 }
 0x150   : > { %5462 = dma.done.wait (%p6344_p8), [#allocation18], 32   ;;  %p6345_p9 = pmov %p6338_p0 }
 0x151   : > { %p1217_p10 = scmp.lt.s32.totalorder %s5720_s5, 1  ;;  %v5517_v1 = vmov 0.0   ;;  %vm5518_vm0 = vmmov 0   ;;  %v5053_v2 = vld [vmem:[%s5554_s17] sm:$0xff]   ;;  %v5054_v3 = vld [vmem:[%s5554_s17 + $0x8] sm:$0xff]   ;;  %vm1263_vm1 = vcmask 261120   ;;  %v1233_v18 = vlaneseq }
 0x152   : > { %5464 = vsyncadd (%p6345_p9), [#allocation18], 4294967264  ;;  %4617 = vmatprep.subr.bf16.mxu0 %v5517_v1  ;;  %4621 = vmatprep.mubr.msk.bf16.mxu0 %vm5518_vm0, %v5517_v1  ;;  %v4412_v6 = vld [vmem:[%s5559_s21] ss:$0 sm:$0xff]  ;;  %s6309_s18 = smov 96   ;;  %s5521_s11 = smov 88  }
 0x153   : > { %s6368_s5 = smov (!%p1217_p10, %s5720_s5), 1  ;;  %4637 = vmatprep.subr.bf16.mxu1 %v5517_v1  ;;  %4639 = vmatprep.mubr.msk.bf16.mxu1 %vm5518_vm0, %v5517_v1  ;;  %vm1319_vm2 = vcmask 64512   ;;  %v1234_v19 = vshrl.u32 %v1233_v18, 7  ;;  %v1236_v20 = vand.u32 127, %v1233_v18  ;;  %s5522_s15 = smov 56   ;;  %vm1385_vm4 = vcmask 1043456  }
 0x154   : > { %s5928_s26 = sshll.u32 %s6368_s5, 3  ;;  %4618 = vmatpush3.bf16.msra.mxu0 %v5053_v2  ;;  %s5519_s5 = smov 120   ;;  %vm4048_vm7 = vcmask 523264  }
 0x155   : > { %s1220_s7 = scalar_lea.vmem %s5544_s9, %s5928_s26  ;;  %4619 = vmatprep.subr.bf16.mxu0 %v5517_v1  ;;  %vm1237_vm3 = vcmp.gt.s32.totalorder %v1236_v20, %v1234_v19  ;;  %s6311_s16 = smov 80  }
 0x156   : > { %v5934_v4 = vld [vmem:[%s1220_s7] sm:$0xff]  ;;  %v5964_v22 = vsel %vm1237_vm3, -1.7677669e+08, %v5517_v1  ;;  %s5524_s1 = smov 64   ;;  %s5525_s28 = smov 112  }
 0x157   : > { %v1239_v5 = vpack.c.bf16 %v5934_v4, %v5934_v4  ;;  %s6346_s2 = sld [smem:[#allocation28_spill]]  ;;  %s6310_s0 = smov 72  }
 0x158   : > { %4620 = vmatpush3.bf16.msra.mxu0 %v5054_v3  ;;  %s5527_s22 = smov 104   ;;  %s5528_s10 = smov 48  }
 0x159   : > { %4625 = vmatprep.subr.bf16.mxu0 %v5517_v1  ;;  %s5529_s7 = smov 40  }
 0x15b   : > { %4622 = vmatmul.mubr.msk.bf16.vlgmr.msra.gmra.mrb[0].mxu0 %vm1263_vm1, %v1239_v5 }
 0x15c   : > { %4627 = vmatprep.mubr.msk.bf16.mxu0 %vm5518_vm0, %v5517_v1 }
 0x15d   : > { %v4496_v61 = vld [vmem:[%s6346_s2] sm:$0xff]  }
 0x15e   : > { %v4498_v62 = vunpack.c.h.bf16 %v4496_v61  ;;  %v4497_v5 = vunpack.c.l.bf16 %v4496_v61 }
 0x22e   : > { %v1301_v7 = vpop.f32.mrb[0].mxu0 }
 0x22f   : > { %v1302_v8 = vadd.f32 %v4412_v6, %v1301_v7  ;;  %v4623_v9 = vpop.f32.mrb[1].mxu0 }
 0x230   : > { %v1304_v10 = vpop.f32.mrb[2].mxu0 }
 0x231   : > { %v5944_v11 = vpack.c.bf16 %v1302_v8, %v1302_v8  ;;  %v4624_v12 = vpop.f32.mrb[3].mxu0 }
 0x233   : > { %1429 = vrot.lane.b32.xlu1 %v5944_v11, %s5519_s5  ;;  %1317 = vrot.lane.b32.xlu0 %v5944_v11, %s6309_s18 }
 0x237   : > { %1431 = vrot.lane.b32.xlu0 %v5944_v11, %s5521_s11 }
 0x2a5   : > { %v1318_v13 = vpop.permute.xlu0 %1317  ;;  %v1430_v17 = vpop.permute.xlu1 %1429 }
 0x2a6   : > { %v1324_v14 = vsel %vm1319_vm2, %v1318_v13, 0 }
 0x2a7   : > { %4626 = vmatpush3.bf16.xpose.msra.mxu0 %v1324_v14 }
 0x2a8   : > { %4631 = vmatprep.subr.bf16.mxu0 %v5517_v1 }
 0x2a9   : > { %v1432_v15 = vpop.permute.xlu0 %1431 }
 0x2aa   : > { %v1437_v16 = vsel %vm1319_vm2, %v1432_v15, 0 }
 0x2ab   : > { %4638 = vmatpush3.bf16.xpose.msra.mxu1 %v1437_v16 }
 0x2ac   : > { %4649 = vmatprep.subr.mxu1 %v5517_v1 }
 0x2ae   : > { %4628 = vmatmul.mubr.msk.bf16.vlgmr.msra.gmra.mrb[4].mxu0 %vm1319_vm2, %v5944_v11 }
 0x2af   : > { %4633 = vmatprep.mubr.msk.bf16.mxu0 %vm5518_vm0, %v5517_v1 }
 0x2b2   : > { %4640 = vmatmul.mubr.msk.bf16.vlgmr.msra.gmra.mrb[0].mxu1 %vm1319_vm2, %v1430_v17 }
 0x2b3   : > { %4651 = vmatprep.mubr.msk.f32.mxu1 %vm5518_vm0, %v5517_v1  ;;  %4650 = vmatpush3.msra.mxu1 %v4498_v62 }
 0x2b4   : > { %4654 = vmatprep.subr.mxu1 %v5517_v1 }
 0x381   : > { %v1360_v21 = vpop.f32.mrb[4].mxu0 }
 0x382   : > { %v1366_v23 = vmul.f32 0.17677669, %v1360_v21  ;;  %v4629_v24 = vpop.f32.mrb[5].mxu0 }
 0x383   : > { %v1363_v25 = vpop.f32.mrb[6].mxu0 }
 0x384   : > { %v4630_v26 = vpop.f32.mrb[7].mxu0  ;;  %v1367_v27 = vadd.f32 %v1366_v23, %v5964_v22 }
 0x385   : > { %v1473_v28 = vpop.f32.mrb[0].mxu1 }
 0x386   : > { %v1479_v29 = vmul.f32 0.17677669, %v1473_v28  ;;  %v4641_v30 = vpop.f32.mrb[1].mxu1  ;;  %v1368_v31 = vsel %vm1319_vm2, %v1367_v27, -inf }
 0x387   : > { %v1476_v32 = vpop.f32.mrb[2].mxu1  ;;  %1369 = vmax.xlane.f32.xlu1 %v1368_v31 }
 0x388   : > { %v4642_v33 = vpop.f32.mrb[3].mxu1  ;;  %v1480_v34 = vadd.f32 %v1479_v29, %v5964_v22 }
 0x38a   : > { %v1481_v35 = vsel %vm1319_vm2, %v1480_v34, -inf }
 0x38b   : > { %1482 = vmax.xlane.f32.xlu0 %v1481_v35 }
 0x398   : > { %1493 = vrot.lane.b32.xlu1 %v5944_v11, %s5522_s15  ;;  %s6347_s15 = sld [smem:[#allocation32_spill]] }
 0x414   : > { %v1370_v36 = vpop.xlane.xlu1 %1369 }
 0x415   : > { %v1371_v37 = vsub.f32 %v1367_v27, %v1370_v36 }
 0x417   : > { %v1372_v38 = vmul.f32 1.442695, %v1371_v37 }
 0x418   : > { %v1483_v39 = vpop.xlane.xlu0 %1482  ;;  %v1494_v46 = vpop.permute.xlu1 %1493 }
 0x419   : > { %5069 = vpow2.f32 %v1372_v38  ;;  %v1484_v40 = vsub.f32 %v1480_v34, %v1483_v39  ;;  %v1499_v55 = vsel %vm1385_vm4, %v1494_v46, 0  ;;  %v4519_v38 = vld [vmem:[%s6346_s2 + $0x8] sm:$0xff]  }
 0x41a   : > { %v4501_v39 = vunpack.c.l.bf16 %v4519_v38 }
 0x41b   : > { %v1485_v41 = vmul.f32 1.442695, %v1484_v40 }
 0x41d   : > { %5071 = vpow2.f32 %v1485_v41 }
 0x423   : > { %v5070_v42 = vpop.eup %5069 }
 0x424   : > { %v1374_v43 = vsel %vm1319_vm2, %v5070_v42, 0.0 }
 0x425   : > { %1375 = vadd.xlane.f32.xlu0 %v1374_v43 }
 0x427   : > { %v5072_v44 = vpop.eup %5071 }
 0x428   : > { %v1487_v45 = vsel %vm1319_vm2, %v5072_v44, 0.0 }
 0x429   : > { %1488 = vadd.xlane.f32.xlu1 %v1487_v45 }
 0x43a   : > { %1689 = vrot.lane.b32.xlu1 %v5944_v11, %s6311_s16 }
 0x43b   : > { %1380 = vrot.lane.b32.xlu0 %v5944_v11, %s5524_s1  ;;  %s6348_s1 = sld [smem:[#allocation26_spill]] }
 0x43f   : > { %1687 = vrot.lane.b32.xlu0 %v5944_v11, %s5525_s28 }
 0x4b2   : > { %v1376_v47 = vpop.xlane.xlu0 %1375 }
 0x4b3   : > { %5073 = vrcp.f32 %v1376_v47 }
 0x4b6   : > { %v1381_v48 = vpop.permute.xlu0 %1380  ;;  %v1489_v49 = vpop.xlane.xlu1 %1488 }
 0x4b7   : > { %v1387_v50 = vsel %vm1385_vm4, %v1381_v48, 0  ;;  %5075 = vrcp.f32 %v1489_v49 }
 0x4b8   : > { %4632 = vmatpush3.bf16.msra.mxu0 %v1387_v50 }
 0x4b9   : > { %4643 = vmatprep.subr.bf16.mxu0 %v5517_v1 }
 0x4ba   : > { %v1690_v57 = vpop.permute.xlu1 %1689  ;;  %v1688_v60 = vpop.permute.xlu0 %1687 }
 0x4bb   : > { %v1695_v59 = vsel %vm1319_vm2, %v1690_v57, 0 }
 0x4bd   : > { %v5074_v51 = vpop.eup %5073 }
 0x4be   : > { %v1378_v52 = vmul.f32 %v5074_v51, %v5070_v42 }
 0x4c0   : > { %v1379_v53 = vpack.c.bf16 %v1378_v52, %v1378_v52 }
 0x4c1   : > { %v5076_v54 = vpop.eup %5075 }
 0x4c2   : > { %4634 = vmatmul.mubr.msk.bf16.vlgmr.msra.gmra.mrb[8].mxu0 %vm1319_vm2, %v1379_v53  ;;  %v1491_v56 = vmul.f32 %v5076_v54, %v5072_v44 }
 0x4c3   : > { %4644 = vmatpush3.bf16.msra.mxu0 %v1499_v55  ;;  %4645 = vmatprep.mubr.msk.bf16.mxu0 %vm5518_vm0, %v5517_v1 }
 0x4c4   : > { %4659 = vmatprep.subr.bf16.mxu0 %v5517_v1  ;;  %v1492_v58 = vpack.c.bf16 %v1491_v56, %v1491_v56 }
 0x4ca   : > { %4646 = vmatmul.mubr.msk.bf16.vlgmr.msra.gmra.mrb[12].mxu0 %vm1319_vm2, %v1492_v58  ;;  %v4502_v58 = vunpack.c.h.bf16 %v4519_v38 }
 0x4cb   : > { %4661 = vmatprep.mubr.msk.bf16.mxu0 %vm5518_vm0, %v5517_v1 }
 0x4cc   : > { %4660 = vmatpush3.bf16.xpose.msra.mxu0 %v1695_v59 }
 0x4cd   : > { %4671 = vmatprep.subr.mxu0 %v5517_v1 }
 0x4d3   : > { %4662 = vmatmul.mubr.msk.bf16.vlgmr.msra.gmra.mrb[16].mxu0 %vm1319_vm2, %v1688_v60 }
 0x4d4   : > { %4673 = vmatprep.mubr.msk.f32.mxu0 %vm5518_vm0, %v5517_v1  ;;  %4672 = vmatpush3.msra.mxu0 %v4501_v39 }
 0x4d5   : > { %4682 = vmatprep.subr.bf16.mxu0 %v5517_v1 }
 0x595   : > { %v1423_v63 = vpop.f32.mrb[8].mxu0 }
 0x596   : > { %v4635_v0 = vpop.f32.mrb[9].mxu0 }
 0x597   : > { %v1426_v2 = vpop.f32.mrb[10].mxu0  ;;  %v5055_v0 = vld [vmem:[%s6347_s15] sm:$0xff]  }
 0x598   : > { %v4636_v3 = vpop.f32.mrb[11].mxu0 }
 0x599   : > { %v5056_v3 = vld [vmem:[%s6347_s15 + $0x8] sm:$0xff]  }
 0x59d   : > { %v1535_v6 = vpop.f32.mrb[12].mxu0 }
 0x59e   : > { %v4647_v7 = vpop.f32.mrb[13].mxu0  ;;  %4652 = vmatmul.mubr.msk.f32.vlgmr.msra.gmra.mrb[4].mxu1 %vm1319_vm2, %v1535_v6 }
 0x59f   : > { %v1538_v8 = vpop.f32.mrb[14].mxu0  ;;  %4655 = vmatpush3.msra.mxu1 %v4497_v5  ;;  %4656 = vmatprep.mubr.msk.f32.mxu1 %vm5518_vm0, %v5517_v1  ;;  %v1231_v5 = vld [vmem:[%s6348_s1] sm:$0xff]  ;;  %s6351_s1 = sld [smem:[#allocation34_spill]] }
 0x5a0   : > { %v4648_v9 = vpop.f32.mrb[15].mxu0  ;;  %4665 = vmatprep.subr.bf16.mxu1 %v5517_v1  ;;  %v2098_v6 = vpack.c.bf16 %v1231_v5, %v1231_v5 }
 0x5a2   : > { %4657 = vmatmul.mubr.msk.f32.vlgmr.msra.gmra.mrb[6].mxu1 %vm1319_vm2, %v1423_v63 }
 0x5a3   : > { %4667 = vmatprep.mubr.msk.bf16.mxu1 %vm5518_vm0, %v5517_v1 }
 0x5a6   : > { %v1731_v10 = vpop.f32.mrb[16].mxu0 }
 0x5a7   : > { %v1737_v12 = vmul.f32 0.17677669, %v1731_v10  ;;  %v4663_v13 = vpop.f32.mrb[17].mxu0 }
 0x5a8   : > { %v1734_v14 = vpop.f32.mrb[18].mxu0 }
 0x5a9   : > { %v4664_v15 = vpop.f32.mrb[19].mxu0  ;;  %v1738_v16 = vadd.f32 %v1737_v12, %v5964_v22 }
 0x5ab   : > { %v1739_v17 = vsel %vm1319_vm2, %v1738_v16, -inf }
 0x5ac   : > { %1740 = vmax.xlane.f32.xlu1 %v1739_v17 }
 0x5bd   : > { %1875 = vrot.lane.b32.xlu1 %v5944_v11, %s6310_s0 }
 0x5c1   : > { %1873 = vrot.lane.b32.xlu1 %v5944_v11, %s5527_s22 }
 0x639   : > { %v1741_v18 = vpop.xlane.xlu1 %1740 }
 0x63a   : > { %v1742_v19 = vsub.f32 %v1738_v16, %v1741_v18 }
 0x63c   : > { %v1743_v20 = vmul.f32 1.442695, %v1742_v19 }
 0x63d   : > { %v1876_v34 = vpop.permute.xlu1 %1875 }
 0x63e   : > { %5077 = vpow2.f32 %v1743_v20  ;;  %v1881_v36 = vsel %vm1319_vm2, %v1876_v34, 0 }
 0x641   : > { %v1874_v37 = vpop.permute.xlu1 %1873 }
 0x648   : > { %v5078_v21 = vpop.eup %5077 }
 0x649   : > { %v1745_v23 = vsel %vm1319_vm2, %v5078_v21, 0.0 }
 0x64a   : > { %1746 = vadd.xlane.f32.xlu0 %v1745_v23 }
 0x660   : > { %1751 = vrot.lane.b32.xlu0 %v5944_v11, %s5528_s10  ;;  %s6349_s10 = sld [smem:[#allocation33_spill]] }
 0x666   : > { %v4431_v12 = vld [vmem:[%s6349_s10] ss:$0 sm:$0xff]  ;;  %s6352_s10 = sld [smem:[#allocation30_spill]] }
 0x671   : > { %v1610_v24 = vpop.f32.mrb[4].mxu1 }
 0x672   : > { %v4653_v25 = vpop.f32.mrb[5].mxu1 }
 0x675   : > { %v1683_v26 = vpop.f32.mrb[6].mxu1 }
 0x676   : > { %v1684_v27 = vadd.f32 %v1683_v26, %v1610_v24  ;;  %v4658_v28 = vpop.f32.mrb[7].mxu1 }
 0x6d7   : > { %v1747_v29 = vpop.xlane.xlu0 %1746 }
 0x6d8   : > { %5079 = vrcp.f32 %v1747_v29 }
 0x6db   : > { %v1752_v30 = vpop.permute.xlu0 %1751 }
 0x6dc   : > { %v1757_v31 = vsel %vm1385_vm4, %v1752_v30, 0 }
 0x6dd   : > { %4666 = vmatpush3.bf16.msra.mxu1 %v1757_v31 }
 0x6de   : > { %4676 = vmatprep.subr.bf16.mxu1 %v5517_v1 }
 0x6e2   : > { %v5080_v32 = vpop.eup %5079 }
 0x6e3   : > { %v1749_v33 = vmul.f32 %v5080_v32, %v5078_v21 }
 0x6e5   : > { %v1750_v35 = vpack.c.bf16 %v1749_v33, %v1749_v33 }
 0x6e7   : > { %4668 = vmatmul.mubr.msk.bf16.vlgmr.msra.gmra.mrb[8].mxu1 %vm1319_vm2, %v1750_v35 }
 0x6e8   : > { %4677 = vmatpush3.bf16.xpose.msra.mxu1 %v1881_v36  ;;  %4678 = vmatprep.mubr.msk.bf16.mxu1 %vm5518_vm0, %v5517_v1 }
 0x6e9   : > { %4688 = vmatprep.subr.mxu1 %v5517_v1 }
 0x6ef   : > { %4679 = vmatmul.mubr.msk.bf16.vlgmr.msra.gmra.mrb[12].mxu1 %vm1319_vm2, %v1874_v37 }
 0x6f0   : > { %4690 = vmatprep.mubr.msk.f32.mxu1 %vm5518_vm0, %v5517_v1  ;;  %4689 = vmatpush3.msra.mxu1 %v4502_v58 }
 0x6f1   : > { %4701 = vmatprep.subr.bf16.mxu1 %v5517_v1 }
 0x7ba   : > { %v1793_v40 = vpop.f32.mrb[8].mxu1 }
 0x7bb   : > { %v4669_v41 = vpop.f32.mrb[9].mxu1  ;;  %4674 = vmatmul.mubr.msk.f32.vlgmr.msra.gmra.mrb[20].mxu0 %vm1319_vm2, %v1793_v40 }
 0x7bc   : > { %v1796_v42 = vpop.f32.mrb[10].mxu1  ;;  %4684 = vmatprep.mubr.msk.bf16.mxu0 %vm5518_vm0, %v5517_v1 }
 0x7bd   : > { %v4670_v43 = vpop.f32.mrb[11].mxu1 }
 0x7c2   : > { %v1917_v44 = vpop.f32.mrb[12].mxu1 }
 0x7c3   : > { %v1923_v45 = vmul.f32 0.17677669, %v1917_v44  ;;  %v4680_v46 = vpop.f32.mrb[13].mxu1 }
 0x7c4   : > { %v1920_v47 = vpop.f32.mrb[14].mxu1 }
 0x7c5   : > { %v4681_v48 = vpop.f32.mrb[15].mxu1  ;;  %v1924_v49 = vadd.f32 %v1923_v45, %v5964_v22 }
 0x7c7   : > { %v1925_v50 = vsel %vm1319_vm2, %v1924_v49, -inf }
 0x7c8   : > { %1926 = vmax.xlane.f32.xlu0 %v1925_v50  ;;  %v5057_v50 = vld [vmem:[%s6351_s1] sm:$0xff]  }
 0x7de   : > { %1937 = vrot.lane.b32.xlu0 %v5944_v11, %s5529_s7  ;;  %s6350_s7 = sld [smem:[#allocation29_spill]] }
 0x7e4   : > { %v4428_v26 = vld [vmem:[%s6350_s7] ss:$0 sm:$0xff]  ;;  %s6353_s7 = sld [smem:[#allocation31_spill]] }
 0x855   : > { %v1927_v51 = vpop.xlane.xlu0 %1926 }
 0x856   : > { %v1928_v52 = vsub.f32 %v1924_v49, %v1927_v51  ;;  %v5058_v51 = vld [vmem:[%s6351_s1 + $0x8] sm:$0xff]  }
 0x858   : > { %v1929_v53 = vmul.f32 1.442695, %v1928_v52 }
 0x859   : > { %v1938_v54 = vpop.permute.xlu0 %1937 }
 0x85a   : > { %5081 = vpow2.f32 %v1929_v53  ;;  %v1943_v55 = vsel %vm1385_vm4, %v1938_v54, 0 }
 0x85b   : > { %4683 = vmatpush3.bf16.msra.mxu0 %v1943_v55 }
 0x85c   : > { %4693 = vmatprep.subr.bf16.mxu0 %v5517_v1 }
 0x864   : > { %v5082_v56 = vpop.eup %5081 }
 0x865   : > { %v1931_v57 = vsel %vm1319_vm2, %v5082_v56, 0.0 }
 0x866   : > { %1932 = vadd.xlane.f32.xlu1 %v1931_v57 }
 0x88e   : > { %v1868_v11 = vpop.f32.mrb[20].mxu0 }
 0x88f   : > { %v1872_v59 = vadd.f32 %v1868_v11, %v1684_v27  ;;  %v4675_v60 = vpop.f32.mrb[21].mxu0 }
 0x8f3   : > { %v1933_v61 = vpop.xlane.xlu1 %1932 }
 0x8f4   : > { %5083 = vrcp.f32 %v1933_v61 }
 0x8fe   : > { %v5084_v62 = vpop.eup %5083 }
 0x8ff   : > { %v1935_v63 = vmul.f32 %v5084_v62, %v5082_v56 }
 0x901   : > { %v1936_v2 = vpack.c.bf16 %v1935_v63, %v1935_v63  ;;  %v4429_v63 = vld [vmem:[%s6352_s10] ss:$0 sm:$0xff]  ;;  %s6356_s10 = sld [smem:[#allocation37_spill]] }
 0x903   : > { %4685 = vmatmul.mubr.msk.bf16.vlgmr.msra.gmra.mrb[24].mxu0 %vm1319_vm2, %v1936_v2  ;;  %v4430_v2 = vld [vmem:[%s6353_s7] ss:$0 sm:$0xff]  ;;  %s6357_s7 = sld [smem:[#allocation27_spill]] }
 0x904   : > { %4694 = vmatpush3.bf16.msra.mxu0 %v5055_v0  ;;  %4697 = vmatprep.mubr.msk.bf16.mxu0 %vm5518_vm0, %v5517_v1 }
 0x905   : > { %4695 = vmatprep.subr.bf16.mxu0 %v5517_v1 }
 0x908   : > { %4696 = vmatpush3.bf16.msra.mxu0 %v5056_v3 }
 0x909   : > { %4709 = vmatprep.subr.bf16.mxu0 %v5517_v1 }
 0x90b   : > { %4698 = vmatmul.mubr.msk.bf16.vlgmr.msra.gmra.mrb[28].mxu0 %vm1263_vm1, %v2098_v6 }
 0x90c   : > { %4711 = vmatprep.mubr.msk.bf16.mxu0 %vm5518_vm0, %v5517_v1 }
 0x9d6   : > { %v1979_v7 = vpop.f32.mrb[24].mxu0 }
 0x9d7   : > { %v4686_v8 = vpop.f32.mrb[25].mxu0  ;;  %4691 = vmatmul.mubr.msk.f32.vlgmr.msra.gmra.mrb[16].mxu1 %vm1319_vm2, %v1979_v7 }
 0x9d8   : > { %v1982_v9 = vpop.f32.mrb[26].mxu0  ;;  %4705 = vmatprep.mubr.msk.bf16.mxu1 %vm5518_vm0, %v5517_v1  ;;  %4702 = vmatpush3.bf16.msra.mxu1 %v5057_v50 }
 0x9d9   : > { %v4687_v10 = vpop.f32.mrb[27].mxu0  ;;  %4703 = vmatprep.subr.bf16.mxu1 %v5517_v1 }
 0x9dc   : > { %4704 = vmatpush3.bf16.msra.mxu1 %v5058_v51 }
 0x9dd   : > { %4715 = vmatprep.subr.bf16.mxu1 %v5517_v1 }
 0x9de   : > { %v2159_v13 = vpop.f32.mrb[28].mxu0 }
 0x9df   : > { %v2160_v14 = vadd.f32 %v4431_v12, %v2159_v13  ;;  %v4699_v15 = vpop.f32.mrb[29].mxu0 }
 0x9e0   : > { %v2162_v16 = vpop.f32.mrb[30].mxu0 }
 0x9e1   : > { %v6047_v17 = vpack.c.bf16 %v2160_v14, %v2160_v14  ;;  %v4700_v18 = vpop.f32.mrb[31].mxu0 }
 0x9e3   : > { %2243 = vrot.lane.b32.xlu1 %v6047_v17, %s6309_s18  ;;  %2353 = vrot.lane.b32.xlu0 %v6047_v17, %s5521_s11  ;;  %s6354_s18 = sld [smem:[#allocation35_spill]] }
 0x9e7   : > { %2351 = vrot.lane.b32.xlu0 %v6047_v17, %s5519_s5 }
 0x9e9   : > { %v4435_v10 = vld [vmem:[%s6354_s18] ss:$0 sm:$0xff]  ;;  %s6355_s18 = sld [smem:[#allocation36_spill]] }
 0xa55   : > { %v2244_v19 = vpop.permute.xlu1 %2243  ;;  %v2354_v21 = vpop.permute.xlu0 %2353 }
 0xa56   : > { %v2249_v20 = vsel %vm1319_vm2, %v2244_v19, 0  ;;  %v2359_v23 = vsel %vm1319_vm2, %v2354_v21, 0 }
 0xa57   : > { %4710 = vmatpush3.bf16.xpose.msra.mxu0 %v2249_v20 }
 0xa58   : > { %4721 = vmatprep.subr.bf16.mxu0 %v5517_v1 }
 0xa59   : > { %v2352_v24 = vpop.permute.xlu0 %2351 }
 0xa5e   : > { %4712 = vmatmul.mubr.msk.bf16.vlgmr.msra.gmra.mrb[32].mxu0 %vm1319_vm2, %v6047_v17 }
 0xa5f   : > { %4722 = vmatpush3.bf16.xpose.msra.mxu0 %v2359_v23  ;;  %4723 = vmatprep.mubr.msk.bf16.mxu0 %vm5518_vm0, %v5517_v1 }
 0xa60   : > { %4733 = vmatprep.subr.mxu0 %v5517_v1 }
 0xa66   : > { %4724 = vmatmul.mubr.msk.bf16.vlgmr.msra.gmra.mrb[36].mxu0 %vm1319_vm2, %v2352_v24 }
 0xa67   : > { %4735 = vmatprep.mubr.msk.f32.mxu0 %vm5518_vm0, %v5517_v1 }
 0xaaa   : > { %v2054_v25 = vpop.f32.mrb[16].mxu1 }
 0xaab   : > { %v2058_v27 = vadd.f32 %v2054_v25, %v1872_v59  ;;  %v4692_v28 = vpop.f32.mrb[17].mxu1 }
 0xaad   : > { %v2066_v29 = vadd.f32 %v4428_v26, %v2058_v27 }
 0xaaf   : > { %v2067_v30 = vadd.f32 %v2066_v29, %v5934_v4 }
 0xab1   : > { %v2070_v31 = vsel %vm1263_vm1, %v2067_v30, 0.0 }
 0xab2   : > { %2071 = vadd.xlane.f32.xlu1 %v2070_v31 }
 0xb31   : > { %v2285_v32 = vpop.f32.mrb[32].mxu0 }
 0xb32   : > { %v2291_v33 = vmul.f32 0.17677669, %v2285_v32  ;;  %v4713_v34 = vpop.f32.mrb[33].mxu0 }
 0xb33   : > { %v2288_v35 = vpop.f32.mrb[34].mxu0 }
 0xb34   : > { %v2292_v36 = vadd.f32 %v2291_v33, %v5964_v22  ;;  %v4714_v37 = vpop.f32.mrb[35].mxu0  ;;  %v4504_v33 = vld [vmem:[%s6355_s18] sm:$0xff]  }
 0xb35   : > { %v4506_v34 = vunpack.c.h.bf16 %v4504_v33 }
 0xb36   : > { %v2293_v38 = vsel %vm1319_vm2, %v2292_v36, -inf }
 0xb37   : > { %2294 = vmax.xlane.f32.xlu1 %v2293_v38  ;;  %4734 = vmatpush3.msra.mxu0 %v4506_v34 }
 0xb38   : > { %4738 = vmatprep.subr.mxu0 %v5517_v1 }
 0xb39   : > { %v2395_v39 = vpop.f32.mrb[36].mxu0 }
 0xb3a   : > { %v4725_v40 = vpop.f32.mrb[37].mxu0  ;;  %v2401_v44 = vmul.f32 0.17677669, %v2395_v39  ;;  %v4505_v39 = vunpack.c.l.bf16 %v4504_v33 }
 0xb3b   : > { %v2398_v41 = vpop.f32.mrb[38].mxu0 }
 0xb3c   : > { %v4726_v42 = vpop.f32.mrb[39].mxu0  ;;  %v2402_v47 = vadd.f32 %v2401_v44, %v5964_v22 }
 0xb3e   : > { %v2403_v49 = vsel %vm1319_vm2, %v2402_v47, -inf }
 0xb3f   : > { %v2072_v4 = vpop.xlane.xlu1 %2071 }
 0xb40   : > { %v2074_v43 = vmul.f32 0.03125, %v2072_v4 }
 0xb42   : > { %v2075_v45 = vsub.f32 %v2067_v30, %v2074_v43 }
 0xb44   : > { %v2076_v46 = vmul.f32 %v2075_v45, %v2075_v45 }
 0xb46   : > { %v2077_v48 = vsel %vm1263_vm1, %v2076_v46, 0.0 }
 0xb47   : > { %2078 = vadd.xlane.f32.xlu0 %v2077_v48 }
 0xb4b   : > { %2404 = vmax.xlane.f32.xlu0 %v2403_v49 }
 0xbc4   : > { %v2295_v52 = vpop.xlane.xlu1 %2294 }
 0xbc5   : > { %v2296_v53 = vsub.f32 %v2292_v36, %v2295_v52 }
 0xbc7   : > { %v2297_v54 = vmul.f32 1.442695, %v2296_v53 }
 0xbc9   : > { %5085 = vpow2.f32 %v2297_v54 }
 0xbd3   : > { %v5086_v55 = vpop.eup %5085 }
 0xbd4   : > { %v2079_v56 = vpop.xlane.xlu0 %2078  ;;  %v2299_v57 = vsel %vm1319_vm2, %v5086_v55, 0.0 }
 0xbd5   : > { %v2080_v58 = vmul.f32 0.03125, %v2079_v56  ;;  %2300 = vadd.xlane.f32.xlu1 %v2299_v57 }
 0xbd7   : > { %v2081_v11 = vadd.f32 1e-05, %v2080_v58 }
 0xbd8   : > { %v2405_v59 = vpop.xlane.xlu0 %2404 }
 0xbd9   : > { %5087 = vrsqrt.f32 %v2081_v11  ;;  %v2406_v60 = vsub.f32 %v2402_v47, %v2405_v59 }
 0xbdb   : > { %v2407_v61 = vmul.f32 1.442695, %v2406_v60 }
 0xbdd   : > { %5089 = vpow2.f32 %v2407_v61 }
 0xbe3   : > { %v5088_v62 = vpop.eup %5087 }
 0xbe4   : > { %v2083_v0 = vmul.f32 %v5088_v62, %v2075_v45 }
 0xbe6   : > { %v2090_v3 = vmul.f32 %v4429_v63, %v2083_v0 }
 0xbe7   : > { %v5090_v5 = vpop.eup %5089 }
 0xbe8   : > { %v2409_v6 = vsel %vm1319_vm2, %v5090_v5, 0.0  ;;  %v6082_v7 = vadd.f32 %v4430_v2, %v2090_v3 }
 0xbe9   : > { %2410 = vadd.xlane.f32.xlu0 %v2409_v6 }
 0xbea   : > { %v2165_v8 = vpack.c.bf16 %v6082_v7, %v6082_v7 }
 0xbec   : > { %4706 = vmatmul.mubr.msk.bf16.vlgmr.msra.gmra.mrb[20].mxu1 %vm1263_vm1, %v2165_v8 }
 0xbed   : > { %4717 = vmatprep.mubr.msk.bf16.mxu1 %vm5518_vm0, %v5517_v1 }
 0xbff   : > { %2612 = vrot.lane.b32.xlu0 %v6047_v17, %s6311_s16  ;;  %s6359_s16 = sld [smem:[#allocation39_spill]] }
 0xc62   : > { %v2301_v9 = vpop.xlane.xlu1 %2300 }
 0xc63   : > { %5091 = vrcp.f32 %v2301_v9 }
 0xc6d   : > { %v5092_v12 = vpop.eup %5091 }
 0xc6e   : > { %v2303_v18 = vmul.f32 %v5092_v12, %v5086_v55 }
 0xc70   : > { %v2304_v23 = vpack.c.bf16 %v2303_v18, %v2303_v18 }
 0xc76   : > { %v2411_v24 = vpop.xlane.xlu0 %2410 }
 0xc77   : > { %5093 = vrcp.f32 %v2411_v24 }
 0xc7a   : > { %v2613_v30 = vpop.permute.xlu0 %2612 }
 0xc7b   : > { %v2618_v31 = vsel %vm1319_vm2, %v2613_v30, 0 }
 0xc81   : > { %v5094_v25 = vpop.eup %5093 }
 0xc82   : > { %v2413_v26 = vmul.f32 %v5094_v25, %v5090_v5  ;;  %v4520_v5 = vld [vmem:[%s6355_s18 + $0x8] sm:$0xff]  }
 0xc83   : > { %v4509_v6 = vunpack.c.l.bf16 %v4520_v5 }
 0xc84   : > { %v2414_v29 = vpack.c.bf16 %v2413_v26, %v2413_v26 }
 0xcbf   : > { %v2226_v13 = vpop.f32.mrb[20].mxu1 }
 0xcc0   : > { %v2227_v14 = vadd.f32 %v4435_v10, %v2226_v13  ;;  %v4707_v15 = vpop.f32.mrb[21].mxu1 }
 0xcc1   : > { %v2229_v16 = vpop.f32.mrb[22].mxu1 }
 0xcc2   : > { %v6092_v19 = vpack.c.bf16 %v2227_v14, %v2227_v14  ;;  %v4708_v20 = vpop.f32.mrb[23].mxu1 }
 0xcc4   : > { %2416 = vrot.lane.b32.xlu1 %v6092_v19, %s5519_s5  ;;  %v2309_v21 = vsel %vm1385_vm4, %v6092_v19, 0 }
 0xcc5   : > { %4716 = vmatpush3.bf16.msra.mxu1 %v2309_v21 }
 0xcc6   : > { %4727 = vmatprep.subr.bf16.mxu1 %v5517_v1 }
 0xcc8   : > { %2610 = vrot.lane.b32.xlu1 %v6047_v17, %s5525_s28  ;;  %4718 = vmatmul.mubr.msk.bf16.vlgmr.msra.gmra.mrb[24].mxu1 %vm1319_vm2, %v2304_v23 }
 0xcc9   : > { %4729 = vmatprep.mubr.msk.bf16.mxu1 %vm5518_vm0, %v5517_v1 }
 0xd36   : > { %v2417_v27 = vpop.permute.xlu1 %2416 }
 0xd37   : > { %v2422_v28 = vsel %vm1385_vm4, %v2417_v27, 0 }
 0xd38   : > { %4728 = vmatpush3.bf16.msra.mxu1 %v2422_v28 }
 0xd39   : > { %4743 = vmatprep.subr.bf16.mxu1 %v5517_v1 }
 0xd3a   : > { %v2611_v32 = vpop.permute.xlu1 %2610 }
 0xd3b   : > { %4730 = vmatmul.mubr.msk.bf16.vlgmr.msra.gmra.mrb[28].mxu1 %vm1319_vm2, %v2414_v29 }
 0xd3c   : > { %4745 = vmatprep.mubr.msk.bf16.mxu1 %vm5518_vm0, %v5517_v1 }
 0xd41   : > { %4744 = vmatpush3.bf16.xpose.msra.mxu1 %v2618_v31 }
 0xd42   : > { %4755 = vmatprep.subr.mxu1 %v5517_v1 }
 0xd48   : > { %4746 = vmatmul.mubr.msk.bf16.vlgmr.msra.gmra.mrb[32].mxu1 %vm1319_vm2, %v2611_v32 }
 0xd49   : > { %4757 = vmatprep.mubr.msk.f32.mxu1 %vm5518_vm0, %v5517_v1  ;;  %4756 = vmatpush3.msra.mxu1 %v4509_v6 }
 0xd4a   : > { %4766 = vmatprep.subr.bf16.mxu1 %v5517_v1 }
 0xd9b   : > { %v2345_v35 = vpop.f32.mrb[24].mxu1 }
 0xd9c   : > { %v4719_v36 = vpop.f32.mrb[25].mxu1 }
 0xd9d   : > { %v2348_v37 = vpop.f32.mrb[26].mxu1 }
 0xd9e   : > { %v4720_v38 = vpop.f32.mrb[27].mxu1 }
 0xe0e   : > { %v2458_v40 = vpop.f32.mrb[28].mxu1 }
 0xe0f   : > { %v4731_v41 = vpop.f32.mrb[29].mxu1  ;;  %4736 = vmatmul.mubr.msk.f32.vlgmr.msra.gmra.mrb[22].mxu0 %vm1319_vm2, %v2458_v40 }
 0xe10   : > { %v2461_v42 = vpop.f32.mrb[30].mxu1  ;;  %4739 = vmatpush3.msra.mxu0 %v4505_v39  ;;  %4740 = vmatprep.mubr.msk.f32.mxu0 %vm5518_vm0, %v5517_v1  ;;  %v4451_v41 = vld [vmem:[%s6356_s10] ss:$0 sm:$0xff]  ;;  %s1224_s10 = scalar_lea.vmem %s6357_s7, %s5928_s26  ;;  %s6366_s7 = sld [smem:[#allocation43_spill]] }
 0xe11   : > { %v4732_v4 = vpop.f32.mrb[31].mxu1  ;;  %4749 = vmatprep.subr.bf16.mxu0 %v5517_v1 }
 0xe13   : > { %4741 = vmatmul.mubr.msk.f32.vlgmr.msra.gmra.mrb[40].mxu0 %vm1319_vm2, %v2345_v35 }
 0xe14   : > { %4751 = vmatprep.mubr.msk.bf16.mxu0 %vm5518_vm0, %v5517_v1 }
 0xe1b   : > { %v2654_v43 = vpop.f32.mrb[32].mxu1 }
 0xe1c   : > { %v2660_v44 = vmul.f32 0.17677669, %v2654_v43  ;;  %v4747_v45 = vpop.f32.mrb[33].mxu1 }
 0xe1d   : > { %v2657_v46 = vpop.f32.mrb[34].mxu1 }
 0xe1e   : > { %v4748_v47 = vpop.f32.mrb[35].mxu1  ;;  %v2661_v48 = vadd.f32 %v2660_v44, %v5964_v22 }
 0xe20   : > { %v2662_v49 = vsel %vm1319_vm2, %v2661_v48, -inf }
 0xe21   : > { %2663 = vmax.xlane.f32.xlu1 %v2662_v49 }
 0xe32   : > { %2798 = vrot.lane.b32.xlu1 %v6047_v17, %s6310_s0  ;;  %s6358_s0 = sld [smem:[#allocation38_spill]] }
 0xe36   : > { %2796 = vrot.lane.b32.xlu1 %v6047_v17, %s5527_s22 }
 0xeae   : > { %v2664_v50 = vpop.xlane.xlu1 %2663 }
 0xeaf   : > { %v2665_v51 = vsub.f32 %v2661_v48, %v2664_v50 }
 0xeb1   : > { %v2666_v52 = vmul.f32 1.442695, %v2665_v51  ;;  %v5059_v51 = vld [vmem:[#allocation7] sm:$0xff]  }
 0xeb2   : > { %v2799_v63 = vpop.permute.xlu1 %2798 }
 0xeb3   : > { %5095 = vpow2.f32 %v2666_v52  ;;  %v2804_v2 = vsel %vm1319_vm2, %v2799_v63, 0  ;;  %v5060_v52 = vld [vmem:[#allocation7 + $0x8] sm:$0xff]  }
 0xeb6   : > { %v2797_v3 = vpop.permute.xlu1 %2796 }
 0xebd   : > { %v5096_v53 = vpop.eup %5095 }
 0xebe   : > { %v2668_v54 = vsel %vm1319_vm2, %v5096_v53, 0.0 }
 0xebf   : > { %2669 = vadd.xlane.f32.xlu0 %v2668_v54  ;;  %v5061_v54 = vld [vmem:[#allocation3] sm:$0xff]  }
 0xed5   : > { %2674 = vrot.lane.b32.xlu0 %v6092_v19, %s5525_s28 }
 0xee2   : > { %v2533_v55 = vpop.f32.mrb[22].mxu0 }
 0xee3   : > { %v4737_v56 = vpop.f32.mrb[23].mxu0 }
 0xee6   : > { %v2606_v57 = vpop.f32.mrb[40].mxu0 }
 0xee7   : > { %v2607_v58 = vadd.f32 %v2606_v57, %v2533_v55  ;;  %v4742_v11 = vpop.f32.mrb[41].mxu0  ;;  %v5062_v55 = vld [vmem:[#allocation3 + $0x8] sm:$0xff]  }
 0xf4c   : > { %v2670_v59 = vpop.xlane.xlu0 %2669 }
 0xf4d   : > { %5097 = vrcp.f32 %v2670_v59  ;;  %v4452_v59 = vld [vmem:[%s6358_s0] ss:$0 sm:$0xff]  ;;  %s6364_s0 = sld [smem:[#allocation42_spill]] }
 0xf50   : > { %v2675_v60 = vpop.permute.xlu0 %2674 }
 0xf51   : > { %v2680_v17 = vsel %vm1385_vm4, %v2675_v60, 0 }
 0xf52   : > { %4750 = vmatpush3.bf16.msra.mxu0 %v2680_v17  ;;  %v4453_v17 = vld [vmem:[%s6359_s16] ss:$0 sm:$0xff]  ;;  %s6362_s16 = smov 72  }
 0xf53   : > { %4760 = vmatprep.subr.bf16.mxu0 %v5517_v1 }
 0xf57   : > { %v5098_v61 = vpop.eup %5097 }
 0xf58   : > { %v2672_v62 = vmul.f32 %v5098_v61, %v5096_v53  ;;  %v1232_v53 = vld [vmem:[%s1224_s10] sm:$0xff]  ;;  %s1228_s10 = scalar_lea.vmem %s5712_s29, %s5928_s26 }
 0xf5a   : > { %v2673_v0 = vpack.c.bf16 %v2672_v62, %v2672_v62 }
 0xf5c   : > { %4752 = vmatmul.mubr.msk.bf16.vlgmr.msra.gmra.mrb[44].mxu0 %vm1319_vm2, %v2673_v0  ;;  %v4458_v0 = vld [vmem:[#allocation8] ss:$0 sm:$0xff] }
 0xf5d   : > { %4761 = vmatpush3.bf16.xpose.msra.mxu0 %v2804_v2  ;;  %4762 = vmatprep.mubr.msk.bf16.mxu0 %vm5518_vm0, %v5517_v1 }
 0xf5e   : > { %4772 = vmatprep.subr.mxu0 %v5517_v1 }
 0xf64   : > { %4763 = vmatmul.mubr.msk.bf16.vlgmr.msra.gmra.mrb[48].mxu0 %vm1319_vm2, %v2797_v3 }
 0xf65   : > { %4774 = vmatprep.mubr.msk.f32.mxu0 %vm5518_vm0, %v5517_v1 }
0x102f   : > { %v2716_v8 = vpop.f32.mrb[44].mxu0 }
0x1030   : > { %v4753_v9 = vpop.f32.mrb[45].mxu0  ;;  %4758 = vmatmul.mubr.msk.f32.vlgmr.msra.gmra.mrb[18].mxu1 %vm1319_vm2, %v2716_v8 }
0x1031   : > { %v2719_v10 = vpop.f32.mrb[46].mxu0  ;;  %4768 = vmatprep.mubr.msk.bf16.mxu1 %vm5518_vm0, %v5517_v1 }
0x1032   : > { %v4754_v12 = vpop.f32.mrb[47].mxu0 }
0x1033   : > { %v4454_v12 = vld [vmem:[#allocation5] ss:$0 sm:$0xff] }
0x1037   : > { %v2840_v13 = vpop.f32.mrb[48].mxu0 }
0x1038   : > { %v2846_v14 = vmul.f32 0.17677669, %v2840_v13  ;;  %v4764_v15 = vpop.f32.mrb[49].mxu0 }
0x1039   : > { %v2843_v16 = vpop.f32.mrb[50].mxu0 }
0x103a   : > { %v4765_v18 = vpop.f32.mrb[51].mxu0  ;;  %v2847_v20 = vadd.f32 %v2846_v14, %v5964_v22  ;;  %v4510_v22 = vunpack.c.h.bf16 %v4520_v5 }
0x103c   : > { %v2848_v21 = vsel %vm1319_vm2, %v2847_v20, -inf  ;;  %4773 = vmatpush3.msra.mxu0 %v4510_v22 }
0x103d   : > { %2849 = vmax.xlane.f32.xlu0 %v2848_v21  ;;  %4785 = vmatprep.subr.bf16.mxu0 %v5517_v1 }
0x1053   : > { %2860 = vrot.lane.b32.xlu0 %v6092_v19, %s5527_s22 }
0x10ca   : > { %v2850_v23 = vpop.xlane.xlu0 %2849 }
0x10cb   : > { %v2851_v24 = vsub.f32 %v2847_v20, %v2850_v23 }
0x10cd   : > { %v2852_v25 = vmul.f32 1.442695, %v2851_v24 }
0x10ce   : > { %v2861_v26 = vpop.permute.xlu0 %2860 }
0x10cf   : > { %5099 = vpow2.f32 %v2852_v25  ;;  %v2866_v27 = vsel %vm1385_vm4, %v2861_v26, 0 }
0x10d0   : > { %4767 = vmatpush3.bf16.msra.mxu1 %v2866_v27 }
0x10d1   : > { %4777 = vmatprep.subr.bf16.mxu1 %v5517_v1 }
0x10d9   : > { %v5100_v28 = vpop.eup %5099 }
0x10da   : > { %v2854_v29 = vsel %vm1319_vm2, %v5100_v28, 0.0 }
0x10db   : > { %2855 = vadd.xlane.f32.xlu1 %v2854_v29 }
0x1103   : > { %v2791_v30 = vpop.f32.mrb[18].mxu1 }
0x1104   : > { %v2795_v19 = vadd.f32 %v2791_v30, %v2607_v58  ;;  %v4759_v31 = vpop.f32.mrb[19].mxu1 }
0x1168   : > { %v2856_v32 = vpop.xlane.xlu1 %2855 }
0x1169   : > { %5101 = vrcp.f32 %v2856_v32 }
0x1173   : > { %v5102_v33 = vpop.eup %5101 }
0x1174   : > { %v2858_v34 = vmul.f32 %v5102_v33, %v5100_v28 }
0x1176   : > { %v2859_v35 = vpack.c.bf16 %v2858_v34, %v2858_v34 }
0x1178   : > { %4769 = vmatmul.mubr.msk.bf16.vlgmr.msra.gmra.mrb[36].mxu1 %vm1319_vm2, %v2859_v35 }
0x1179   : > { %4781 = vmatprep.mubr.msk.bf16.mxu1 %vm5518_vm0, %v5517_v1  ;;  %4778 = vmatpush3.bf16.msra.mxu1 %v5061_v54 }
0x117a   : > { %4779 = vmatprep.subr.bf16.mxu1 %v5517_v1 }
0x117d   : > { %4780 = vmatpush3.bf16.msra.mxu1 %v5062_v55 }
0x117e   : > { %4793 = vmatprep.subr.bf16.mxu1 %v5517_v1 }
0x124b   : > { %v2902_v36 = vpop.f32.mrb[36].mxu1 }
0x124c   : > { %v4770_v37 = vpop.f32.mrb[37].mxu1  ;;  %4775 = vmatmul.mubr.msk.f32.vlgmr.msra.gmra.mrb[42].mxu0 %vm1319_vm2, %v2902_v36 }
0x124d   : > { %v2905_v38 = vpop.f32.mrb[38].mxu1  ;;  %4789 = vmatprep.mubr.msk.bf16.mxu0 %vm5518_vm0, %v5517_v1  ;;  %4786 = vmatpush3.bf16.msra.mxu0 %v5059_v51 }
0x124e   : > { %v4771_v39 = vpop.f32.mrb[39].mxu1  ;;  %4787 = vmatprep.subr.bf16.mxu0 %v5517_v1 }
0x1251   : > { %4788 = vmatpush3.bf16.msra.mxu0 %v5060_v52 }
0x1252   : > { %4799 = vmatprep.subr.bf16.mxu0 %v5517_v1 }
0x131f   : > { %v2977_v40 = vpop.f32.mrb[42].mxu0 }
0x1320   : > { %v2981_v42 = vadd.f32 %v2977_v40, %v2795_v19  ;;  %v4776_v4 = vpop.f32.mrb[43].mxu0 }
0x1322   : > { %v2989_v43 = vadd.f32 %v4451_v41, %v2981_v42 }
0x1324   : > { %v2990_v44 = vadd.f32 %v2989_v43, %v6082_v7  ;;  %v3087_v7 = vpack.c.bf16 %v1232_v53, %v1232_v53 }
0x1326   : > { %v2993_v45 = vsel %vm1263_vm1, %v2990_v44, 0.0  ;;  %4790 = vmatmul.mubr.msk.bf16.vlgmr.msra.gmra.mrb[52].mxu0 %vm1263_vm1, %v3087_v7 }
0x1327   : > { %2994 = vadd.xlane.f32.xlu1 %v2993_v45  ;;  %4801 = vmatprep.mubr.msk.bf16.mxu0 %vm5518_vm0, %v5517_v1 }
0x13b4   : > { %v2995_v46 = vpop.xlane.xlu1 %2994 }
0x13b5   : > { %v2996_v47 = vmul.f32 0.03125, %v2995_v46 }
0x13b7   : > { %v2997_v48 = vsub.f32 %v2990_v44, %v2996_v47 }
0x13b9   : > { %v2998_v49 = vmul.f32 %v2997_v48, %v2997_v48 }
0x13bb   : > { %v2999_v50 = vsel %vm1263_vm1, %v2998_v49, 0.0 }
0x13bc   : > { %3000 = vadd.xlane.f32.xlu1 %v2999_v50 }
0x13f9   : > { %v3148_v2 = vpop.f32.mrb[52].mxu0 }
0x13fa   : > { %v3149_v3 = vadd.f32 %v4458_v0, %v3148_v2  ;;  %v4791_v5 = vpop.f32.mrb[53].mxu0 }
0x13fb   : > { %v3151_v6 = vpop.f32.mrb[54].mxu0 }
0x13fc   : > { %v6183_v8 = vpack.c.bf16 %v3149_v3, %v3149_v3  ;;  %v4792_v9 = vpop.f32.mrb[55].mxu0 }
0x13fe   : > { %3275 = vrot.lane.b32.xlu1 %v6183_v8, %s5519_s5  ;;  %v3168_v10 = vsel %vm1319_vm2, %v6183_v8, 0 }
0x1449   : > { %v3001_v56 = vpop.xlane.xlu1 %3000 }
0x144a   : > { %v3002_v57 = vmul.f32 0.03125, %v3001_v56 }
0x144c   : > { %v3003_v58 = vadd.f32 1e-05, %v3002_v57 }
0x144e   : > { %5103 = vrsqrt.f32 %v3003_v58  ;;  %v4512_v58 = vld [vmem:[#allocation10] sm:$0xff]  }
0x1458   : > { %v5104_v11 = vpop.eup %5103 }
0x1459   : > { %v3005_v60 = vmul.f32 %v5104_v11, %v2997_v48  ;;  %v4514_v11 = vunpack.c.h.bf16 %v4512_v58 }
0x145b   : > { %v3012_v61 = vmul.f32 %v4452_v59, %v3005_v60 }
0x145d   : > { %v6176_v62 = vadd.f32 %v4453_v17, %v3012_v61 }
0x145f   : > { %v3020_v63 = vpack.c.bf16 %v6176_v62, %v6176_v62 }
0x1461   : > { %4782 = vmatmul.mubr.msk.bf16.vlgmr.msra.gmra.mrb[40].mxu1 %vm1263_vm1, %v3020_v63  ;;  %v4513_v63 = vunpack.c.l.bf16 %v4512_v58 }
0x1462   : > { %4795 = vmatprep.mubr.msk.bf16.mxu1 %vm5518_vm0, %v5517_v1  ;;  %4794 = vmatpush3.bf16.xpose.msra.mxu1 %v3168_v10 }
0x1463   : > { %4805 = vmatprep.subr.bf16.mxu1 %v5517_v1 }
0x1470   : > { %v3276_v14 = vpop.permute.xlu1 %3275 }
0x1471   : > { %v3281_v23 = vsel %vm1319_vm2, %v3276_v14, 0 }
0x1534   : > { %v3081_v13 = vpop.f32.mrb[40].mxu1 }
0x1535   : > { %v3082_v15 = vadd.f32 %v4454_v12, %v3081_v13  ;;  %v4783_v16 = vpop.f32.mrb[41].mxu1 }
0x1536   : > { %v3084_v18 = vpop.f32.mrb[42].mxu1 }
0x1537   : > { %v6190_v20 = vpack.c.bf16 %v3082_v15, %v3082_v15  ;;  %v4784_v21 = vpop.f32.mrb[43].mxu1 }
0x1539   : > { %3273 = vrot.lane.b32.xlu0 %v6190_v20, %s5519_s5  ;;  %4796 = vmatmul.mubr.msk.bf16.vlgmr.msra.gmra.mrb[44].mxu1 %vm1319_vm2, %v6190_v20  ;;  %s6360_s5 = smov 96  }
0x153a   : > { %4806 = vmatpush3.bf16.xpose.msra.mxu1 %v3281_v23  ;;  %4807 = vmatprep.mubr.msk.bf16.mxu1 %vm5518_vm0, %v5517_v1 }
0x153b   : > { %4817 = vmatprep.subr.mxu1 %v5517_v1 }
0x15ab   : > { %v3274_v24 = vpop.permute.xlu0 %3273 }
0x15ac   : > { %4808 = vmatmul.mubr.msk.bf16.vlgmr.msra.gmra.mrb[48].mxu1 %vm1319_vm2, %v3274_v24 }
0x15ad   : > { %4819 = vmatprep.mubr.msk.f32.mxu1 %vm5518_vm0, %v5517_v1  ;;  %4818 = vmatpush3.msra.mxu1 %v4514_v11 }
0x15ae   : > { %4822 = vmatprep.subr.mxu1 %v5517_v1 }
0x160c   : > { %v3204_v25 = vpop.f32.mrb[44].mxu1 }
0x160d   : > { %v3210_v26 = vmul.f32 0.17677669, %v3204_v25  ;;  %v4797_v27 = vpop.f32.mrb[45].mxu1 }
0x160e   : > { %v3207_v28 = vpop.f32.mrb[46].mxu1 }
0x160f   : > { %v4798_v29 = vpop.f32.mrb[47].mxu1  ;;  %v3211_v22 = vsel %vm1319_vm2, %v3210_v26, -inf }
0x1610   : > { %3212 = vmax.xlane.f32.xlu0 %v3211_v22 }
0x167f   : > { %v3317_v30 = vpop.f32.mrb[48].mxu1 }
0x1680   : > { %v3323_v19 = vmul.f32 0.17677669, %v3317_v30  ;;  %v4809_v31 = vpop.f32.mrb[49].mxu1 }
0x1681   : > { %v3320_v32 = vpop.f32.mrb[50].mxu1 }
0x1682   : > { %v4810_v33 = vpop.f32.mrb[51].mxu1  ;;  %v3324_v34 = vsel %vm1319_vm2, %v3323_v19, -inf }
0x1683   : > { %3325 = vmax.xlane.f32.xlu1 %v3324_v34 }
0x1694   : > { %3336 = vrot.lane.b32.xlu1 %v6183_v8, %s5521_s11  ;;  %s6361_s11 = smov 80  }
0x1698   : > { %3532 = vrot.lane.b32.xlu1 %v6183_v8, %s5525_s28 }
0x169d   : > { %v3213_v35 = vpop.xlane.xlu0 %3212 }
0x169e   : > { %v3214_v36 = vsub.f32 %v3210_v26, %v3213_v35  ;;  %v4521_v35 = vld [vmem:[#allocation10 + $0x8] sm:$0xff]  }
0x16a0   : > { %v3215_v37 = vmul.f32 1.442695, %v3214_v36  ;;  %v4517_v36 = vunpack.c.l.bf16 %v4521_v35 }
0x16a2   : > { %5105 = vpow2.f32 %v3215_v37 }
0x16ac   : > { %v5106_v38 = vpop.eup %5105 }
0x16ad   : > { %v3217_v39 = vsel %vm1319_vm2, %v5106_v38, 0.0 }
0x16ae   : > { %3218 = vadd.xlane.f32.xlu0 %v3217_v39 }
0x1710   : > { %v3326_v40 = vpop.xlane.xlu1 %3325 }
0x1711   : > { %v3327_v41 = vsub.f32 %v3323_v19, %v3326_v40 }
0x1713   : > { %v3328_v42 = vmul.f32 1.442695, %v3327_v41 }
0x1714   : > { %v3337_v50 = vpop.permute.xlu1 %3336 }
0x1715   : > { %5107 = vpow2.f32 %v3328_v42  ;;  %v3342_v52 = vsel %vm1385_vm4, %v3337_v50, 0 }
0x1718   : > { %v3533_v55 = vpop.permute.xlu1 %3532 }
0x1719   : > { %v3538_v56 = vsel %vm1319_vm2, %v3533_v55, 0 }
0x171f   : > { %v5108_v4 = vpop.eup %5107 }
0x1720   : > { %v3330_v43 = vsel %vm1319_vm2, %v5108_v4, 0.0 }
0x1721   : > { %3331 = vadd.xlane.f32.xlu0 %v3330_v43 }
0x1737   : > { %3224 = vrot.lane.b32.xlu0 %v6183_v8, %s6360_s5 }
0x173b   : > { %3530 = vrot.lane.b32.xlu0 %v6190_v20, %s5525_s28  ;;  %v3219_v44 = vpop.xlane.xlu0 %3218  ;;  %s6363_s28 = sld [smem:[#allocation40_spill]] }
0x173c   : > { %5109 = vrcp.f32 %v3219_v44 }
0x1746   : > { %v5110_v45 = vpop.eup %5109 }
0x1747   : > { %v3221_v47 = vmul.f32 %v5110_v45, %v5106_v38 }
0x1749   : > { %v3222_v51 = vpack.c.bf16 %v3221_v47, %v3221_v47 }
0x17ae   : > { %v3332_v46 = vpop.xlane.xlu0 %3331 }
0x17af   : > { %5111 = vrcp.f32 %v3332_v46 }
0x17b2   : > { %v3225_v48 = vpop.permute.xlu0 %3224 }
0x17b3   : > { %v3230_v49 = vsel %vm1385_vm4, %v3225_v48, 0 }
0x17b4   : > { %4800 = vmatpush3.bf16.msra.mxu0 %v3230_v49 }
0x17b5   : > { %4811 = vmatprep.subr.bf16.mxu0 %v5517_v1 }
0x17b6   : > { %v3531_v57 = vpop.permute.xlu0 %3530 }
0x17b7   : > { %4802 = vmatmul.mubr.msk.bf16.vlgmr.msra.gmra.mrb[56].mxu0 %vm1319_vm2, %v3222_v51 }
0x17b8   : > { %4812 = vmatpush3.bf16.msra.mxu0 %v3342_v52  ;;  %4813 = vmatprep.mubr.msk.bf16.mxu0 %vm5518_vm0, %v5517_v1 }
0x17b9   : > { %v5112_v53 = vpop.eup %5111  ;;  %4827 = vmatprep.subr.bf16.mxu0 %v5517_v1 }
0x17ba   : > { %v3334_v7 = vmul.f32 %v5112_v53, %v5108_v4  ;;  %v4518_v53 = vunpack.c.h.bf16 %v4521_v35  ;;  %v4488_v35 = vld [vmem:[#allocation2] ss:$0 sm:$0xff] }
0x17bc   : > { %v3335_v54 = vpack.c.bf16 %v3334_v7, %v3334_v7 }
0x17bf   : > { %4814 = vmatmul.mubr.msk.bf16.vlgmr.msra.gmra.mrb[60].mxu0 %vm1319_vm2, %v3335_v54 }
0x17c0   : > { %4829 = vmatprep.mubr.msk.bf16.mxu0 %vm5518_vm0, %v5517_v1 }
0x17c1   : > { %4828 = vmatpush3.bf16.xpose.msra.mxu0 %v3538_v56 }
0x17c2   : > { %4839 = vmatprep.subr.mxu0 %v5517_v1 }
0x17c8   : > { %4830 = vmatmul.mubr.msk.bf16.vlgmr.msra.gmra.mrb[64].mxu0 %vm1319_vm2, %v3531_v57 }
0x17c9   : > { %4841 = vmatprep.mubr.msk.f32.mxu0 %vm5518_vm0, %v5517_v1  ;;  %4840 = vmatpush3.msra.mxu0 %v4517_v36 }
0x17ca   : > { %4850 = vmatprep.subr.bf16.mxu0 %v5517_v1 }
0x188a   : > { %v3266_v59 = vpop.f32.mrb[56].mxu0 }
0x188b   : > { %v4803_v60 = vpop.f32.mrb[57].mxu0 }
0x188c   : > { %v3269_v17 = vpop.f32.mrb[58].mxu0 }
0x188d   : > { %v4804_v61 = vpop.f32.mrb[59].mxu0 }
0x1892   : > { %v3378_v0 = vpop.f32.mrb[60].mxu0 }
0x1893   : > { %v4815_v2 = vpop.f32.mrb[61].mxu0  ;;  %4820 = vmatmul.mubr.msk.f32.vlgmr.msra.gmra.mrb[52].mxu1 %vm1319_vm2, %v3378_v0 }
0x1894   : > { %v3381_v3 = vpop.f32.mrb[62].mxu0  ;;  %4823 = vmatpush3.msra.mxu1 %v4513_v63  ;;  %4824 = vmatprep.mubr.msk.f32.mxu1 %vm5518_vm0, %v5517_v1  ;;  %v4474_v63 = vld [vmem:[#allocation11] ss:$0 sm:$0xff] }
0x1895   : > { %v4816_v5 = vpop.f32.mrb[63].mxu0  ;;  %4833 = vmatprep.subr.bf16.mxu1 %v5517_v1 }
0x1897   : > { %4825 = vmatmul.mubr.msk.f32.vlgmr.msra.gmra.mrb[54].mxu1 %vm1319_vm2, %v3266_v59 }
0x1898   : > { %4835 = vmatprep.mubr.msk.bf16.mxu1 %vm5518_vm0, %v5517_v1 }
0x189b   : > { %v3574_v6 = vpop.f32.mrb[64].mxu0 }
0x189c   : > { %v3580_v9 = vmul.f32 0.17677669, %v3574_v6  ;;  %v4831_v10 = vpop.f32.mrb[65].mxu0 }
0x189d   : > { %v3577_v12 = vpop.f32.mrb[66].mxu0 }
0x189e   : > { %v4832_v13 = vpop.f32.mrb[67].mxu0  ;;  %v3581_v14 = vsel %vm1319_vm2, %v3580_v9, -inf }
0x189f   : > { %3582 = vmax.xlane.f32.xlu1 %v3581_v14 }
0x18b0   : > { %3717 = vrot.lane.b32.xlu1 %v6183_v8, %s5527_s22 }
0x18b4   : > { %3715 = vrot.lane.b32.xlu1 %v6190_v20, %s5527_s22  ;;  %s6365_s22 = sld [smem:[#allocation41_spill]] }
0x192c   : > { %v3583_v15 = vpop.xlane.xlu1 %3582 }
0x192d   : > { %v3584_v16 = vsub.f32 %v3580_v9, %v3583_v15  ;;  %v5063_v15 = vld [vmem:[%s6363_s28] sm:$0xff]  }
0x192f   : > { %v3585_v18 = vmul.f32 1.442695, %v3584_v16  ;;  %v5064_v16 = vld [vmem:[%s6363_s28 + $0x8] sm:$0xff]  }
0x1930   : > { %v3718_v31 = vpop.permute.xlu1 %3717 }
0x1931   : > { %5113 = vpow2.f32 %v3585_v18  ;;  %v3723_v33 = vsel %vm1319_vm2, %v3718_v31, 0  ;;  %v5065_v31 = vld [vmem:[%s6365_s22] sm:$0xff]  }
0x1934   : > { %v3716_v34 = vpop.permute.xlu1 %3715 }
0x193b   : > { %v5114_v21 = vpop.eup %5113 }
0x193c   : > { %v3587_v23 = vsel %vm1319_vm2, %v5114_v21, 0.0 }
0x193d   : > { %3588 = vadd.xlane.f32.xlu0 %v3587_v23 }
0x1953   : > { %3593 = vrot.lane.b32.xlu0 %v6183_v8, %s6361_s11 }
0x1966   : > { %v3453_v24 = vpop.f32.mrb[52].mxu1 }
0x1967   : > { %v4821_v25 = vpop.f32.mrb[53].mxu1 }
0x196a   : > { %v3526_v26 = vpop.f32.mrb[54].mxu1 }
0x196b   : > { %v3527_v27 = vadd.f32 %v3526_v26, %v3453_v24  ;;  %v4826_v28 = vpop.f32.mrb[55].mxu1  ;;  %v4475_v24 = vld [vmem:[#allocation13] ss:$0 sm:$0xff]  ;;  %v4476_v26 = vld [vmem:[#allocation14] ss:$0 sm:$0xff] }
0x196c   : > { %v4487_v28 = vld [vmem:[%s6364_s0] ss:$0 sm:$0xff] }
0x19ca   : > { %v3589_v29 = vpop.xlane.xlu0 %3588 }
0x19cb   : > { %5115 = vrcp.f32 %v3589_v29 }
0x19ce   : > { %v3594_v22 = vpop.permute.xlu0 %3593 }
0x19cf   : > { %v3599_v20 = vsel %vm1385_vm4, %v3594_v22, 0 }
0x19d0   : > { %4834 = vmatpush3.bf16.msra.mxu1 %v3599_v20 }
0x19d1   : > { %4844 = vmatprep.subr.bf16.mxu1 %v5517_v1 }
0x19d5   : > { %v5116_v30 = vpop.eup %5115 }
0x19d6   : > { %v3591_v19 = vmul.f32 %v5116_v30, %v5114_v21 }
0x19d8   : > { %v3592_v32 = vpack.c.bf16 %v3591_v19, %v3591_v19  ;;  %v5530_v19 = vmov 0  }
0x19d9   : > { %5051 = vset.pattern.permute.xlu1 %v5530_v19  ;;  %5052 = vset.pattern.permute.xlu0 %v5530_v19 }
0x19da   : > { %4836 = vmatmul.mubr.msk.bf16.vlgmr.msra.gmra.mrb[56].mxu1 %vm1319_vm2, %v3592_v32  ;;  %v5066_v32 = vld [vmem:[%s6365_s22 + $0x8] sm:$0xff]  }
0x19db   : > { %4845 = vmatpush3.bf16.xpose.msra.mxu1 %v3723_v33  ;;  %4846 = vmatprep.mubr.msk.bf16.mxu1 %vm5518_vm0, %v5517_v1  ;;  %v5067_v33 = vld [vmem:[%s6365_s22 + $0x10] sm:$0xff]  }
0x19dc   : > { %4856 = vmatprep.subr.mxu1 %v5517_v1 }
0x19e2   : > { %4847 = vmatmul.mubr.msk.bf16.vlgmr.msra.gmra.mrb[60].mxu1 %vm1319_vm2, %v3716_v34  ;;  %v5068_v34 = vld [vmem:[%s6365_s22 + $0x18] sm:$0xff]  }
0x19e3   : > { %4858 = vmatprep.mubr.msk.f32.mxu1 %vm5518_vm0, %v5517_v1  ;;  %4857 = vmatpush3.msra.mxu1 %v4518_v53 }
0x19e4   : > { %4869 = vmatprep.subr.bf16.mxu1 %v5517_v1 }
0x1aad   : > { %v3635_v37 = vpop.f32.mrb[56].mxu1 }
0x1aae   : > { %v4837_v38 = vpop.f32.mrb[57].mxu1  ;;  %4842 = vmatmul.mubr.msk.f32.vlgmr.msra.gmra.mrb[68].mxu0 %vm1319_vm2, %v3635_v37 }
0x1aaf   : > { %v3638_v39 = vpop.f32.mrb[58].mxu1  ;;  %4852 = vmatprep.mubr.msk.bf16.mxu0 %vm5518_vm0, %v5517_v1 }
0x1ab0   : > { %v4838_v40 = vpop.f32.mrb[59].mxu1 }
0x1ab1   : > { %v4477_v40 = vld [vmem:[#allocation16] ss:$0 sm:$0xff] }
0x1ab5   : > { %v3759_v41 = vpop.f32.mrb[60].mxu1 }
0x1ab6   : > { %v3765_v42 = vmul.f32 0.17677669, %v3759_v41  ;;  %v4848_v4 = vpop.f32.mrb[61].mxu1 }
0x1ab7   : > { %v3762_v43 = vpop.f32.mrb[62].mxu1 }
0x1ab8   : > { %v4849_v44 = vpop.f32.mrb[63].mxu1  ;;  %v3766_v45 = vsel %vm1319_vm2, %v3765_v42, -inf }
0x1ab9   : > { %3767 = vmax.xlane.f32.xlu0 %v3766_v45 }
0x1acf   : > { %3778 = vrot.lane.b32.xlu0 %v6183_v8, %s6362_s16 }
0x1b46   : > { %v3768_v46 = vpop.xlane.xlu0 %3767 }
0x1b47   : > { %v3769_v47 = vsub.f32 %v3765_v42, %v3768_v46 }
0x1b49   : > { %v3770_v48 = vmul.f32 1.442695, %v3769_v47  ;;  %v4489_v47 = vld [vmem:[%s6366_s7] ss:$0 sm:$0xff] }
0x1b4a   : > { %v3779_v49 = vpop.permute.xlu0 %3778 }
0x1b4b   : > { %5117 = vpow2.f32 %v3770_v48  ;;  %v3784_v50 = vsel %vm1385_vm4, %v3779_v49, 0 }
0x1b4c   : > { %4851 = vmatpush3.bf16.msra.mxu0 %v3784_v50  ;;  %v4490_v50 = vld [vmem:[#allocation19] ss:$0 sm:$0xff] }
0x1b4d   : > { %4861 = vmatprep.subr.bf16.mxu0 %v5517_v1 }
0x1b55   : > { %v5118_v51 = vpop.eup %5117 }
0x1b56   : > { %v3772_v52 = vsel %vm1319_vm2, %v5118_v51, 0.0 }
0x1b57   : > { %3773 = vadd.xlane.f32.xlu1 %v3772_v52 }
0x1b81   : > { %v3710_v7 = vpop.f32.mrb[68].mxu0 }
0x1b82   : > { %v3714_v8 = vadd.f32 %v3710_v7, %v3527_v27  ;;  %v4843_v54 = vpop.f32.mrb[69].mxu0 }
0x1be4   : > { %v3774_v55 = vpop.xlane.xlu1 %3773 }
0x1be5   : > { %5119 = vrcp.f32 %v3774_v55  ;;  %v4481_v55 = vld [vmem:[#allocation17] ss:$0 sm:$0xff] }
0x1bef   : > { %v5120_v56 = vpop.eup %5119 }
0x1bf0   : > { %v3776_v57 = vmul.f32 %v5120_v56, %v5118_v51 }
0x1bf2   : > { %v3777_v58 = vpack.c.bf16 %v3776_v57, %v3776_v57 }
0x1bf4   : > { %4853 = vmatmul.mubr.msk.bf16.vlgmr.msra.gmra.mrb[72].mxu0 %vm1319_vm2, %v3777_v58 }
0x1bf5   : > { %4865 = vmatprep.mubr.msk.bf16.mxu0 %vm5518_vm0, %v5517_v1  ;;  %4862 = vmatpush3.bf16.msra.mxu0 %v5063_v15  ;;  %v4491_v15 = vld [vmem:[%s5702_s3] ss:$0 sm:$0xff] }
0x1bf6   : > { %4863 = vmatprep.subr.bf16.mxu0 %v5517_v1 }
0x1bf9   : > { %4864 = vmatpush3.bf16.msra.mxu0 %v5064_v16 }
0x1cc7   : > { %v3820_v11 = vpop.f32.mrb[72].mxu0 }
0x1cc8   : > { %v4854_v59 = vpop.f32.mrb[73].mxu0  ;;  %4859 = vmatmul.mubr.msk.f32.vlgmr.msra.gmra.mrb[64].mxu1 %vm1319_vm2, %v3820_v11 }
0x1cc9   : > { %v3823_v60 = vpop.f32.mrb[74].mxu0  ;;  %4877 = vmatprep.mubr.msk.bf16.mxu1 %vm5518_vm0, %v5517_v1  ;;  %4870 = vmatpush3.bf16.msra.mxu1 %v5065_v31 }
0x1cca   : > { %v4855_v17 = vpop.f32.mrb[75].mxu0  ;;  %4871 = vmatprep.subr.bf16.mxu1 %v5517_v1 }
0x1ccd   : > { %4872 = vmatpush3.bf16.msra.mxu1 %v5066_v32 }
0x1cce   : > { %4873 = vmatprep.subr.bf16.mxu1 %v5517_v1 }
0x1cd1   : > { %4874 = vmatpush3.bf16.msra.mxu1 %v5067_v33 }
0x1cd2   : > { %4875 = vmatprep.subr.bf16.mxu1 %v5517_v1 }
0x1cd5   : > { %4876 = vmatpush3.bf16.msra.mxu1 %v5068_v34 }
0x1d9b   : > { %v3895_v61 = vpop.f32.mrb[64].mxu1 }
0x1d9c   : > { %v3899_v0 = vadd.f32 %v3895_v61, %v3714_v8  ;;  %v4860_v2 = vpop.f32.mrb[65].mxu1 }
0x1d9e   : > { %v3907_v3 = vadd.f32 %v4474_v63, %v3899_v0 }
0x1da0   : > { %v3908_v5 = vadd.f32 %v3907_v3, %v6176_v62 }
0x1da2   : > { %v3911_v6 = vsel %vm1263_vm1, %v3908_v5, 0.0 }
0x1da3   : > { %3912 = vadd.xlane.f32.xlu1 %v3911_v6 }
0x1e30   : > { %v3913_v9 = vpop.xlane.xlu1 %3912 }
0x1e31   : > { %v3914_v10 = vmul.f32 0.03125, %v3913_v9 }
0x1e33   : > { %v3915_v12 = vsub.f32 %v3908_v5, %v3914_v10 }
0x1e35   : > { %v3916_v13 = vmul.f32 %v3915_v12, %v3915_v12 }
0x1e37   : > { %v3917_v14 = vsel %vm1263_vm1, %v3916_v13, 0.0 }
0x1e38   : > { %3918 = vadd.xlane.f32.xlu1 %v3917_v14 }
0x1ec5   : > { %v3919_v18 = vpop.xlane.xlu1 %3918 }
0x1ec6   : > { %v3920_v21 = vmul.f32 0.03125, %v3919_v18  ;;  %v4492_v18 = vld [vmem:[%s5707_s25] ss:$0 sm:$0xff] }
0x1ec8   : > { %v3921_v62 = vadd.f32 1e-05, %v3920_v21 }
0x1eca   : > { %5121 = vrsqrt.f32 %v3921_v62 }
0x1ed4   : > { %v5122_v23 = vpop.eup %5121 }
0x1ed5   : > { %v3923_v25 = vmul.f32 %v5122_v23, %v3915_v12 }
0x1ed7   : > { %v3930_v27 = vmul.f32 %v4475_v24, %v3923_v25 }
0x1ed9   : > { %v3937_v29 = vadd.f32 %v4476_v26, %v3930_v27 }
0x1edb   : > { %v3938_v22 = vpack.c.bf16 %v3937_v29, %v3937_v29  ;;  %v4099_v20 = vmul.f32 %v4487_v28, %v3937_v29 }
0x1edd   : > { %4866 = vmatmul.mubr.msk.bf16.vlgmr.msra.gmra.mrb[76].mxu0 %vm1263_vm1, %v3938_v22  ;;  %v4100_v30 = vsel %vm1263_vm1, %v4099_v20, 0.0 }
0x1ede   : > { %4101 = vadd.xlane.f32.xlu1 %v4100_v30 }
0x1f6b   : > { %v4102_v36 = vpop.xlane.xlu1 %4101 }
0x1f6c   : > { %v4110_v37 = vadd.f32 %v4488_v35, %v4102_v36 }
0x1f6e   : > { %v4112_v38 = vmul.f32 0.01, %v4110_v37  ;;  %vm4111_vm5 = vcmp.ge.f32.partialorder %v4110_v37, 0.0 }
0x1f70   : > { %v4113_v39 = vsel %vm4111_vm5, %v4110_v37, %v4112_v38 }
0x1f71   : > { %4117 = vperm.xlu1 %5051, %v4113_v39  }
0x1fb0   : > { %v3999_v41 = vpop.f32.mrb[76].mxu0 }
0x1fb1   : > { %v4000_v42 = vadd.f32 %v4477_v40, %v3999_v41  ;;  %v4867_v4 = vpop.f32.mrb[77].mxu0 }
0x1fb2   : > { %v4002_v43 = vpop.f32.mrb[78].mxu0 }
0x1fb3   : > { %vm4005_vm6 = vcmp.ge.f32.partialorder %v4000_v42, 0.0  ;;  %v4006_v44 = vmul.f32 0.01, %v4000_v42  ;;  %v4868_v45 = vpop.f32.mrb[79].mxu0 }
0x1fb5   : > { %v4007_v46 = vsel %vm4005_vm6, %v4000_v42, %v4006_v44 }
0x1fb6   : > { %v4008_v1 = vpack.c.bf16 %v4007_v46, %v4007_v46 }
0x1fb8   : > { %4878 = vmatmul.mubr.msk.bf16.vlgmr.msra.gmra.mrb[68].mxu1 %vm4048_vm7, %v4008_v1 }
0x1ff0   : > { %v4118_v48 = vpop.permute.xlu1 %4117 }
0x1ff1   : > { %v4126_v49 = vmul.f32 %v4489_v47, %v4118_v48 }
0x1ff3   : > { %v4134_v51 = vadd.f32 %v4490_v50, %v4126_v49 }
0x1ff5   : > { %v4135_v52 = vsub.f32 0.0, %v4134_v51 }
0x1ff7   : > { %v4136_v53 = vmul.f32 1.442695, %v4135_v52 }
0x1ff9   : > { %5123 = vpow2.f32 %v4136_v53 }
0x2003   : > { %v5124_v7 = vpop.eup %5123 }
0x2004   : > { %v4138_v8 = vadd.f32 1.0, %v5124_v7 }
0x2006   : > { %5125 = vrcp.f32 %v4138_v8 }
0x2010   : > { %v5126_v54 = vpop.eup %5125 }
0x2011   : > { %v4142_v58 = vsub.f32 1.0, %v5126_v54  ;;  %v4141_v61 = vmul.f32 %v5126_v54, %v3937_v29 }
0x208b   : > { %v4086_v56 = vpop.f32.mrb[68].mxu1 }
0x208c   : > { %v4087_v57 = vadd.f32 %v4481_v55, %v4086_v56  ;;  %v4879_v11 = vpop.f32.mrb[69].mxu1 }
0x208d   : > { %v4089_v59 = vpop.f32.mrb[70].mxu1 }
0x208e   : > { %v4143_v60 = vmul.f32 %v4142_v58, %v4087_v57  ;;  %v4880_v17 = vpop.f32.mrb[71].mxu1 }
0x2090   : > { %v4144_v63 = vadd.f32 %v4143_v60, %v4141_v61 }
0x2092   : > { %v4147_v0 = vsel %vm1263_vm1, %v4144_v63, 0.0 }
0x2093   : > { %4148 = vadd.xlane.f32.xlu0 %v4147_v0 }
0x2120   : > { %v4149_v2 = vpop.xlane.xlu0 %4148 }
0x2121   : > { %v4150_v3 = vmul.f32 0.03125, %v4149_v2 }
0x2123   : > { %v4151_v5 = vsub.f32 %v4144_v63, %v4150_v3 }
0x2125   : > { %v4152_v6 = vmul.f32 %v4151_v5, %v4151_v5 }
0x2127   : > { %v4153_v9 = vsel %vm1263_vm1, %v4152_v6, 0.0 }
0x2128   : > { %4154 = vadd.xlane.f32.xlu1 %v4153_v9 }
0x21b5   : > { %v4155_v10 = vpop.xlane.xlu1 %4154 }
0x21b6   : > { %v4156_v12 = vmul.f32 0.03125, %v4155_v10 }
0x21b8   : > { %v4157_v13 = vadd.f32 1e-05, %v4156_v12 }
0x21ba   : > { %5127 = vrsqrt.f32 %v4157_v13 }
0x21c4   : > { %v5128_v14 = vpop.eup %5127 }
0x21c5   : > { %v4159_v16 = vmul.f32 %v5128_v14, %v4151_v5 }
0x21c7   : > { %v4166_v21 = vmul.f32 %v4491_v15, %v4159_v16 }
0x21c9   : > { %v4173_v62 = vadd.f32 %v4492_v18, %v4166_v21 }
0x21cb   : > { %4174 = vst.msk [vmem:[%s1228_s10] sm:$0xff] %vm1263_vm1, %v4173_v62 }
0x21cc PF: > { %s89_s23 = sadd.s32 1, %s5467_s23  }
0x21cd   : > { %p86_p11 = scmp.ge.s32.totalorder %s89_s23, 4  }
0x21cf   :  { %88 = sbr.rel (!%p86_p11) target bundleno = 63 (0x3f), region = 273 }
0x21d6   :  { %4194 = vsyncpa [#allocation4], 1 }
0x21d7   :  { %4196 = vsyncpa [#allocation4 + $0x1], 1 }
0x21d8   :  { %4197 = vsyncpa [#allocation6], 1 }
0x21d9   :  { %4198 = vsyncpa [#allocation9], 1 }
0x21da   :  { %4199 = vsyncpa [#allocation12], 1 }
0x21db   :  { %4200 = vsyncpa [#allocation15], 1 }
0x21dc   :  { %4201 = vsyncpa [#allocation18], 1 }

// kernel: transformer_decoder_forward.3
= control target key start
LH: loop header
LB: loop body
LE: loop exit
PB: predicated region body
PF: predicated region fallthrough
CT: control target
= control target key end

     0   :  { %s5764_s6 = smov 1   ;;  %s5765_s10 = smov 2   ;;  %s6687_s0 = inlined_call_operand.smem [shape: u32[36], index: -1, kind: input, shape index: {}] }
   0x1   :  { %s5836_s5 = sld [smem:[%s6687_s0]]   ;;  %s5766_s14 = smov 3  }
   0x2   :  { %s5841_s9 = sld [smem:[%s6687_s0 + %s5764_s6]]   ;;  %s5767_s18 = smov 4  }
   0x3   :  { %s5846_s13 = sld [smem:[%s6687_s0 + %s5765_s10]]   ;;  %s5768_s22 = smov 5  }
   0x4   :  { %s5851_s17 = sld [smem:[%s6687_s0 + %s5766_s14]]   ;;  %s5769_s26 = smov 6  }
   0x5   :  { %s5856_s21 = sld [smem:[%s6687_s0 + %s5767_s18]]   ;;  %s5770_s30 = smov 7  }
   0x6   :  { %s5861_s25 = sld [smem:[%s6687_s0 + %s5768_s22]]   ;;  %s5771_s4 = smov 8  }
   0x7   :  { %6724 = sst [smem:[#allocation36_spill]] %s5836_s5  ;;  %s5772_s10 = smov 9  }
   0x8   :  { %s5866_s29 = sld [smem:[%s6687_s0 + %s5769_s26]]   ;;  %s5773_s15 = smov 10  }
   0x9   :  { %6725 = sst [smem:[#allocation37_spill]] %s5846_s13  ;;  %s5774_s20 = smov 11  }
   0xa   :  { %s5871_s3 = sld [smem:[%s6687_s0 + %s5770_s30]]   ;;  %s5775_s26 = smov 12  }
   0xb   :  { %6726 = sst [smem:[#allocation38_spill]] %s5856_s21  ;;  %s5776_s1 = smov 13  }
   0xc   :  { %6727 = sst [smem:[#allocation39_spill]] %s5861_s25  ;;  %s5777_s7 = smov 14  }
   0xd   :  { %s5876_s8 = sld [smem:[%s6687_s0 + %s5771_s4]]   ;;  %s5779_s22 = smov 16  }
   0xe   :  { %6728 = sst [smem:[#allocation40_spill]] %s5866_s29  ;;  %s5780_s28 = smov 17  }
   0xf   :  { %s5881_s14 = sld [smem:[%s6687_s0 + %s5772_s10]]   ;;  %s5794_s16 = smov 31  }
  0x10   :  { %6729 = sst [smem:[#allocation41_spill]] %s5871_s3  ;;  %s5795_s23 = smov 32  }
  0x11   :  { %s5886_s19 = sld [smem:[%s6687_s0 + %s5773_s15]]   ;;  %s5778_s15 = smov 15  }
  0x12   :  { %s5891_s24 = sld [smem:[%s6687_s0 + %s5774_s20]]   ;;  %s5797_s10 = smov 34  }
  0x13   :  { %6730 = sst [smem:[#allocation42_spill]] %s5876_s8 }
  0x14   :  { %s5896_s30 = sld [smem:[%s6687_s0 + %s5775_s26]]  }
  0x15   :  { %6731 = sst [smem:[#allocation43_spill]] %s5881_s14 }
  0x16   :  { %s5901_s6 = sld [smem:[%s6687_s0 + %s5776_s1]]   ;;  %s5796_s1 = smov 33  }
  0x17   :  { %6732 = sst [smem:[#allocation44_spill]] %s5886_s19 }
  0x18   :  { %6733 = sst [smem:[#allocation45_spill]] %s5891_s24 }
  0x19   :  { %s5906_s12 = sld [smem:[%s6687_s0 + %s5777_s7]]   ;;  %s5781_s7 = smov 18  }
  0x1a   :  { %6734 = sst [smem:[#allocation46_spill]] %s5896_s30 }
  0x1b   :  { %s5911_s20 = sld [smem:[%s6687_s0 + %s5778_s15]]   ;;  %s5782_s15 = smov 19  }
  0x1c   :  { %6735 = sst [smem:[#allocation47_spill]] %s5901_s6 }
  0x1d   :  { %s5916_s27 = sld [smem:[%s6687_s0 + %s5779_s22]]   ;;  %s5783_s22 = smov 20  }
  0x1e   :  { %s5921_s4 = sld [smem:[%s6687_s0 + %s5780_s28]]   ;;  %s5784_s28 = smov 21  }
  0x1f   :  { %6736 = sst [smem:[#allocation48_spill]] %s5906_s12 }
  0x20   :  { %s5926_s13 = sld [smem:[%s6687_s0 + %s5781_s7]]   ;;  %s5785_s7 = smov 22  }
  0x21   :  { %s5931_s12 = sld [smem:[%s6687_s0 + %s5782_s15]]   ;;  %s5786_s15 = smov 23  }
  0x22   :  { %s5936_s6 = sld [smem:[%s6687_s0 + %s5783_s22]]   ;;  %s5787_s22 = smov 24  }
  0x23   :  { %6737 = sst [smem:[#allocation49_spill]] %s5916_s27 }
  0x24   :  { %6738 = sst [smem:[#allocation50_spill]] %s5921_s4 }
  0x25   :  { %s5941_s4 = sld [smem:[%s6687_s0 + %s5784_s28]]   ;;  %s5788_s28 = smov 25  }
  0x26   :  { %s5946_s30 = sld [smem:[%s6687_s0 + %s5785_s7]]   ;;  %s5789_s7 = smov 26  }
  0x27   :  { %6739 = sst [smem:[#allocation51_spill]] %s5931_s12 }
  0x28   :  { %6740 = sst [smem:[#allocation52_spill]] %s5936_s6 }
  0x29   :  { %s5951_s12 = sld [smem:[%s6687_s0 + %s5786_s15]]   ;;  %s5790_s15 = smov 27  }
  0x2a   :  { %s5956_s8 = sld [smem:[%s6687_s0 + %s5787_s22]]   ;;  %s5791_s22 = smov 28  }
  0x2b   :  { %6741 = sst [smem:[#allocation53_spill]] %s5941_s4 }
  0x2c   :  { %s5961_s4 = sld [smem:[%s6687_s0 + %s5788_s28]]   ;;  %s5792_s28 = smov 29  }
  0x2d   :  { %s5966_s3 = sld [smem:[%s6687_s0 + %s5789_s7]]   ;;  %s5793_s7 = smov 30  }
  0x2e   :  { %s5971_s24 = sld [smem:[%s6687_s0 + %s5790_s15]]  }
  0x2f   :  { %s5976_s29 = sld [smem:[%s6687_s0 + %s5791_s22]]  }
  0x30   :  { %s4456_s19 = sld [smem:[%s6687_s0 + %s5793_s7]]  }
  0x31   :  { %s5994_s5 = sld [smem:[%s6687_s0 + %s5795_s23]]  }
  0x32   :  { %6742 = sst [smem:[#allocation54_spill]] %s5961_s4 }
  0x33   :  { %6743 = sst [smem:[#allocation55_spill]] %s5966_s3 }
  0x34   :  { %6744 = sst [smem:[#allocation56_spill]] %s5971_s24 }
  0x35   :  { %s5981_s4 = sld [smem:[%s6687_s0 + %s5792_s28]]  }
  0x36   :  { %s5989_s24 = sld [smem:[%s6687_s0 + %s5794_s16]]   ;;  %s5798_s16 = smov 35   ;;  %v76_v0 = vstv %s4456_s19 }
  0x37   :  { %6746 = sst [smem:[#allocation58_spill]] %s5994_s5  ;;  %77 = vst [vmem:[#allocation2] sm:$0x1] %v76_v0 }
  0x38   :  { %s5999_s14 = sld [smem:[%s6687_s0 + %s5796_s1]]  }
  0x39   :  { %s6004_s25 = sld [smem:[%s6687_s0 + %s5797_s10]]  }
  0x3a   :  { %s6009_s21 = sld [smem:[%s6687_s0 + %s5798_s16]]  }
  0x3b   :  { %6745 = sst [smem:[#allocation57_spill]] %s5981_s4 }
  0x3c   :  { %78 = vsyncpa [#allocation4], 0 }
  0x3d   :  { %79 = vsyncpa [#allocation7], 0 }
  0x3e   :  { %80 = vsyncpa [#allocation10], 0 }
  0x3f   :  { %81 = vsyncpa [#allocation13], 0 }
  0x40   :  { %82 = vsyncpa [#allocation16], 0 }
  0x41   :  { %83 = vsyncpa [#allocation19], 0 }
  0x42   :  { %84 = vsyncpa [#allocation22], 0 }
  0x43   :  { %85 = vsyncpa [#allocation25], 0 }
  0x44   :  { %86 = vsyncpa [#allocation5], 0 }
  0x45   :  { %88 = vsyncpa [#allocation5 + $0x1], 0  ;;  %s6011_s23 = smov 0   ;;  %s6013_s22 = smov 0  }
  0x46   :  { %s6015_s26 = smov 0   ;;  %s6017_s0 = smov 0  }
  0x47 LB: > { %s6747_s5 = sld [smem:[#allocation58_spill]]  ;;  %s6748_s4 = sld [smem:[#allocation57_spill]]  ;;  %s5750_s23 = sphi %s6011_s23, %s6812_s23   ;;  %s5762_s0 = sphi %s6017_s0, %s6809_s0   ;;  %s5758_s26 = sphi %s6015_s26, %s6811_s26   ;;  %s5754_s22 = sphi %s6013_s22, %s6813_s22  }
  0x48   : > { %s6749_s3 = sld [smem:[#allocation55_spill]]  ;;  %s6750_s27 = sld [smem:[#allocation49_spill]] }
  0x49   : > { %s6751_s6 = sld [smem:[#allocation52_spill]]  ;;  %6752 = sst [smem:[#allocation59_spill]] %s5758_s26 }
  0x4a   : > { %s6032_s19 = sadd.s32 4294967295, %s5762_s0   ;;  %s4463_s1 = sadd.s32 4294967294, %s5762_s0  }
  0x4b   : > { %s6036_s28 = sadd.s32 1, %s5762_s0   ;;  %s846_s2 = sadd.s32 1, %s5758_s26 }
  0x4c   : > { %6753 = sst [smem:[#allocation60_spill]] %s6036_s28  ;;  %s843_s10 = ssub.s32 %s5762_s0, %s6036_s28 }
  0x4d   : > { %p856_p0 = scmp.ne.s32.totalorder %s5758_s26, %s5754_s22  ;;  %p844_p1 = scmp.eq.s32.totalorder %s843_s10, 0 }
  0x4e   : > { %p857_p2 = scmp.eq.s32.totalorder %s6032_s19, 1  ;;  %p862_p3 = scmp.ne.s32.totalorder %s5754_s22, %s5750_s23 }
  0x4f   : > { %p863_p4 = scmp.eq.s32.totalorder %s4463_s1, 1  ;;  %p4464_p7 = scmp.ge.s32.totalorder %s5762_s0, 1 }
  0x50   : > { %s6047_s7 = scalar_select %p844_p1, %s5758_s26, %s846_s2  }
  0x51   : > { %p6049_p5 = por %p857_p2, %p856_p0  ;;  %p6053_p6 = por %p863_p4, %p862_p3 }
  0x52   : > { %6754 = sst [smem:[#allocation61_spill]] %s6047_s7  ;;  %p870_p8 = scmp.lt.s32.totalorder %s5762_s0, 3 }
  0x53   : > { %s6755_s11 = scalar_select %p6049_p5, 1, 0 }
  0x54   : > { %s6756_s16 = scalar_select %p6053_p6, 1, 0 }
  0x55   : > { %p6701_p9 = scmp.eq.s32.totalorder %s6032_s19, 0  ;;  %p6060_p10 = pnand %p4464_p7, %p870_p8 }
  0x56   : > { %6757 = sst [smem:[#allocation62_spill]] %s6756_s16  ;;  %s5799_s18 = smov [#allocation6]  }
  0x57   : > { %s6758_s15 = scalar_select %p6060_p10, 1, 0 }
  0x58   : > { %s933_s1 = sshll.u32 %s5799_s18, 4  ;;  %p5027_p11 = pneg %p6060_p10  ;;  %s934_s1 = int_to_ptr.vmem [resolvable:$true] %s933_s1 }
  0x59   : > { %s5800_s2 = smov [#allocation9]   ;;  %s5801_s26 = smov [#allocation12]  }
  0x5a   : > { %s961_s10 = sshll.u32 %s5800_s2, 4  ;;  %p6068_p12 = pnand %p6701_p9, %p5027_p11  ;;  %s6072_s10 = int_to_ptr.vmem [resolvable:$true] %s961_s10 }
  0x5b   : > { %s986_s28 = sshll.u32 %s5801_s26, 4  ;;  %s5276_s16 = scalar_lea.hbm %s6750_s27, 16  ;;  %s6074_s28 = int_to_ptr.vmem [resolvable:$true] %s986_s28 }
  0x5c   : > { %p5277_p13 = scmp.ne.s32.totalorder %s6750_s27, %s5276_s16  ;;  %p6080_p0 = pneg %p6068_p12 }
  0x5d   : > { %p5283_p3 = scmp.lt.u32.totalorder %s5276_s16, %s6750_s27 }
  0x5e   : > { %p5279_p1 = pnand %p6080_p0, %p5277_p13 }
  0x60   : > { %p5280_p2 = pneg %p5279_p1 }
  0x62   : > { %p5285_p4 = pnand %p5283_p3, %p5280_p2 }
  0x64   : > { %5288 = shalt.err (!%p5285_p4)
}
  0x65   : > { %s5289_s2 = scalar_lea.vmem %s934_s1, 16  ;;  %s5296_s26 = scalar_lea.vmem %s934_s1, 32 }
  0x66   : > { %p5290_p7 = scmp.ne.s32.totalorder %s934_s1, %s5289_s2  ;;  %p5297_p9 = scmp.lt.s32.totalorder %s934_s1, %s934_s1 }
  0x67   : > { %p5298_p6 = scmp.lt.s32.totalorder %s5296_s26, %s5289_s2 }
  0x68   : > { %p5292_p8 = pnand %p5290_p7, %p6080_p0 }
  0x69   : > { %p5299_p5 = por %p5298_p6, %p5297_p9 }
  0x6a   : > { %p5293_p11 = pneg %p5292_p8 }
  0x6c   : > { %p5300_p10 = pnand %p5299_p5, %p5293_p11 }
  0x6e   : > { %5303 = shalt.err (!%p5300_p10)
}
  0x6f   : > { %5033 = dma.hbm_to_vmem [thread:$0]  (!%p6068_p12), %s6750_s27, 16, %s934_s1, [#allocation7]  }
  0x70   : > { %s5304_s16 = scalar_lea.hbm %s6751_s6, 16 }
  0x71   : > { %p5305_p13 = scmp.ne.s32.totalorder %s6751_s6, %s5304_s16  ;;  %p5311_p3 = scmp.lt.u32.totalorder %s5304_s16, %s6751_s6 }
  0x73   : > { %p5307_p1 = pnand %p5305_p13, %p6080_p0 }
  0x75   : > { %p5308_p2 = pneg %p5307_p1 }
  0x77   : > { %p5313_p4 = pnand %p5311_p3, %p5308_p2 }
  0x79   : > { %5316 = shalt.err (!%p5313_p4)
}
  0x7a   : > { %s5317_s2 = scalar_lea.vmem %s6072_s10, 16  ;;  %s5324_s26 = scalar_lea.vmem %s6072_s10, 32 }
  0x7b   : > { %p5318_p5 = scmp.ne.s32.totalorder %s6072_s10, %s5317_s2  ;;  %p5325_p10 = scmp.lt.s32.totalorder %s6072_s10, %s6072_s10 }
  0x7c   : > { %p5326_p7 = scmp.lt.s32.totalorder %s5324_s26, %s5317_s2 }
  0x7d   : > { %p5320_p6 = pnand %p5318_p5, %p6080_p0 }
  0x7e   : > { %p5327_p8 = por %p5326_p7, %p5325_p10 }
  0x7f   : > { %p5321_p9 = pneg %p5320_p6 }
  0x81   : > { %p5328_p11 = pnand %p5327_p8, %p5321_p9 }
  0x83   : > { %5331 = shalt.err (!%p5328_p11)
}
  0x84   : > { %5039 = dma.hbm_to_vmem [thread:$0]  (!%p6068_p12), %s6751_s6, 16, %s6072_s10, [#allocation10]  }
  0x85   : > { %s5332_s1 = scalar_lea.hbm %s5951_s12, 16 }
  0x86   : > { %p5333_p13 = scmp.ne.s32.totalorder %s5951_s12, %s5332_s1  ;;  %p5339_p3 = scmp.lt.u32.totalorder %s5332_s1, %s5951_s12 }
  0x88   : > { %p5335_p1 = pnand %p5333_p13, %p6080_p0 }
  0x8a   : > { %p5336_p2 = pneg %p5335_p1 }
  0x8c   : > { %p5341_p4 = pnand %p5339_p3, %p5336_p2 }
  0x8e   : > { %5344 = shalt.err (!%p5341_p4)
}
  0x8f   : > { %s5345_s16 = scalar_lea.vmem %s6074_s28, 16  ;;  %s5352_s2 = scalar_lea.vmem %s6074_s28, 32 }
  0x90   : > { %p5346_p5 = scmp.ne.s32.totalorder %s6074_s28, %s5345_s16  ;;  %p5353_p10 = scmp.lt.s32.totalorder %s6074_s28, %s6074_s28 }
  0x91   : > { %p5354_p7 = scmp.lt.s32.totalorder %s5352_s2, %s5345_s16 }
  0x92   : > { %p5348_p6 = pnand %p5346_p5, %p6080_p0 }
  0x93   : > { %p5355_p8 = por %p5354_p7, %p5353_p10 }
  0x94   : > { %p5349_p9 = pneg %p5348_p6 }
  0x96   : > { %p5356_p11 = pnand %p5355_p8, %p5349_p9 }
  0x98   : > { %5359 = shalt.err (!%p5356_p11)
}
  0x99   : > { %5045 = dma.hbm_to_vmem [thread:$0]  (!%p6068_p12), %s5951_s12, 16, %s6074_s28, [#allocation13]  }
  0x9a   : > { %s5802_s10 = smov [#allocation15]   ;;  %s5803_s1 = smov [#allocation18]  }
  0x9b   : > { %s1011_s26 = sshll.u32 %s5802_s10, 4  ;;  %s1036_s6 = sshll.u32 %s5803_s1, 4  ;;  %s1012_s26 = int_to_ptr.vmem [resolvable:$true] %s1011_s26  ;;  %s1037_s6 = int_to_ptr.vmem [resolvable:$true] %s1036_s6 }
  0x9c   : > { %s5360_s27 = scalar_lea.hbm %s6749_s3, 16 }
  0x9d   : > { %p5361_p13 = scmp.ne.s32.totalorder %s6749_s3, %s5360_s27  ;;  %p5367_p3 = scmp.lt.u32.totalorder %s5360_s27, %s6749_s3 }
  0x9f   : > { %p5363_p1 = pnand %p5361_p13, %p6080_p0 }
  0xa1   : > { %p5364_p2 = pneg %p5363_p1 }
  0xa3   : > { %p5369_p4 = pnand %p5367_p3, %p5364_p2 }
  0xa5   : > { %5372 = shalt.err (!%p5369_p4)
}
  0xa6   : > { %s5373_s16 = scalar_lea.vmem %s1012_s26, 16  ;;  %s5380_s28 = scalar_lea.vmem %s1012_s26, 32 }
  0xa7   : > { %p5374_p5 = scmp.ne.s32.totalorder %s1012_s26, %s5373_s16  ;;  %p5381_p10 = scmp.lt.s32.totalorder %s1012_s26, %s1012_s26 }
  0xa8   : > { %p5382_p7 = scmp.lt.s32.totalorder %s5380_s28, %s5373_s16 }
  0xa9   : > { %p5376_p6 = pnand %p5374_p5, %p6080_p0 }
  0xaa   : > { %p5383_p8 = por %p5382_p7, %p5381_p10 }
  0xab   : > { %p5377_p9 = pneg %p5376_p6 }
  0xad   : > { %p5384_p11 = pnand %p5383_p8, %p5377_p9 }
  0xaf   : > { %5387 = shalt.err (!%p5384_p11)
}
  0xb0   : > { %5051 = dma.hbm_to_vmem [thread:$0]  (!%p6068_p12), %s6749_s3, 16, %s1012_s26, [#allocation16]  }
  0xb1   : > { %s5388_s27 = scalar_lea.hbm %s6748_s4, 16 }
  0xb2   : > { %p5389_p13 = scmp.ne.s32.totalorder %s6748_s4, %s5388_s27  ;;  %p5395_p3 = scmp.lt.u32.totalorder %s5388_s27, %s6748_s4 }
  0xb4   : > { %p5391_p1 = pnand %p5389_p13, %p6080_p0 }
  0xb6   : > { %p5392_p2 = pneg %p5391_p1 }
  0xb8   : > { %p5397_p4 = pnand %p5395_p3, %p5392_p2 }
  0xba   : > { %5400 = shalt.err (!%p5397_p4)
}
  0xbb   : > { %s5401_s2 = scalar_lea.vmem %s1037_s6, 16  ;;  %s5408_s10 = scalar_lea.vmem %s1037_s6, 32 }
  0xbc   : > { %p5402_p5 = scmp.ne.s32.totalorder %s1037_s6, %s5401_s2  ;;  %p5409_p10 = scmp.lt.s32.totalorder %s1037_s6, %s1037_s6 }
  0xbd   : > { %p5410_p7 = scmp.lt.s32.totalorder %s5408_s10, %s5401_s2 }
  0xbe   : > { %p5404_p6 = pnand %p5402_p5, %p6080_p0 }
  0xbf   : > { %p5411_p8 = por %p5410_p7, %p5409_p10 }
  0xc0   : > { %p5405_p9 = pneg %p5404_p6 }
  0xc2   : > { %p5412_p11 = pnand %p5411_p8, %p5405_p9 }
  0xc4   : > { %5415 = shalt.err (!%p5412_p11)
}
  0xc5   : > { %5057 = dma.hbm_to_vmem [thread:$0]  (!%p6068_p12), %s6748_s4, 16, %s1037_s6, [#allocation19]  }
  0xc6   : > { %s5804_s26 = smov [#allocation21]   ;;  %s5805_s16 = smov [#allocation3]  }
  0xc7   : > { %s1061_s1 = sshll.u32 %s5804_s26, 4  ;;  %s922_s28 = sshll.u32 %s5805_s16, 4  ;;  %s1062_s1 = int_to_ptr.vmem [resolvable:$true] %s1061_s1  ;;  %s923_s28 = int_to_ptr.vmem [resolvable:$true] %s922_s28 }
  0xc8   : > { %s5416_s27 = scalar_lea.hbm %s6747_s5, 16 }
  0xc9   : > { %p5417_p13 = scmp.ne.s32.totalorder %s6747_s5, %s5416_s27  ;;  %p5423_p3 = scmp.lt.u32.totalorder %s5416_s27, %s6747_s5 }
  0xcb   : > { %p5419_p1 = pnand %p5417_p13, %p6080_p0 }
  0xcd   : > { %p5420_p2 = pneg %p5419_p1 }
  0xcf   : > { %p5425_p4 = pnand %p5423_p3, %p5420_p2 }
  0xd1   : > { %5428 = shalt.err (!%p5425_p4)
}
  0xd2   : > { %s5429_s2 = scalar_lea.vmem %s1062_s1, 16  ;;  %s5436_s6 = scalar_lea.vmem %s1062_s1, 32 }
  0xd3   : > { %p5430_p5 = scmp.ne.s32.totalorder %s1062_s1, %s5429_s2  ;;  %p5437_p10 = scmp.lt.s32.totalorder %s1062_s1, %s1062_s1 }
  0xd4   : > { %p5438_p7 = scmp.lt.s32.totalorder %s5436_s6, %s5429_s2 }
  0xd5   : > { %p5432_p6 = pnand %p5430_p5, %p6080_p0 }
  0xd6   : > { %p5439_p8 = por %p5438_p7, %p5437_p10 }
  0xd7   : > { %p5433_p9 = pneg %p5432_p6 }
  0xd9   : > { %p5440_p11 = pnand %p5439_p8, %p5433_p9 }
  0xdb   : > { %5443 = shalt.err (!%p5440_p11)
}
  0xdc   : > { %5063 = dma.hbm_to_vmem [thread:$0]  (!%p6068_p12), %s6747_s5, 16, %s1062_s1, [#allocation22]  }
  0xdd   : > { %s5444_s10 = scalar_lea.hbm %s5911_s20, 16 }
  0xde   : > { %p5445_p13 = scmp.ne.s32.totalorder %s5911_s20, %s5444_s10  ;;  %p5451_p3 = scmp.lt.u32.totalorder %s5444_s10, %s5911_s20 }
  0xe0   : > { %p5447_p1 = pnand %p5445_p13, %p6080_p0 }
  0xe2   : > { %p5448_p2 = pneg %p5447_p1 }
  0xe4   : > { %p5453_p4 = pnand %p5451_p3, %p5448_p2 }
  0xe6   : > { %5456 = shalt.err (!%p5453_p4)
}
  0xe7   : > { %s5457_s26 = scalar_lea.vmem %s923_s28, 16  ;;  %s5464_s16 = scalar_lea.vmem %s923_s28, 32 }
  0xe8   : > { %p5458_p5 = scmp.ne.s32.totalorder %s923_s28, %s5457_s26  ;;  %p5465_p10 = scmp.lt.s32.totalorder %s923_s28, %s923_s28 }
  0xe9   : > { %p5466_p7 = scmp.lt.s32.totalorder %s5464_s16, %s5457_s26 }
  0xea   : > { %p5460_p6 = pnand %p5458_p5, %p6080_p0 }
  0xeb   : > { %p5467_p8 = por %p5466_p7, %p5465_p10 }
  0xec   : > { %p5461_p9 = pneg %p5460_p6 }
  0xee   : > { %p5468_p11 = pnand %p5467_p8, %p5461_p9 }
  0xf0   : > { %5471 = shalt.err (!%p5468_p11)
}
  0xf1   : > { %5030 = dma.hbm_to_vmem [thread:$0]  (!%p6068_p12), %s5911_s20, 16, %s923_s28, [#allocation4]  }
  0xf2   : > { %s5806_s1 = smov [#allocation8]   ;;  %s5807_s2 = smov [#allocation11]  }
  0xf3   : > { %s947_s27 = sshll.u32 %s5806_s1, 4  ;;  %s975_s6 = sshll.u32 %s5807_s2, 4  ;;  %s948_s27 = int_to_ptr.vmem [resolvable:$true] %s947_s27  ;;  %s976_s6 = int_to_ptr.vmem [resolvable:$true] %s975_s6 }
  0xf4   : > { %s5472_s10 = scalar_lea.hbm %s5926_s13, 16 }
  0xf5   : > { %p5473_p13 = scmp.ne.s32.totalorder %s5926_s13, %s5472_s10  ;;  %p5479_p3 = scmp.lt.u32.totalorder %s5472_s10, %s5926_s13 }
  0xf7   : > { %p5475_p1 = pnand %p5473_p13, %p6080_p0 }
  0xf9   : > { %p5476_p2 = pneg %p5475_p1 }
  0xfb   : > { %p5481_p4 = pnand %p5479_p3, %p5476_p2 }
  0xfd   : > { %5484 = shalt.err (!%p5481_p4)
}
  0xfe   : > { %s5485_s26 = scalar_lea.vmem %s948_s27, 16  ;;  %s5492_s28 = scalar_lea.vmem %s948_s27, 32 }
  0xff   : > { %p5486_p5 = scmp.ne.s32.totalorder %s948_s27, %s5485_s26  ;;  %p5493_p10 = scmp.lt.s32.totalorder %s948_s27, %s948_s27 }
 0x100   : > { %p5494_p7 = scmp.lt.s32.totalorder %s5492_s28, %s5485_s26 }
 0x101   : > { %p5488_p6 = pnand %p5486_p5, %p6080_p0 }
 0x102   : > { %p5495_p8 = por %p5494_p7, %p5493_p10 }
 0x103   : > { %p5489_p9 = pneg %p5488_p6 }
 0x105   : > { %p5496_p11 = pnand %p5495_p8, %p5489_p9 }
 0x107   : > { %5499 = shalt.err (!%p5496_p11)
}
 0x108   : > { %5036 = dma.hbm_to_vmem [thread:$0]  (!%p6068_p12), %s5926_s13, 16, %s948_s27, [#allocation7]  }
 0x109   : > { %s5500_s16 = scalar_lea.hbm %s5946_s30, 16 }
 0x10a   : > { %p5501_p13 = scmp.ne.s32.totalorder %s5946_s30, %s5500_s16  ;;  %p5507_p3 = scmp.lt.u32.totalorder %s5500_s16, %s5946_s30 }
 0x10c   : > { %p5503_p1 = pnand %p5501_p13, %p6080_p0 }
 0x10e   : > { %p5504_p2 = pneg %p5503_p1 }
 0x110   : > { %p5509_p4 = pnand %p5507_p3, %p5504_p2 }
 0x112   : > { %5512 = shalt.err (!%p5509_p4)
}
 0x113   : > { %s5513_s1 = scalar_lea.vmem %s976_s6, 16  ;;  %s5520_s2 = scalar_lea.vmem %s976_s6, 32 }
 0x114   : > { %p5514_p5 = scmp.ne.s32.totalorder %s976_s6, %s5513_s1  ;;  %p5521_p10 = scmp.lt.s32.totalorder %s976_s6, %s976_s6 }
 0x115   : > { %p5522_p7 = scmp.lt.s32.totalorder %s5520_s2, %s5513_s1 }
 0x116   : > { %p5516_p6 = pnand %p5514_p5, %p6080_p0 }
 0x117   : > { %p5523_p8 = por %p5522_p7, %p5521_p10 }
 0x118   : > { %p5517_p9 = pneg %p5516_p6 }
 0x11a   : > { %p5524_p11 = pnand %p5523_p8, %p5517_p9 }
 0x11c   : > { %5527 = shalt.err (!%p5524_p11)
}
 0x11d   : > { %5042 = dma.hbm_to_vmem [thread:$0]  (!%p6068_p12), %s5946_s30, 16, %s976_s6, [#allocation10]  }
 0x11e   : > { %s5808_s27 = smov [#allocation14]   ;;  %s5809_s26 = smov [#allocation17]  }
 0x11f   : > { %s997_s10 = sshll.u32 %s5808_s27, 4  ;;  %s1025_s28 = sshll.u32 %s5809_s26, 4  ;;  %s998_s10 = int_to_ptr.vmem [resolvable:$true] %s997_s10  ;;  %s1026_s28 = int_to_ptr.vmem [resolvable:$true] %s1025_s28 }
 0x120   : > { %s5528_s16 = scalar_lea.hbm %s5956_s8, 16 }
 0x121   : > { %p5529_p13 = scmp.ne.s32.totalorder %s5956_s8, %s5528_s16  ;;  %p5535_p3 = scmp.lt.u32.totalorder %s5528_s16, %s5956_s8 }
 0x123   : > { %p5531_p1 = pnand %p5529_p13, %p6080_p0 }
 0x125   : > { %p5532_p2 = pneg %p5531_p1 }
 0x127   : > { %p5537_p4 = pnand %p5535_p3, %p5532_p2 }
 0x129   : > { %5540 = shalt.err (!%p5537_p4)
}
 0x12a   : > { %s5541_s1 = scalar_lea.vmem %s998_s10, 16  ;;  %s5548_s6 = scalar_lea.vmem %s998_s10, 32 }
 0x12b   : > { %p5542_p5 = scmp.ne.s32.totalorder %s998_s10, %s5541_s1  ;;  %p5549_p10 = scmp.lt.s32.totalorder %s998_s10, %s998_s10 }
 0x12c   : > { %p5550_p7 = scmp.lt.s32.totalorder %s5548_s6, %s5541_s1 }
 0x12d   : > { %p5544_p6 = pnand %p5542_p5, %p6080_p0 }
 0x12e   : > { %p5551_p8 = por %p5550_p7, %p5549_p10 }
 0x12f   : > { %p5545_p9 = pneg %p5544_p6 }
 0x131   : > { %p5552_p11 = pnand %p5551_p8, %p5545_p9 }
 0x133   : > { %5555 = shalt.err (!%p5552_p11)
}
 0x134   : > { %5048 = dma.hbm_to_vmem [thread:$0]  (!%p6068_p12), %s5956_s8, 16, %s998_s10, [#allocation13]  }
 0x135   : > { %s5556_s2 = scalar_lea.hbm %s5976_s29, 16 }
 0x136   : > { %p5557_p13 = scmp.ne.s32.totalorder %s5976_s29, %s5556_s2  ;;  %p5563_p3 = scmp.lt.u32.totalorder %s5556_s2, %s5976_s29 }
 0x138   : > { %p5559_p1 = pnand %p5557_p13, %p6080_p0 }
 0x13a   : > { %p5560_p2 = pneg %p5559_p1 }
 0x13c   : > { %p5565_p4 = pnand %p5563_p3, %p5560_p2 }
 0x13e   : > { %5568 = shalt.err (!%p5565_p4)
}
 0x13f   : > { %s5569_s27 = scalar_lea.vmem %s1026_s28, 16  ;;  %s5576_s26 = scalar_lea.vmem %s1026_s28, 32 }
 0x140   : > { %p5570_p5 = scmp.ne.s32.totalorder %s1026_s28, %s5569_s27  ;;  %p5577_p10 = scmp.lt.s32.totalorder %s1026_s28, %s1026_s28 }
 0x141   : > { %p5578_p7 = scmp.lt.s32.totalorder %s5576_s26, %s5569_s27 }
 0x142   : > { %p5572_p6 = pnand %p5570_p5, %p6080_p0 }
 0x143   : > { %p5579_p8 = por %p5578_p7, %p5577_p10 }
 0x144   : > { %p5573_p9 = pneg %p5572_p6 }
 0x146   : > { %p5580_p11 = pnand %p5579_p8, %p5573_p9 }
 0x148   : > { %5583 = shalt.err (!%p5580_p11)
}
 0x149   : > { %5054 = dma.hbm_to_vmem [thread:$0]  (!%p6068_p12), %s5976_s29, 16, %s1026_s28, [#allocation16]  }
 0x14a   : > { %s5810_s10 = smov [#allocation20]   ;;  %s5811_s1 = smov [#allocation23]  }
 0x14b   : > { %s1050_s16 = sshll.u32 %s5810_s10, 4  ;;  %s1072_s6 = sshll.u32 %s5811_s1, 4  ;;  %s1051_s16 = int_to_ptr.vmem [resolvable:$true] %s1050_s16  ;;  %s1073_s6 = int_to_ptr.vmem [resolvable:$true] %s1072_s6 }
 0x14c   : > { %s5584_s2 = scalar_lea.hbm %s5989_s24, 16 }
 0x14d   : > { %p5585_p13 = scmp.ne.s32.totalorder %s5989_s24, %s5584_s2  ;;  %p5591_p3 = scmp.lt.u32.totalorder %s5584_s2, %s5989_s24 }
 0x14f   : > { %p5587_p1 = pnand %p5585_p13, %p6080_p0 }
 0x151   : > { %p5588_p2 = pneg %p5587_p1 }
 0x153   : > { %p5593_p4 = pnand %p5591_p3, %p5588_p2 }
 0x155   : > { %5596 = shalt.err (!%p5593_p4)
}
 0x156   : > { %s5597_s27 = scalar_lea.vmem %s1051_s16, 16  ;;  %s5604_s28 = scalar_lea.vmem %s1051_s16, 32 }
 0x157   : > { %p5598_p5 = scmp.ne.s32.totalorder %s1051_s16, %s5597_s27  ;;  %p5605_p10 = scmp.lt.s32.totalorder %s1051_s16, %s1051_s16 }
 0x158   : > { %p5606_p7 = scmp.lt.s32.totalorder %s5604_s28, %s5597_s27 }
 0x159   : > { %p5600_p6 = pnand %p5598_p5, %p6080_p0 }
 0x15a   : > { %p5607_p8 = por %p5606_p7, %p5605_p10 }
 0x15b   : > { %p5601_p9 = pneg %p5600_p6 }
 0x15d   : > { %p5608_p11 = pnand %p5607_p8, %p5601_p9 }
 0x15f   : > { %5611 = shalt.err (!%p5608_p11)
}
 0x160   : > { %5060 = dma.hbm_to_vmem [thread:$0]  (!%p6068_p12), %s5989_s24, 16, %s1051_s16, [#allocation19]  }
 0x161   : > { %s5612_s26 = scalar_lea.hbm %s5999_s14, 16 }
 0x162   : > { %p5613_p13 = scmp.ne.s32.totalorder %s5999_s14, %s5612_s26  ;;  %p5619_p3 = scmp.lt.u32.totalorder %s5612_s26, %s5999_s14 }
 0x164   : > { %p5615_p1 = pnand %p5613_p13, %p6080_p0 }
 0x166   : > { %p5616_p2 = pneg %p5615_p1 }
 0x168   : > { %p5621_p4 = pnand %p5619_p3, %p5616_p2 }
 0x16a   : > { %5624 = shalt.err (!%p5621_p4)
}
 0x16b   : > { %s5625_s10 = scalar_lea.vmem %s1073_s6, 16  ;;  %s5632_s1 = scalar_lea.vmem %s1073_s6, 32 }
 0x16c   : > { %p5626_p5 = scmp.ne.s32.totalorder %s1073_s6, %s5625_s10  ;;  %p5633_p10 = scmp.lt.s32.totalorder %s1073_s6, %s1073_s6 }
 0x16d   : > { %p5634_p7 = scmp.lt.s32.totalorder %s5632_s1, %s5625_s10 }
 0x16e   : > { %p5628_p6 = pnand %p5626_p5, %p6080_p0 }
 0x16f   : > { %p5635_p8 = por %p5634_p7, %p5633_p10 }
 0x170   : > { %p5629_p9 = pneg %p5628_p6 }
 0x172   : > { %p5636_p11 = pnand %p5635_p8, %p5629_p9 }
 0x174   : > { %5639 = shalt.err (!%p5636_p11)
}
 0x175   : > { %5066 = dma.hbm_to_vmem [thread:$0]  (!%p6068_p12), %s5999_s14, 16, %s1073_s6, [#allocation22]  }
 0x176   : > { %s5812_s16 = smov [#allocation24]   ;;  %s5640_s27 = scalar_lea.hbm %s6004_s25, 16 }
 0x177   : > { %s1083_s2 = sshll.u32 %s5812_s16, 4  ;;  %p5641_p13 = scmp.ne.s32.totalorder %s6004_s25, %s5640_s27  ;;  %s1084_s2 = int_to_ptr.vmem [resolvable:$true] %s1083_s2 }
 0x178   : > { %p5647_p3 = scmp.lt.u32.totalorder %s5640_s27, %s6004_s25 }
 0x179   : > { %p5643_p1 = pnand %p5641_p13, %p6080_p0 }
 0x17b   : > { %p5644_p2 = pneg %p5643_p1 }
 0x17d   : > { %p5649_p4 = pnand %p5647_p3, %p5644_p2 }
 0x17f   : > { %5652 = shalt.err (!%p5649_p4)
}
 0x180   : > { %s5653_s28 = scalar_lea.vmem %s1084_s2, 16  ;;  %s5660_s26 = scalar_lea.vmem %s1084_s2, 32 }
 0x181   : > { %p5654_p5 = scmp.ne.s32.totalorder %s1084_s2, %s5653_s28  ;;  %p5661_p10 = scmp.lt.s32.totalorder %s1084_s2, %s1084_s2 }
 0x182   : > { %p5662_p7 = scmp.lt.s32.totalorder %s5660_s26, %s5653_s28 }
 0x183   : > { %p5656_p6 = pnand %p5654_p5, %p6080_p0 }
 0x184   : > { %p5663_p8 = por %p5662_p7, %p5661_p10 }
 0x185   : > { %p5657_p9 = pneg %p5656_p6 }
 0x187   : > { %p5664_p11 = pnand %p5663_p8, %p5657_p9 }
 0x189   : > { %5667 = shalt.err (!%p5664_p11)
}
 0x18a   : > { %5069 = dma.hbm_to_vmem [thread:$0]  (!%p6068_p12), %s6004_s25, 16, %s1084_s2, [#allocation25]  }
 0x18b   : > { %p6761_p13 = scmp.ne.s32.totalorder %s6758_s15, 0 }
 0x18c   : > { %p6762_p1 = scmp.eq.s32.totalorder (!%p6761_p13), %s6032_s19, 0 }
 0x18d   : > { %1110 = sbr.rel (%p6761_p13) target bundleno = 8754 (0x2232), region = 160 }
 0x194   : > { %5713 = dma.done.wait (%p6762_p1), [#allocation4], 16   ;;  %p6763_p2 = pmov %p6762_p1 }
 0x195   : > { %p6764_p0 = pmov %p6762_p1 }
 0x196   : > { %5715 = vsyncadd (%p6763_p2), [#allocation4], 4294967280 }
 0x197   : > { %5717 = dma.done.wait (%p6764_p0), [#allocation7], 32   ;;  %p6765_p3 = pmov %p6764_p0 }
 0x198   : > { %p6766_p4 = pmov %p6764_p0 }
 0x199   : > { %5719 = vsyncadd (%p6765_p3), [#allocation7], 4294967264 }
 0x19a   : > { %5721 = dma.done.wait (%p6766_p4), [#allocation10], 32   ;;  %p6767_p12 = pmov %p6764_p0 }
 0x19b   : > { %p6768_p5 = pmov %p6764_p0 }
 0x19c   : > { %5723 = vsyncadd (%p6767_p12), [#allocation10], 4294967264 }
 0x19d   : > { %5725 = dma.done.wait (%p6768_p5), [#allocation13], 32   ;;  %p6769_p6 = pmov %p6764_p0 }
 0x19e   : > { %p6770_p9 = pmov %p6764_p0 }
 0x19f   : > { %5727 = vsyncadd (%p6769_p6), [#allocation13], 4294967264 }
 0x1a0   : > { %5729 = dma.done.wait (%p6770_p9), [#allocation16], 32   ;;  %p6771_p10 = pmov %p6764_p0 }
 0x1a1   : > { %p6772_p7 = pmov %p6764_p0 }
 0x1a2   : > { %5731 = vsyncadd (%p6771_p10), [#allocation16], 4294967264 }
 0x1a3   : > { %5733 = dma.done.wait (%p6772_p7), [#allocation19], 32   ;;  %p6773_p8 = pmov %p6764_p0 }
 0x1a4   : > { %p6774_p11 = pmov %p6764_p0 }
 0x1a5   : > { %5735 = vsyncadd (%p6773_p8), [#allocation19], 4294967264 }
 0x1a6   : > { %5737 = dma.done.wait (%p6774_p11), [#allocation22], 32   ;;  %p6775_p13 = pmov %p6764_p0 }
 0x1a7   : > { %p6776_p1 = pmov %p6764_p0 }
 0x1a8   : > { %5739 = vsyncadd (%p6775_p13), [#allocation22], 4294967264 }
 0x1a9   : > { %5741 = dma.done.wait (%p6776_p1), [#allocation25], 16   ;;  %p6777_p2 = pmov %p6764_p0 }
 0x1aa   : > { %p1253_p0 = scmp.lt.s32.totalorder %s6032_s19, 1  ;;  %v5813_v1 = vmov 0.0   ;;  %vm5814_vm0 = vmmov 0   ;;  %s6778_s15 = sld [smem:[#allocation38_spill]]  ;;  %v5200_v2 = vld [vmem:[%s5851_s17] sm:$0xff]   ;;  %v5201_v3 = vld [vmem:[%s5851_s17 + $0x8] sm:$0xff]   ;;  %v1265_v18 = vlaneseq }
 0x1ab   : > { %5743 = vsyncadd (%p6777_p2), [#allocation25], 4294967280  ;;  %4705 = vmatprep.subr.bf16.mxu0 %v5813_v1  ;;  %4709 = vmatprep.mubr.msk.bf16.mxu0 %vm5814_vm0, %v5813_v1  ;;  %vm1295_vm1 = vcmask 261120   ;;  %s6715_s10 = smov 120   ;;  %s6709_s1 = smov 96   ;;  %vm1351_vm2 = vcmask 64512  }
 0x1ac   : > { %s6273_s7 = scalar_select %p1253_p0, %s6032_s19, 1  ;;  %4725 = vmatprep.subr.bf16.mxu1 %v5813_v1  ;;  %4727 = vmatprep.mubr.msk.bf16.mxu1 %vm5814_vm0, %v5813_v1  ;;  %v1266_v19 = vshrl.u32 %v1265_v18, 7  ;;  %v1268_v20 = vand.u32 127, %v1265_v18  ;;  %vm1417_vm4 = vcmask 1043456   ;;  %vm4080_vm7 = vcmask 523264  }
 0x1ad   : > { %4706 = vmatpush3.bf16.msra.mxu0 %v5200_v2  ;;  %s6710_s16 = smov 88   ;;  %s5818_s2 = smov 56  }
 0x1ae   : > { %s6706_s18 = sshll.u32 %s6273_s7, 3  ;;  %4707 = vmatprep.subr.bf16.mxu0 %v5813_v1  ;;  %vm1269_vm3 = vcmp.gt.s32.totalorder %v1268_v20, %v1266_v19  ;;  %s6712_s27 = smov 80  }
 0x1af   : > { %s1256_s6 = scalar_lea.vmem %s5841_s9, %s6706_s18  ;;  %v6314_v22 = vsel %vm1269_vm3, -1.7677669e+08, %v5813_v1  ;;  %s5820_s28 = smov 64  }
 0x1b0   : > { %v6284_v4 = vld [vmem:[%s1256_s6] sm:$0xff]  ;;  %s6713_s26 = smov 112   ;;  %s6711_s6 = smov 72  }
 0x1b1   : > { %v1271_v5 = vpack.c.bf16 %v6284_v4, %v6284_v4  ;;  %4708 = vmatpush3.bf16.msra.mxu0 %v5201_v3  ;;  %v4498_v6 = vld [vmem:[%s6778_s15] ss:$0 sm:$0xff]  ;;  %s6779_s15 = sld [smem:[#allocation39_spill]]  ;;  %s6780_s18 = sld [smem:[#allocation43_spill]] }
 0x1b2   : > { %4713 = vmatprep.subr.bf16.mxu0 %v5813_v1  ;;  %p6806_p4 = scmp.ne.s32.totalorder %s6755_s11, 0 }
 0x1b4   : > { %4710 = vmatmul.mubr.msk.bf16.vlgmr.msra.gmra.mrb[0].mxu0 %vm1295_vm1, %v1271_v5 }
 0x1b5   : > { %4715 = vmatprep.mubr.msk.bf16.mxu0 %vm5814_vm0, %v5813_v1 }
 0x1b7   : > { %v4584_v61 = vld [vmem:[%s6779_s15] sm:$0xff]  }
 0x1b8   : > { %v4586_v62 = vunpack.c.h.bf16 %v4584_v61  ;;  %v4585_v5 = vunpack.c.l.bf16 %v4584_v61 }
 0x287   : > { %v1333_v7 = vpop.f32.mrb[0].mxu0 }
 0x288   : > { %v1334_v8 = vadd.f32 %v4498_v6, %v1333_v7  ;;  %v4711_v9 = vpop.f32.mrb[1].mxu0 }
 0x289   : > { %v1336_v10 = vpop.f32.mrb[2].mxu0 }
 0x28a   : > { %v6294_v11 = vpack.c.bf16 %v1334_v8, %v1334_v8  ;;  %v4712_v12 = vpop.f32.mrb[3].mxu0 }
 0x28c   : > { %1461 = vrot.lane.b32.xlu1 %v6294_v11, %s6715_s10  ;;  %1349 = vrot.lane.b32.xlu0 %v6294_v11, %s6709_s1 }
 0x290   : > { %1463 = vrot.lane.b32.xlu0 %v6294_v11, %s6710_s16 }
 0x2fe   : > { %v1350_v13 = vpop.permute.xlu0 %1349  ;;  %v1462_v17 = vpop.permute.xlu1 %1461 }
 0x2ff   : > { %v1356_v14 = vsel %vm1351_vm2, %v1350_v13, 0 }
 0x300   : > { %4714 = vmatpush3.bf16.xpose.msra.mxu0 %v1356_v14 }
 0x301   : > { %4719 = vmatprep.subr.bf16.mxu0 %v5813_v1 }
 0x302   : > { %v1464_v15 = vpop.permute.xlu0 %1463 }
 0x303   : > { %v1469_v16 = vsel %vm1351_vm2, %v1464_v15, 0 }
 0x304   : > { %4726 = vmatpush3.bf16.xpose.msra.mxu1 %v1469_v16 }
 0x305   : > { %4737 = vmatprep.subr.mxu1 %v5813_v1 }
 0x307   : > { %4716 = vmatmul.mubr.msk.bf16.vlgmr.msra.gmra.mrb[4].mxu0 %vm1351_vm2, %v6294_v11 }
 0x308   : > { %4721 = vmatprep.mubr.msk.bf16.mxu0 %vm5814_vm0, %v5813_v1 }
 0x30b   : > { %4728 = vmatmul.mubr.msk.bf16.vlgmr.msra.gmra.mrb[0].mxu1 %vm1351_vm2, %v1462_v17 }
 0x30c   : > { %4739 = vmatprep.mubr.msk.f32.mxu1 %vm5814_vm0, %v5813_v1  ;;  %4738 = vmatpush3.msra.mxu1 %v4586_v62 }
 0x30d   : > { %4742 = vmatprep.subr.mxu1 %v5813_v1 }
 0x3da   : > { %v1392_v21 = vpop.f32.mrb[4].mxu0 }
 0x3db   : > { %v1398_v23 = vmul.f32 0.17677669, %v1392_v21  ;;  %v4717_v24 = vpop.f32.mrb[5].mxu0 }
 0x3dc   : > { %v1395_v25 = vpop.f32.mrb[6].mxu0 }
 0x3dd   : > { %v4718_v26 = vpop.f32.mrb[7].mxu0  ;;  %v1399_v27 = vadd.f32 %v1398_v23, %v6314_v22 }
 0x3de   : > { %v1505_v28 = vpop.f32.mrb[0].mxu1 }
 0x3df   : > { %v1511_v29 = vmul.f32 0.17677669, %v1505_v28  ;;  %v4729_v30 = vpop.f32.mrb[1].mxu1  ;;  %v1400_v31 = vsel %vm1351_vm2, %v1399_v27, -inf }
 0x3e0   : > { %v1508_v32 = vpop.f32.mrb[2].mxu1  ;;  %1401 = vmax.xlane.f32.xlu1 %v1400_v31 }
 0x3e1   : > { %v4730_v33 = vpop.f32.mrb[3].mxu1  ;;  %v1512_v34 = vadd.f32 %v1511_v29, %v6314_v22 }
 0x3e3   : > { %v1513_v35 = vsel %vm1351_vm2, %v1512_v34, -inf }
 0x3e4   : > { %1514 = vmax.xlane.f32.xlu0 %v1513_v35 }
 0x3f1   : > { %1525 = vrot.lane.b32.xlu1 %v6294_v11, %s5818_s2  ;;  %s6707_s2 = smov 104  }
 0x46d   : > { %v1402_v36 = vpop.xlane.xlu1 %1401 }
 0x46e   : > { %v1403_v37 = vsub.f32 %v1399_v27, %v1402_v36 }
 0x470   : > { %v1404_v38 = vmul.f32 1.442695, %v1403_v37 }
 0x471   : > { %v1515_v39 = vpop.xlane.xlu0 %1514  ;;  %v1526_v46 = vpop.permute.xlu1 %1525 }
 0x472   : > { %5216 = vpow2.f32 %v1404_v38  ;;  %v1516_v40 = vsub.f32 %v1512_v34, %v1515_v39  ;;  %v1531_v55 = vsel %vm1417_vm4, %v1526_v46, 0  ;;  %v4607_v38 = vld [vmem:[%s6779_s15 + $0x8] sm:$0xff]  }
 0x473   : > { %v4589_v39 = vunpack.c.l.bf16 %v4607_v38 }
 0x474   : > { %v1517_v41 = vmul.f32 1.442695, %v1516_v40 }
 0x476   : > { %5218 = vpow2.f32 %v1517_v41 }
 0x47c   : > { %v5217_v42 = vpop.eup %5216 }
 0x47d   : > { %v1406_v43 = vsel %vm1351_vm2, %v5217_v42, 0.0 }
 0x47e   : > { %1407 = vadd.xlane.f32.xlu0 %v1406_v43 }
 0x480   : > { %v5219_v44 = vpop.eup %5218 }
 0x481   : > { %v1519_v45 = vsel %vm1351_vm2, %v5219_v44, 0.0 }
 0x482   : > { %1520 = vadd.xlane.f32.xlu1 %v1519_v45 }
 0x493   : > { %1721 = vrot.lane.b32.xlu1 %v6294_v11, %s6712_s27 }
 0x494   : > { %1412 = vrot.lane.b32.xlu0 %v6294_v11, %s5820_s28  ;;  %s5824_s28 = smov 48  }
 0x498   : > { %1719 = vrot.lane.b32.xlu0 %v6294_v11, %s6713_s26 }
 0x50b   : > { %v1408_v47 = vpop.xlane.xlu0 %1407 }
 0x50c   : > { %5220 = vrcp.f32 %v1408_v47 }
 0x50f   : > { %v1413_v48 = vpop.permute.xlu0 %1412  ;;  %v1521_v49 = vpop.xlane.xlu1 %1520 }
 0x510   : > { %v1419_v50 = vsel %vm1417_vm4, %v1413_v48, 0  ;;  %5222 = vrcp.f32 %v1521_v49 }
 0x511   : > { %4720 = vmatpush3.bf16.msra.mxu0 %v1419_v50 }
 0x512   : > { %4731 = vmatprep.subr.bf16.mxu0 %v5813_v1 }
 0x513   : > { %v1722_v57 = vpop.permute.xlu1 %1721  ;;  %v1720_v60 = vpop.permute.xlu0 %1719 }
 0x514   : > { %v1727_v59 = vsel %vm1351_vm2, %v1722_v57, 0 }
 0x516   : > { %v5221_v51 = vpop.eup %5220 }
 0x517   : > { %v1410_v52 = vmul.f32 %v5221_v51, %v5217_v42 }
 0x519   : > { %v1411_v53 = vpack.c.bf16 %v1410_v52, %v1410_v52 }
 0x51a   : > { %v5223_v54 = vpop.eup %5222 }
 0x51b   : > { %4722 = vmatmul.mubr.msk.bf16.vlgmr.msra.gmra.mrb[8].mxu0 %vm1351_vm2, %v1411_v53  ;;  %v1523_v56 = vmul.f32 %v5223_v54, %v5219_v44 }
 0x51c   : > { %4732 = vmatpush3.bf16.msra.mxu0 %v1531_v55  ;;  %4733 = vmatprep.mubr.msk.bf16.mxu0 %vm5814_vm0, %v5813_v1 }
 0x51d   : > { %4747 = vmatprep.subr.bf16.mxu0 %v5813_v1  ;;  %v1524_v58 = vpack.c.bf16 %v1523_v56, %v1523_v56 }
 0x523   : > { %4734 = vmatmul.mubr.msk.bf16.vlgmr.msra.gmra.mrb[12].mxu0 %vm1351_vm2, %v1524_v58  ;;  %v4590_v58 = vunpack.c.h.bf16 %v4607_v38 }
 0x524   : > { %4749 = vmatprep.mubr.msk.bf16.mxu0 %vm5814_vm0, %v5813_v1 }
 0x525   : > { %4748 = vmatpush3.bf16.xpose.msra.mxu0 %v1727_v59 }
 0x526   : > { %4759 = vmatprep.subr.mxu0 %v5813_v1 }
 0x52c   : > { %4750 = vmatmul.mubr.msk.bf16.vlgmr.msra.gmra.mrb[16].mxu0 %vm1351_vm2, %v1720_v60 }
 0x52d   : > { %4761 = vmatprep.mubr.msk.f32.mxu0 %vm5814_vm0, %v5813_v1  ;;  %4760 = vmatpush3.msra.mxu0 %v4589_v39 }
 0x52e   : > { %4770 = vmatprep.subr.bf16.mxu0 %v5813_v1 }
 0x5ee   : > { %v1455_v63 = vpop.f32.mrb[8].mxu0 }
 0x5ef   : > { %v4723_v0 = vpop.f32.mrb[9].mxu0 }
 0x5f0   : > { %v1458_v2 = vpop.f32.mrb[10].mxu0  ;;  %v5202_v0 = vld [vmem:[%s6780_s18] sm:$0xff]  }
 0x5f1   : > { %v4724_v3 = vpop.f32.mrb[11].mxu0 }
 0x5f2   : > { %v5203_v3 = vld [vmem:[%s6780_s18 + $0x8] sm:$0xff]  }
 0x5f6   : > { %v1567_v6 = vpop.f32.mrb[12].mxu0 }
 0x5f7   : > { %v4735_v7 = vpop.f32.mrb[13].mxu0  ;;  %4740 = vmatmul.mubr.msk.f32.vlgmr.msra.gmra.mrb[4].mxu1 %vm1351_vm2, %v1567_v6 }
 0x5f8   : > { %v1570_v8 = vpop.f32.mrb[14].mxu0  ;;  %4743 = vmatpush3.msra.mxu1 %v4585_v5  ;;  %4744 = vmatprep.mubr.msk.f32.mxu1 %vm5814_vm0, %v5813_v1 }
 0x5f9   : > { %v4736_v9 = vpop.f32.mrb[15].mxu0  ;;  %4753 = vmatprep.subr.bf16.mxu1 %v5813_v1 }
 0x5fb   : > { %4745 = vmatmul.mubr.msk.f32.vlgmr.msra.gmra.mrb[6].mxu1 %vm1351_vm2, %v1455_v63 }
 0x5fc   : > { %4755 = vmatprep.mubr.msk.bf16.mxu1 %vm5814_vm0, %v5813_v1 }
 0x5ff   : > { %v1763_v10 = vpop.f32.mrb[16].mxu0 }
 0x600   : > { %v1769_v12 = vmul.f32 0.17677669, %v1763_v10  ;;  %v4751_v13 = vpop.f32.mrb[17].mxu0 }
 0x601   : > { %v1766_v14 = vpop.f32.mrb[18].mxu0 }
 0x602   : > { %v4752_v15 = vpop.f32.mrb[19].mxu0  ;;  %v1770_v16 = vadd.f32 %v1769_v12, %v6314_v22 }
 0x604   : > { %v1771_v17 = vsel %vm1351_vm2, %v1770_v16, -inf }
 0x605   : > { %1772 = vmax.xlane.f32.xlu1 %v1771_v17 }
 0x616   : > { %1907 = vrot.lane.b32.xlu1 %v6294_v11, %s6711_s6 }
 0x61a   : > { %1905 = vrot.lane.b32.xlu1 %v6294_v11, %s6707_s2  ;;  %s6781_s2 = sld [smem:[#allocation36_spill]] }
 0x620   : > { %v1263_v5 = vld [vmem:[%s6781_s2] sm:$0xff]  ;;  %s6783_s2 = sld [smem:[#allocation40_spill]] }
 0x621   : > { %v2130_v6 = vpack.c.bf16 %v1263_v5, %v1263_v5 }
 0x692   : > { %v1773_v18 = vpop.xlane.xlu1 %1772 }
 0x693   : > { %v1774_v19 = vsub.f32 %v1770_v16, %v1773_v18 }
 0x695   : > { %v1775_v20 = vmul.f32 1.442695, %v1774_v19 }
 0x696   : > { %v1908_v34 = vpop.permute.xlu1 %1907 }
 0x697   : > { %5224 = vpow2.f32 %v1775_v20  ;;  %v1913_v36 = vsel %vm1351_vm2, %v1908_v34, 0 }
 0x69a   : > { %v1906_v37 = vpop.permute.xlu1 %1905 }
 0x6a1   : > { %v5225_v21 = vpop.eup %5224 }
 0x6a2   : > { %v1777_v23 = vsel %vm1351_vm2, %v5225_v21, 0.0 }
 0x6a3   : > { %1778 = vadd.xlane.f32.xlu0 %v1777_v23 }
 0x6b9   : > { %1783 = vrot.lane.b32.xlu0 %v6294_v11, %s5824_s28  ;;  %s5825_s28 = smov 40  }
 0x6ca   : > { %v1642_v24 = vpop.f32.mrb[4].mxu1 }
 0x6cb   : > { %v4741_v25 = vpop.f32.mrb[5].mxu1 }
 0x6ce   : > { %v1715_v26 = vpop.f32.mrb[6].mxu1 }
 0x6cf   : > { %v1716_v27 = vadd.f32 %v1715_v26, %v1642_v24  ;;  %v4746_v28 = vpop.f32.mrb[7].mxu1  ;;  %v4514_v26 = vld [vmem:[%s6783_s2] ss:$0 sm:$0xff]  ;;  %s6785_s2 = sld [smem:[#allocation41_spill]] }
 0x730   : > { %v1779_v29 = vpop.xlane.xlu0 %1778 }
 0x731   : > { %5226 = vrcp.f32 %v1779_v29 }
 0x734   : > { %v1784_v30 = vpop.permute.xlu0 %1783 }
 0x735   : > { %v1789_v31 = vsel %vm1417_vm4, %v1784_v30, 0 }
 0x736   : > { %4754 = vmatpush3.bf16.msra.mxu1 %v1789_v31 }
 0x737   : > { %4764 = vmatprep.subr.bf16.mxu1 %v5813_v1 }
 0x73b   : > { %v5227_v32 = vpop.eup %5226 }
 0x73c   : > { %v1781_v33 = vmul.f32 %v5227_v32, %v5225_v21 }
 0x73e   : > { %v1782_v35 = vpack.c.bf16 %v1781_v33, %v1781_v33 }
 0x740   : > { %4756 = vmatmul.mubr.msk.bf16.vlgmr.msra.gmra.mrb[8].mxu1 %vm1351_vm2, %v1782_v35 }
 0x741   : > { %4765 = vmatpush3.bf16.xpose.msra.mxu1 %v1913_v36  ;;  %4766 = vmatprep.mubr.msk.bf16.mxu1 %vm5814_vm0, %v5813_v1 }
 0x742   : > { %4776 = vmatprep.subr.mxu1 %v5813_v1 }
 0x748   : > { %4767 = vmatmul.mubr.msk.bf16.vlgmr.msra.gmra.mrb[12].mxu1 %vm1351_vm2, %v1906_v37 }
 0x749   : > { %4778 = vmatprep.mubr.msk.f32.mxu1 %vm5814_vm0, %v5813_v1  ;;  %4777 = vmatpush3.msra.mxu1 %v4590_v58 }
 0x74a   : > { %4789 = vmatprep.subr.bf16.mxu1 %v5813_v1 }
 0x813   : > { %v1825_v40 = vpop.f32.mrb[8].mxu1 }
 0x814   : > { %v4757_v41 = vpop.f32.mrb[9].mxu1  ;;  %4762 = vmatmul.mubr.msk.f32.vlgmr.msra.gmra.mrb[20].mxu0 %vm1351_vm2, %v1825_v40 }
 0x815   : > { %v1828_v42 = vpop.f32.mrb[10].mxu1  ;;  %4772 = vmatprep.mubr.msk.bf16.mxu0 %vm5814_vm0, %v5813_v1 }
 0x816   : > { %v4758_v43 = vpop.f32.mrb[11].mxu1 }
 0x81b   : > { %v1949_v44 = vpop.f32.mrb[12].mxu1 }
 0x81c   : > { %v1955_v45 = vmul.f32 0.17677669, %v1949_v44  ;;  %v4768_v46 = vpop.f32.mrb[13].mxu1 }
 0x81d   : > { %v1952_v47 = vpop.f32.mrb[14].mxu1 }
 0x81e   : > { %v4769_v48 = vpop.f32.mrb[15].mxu1  ;;  %v1956_v49 = vadd.f32 %v1955_v45, %v6314_v22 }
 0x820   : > { %v1957_v50 = vsel %vm1351_vm2, %v1956_v49, -inf }
 0x821   : > { %1958 = vmax.xlane.f32.xlu0 %v1957_v50 }
 0x837   : > { %1969 = vrot.lane.b32.xlu0 %v6294_v11, %s5825_s28  ;;  %s6782_s28 = sld [smem:[#allocation44_spill]] }
 0x83d   : > { %v4517_v12 = vld [vmem:[%s6782_s28] ss:$0 sm:$0xff]  ;;  %s6784_s28 = sld [smem:[#allocation45_spill]] }
 0x843   : > { %v5204_v50 = vld [vmem:[%s6784_s28] sm:$0xff]  }
 0x8ae   : > { %v1959_v51 = vpop.xlane.xlu0 %1958 }
 0x8af   : > { %v1960_v52 = vsub.f32 %v1956_v49, %v1959_v51  ;;  %v5205_v51 = vld [vmem:[%s6784_s28 + $0x8] sm:$0xff]  }
 0x8b1   : > { %v1961_v53 = vmul.f32 1.442695, %v1960_v52 }
 0x8b2   : > { %v1970_v54 = vpop.permute.xlu0 %1969 }
 0x8b3   : > { %5228 = vpow2.f32 %v1961_v53  ;;  %v1975_v55 = vsel %vm1417_vm4, %v1970_v54, 0 }
 0x8b4   : > { %4771 = vmatpush3.bf16.msra.mxu0 %v1975_v55 }
 0x8b5   : > { %4781 = vmatprep.subr.bf16.mxu0 %v5813_v1 }
 0x8bd   : > { %v5229_v56 = vpop.eup %5228 }
 0x8be   : > { %v1963_v57 = vsel %vm1351_vm2, %v5229_v56, 0.0 }
 0x8bf   : > { %1964 = vadd.xlane.f32.xlu1 %v1963_v57 }
 0x8e7   : > { %v1900_v11 = vpop.f32.mrb[20].mxu0 }
 0x8e8   : > { %v1904_v59 = vadd.f32 %v1900_v11, %v1716_v27  ;;  %v4763_v60 = vpop.f32.mrb[21].mxu0 }
 0x94c   : > { %v1965_v61 = vpop.xlane.xlu1 %1964 }
 0x94d   : > { %5230 = vrcp.f32 %v1965_v61 }
 0x957   : > { %v5231_v62 = vpop.eup %5230 }
 0x958   : > { %v1967_v63 = vmul.f32 %v5231_v62, %v5229_v56 }
 0x95a   : > { %v1968_v2 = vpack.c.bf16 %v1967_v63, %v1967_v63  ;;  %v4515_v63 = vld [vmem:[%s6785_s2] ss:$0 sm:$0xff]  ;;  %s6790_s2 = sld [smem:[#allocation48_spill]] }
 0x95c   : > { %4773 = vmatmul.mubr.msk.bf16.vlgmr.msra.gmra.mrb[24].mxu0 %vm1351_vm2, %v1968_v2 }
 0x95d   : > { %4782 = vmatpush3.bf16.msra.mxu0 %v5202_v0  ;;  %4785 = vmatprep.mubr.msk.bf16.mxu0 %vm5814_vm0, %v5813_v1 }
 0x95e   : > { %4783 = vmatprep.subr.bf16.mxu0 %v5813_v1 }
 0x961   : > { %4784 = vmatpush3.bf16.msra.mxu0 %v5203_v3 }
 0x962   : > { %4797 = vmatprep.subr.bf16.mxu0 %v5813_v1 }
 0x964   : > { %4786 = vmatmul.mubr.msk.bf16.vlgmr.msra.gmra.mrb[28].mxu0 %vm1295_vm1, %v2130_v6 }
 0x965   : > { %4799 = vmatprep.mubr.msk.bf16.mxu0 %vm5814_vm0, %v5813_v1 }
 0xa2f   : > { %v2011_v7 = vpop.f32.mrb[24].mxu0 }
 0xa30   : > { %v4774_v8 = vpop.f32.mrb[25].mxu0  ;;  %4779 = vmatmul.mubr.msk.f32.vlgmr.msra.gmra.mrb[16].mxu1 %vm1351_vm2, %v2011_v7 }
 0xa31   : > { %v2014_v9 = vpop.f32.mrb[26].mxu0  ;;  %4793 = vmatprep.mubr.msk.bf16.mxu1 %vm5814_vm0, %v5813_v1  ;;  %4790 = vmatpush3.bf16.msra.mxu1 %v5204_v50 }
 0xa32   : > { %v4775_v10 = vpop.f32.mrb[27].mxu0  ;;  %4791 = vmatprep.subr.bf16.mxu1 %v5813_v1 }
 0xa35   : > { %4792 = vmatpush3.bf16.msra.mxu1 %v5205_v51 }
 0xa36   : > { %4803 = vmatprep.subr.bf16.mxu1 %v5813_v1 }
 0xa37   : > { %v2191_v13 = vpop.f32.mrb[28].mxu0 }
 0xa38   : > { %v2192_v14 = vadd.f32 %v4517_v12, %v2191_v13  ;;  %v4787_v15 = vpop.f32.mrb[29].mxu0 }
 0xa39   : > { %v2194_v16 = vpop.f32.mrb[30].mxu0 }
 0xa3a   : > { %v6397_v17 = vpack.c.bf16 %v2192_v14, %v2192_v14  ;;  %v4788_v18 = vpop.f32.mrb[31].mxu0 }
 0xa3c   : > { %2275 = vrot.lane.b32.xlu1 %v6397_v17, %s6709_s1  ;;  %2385 = vrot.lane.b32.xlu0 %v6397_v17, %s6710_s16  ;;  %s6786_s1 = sld [smem:[#allocation42_spill]]  ;;  %s6787_s16 = sld [smem:[#allocation46_spill]] }
 0xa40   : > { %2383 = vrot.lane.b32.xlu0 %v6397_v17, %s6715_s10 }
 0xa42   : > { %v4516_v2 = vld [vmem:[%s6786_s1] ss:$0 sm:$0xff]  ;;  %s6788_s1 = sld [smem:[#allocation47_spill]] }
 0xa43   : > { %v4521_v10 = vld [vmem:[%s6787_s16] ss:$0 sm:$0xff]  ;;  %s6789_s16 = smov 104  }
 0xaae   : > { %v2276_v19 = vpop.permute.xlu1 %2275  ;;  %v2386_v21 = vpop.permute.xlu0 %2385 }
 0xaaf   : > { %v2281_v20 = vsel %vm1351_vm2, %v2276_v19, 0  ;;  %v2391_v23 = vsel %vm1351_vm2, %v2386_v21, 0 }
 0xab0   : > { %4798 = vmatpush3.bf16.xpose.msra.mxu0 %v2281_v20 }
 0xab1   : > { %4809 = vmatprep.subr.bf16.mxu0 %v5813_v1 }
 0xab2   : > { %v2384_v24 = vpop.permute.xlu0 %2383 }
 0xab7   : > { %4800 = vmatmul.mubr.msk.bf16.vlgmr.msra.gmra.mrb[32].mxu0 %vm1351_vm2, %v6397_v17 }
 0xab8   : > { %4810 = vmatpush3.bf16.xpose.msra.mxu0 %v2391_v23  ;;  %4811 = vmatprep.mubr.msk.bf16.mxu0 %vm5814_vm0, %v5813_v1 }
 0xab9   : > { %4821 = vmatprep.subr.mxu0 %v5813_v1 }
 0xabf   : > { %4812 = vmatmul.mubr.msk.bf16.vlgmr.msra.gmra.mrb[36].mxu0 %vm1351_vm2, %v2384_v24 }
 0xac0   : > { %4823 = vmatprep.mubr.msk.f32.mxu0 %vm5814_vm0, %v5813_v1 }
 0xb03   : > { %v2086_v25 = vpop.f32.mrb[16].mxu1 }
 0xb04   : > { %v2090_v27 = vadd.f32 %v2086_v25, %v1904_v59  ;;  %v4780_v28 = vpop.f32.mrb[17].mxu1 }
 0xb06   : > { %v2098_v29 = vadd.f32 %v4514_v26, %v2090_v27 }
 0xb08   : > { %v2099_v30 = vadd.f32 %v2098_v29, %v6284_v4 }
 0xb0a   : > { %v2102_v31 = vsel %vm1295_vm1, %v2099_v30, 0.0 }
 0xb0b   : > { %2103 = vadd.xlane.f32.xlu1 %v2102_v31 }
 0xb8a   : > { %v2317_v32 = vpop.f32.mrb[32].mxu0 }
 0xb8b   : > { %v2323_v33 = vmul.f32 0.17677669, %v2317_v32  ;;  %v4801_v34 = vpop.f32.mrb[33].mxu0 }
 0xb8c   : > { %v2320_v35 = vpop.f32.mrb[34].mxu0 }
 0xb8d   : > { %v2324_v36 = vadd.f32 %v2323_v33, %v6314_v22  ;;  %v4802_v37 = vpop.f32.mrb[35].mxu0  ;;  %v4592_v33 = vld [vmem:[%s6788_s1] sm:$0xff]  }
 0xb8e   : > { %v4594_v34 = vunpack.c.h.bf16 %v4592_v33 }
 0xb8f   : > { %v2325_v38 = vsel %vm1351_vm2, %v2324_v36, -inf }
 0xb90   : > { %2326 = vmax.xlane.f32.xlu1 %v2325_v38  ;;  %4822 = vmatpush3.msra.mxu0 %v4594_v34 }
 0xb91   : > { %4826 = vmatprep.subr.mxu0 %v5813_v1 }
 0xb92   : > { %v2427_v39 = vpop.f32.mrb[36].mxu0 }
 0xb93   : > { %v4813_v40 = vpop.f32.mrb[37].mxu0  ;;  %v2433_v44 = vmul.f32 0.17677669, %v2427_v39  ;;  %v4593_v39 = vunpack.c.l.bf16 %v4592_v33 }
 0xb94   : > { %v2430_v41 = vpop.f32.mrb[38].mxu0 }
 0xb95   : > { %v4814_v42 = vpop.f32.mrb[39].mxu0  ;;  %v2434_v47 = vadd.f32 %v2433_v44, %v6314_v22 }
 0xb97   : > { %v2435_v49 = vsel %vm1351_vm2, %v2434_v47, -inf }
 0xb98   : > { %v2104_v4 = vpop.xlane.xlu1 %2103 }
 0xb99   : > { %v2106_v43 = vmul.f32 0.03125, %v2104_v4 }
 0xb9b   : > { %v2107_v45 = vsub.f32 %v2099_v30, %v2106_v43 }
 0xb9d   : > { %v2108_v46 = vmul.f32 %v2107_v45, %v2107_v45 }
 0xb9f   : > { %v2109_v48 = vsel %vm1295_vm1, %v2108_v46, 0.0 }
 0xba0   : > { %2110 = vadd.xlane.f32.xlu0 %v2109_v48 }
 0xba4   : > { %2436 = vmax.xlane.f32.xlu0 %v2435_v49 }
 0xc1d   : > { %v2327_v52 = vpop.xlane.xlu1 %2326 }
 0xc1e   : > { %v2328_v53 = vsub.f32 %v2324_v36, %v2327_v52 }
 0xc20   : > { %v2329_v54 = vmul.f32 1.442695, %v2328_v53 }
 0xc22   : > { %5232 = vpow2.f32 %v2329_v54 }
 0xc2c   : > { %v5233_v55 = vpop.eup %5232 }
 0xc2d   : > { %v2111_v56 = vpop.xlane.xlu0 %2110  ;;  %v2331_v57 = vsel %vm1351_vm2, %v5233_v55, 0.0 }
 0xc2e   : > { %v2112_v58 = vmul.f32 0.03125, %v2111_v56  ;;  %2332 = vadd.xlane.f32.xlu1 %v2331_v57 }
 0xc30   : > { %v2113_v11 = vadd.f32 1e-05, %v2112_v58 }
 0xc31   : > { %v2437_v59 = vpop.xlane.xlu0 %2436 }
 0xc32   : > { %5234 = vrsqrt.f32 %v2113_v11  ;;  %v2438_v60 = vsub.f32 %v2434_v47, %v2437_v59 }
 0xc34   : > { %v2439_v61 = vmul.f32 1.442695, %v2438_v60 }
 0xc36   : > { %5236 = vpow2.f32 %v2439_v61 }
 0xc3c   : > { %v5235_v62 = vpop.eup %5234 }
 0xc3d   : > { %v2115_v0 = vmul.f32 %v5235_v62, %v2107_v45 }
 0xc3f   : > { %v2122_v3 = vmul.f32 %v4515_v63, %v2115_v0 }
 0xc40   : > { %v5237_v5 = vpop.eup %5236 }
 0xc41   : > { %v2441_v6 = vsel %vm1351_vm2, %v5237_v5, 0.0  ;;  %v6432_v7 = vadd.f32 %v4516_v2, %v2122_v3 }
 0xc42   : > { %2442 = vadd.xlane.f32.xlu0 %v2441_v6 }
 0xc43   : > { %v2197_v8 = vpack.c.bf16 %v6432_v7, %v6432_v7 }
 0xc45   : > { %4794 = vmatmul.mubr.msk.bf16.vlgmr.msra.gmra.mrb[20].mxu1 %vm1295_vm1, %v2197_v8 }
 0xc46   : > { %4805 = vmatprep.mubr.msk.bf16.mxu1 %vm5814_vm0, %v5813_v1 }
 0xc58   : > { %2644 = vrot.lane.b32.xlu0 %v6397_v17, %s6712_s27  ;;  %s6792_s27 = sld [smem:[#allocation37_spill]] }
 0xcbb   : > { %v2333_v9 = vpop.xlane.xlu1 %2332 }
 0xcbc   : > { %5238 = vrcp.f32 %v2333_v9 }
 0xcc6   : > { %v5239_v12 = vpop.eup %5238 }
 0xcc7   : > { %v2335_v18 = vmul.f32 %v5239_v12, %v5233_v55 }
 0xcc9   : > { %v2336_v23 = vpack.c.bf16 %v2335_v18, %v2335_v18 }
 0xccf   : > { %v2443_v24 = vpop.xlane.xlu0 %2442 }
 0xcd0   : > { %5240 = vrcp.f32 %v2443_v24 }
 0xcd3   : > { %v2645_v30 = vpop.permute.xlu0 %2644 }
 0xcd4   : > { %v2650_v31 = vsel %vm1351_vm2, %v2645_v30, 0 }
 0xcda   : > { %v5241_v25 = vpop.eup %5240 }
 0xcdb   : > { %v2445_v26 = vmul.f32 %v5241_v25, %v5237_v5  ;;  %v4608_v5 = vld [vmem:[%s6788_s1 + $0x8] sm:$0xff]  }
 0xcdc   : > { %v4597_v6 = vunpack.c.l.bf16 %v4608_v5 }
 0xcdd   : > { %v2446_v29 = vpack.c.bf16 %v2445_v26, %v2445_v26 }
 0xd18   : > { %v2258_v13 = vpop.f32.mrb[20].mxu1 }
 0xd19   : > { %v2259_v14 = vadd.f32 %v4521_v10, %v2258_v13  ;;  %v4795_v15 = vpop.f32.mrb[21].mxu1 }
 0xd1a   : > { %v2261_v16 = vpop.f32.mrb[22].mxu1 }
 0xd1b   : > { %v6442_v19 = vpack.c.bf16 %v2259_v14, %v2259_v14  ;;  %v4796_v20 = vpop.f32.mrb[23].mxu1 }
 0xd1d   : > { %2448 = vrot.lane.b32.xlu1 %v6442_v19, %s6715_s10  ;;  %v2341_v21 = vsel %vm1417_vm4, %v6442_v19, 0 }
 0xd1e   : > { %4804 = vmatpush3.bf16.msra.mxu1 %v2341_v21 }
 0xd1f   : > { %4815 = vmatprep.subr.bf16.mxu1 %v5813_v1 }
 0xd21   : > { %2642 = vrot.lane.b32.xlu1 %v6397_v17, %s6713_s26  ;;  %4806 = vmatmul.mubr.msk.bf16.vlgmr.msra.gmra.mrb[24].mxu1 %vm1351_vm2, %v2336_v23 }
 0xd22   : > { %4817 = vmatprep.mubr.msk.bf16.mxu1 %vm5814_vm0, %v5813_v1 }
 0xd8f   : > { %v2449_v27 = vpop.permute.xlu1 %2448 }
 0xd90   : > { %v2454_v28 = vsel %vm1417_vm4, %v2449_v27, 0 }
 0xd91   : > { %4816 = vmatpush3.bf16.msra.mxu1 %v2454_v28 }
 0xd92   : > { %4831 = vmatprep.subr.bf16.mxu1 %v5813_v1 }
 0xd93   : > { %v2643_v32 = vpop.permute.xlu1 %2642 }
 0xd94   : > { %4818 = vmatmul.mubr.msk.bf16.vlgmr.msra.gmra.mrb[28].mxu1 %vm1351_vm2, %v2446_v29 }
 0xd95   : > { %4833 = vmatprep.mubr.msk.bf16.mxu1 %vm5814_vm0, %v5813_v1 }
 0xd9a   : > { %4832 = vmatpush3.bf16.xpose.msra.mxu1 %v2650_v31 }
 0xd9b   : > { %4843 = vmatprep.subr.mxu1 %v5813_v1 }
 0xda1   : > { %4834 = vmatmul.mubr.msk.bf16.vlgmr.msra.gmra.mrb[32].mxu1 %vm1351_vm2, %v2643_v32 }
 0xda2   : > { %4845 = vmatprep.mubr.msk.f32.mxu1 %vm5814_vm0, %v5813_v1  ;;  %4844 = vmatpush3.msra.mxu1 %v4597_v6 }
 0xda3   : > { %4854 = vmatprep.subr.bf16.mxu1 %v5813_v1 }
 0xdf4   : > { %v2377_v35 = vpop.f32.mrb[24].mxu1 }
 0xdf5   : > { %v4807_v36 = vpop.f32.mrb[25].mxu1 }
 0xdf6   : > { %v2380_v37 = vpop.f32.mrb[26].mxu1 }
 0xdf7   : > { %v4808_v38 = vpop.f32.mrb[27].mxu1 }
 0xe67   : > { %v2490_v40 = vpop.f32.mrb[28].mxu1 }
 0xe68   : > { %v4819_v41 = vpop.f32.mrb[29].mxu1  ;;  %4824 = vmatmul.mubr.msk.f32.vlgmr.msra.gmra.mrb[22].mxu0 %vm1351_vm2, %v2490_v40 }
 0xe69   : > { %v2493_v42 = vpop.f32.mrb[30].mxu1  ;;  %4827 = vmatpush3.msra.mxu0 %v4593_v39  ;;  %4828 = vmatprep.mubr.msk.f32.mxu0 %vm5814_vm0, %v5813_v1  ;;  %v4537_v41 = vld [vmem:[%s6790_s2] ss:$0 sm:$0xff]  ;;  %s6795_s2 = sshll.u32 %s6273_s7, 3  ;;  %s6796_s7 = smov 120  }
 0xe6a   : > { %v4820_v4 = vpop.f32.mrb[31].mxu1  ;;  %4837 = vmatprep.subr.bf16.mxu0 %v5813_v1  ;;  %s1260_s1 = scalar_lea.vmem %s6792_s27, %s6795_s2  ;;  %s6797_s27 = smov 88  }
 0xe6b   : > { %s6800_s2 = sld [smem:[#allocation53_spill]] }
 0xe6c   : > { %4829 = vmatmul.mubr.msk.f32.vlgmr.msra.gmra.mrb[40].mxu0 %vm1351_vm2, %v2377_v35 }
 0xe6d   : > { %4839 = vmatprep.mubr.msk.bf16.mxu0 %vm5814_vm0, %v5813_v1 }
 0xe74   : > { %v2686_v43 = vpop.f32.mrb[32].mxu1 }
 0xe75   : > { %v2692_v44 = vmul.f32 0.17677669, %v2686_v43  ;;  %v4835_v45 = vpop.f32.mrb[33].mxu1 }
 0xe76   : > { %v2689_v46 = vpop.f32.mrb[34].mxu1 }
 0xe77   : > { %v4836_v47 = vpop.f32.mrb[35].mxu1  ;;  %v2693_v48 = vadd.f32 %v2692_v44, %v6314_v22 }
 0xe79   : > { %v2694_v49 = vsel %vm1351_vm2, %v2693_v48, -inf }
 0xe7a   : > { %2695 = vmax.xlane.f32.xlu1 %v2694_v49 }
 0xe8b   : > { %2830 = vrot.lane.b32.xlu1 %v6397_v17, %s6711_s6  ;;  %s6791_s6 = sld [smem:[#allocation51_spill]] }
 0xe8f   : > { %2828 = vrot.lane.b32.xlu1 %v6397_v17, %s6789_s16 }
 0xf07   : > { %v2696_v50 = vpop.xlane.xlu1 %2695 }
 0xf08   : > { %v2697_v51 = vsub.f32 %v2693_v48, %v2696_v50 }
 0xf0a   : > { %v2698_v52 = vmul.f32 1.442695, %v2697_v51  ;;  %v5206_v51 = vld [vmem:[%s6791_s6] sm:$0xff]  }
 0xf0b   : > { %v2831_v63 = vpop.permute.xlu1 %2830 }
 0xf0c   : > { %5242 = vpow2.f32 %v2698_v52  ;;  %v2836_v2 = vsel %vm1351_vm2, %v2831_v63, 0  ;;  %v5207_v52 = vld [vmem:[%s6791_s6 + $0x8] sm:$0xff]  }
 0xf0f   : > { %v2829_v3 = vpop.permute.xlu1 %2828 }
 0xf16   : > { %v5243_v53 = vpop.eup %5242 }
 0xf17   : > { %v2700_v54 = vsel %vm1351_vm2, %v5243_v53, 0.0 }
 0xf18   : > { %2701 = vadd.xlane.f32.xlu0 %v2700_v54 }
 0xf2e   : > { %2706 = vrot.lane.b32.xlu0 %v6442_v19, %s6713_s26  ;;  %s6793_s26 = sld [smem:[#allocation50_spill]] }
 0xf34   : > { %s6794_s10 = smov %s6793_s26  ;;  %v5208_v54 = vld [vmem:[%s6793_s26] sm:$0xff]   ;;  %s6798_s26 = smov 112  }
 0xf3b   : > { %v2565_v55 = vpop.f32.mrb[22].mxu0 }
 0xf3c   : > { %v4825_v56 = vpop.f32.mrb[23].mxu0 }
 0xf3f   : > { %v2638_v57 = vpop.f32.mrb[40].mxu0 }
 0xf40   : > { %v2639_v58 = vadd.f32 %v2638_v57, %v2565_v55  ;;  %v4830_v11 = vpop.f32.mrb[41].mxu0  ;;  %v5209_v55 = vld [vmem:[%s6794_s10 + $0x8] sm:$0xff]  }
 0xfa5   : > { %v2702_v59 = vpop.xlane.xlu0 %2701 }
 0xfa6   : > { %5244 = vrcp.f32 %v2702_v59  ;;  %v4538_v59 = vld [vmem:[#allocation3] ss:$0 sm:$0xff] }
 0xfa9   : > { %v2707_v60 = vpop.permute.xlu0 %2706 }
 0xfaa   : > { %v2712_v17 = vsel %vm1417_vm4, %v2707_v60, 0 }
 0xfab   : > { %4838 = vmatpush3.bf16.msra.mxu0 %v2712_v17  ;;  %v4539_v17 = vld [vmem:[#allocation6] ss:$0 sm:$0xff] }
 0xfac   : > { %4848 = vmatprep.subr.bf16.mxu0 %v5813_v1 }
 0xfb0   : > { %v5245_v61 = vpop.eup %5244 }
 0xfb1   : > { %v2704_v62 = vmul.f32 %v5245_v61, %v5243_v53 }
 0xfb3   : > { %v2705_v0 = vpack.c.bf16 %v2704_v62, %v2704_v62 }
 0xfb5   : > { %4840 = vmatmul.mubr.msk.bf16.vlgmr.msra.gmra.mrb[44].mxu0 %vm1351_vm2, %v2705_v0  ;;  %v4544_v0 = vld [vmem:[#allocation9] ss:$0 sm:$0xff] }
 0xfb6   : > { %4849 = vmatpush3.bf16.xpose.msra.mxu0 %v2836_v2  ;;  %4850 = vmatprep.mubr.msk.bf16.mxu0 %vm5814_vm0, %v5813_v1 }
 0xfb7   : > { %4860 = vmatprep.subr.mxu0 %v5813_v1 }
 0xfbd   : > { %4851 = vmatmul.mubr.msk.bf16.vlgmr.msra.gmra.mrb[48].mxu0 %vm1351_vm2, %v2829_v3 }
 0xfbe   : > { %4862 = vmatprep.mubr.msk.f32.mxu0 %vm5814_vm0, %v5813_v1 }
0x1088   : > { %v2748_v8 = vpop.f32.mrb[44].mxu0 }
0x1089   : > { %v4841_v9 = vpop.f32.mrb[45].mxu0  ;;  %4846 = vmatmul.mubr.msk.f32.vlgmr.msra.gmra.mrb[18].mxu1 %vm1351_vm2, %v2748_v8 }
0x108a   : > { %v2751_v10 = vpop.f32.mrb[46].mxu0  ;;  %4856 = vmatprep.mubr.msk.bf16.mxu1 %vm5814_vm0, %v5813_v1 }
0x108b   : > { %v4842_v12 = vpop.f32.mrb[47].mxu0 }
0x108c   : > { %v4540_v12 = vld [vmem:[#allocation8] ss:$0 sm:$0xff] }
0x1090   : > { %v2872_v13 = vpop.f32.mrb[48].mxu0 }
0x1091   : > { %v2878_v14 = vmul.f32 0.17677669, %v2872_v13  ;;  %v4852_v15 = vpop.f32.mrb[49].mxu0 }
0x1092   : > { %v2875_v16 = vpop.f32.mrb[50].mxu0 }
0x1093   : > { %v4853_v18 = vpop.f32.mrb[51].mxu0  ;;  %v2879_v20 = vadd.f32 %v2878_v14, %v6314_v22  ;;  %v4598_v22 = vunpack.c.h.bf16 %v4608_v5 }
0x1095   : > { %v2880_v21 = vsel %vm1351_vm2, %v2879_v20, -inf  ;;  %4861 = vmatpush3.msra.mxu0 %v4598_v22 }
0x1096   : > { %2881 = vmax.xlane.f32.xlu0 %v2880_v21  ;;  %4873 = vmatprep.subr.bf16.mxu0 %v5813_v1 }
0x10ac   : > { %2892 = vrot.lane.b32.xlu0 %v6442_v19, %s6789_s16 }
0x1123   : > { %v2882_v23 = vpop.xlane.xlu0 %2881 }
0x1124   : > { %v2883_v24 = vsub.f32 %v2879_v20, %v2882_v23 }
0x1126   : > { %v2884_v25 = vmul.f32 1.442695, %v2883_v24 }
0x1127   : > { %v2893_v26 = vpop.permute.xlu0 %2892 }
0x1128   : > { %5246 = vpow2.f32 %v2884_v25  ;;  %v2898_v27 = vsel %vm1417_vm4, %v2893_v26, 0 }
0x1129   : > { %4855 = vmatpush3.bf16.msra.mxu1 %v2898_v27 }
0x112a   : > { %4865 = vmatprep.subr.bf16.mxu1 %v5813_v1 }
0x1132   : > { %v5247_v28 = vpop.eup %5246 }
0x1133   : > { %v2886_v29 = vsel %vm1351_vm2, %v5247_v28, 0.0 }
0x1134   : > { %2887 = vadd.xlane.f32.xlu1 %v2886_v29 }
0x115c   : > { %v2823_v30 = vpop.f32.mrb[18].mxu1 }
0x115d   : > { %v2827_v19 = vadd.f32 %v2823_v30, %v2639_v58  ;;  %v4847_v31 = vpop.f32.mrb[19].mxu1 }
0x11c1   : > { %v2888_v32 = vpop.xlane.xlu1 %2887 }
0x11c2   : > { %5248 = vrcp.f32 %v2888_v32 }
0x11cc   : > { %v5249_v33 = vpop.eup %5248 }
0x11cd   : > { %v2890_v34 = vmul.f32 %v5249_v33, %v5247_v28 }
0x11cf   : > { %v2891_v35 = vpack.c.bf16 %v2890_v34, %v2890_v34 }
0x11d1   : > { %4857 = vmatmul.mubr.msk.bf16.vlgmr.msra.gmra.mrb[36].mxu1 %vm1351_vm2, %v2891_v35 }
0x11d2   : > { %4869 = vmatprep.mubr.msk.bf16.mxu1 %vm5814_vm0, %v5813_v1  ;;  %4866 = vmatpush3.bf16.msra.mxu1 %v5208_v54 }
0x11d3   : > { %4867 = vmatprep.subr.bf16.mxu1 %v5813_v1 }
0x11d6   : > { %4868 = vmatpush3.bf16.msra.mxu1 %v5209_v55 }
0x11d7   : > { %4881 = vmatprep.subr.bf16.mxu1 %v5813_v1 }
0x12a4   : > { %v2934_v36 = vpop.f32.mrb[36].mxu1 }
0x12a5   : > { %v4858_v37 = vpop.f32.mrb[37].mxu1  ;;  %4863 = vmatmul.mubr.msk.f32.vlgmr.msra.gmra.mrb[42].mxu0 %vm1351_vm2, %v2934_v36 }
0x12a6   : > { %v2937_v38 = vpop.f32.mrb[38].mxu1  ;;  %4877 = vmatprep.mubr.msk.bf16.mxu0 %vm5814_vm0, %v5813_v1  ;;  %4874 = vmatpush3.bf16.msra.mxu0 %v5206_v51 }
0x12a7   : > { %v4859_v39 = vpop.f32.mrb[39].mxu1  ;;  %4875 = vmatprep.subr.bf16.mxu0 %v5813_v1 }
0x12aa   : > { %4876 = vmatpush3.bf16.msra.mxu0 %v5207_v52 }
0x12ab   : > { %4887 = vmatprep.subr.bf16.mxu0 %v5813_v1 }
0x1378   : > { %v3009_v40 = vpop.f32.mrb[42].mxu0 }
0x1379   : > { %v3013_v42 = vadd.f32 %v3009_v40, %v2827_v19  ;;  %v4864_v4 = vpop.f32.mrb[43].mxu0 }
0x137b   : > { %v3021_v43 = vadd.f32 %v4537_v41, %v3013_v42 }
0x137d   : > { %v3022_v44 = vadd.f32 %v3021_v43, %v6432_v7  ;;  %v1264_v7 = vld [vmem:[%s1260_s1] sm:$0xff]  ;;  %s6799_s1 = smov 96  }
0x137e   : > { %v3119_v53 = vpack.c.bf16 %v1264_v7, %v1264_v7 }
0x137f   : > { %v3025_v45 = vsel %vm1295_vm1, %v3022_v44, 0.0 }
0x1380   : > { %3026 = vadd.xlane.f32.xlu1 %v3025_v45  ;;  %4878 = vmatmul.mubr.msk.bf16.vlgmr.msra.gmra.mrb[52].mxu0 %vm1295_vm1, %v3119_v53 }
0x1381   : > { %4889 = vmatprep.mubr.msk.bf16.mxu0 %vm5814_vm0, %v5813_v1 }
0x140d   : > { %v3027_v46 = vpop.xlane.xlu1 %3026 }
0x140e   : > { %v3028_v47 = vmul.f32 0.03125, %v3027_v46 }
0x1410   : > { %v3029_v48 = vsub.f32 %v3022_v44, %v3028_v47 }
0x1412   : > { %v3030_v49 = vmul.f32 %v3029_v48, %v3029_v48 }
0x1414   : > { %v3031_v50 = vsel %vm1295_vm1, %v3030_v49, 0.0 }
0x1415   : > { %3032 = vadd.xlane.f32.xlu1 %v3031_v50 }
0x1453   : > { %v3180_v2 = vpop.f32.mrb[52].mxu0 }
0x1454   : > { %v3181_v3 = vadd.f32 %v4544_v0, %v3180_v2  ;;  %v4879_v5 = vpop.f32.mrb[53].mxu0 }
0x1455   : > { %v3183_v6 = vpop.f32.mrb[54].mxu0 }
0x1456   : > { %v6536_v8 = vpack.c.bf16 %v3181_v3, %v3181_v3  ;;  %v4880_v9 = vpop.f32.mrb[55].mxu0 }
0x1458   : > { %3307 = vrot.lane.b32.xlu1 %v6536_v8, %s6796_s7  ;;  %v3200_v10 = vsel %vm1351_vm2, %v6536_v8, 0 }
0x14a2   : > { %v3033_v56 = vpop.xlane.xlu1 %3032 }
0x14a3   : > { %v3034_v57 = vmul.f32 0.03125, %v3033_v56 }
0x14a5   : > { %v3035_v58 = vadd.f32 1e-05, %v3034_v57 }
0x14a7   : > { %5250 = vrsqrt.f32 %v3035_v58  ;;  %v4600_v58 = vld [vmem:[%s6800_s2] sm:$0xff]  }
0x14b1   : > { %v5251_v11 = vpop.eup %5250 }
0x14b2   : > { %v3037_v60 = vmul.f32 %v5251_v11, %v3029_v48  ;;  %v4602_v11 = vunpack.c.h.bf16 %v4600_v58 }
0x14b4   : > { %v3044_v61 = vmul.f32 %v4538_v59, %v3037_v60 }
0x14b6   : > { %v6529_v62 = vadd.f32 %v4539_v17, %v3044_v61 }
0x14b8   : > { %v3052_v63 = vpack.c.bf16 %v6529_v62, %v6529_v62 }
0x14ba   : > { %4870 = vmatmul.mubr.msk.bf16.vlgmr.msra.gmra.mrb[40].mxu1 %vm1295_vm1, %v3052_v63  ;;  %v4601_v63 = vunpack.c.l.bf16 %v4600_v58 }
0x14bb   : > { %4883 = vmatprep.mubr.msk.bf16.mxu1 %vm5814_vm0, %v5813_v1  ;;  %4882 = vmatpush3.bf16.xpose.msra.mxu1 %v3200_v10 }
0x14bc   : > { %4893 = vmatprep.subr.bf16.mxu1 %v5813_v1 }
0x14ca   : > { %v3308_v14 = vpop.permute.xlu1 %3307 }
0x14cb   : > { %v3313_v23 = vsel %vm1351_vm2, %v3308_v14, 0 }
0x158d   : > { %v3113_v13 = vpop.f32.mrb[40].mxu1 }
0x158e   : > { %v3114_v15 = vadd.f32 %v4540_v12, %v3113_v13  ;;  %v4871_v16 = vpop.f32.mrb[41].mxu1 }
0x158f   : > { %v3116_v18 = vpop.f32.mrb[42].mxu1 }
0x1590   : > { %v6543_v20 = vpack.c.bf16 %v3114_v15, %v3114_v15  ;;  %v4872_v21 = vpop.f32.mrb[43].mxu1 }
0x1592   : > { %3305 = vrot.lane.b32.xlu0 %v6543_v20, %s6796_s7  ;;  %4884 = vmatmul.mubr.msk.bf16.vlgmr.msra.gmra.mrb[44].mxu1 %vm1351_vm2, %v6543_v20  ;;  %s6801_s7 = smov 80  }
0x1593   : > { %4894 = vmatpush3.bf16.xpose.msra.mxu1 %v3313_v23  ;;  %4895 = vmatprep.mubr.msk.bf16.mxu1 %vm5814_vm0, %v5813_v1 }
0x1594   : > { %4905 = vmatprep.subr.mxu1 %v5813_v1 }
0x1604   : > { %v3306_v24 = vpop.permute.xlu0 %3305 }
0x1605   : > { %4896 = vmatmul.mubr.msk.bf16.vlgmr.msra.gmra.mrb[48].mxu1 %vm1351_vm2, %v3306_v24 }
0x1606   : > { %4907 = vmatprep.mubr.msk.f32.mxu1 %vm5814_vm0, %v5813_v1  ;;  %4906 = vmatpush3.msra.mxu1 %v4602_v11 }
0x1607   : > { %4910 = vmatprep.subr.mxu1 %v5813_v1 }
0x1665   : > { %v3236_v25 = vpop.f32.mrb[44].mxu1 }
0x1666   : > { %v3242_v26 = vmul.f32 0.17677669, %v3236_v25  ;;  %v4885_v27 = vpop.f32.mrb[45].mxu1 }
0x1667   : > { %v3239_v28 = vpop.f32.mrb[46].mxu1 }
0x1668   : > { %v4886_v29 = vpop.f32.mrb[47].mxu1  ;;  %v3243_v22 = vsel %vm1351_vm2, %v3242_v26, -inf }
0x1669   : > { %3244 = vmax.xlane.f32.xlu0 %v3243_v22 }
0x16d8   : > { %v3349_v30 = vpop.f32.mrb[48].mxu1 }
0x16d9   : > { %v3355_v19 = vmul.f32 0.17677669, %v3349_v30  ;;  %v4897_v31 = vpop.f32.mrb[49].mxu1 }
0x16da   : > { %v3352_v32 = vpop.f32.mrb[50].mxu1 }
0x16db   : > { %v4898_v33 = vpop.f32.mrb[51].mxu1  ;;  %v3356_v34 = vsel %vm1351_vm2, %v3355_v19, -inf }
0x16dc   : > { %3357 = vmax.xlane.f32.xlu1 %v3356_v34 }
0x16ed   : > { %3368 = vrot.lane.b32.xlu1 %v6536_v8, %s6797_s27  ;;  %s6803_s27 = sld [smem:[#allocation54_spill]] }
0x16f1   : > { %3564 = vrot.lane.b32.xlu1 %v6536_v8, %s6798_s26 }
0x16f6   : > { %v3245_v35 = vpop.xlane.xlu0 %3244 }
0x16f7   : > { %v3246_v36 = vsub.f32 %v3242_v26, %v3245_v35  ;;  %v4609_v35 = vld [vmem:[%s6800_s2 + $0x8] sm:$0xff]  }
0x16f9   : > { %v3247_v37 = vmul.f32 1.442695, %v3246_v36  ;;  %v4605_v36 = vunpack.c.l.bf16 %v4609_v35 }
0x16fb   : > { %5252 = vpow2.f32 %v3247_v37 }
0x1705   : > { %v5253_v38 = vpop.eup %5252 }
0x1706   : > { %v3249_v39 = vsel %vm1351_vm2, %v5253_v38, 0.0 }
0x1707   : > { %3250 = vadd.xlane.f32.xlu0 %v3249_v39 }
0x1769   : > { %v3358_v40 = vpop.xlane.xlu1 %3357 }
0x176a   : > { %v3359_v41 = vsub.f32 %v3355_v19, %v3358_v40 }
0x176c   : > { %v3360_v42 = vmul.f32 1.442695, %v3359_v41 }
0x176d   : > { %v3369_v50 = vpop.permute.xlu1 %3368 }
0x176e   : > { %5254 = vpow2.f32 %v3360_v42  ;;  %v3374_v52 = vsel %vm1417_vm4, %v3369_v50, 0 }
0x1771   : > { %v3565_v55 = vpop.permute.xlu1 %3564 }
0x1772   : > { %v3570_v56 = vsel %vm1351_vm2, %v3565_v55, 0 }
0x1778   : > { %v5255_v4 = vpop.eup %5254 }
0x1779   : > { %v3362_v43 = vsel %vm1351_vm2, %v5255_v4, 0.0 }
0x177a   : > { %3363 = vadd.xlane.f32.xlu0 %v3362_v43 }
0x1790   : > { %3256 = vrot.lane.b32.xlu0 %v6536_v8, %s6799_s1 }
0x1794   : > { %3562 = vrot.lane.b32.xlu0 %v6543_v20, %s6798_s26  ;;  %v3251_v44 = vpop.xlane.xlu0 %3250  ;;  %s6804_s26 = sld [smem:[#allocation56_spill]] }
0x1795   : > { %5256 = vrcp.f32 %v3251_v44 }
0x179a   : > { %s6805_s1 = smov %s6804_s26 }
0x179f   : > { %v5257_v45 = vpop.eup %5256 }
0x17a0   : > { %v3253_v47 = vmul.f32 %v5257_v45, %v5253_v38 }
0x17a2   : > { %v3254_v51 = vpack.c.bf16 %v3253_v47, %v3253_v47 }
0x1807   : > { %v3364_v46 = vpop.xlane.xlu0 %3363 }
0x1808   : > { %5258 = vrcp.f32 %v3364_v46 }
0x180b   : > { %v3257_v48 = vpop.permute.xlu0 %3256 }
0x180c   : > { %v3262_v49 = vsel %vm1417_vm4, %v3257_v48, 0 }
0x180d   : > { %4888 = vmatpush3.bf16.msra.mxu0 %v3262_v49 }
0x180e   : > { %4899 = vmatprep.subr.bf16.mxu0 %v5813_v1 }
0x180f   : > { %v3563_v57 = vpop.permute.xlu0 %3562 }
0x1810   : > { %4890 = vmatmul.mubr.msk.bf16.vlgmr.msra.gmra.mrb[56].mxu0 %vm1351_vm2, %v3254_v51 }
0x1811   : > { %4900 = vmatpush3.bf16.msra.mxu0 %v3374_v52  ;;  %4901 = vmatprep.mubr.msk.bf16.mxu0 %vm5814_vm0, %v5813_v1 }
0x1812   : > { %v5259_v7 = vpop.eup %5258  ;;  %4915 = vmatprep.subr.bf16.mxu0 %v5813_v1 }
0x1813   : > { %v3366_v53 = vmul.f32 %v5259_v7, %v5255_v4  ;;  %v4606_v7 = vunpack.c.h.bf16 %v4609_v35  ;;  %v4574_v35 = vld [vmem:[#allocation2] ss:$0 sm:$0xff] }
0x1815   : > { %v3367_v54 = vpack.c.bf16 %v3366_v53, %v3366_v53 }
0x1818   : > { %4902 = vmatmul.mubr.msk.bf16.vlgmr.msra.gmra.mrb[60].mxu0 %vm1351_vm2, %v3367_v54 }
0x1819   : > { %4917 = vmatprep.mubr.msk.bf16.mxu0 %vm5814_vm0, %v5813_v1 }
0x181a   : > { %4916 = vmatpush3.bf16.xpose.msra.mxu0 %v3570_v56 }
0x181b   : > { %4927 = vmatprep.subr.mxu0 %v5813_v1 }
0x1821   : > { %4918 = vmatmul.mubr.msk.bf16.vlgmr.msra.gmra.mrb[64].mxu0 %vm1351_vm2, %v3563_v57 }
0x1822   : > { %4929 = vmatprep.mubr.msk.f32.mxu0 %vm5814_vm0, %v5813_v1  ;;  %4928 = vmatpush3.msra.mxu0 %v4605_v36 }
0x1823   : > { %4938 = vmatprep.subr.bf16.mxu0 %v5813_v1 }
0x18e3   : > { %v3298_v59 = vpop.f32.mrb[56].mxu0 }
0x18e4   : > { %v4891_v60 = vpop.f32.mrb[57].mxu0 }
0x18e5   : > { %v3301_v17 = vpop.f32.mrb[58].mxu0 }
0x18e6   : > { %v4892_v61 = vpop.f32.mrb[59].mxu0 }
0x18eb   : > { %v3410_v0 = vpop.f32.mrb[60].mxu0 }
0x18ec   : > { %v4903_v2 = vpop.f32.mrb[61].mxu0  ;;  %4908 = vmatmul.mubr.msk.f32.vlgmr.msra.gmra.mrb[52].mxu1 %vm1351_vm2, %v3410_v0 }
0x18ed   : > { %v3413_v3 = vpop.f32.mrb[62].mxu0  ;;  %4911 = vmatpush3.msra.mxu1 %v4601_v63  ;;  %4912 = vmatprep.mubr.msk.f32.mxu1 %vm5814_vm0, %v5813_v1  ;;  %v4560_v63 = vld [vmem:[#allocation11] ss:$0 sm:$0xff] }
0x18ee   : > { %v4904_v5 = vpop.f32.mrb[63].mxu0  ;;  %4921 = vmatprep.subr.bf16.mxu1 %v5813_v1 }
0x18f0   : > { %4913 = vmatmul.mubr.msk.f32.vlgmr.msra.gmra.mrb[54].mxu1 %vm1351_vm2, %v3298_v59 }
0x18f1   : > { %4923 = vmatprep.mubr.msk.bf16.mxu1 %vm5814_vm0, %v5813_v1 }
0x18f4   : > { %v3606_v6 = vpop.f32.mrb[64].mxu0 }
0x18f5   : > { %v3612_v9 = vmul.f32 0.17677669, %v3606_v6  ;;  %v4919_v10 = vpop.f32.mrb[65].mxu0 }
0x18f6   : > { %v3609_v12 = vpop.f32.mrb[66].mxu0 }
0x18f7   : > { %v4920_v13 = vpop.f32.mrb[67].mxu0  ;;  %v3613_v14 = vsel %vm1351_vm2, %v3612_v9, -inf }
0x18f8   : > { %3614 = vmax.xlane.f32.xlu1 %v3613_v14 }
0x1909   : > { %3749 = vrot.lane.b32.xlu1 %v6536_v8, %s6789_s16 }
0x190d   : > { %3747 = vrot.lane.b32.xlu1 %v6543_v20, %s6789_s16  ;;  %s6802_s16 = smov 72  }
0x1985   : > { %v3615_v15 = vpop.xlane.xlu1 %3614 }
0x1986   : > { %v3616_v16 = vsub.f32 %v3612_v9, %v3615_v15  ;;  %v5210_v15 = vld [vmem:[%s6803_s27] sm:$0xff]  }
0x1988   : > { %v3617_v18 = vmul.f32 1.442695, %v3616_v16  ;;  %v5211_v16 = vld [vmem:[%s6803_s27 + $0x8] sm:$0xff]  }
0x1989   : > { %v3750_v31 = vpop.permute.xlu1 %3749 }
0x198a   : > { %5260 = vpow2.f32 %v3617_v18  ;;  %v3755_v33 = vsel %vm1351_vm2, %v3750_v31, 0  ;;  %v5212_v31 = vld [vmem:[%s6804_s26] sm:$0xff]   ;;  %s4580_s26 = sshll.u32 %s6032_s19, 7  ;;  %s5827_s19 = smov [#allocation26]  }
0x198b   : > { %s6648_s3 = scalar_lea.hbm %s6009_s21, %s4580_s26 }
0x198d   : > { %v3748_v34 = vpop.permute.xlu1 %3747 }
0x1994   : > { %v5261_v21 = vpop.eup %5260 }
0x1995   : > { %v3619_v23 = vsel %vm1351_vm2, %v5261_v21, 0.0 }
0x1996   : > { %3620 = vadd.xlane.f32.xlu0 %v3619_v23 }
0x19ac   : > { %3625 = vrot.lane.b32.xlu0 %v6536_v8, %s6801_s7  ;;  %s1250_s7 = sand.u32 1, %s5754_s22  }
0x19ad   : > { %s4208_s4 = scalar_lea.sflag [#allocation5], %s1250_s7 }
0x19bf   : > { %v3485_v24 = vpop.f32.mrb[52].mxu1 }
0x19c0   : > { %v4909_v25 = vpop.f32.mrb[53].mxu1 }
0x19c3   : > { %v3558_v26 = vpop.f32.mrb[54].mxu1 }
0x19c4   : > { %v3559_v27 = vadd.f32 %v3558_v26, %v3485_v24  ;;  %v4914_v28 = vpop.f32.mrb[55].mxu1  ;;  %v4561_v24 = vld [vmem:[#allocation12] ss:$0 sm:$0xff]  ;;  %v4562_v26 = vld [vmem:[#allocation14] ss:$0 sm:$0xff] }
0x19c5   : > { %v4573_v28 = vld [vmem:[#allocation18] ss:$0 sm:$0xff] }
0x1a23   : > { %v3621_v29 = vpop.xlane.xlu0 %3620 }
0x1a24   : > { %5262 = vrcp.f32 %v3621_v29 }
0x1a27   : > { %v3626_v22 = vpop.permute.xlu0 %3625 }
0x1a28   : > { %v3631_v20 = vsel %vm1417_vm4, %v3626_v22, 0 }
0x1a29   : > { %4922 = vmatpush3.bf16.msra.mxu1 %v3631_v20 }
0x1a2a   : > { %4932 = vmatprep.subr.bf16.mxu1 %v5813_v1 }
0x1a2e   : > { %v5263_v30 = vpop.eup %5262 }
0x1a2f   : > { %v3623_v19 = vmul.f32 %v5263_v30, %v5261_v21 }
0x1a31   : > { %v3624_v32 = vpack.c.bf16 %v3623_v19, %v3623_v19  ;;  %v5826_v19 = vmov 0  }
0x1a32   : > { %5198 = vset.pattern.permute.xlu1 %v5826_v19  ;;  %5199 = vset.pattern.permute.xlu0 %v5826_v19 }
0x1a33   : > { %4924 = vmatmul.mubr.msk.bf16.vlgmr.msra.gmra.mrb[56].mxu1 %vm1351_vm2, %v3624_v32  ;;  %v5213_v32 = vld [vmem:[%s6805_s1 + $0x8] sm:$0xff]  }
0x1a34   : > { %4933 = vmatpush3.bf16.xpose.msra.mxu1 %v3755_v33  ;;  %4934 = vmatprep.mubr.msk.bf16.mxu1 %vm5814_vm0, %v5813_v1  ;;  %v5214_v33 = vld [vmem:[%s6805_s1 + $0x10] sm:$0xff]  }
0x1a35   : > { %4944 = vmatprep.subr.mxu1 %v5813_v1 }
0x1a3b   : > { %4935 = vmatmul.mubr.msk.bf16.vlgmr.msra.gmra.mrb[60].mxu1 %vm1351_vm2, %v3748_v34  ;;  %v5215_v34 = vld [vmem:[%s6805_s1 + $0x18] sm:$0xff]  }
0x1a3c   : > { %4946 = vmatprep.mubr.msk.f32.mxu1 %vm5814_vm0, %v5813_v1  ;;  %4945 = vmatpush3.msra.mxu1 %v4606_v7 }
0x1a3d   : > { %4957 = vmatprep.subr.bf16.mxu1 %v5813_v1 }
0x1b06   : > { %v3667_v37 = vpop.f32.mrb[56].mxu1 }
0x1b07   : > { %v4925_v38 = vpop.f32.mrb[57].mxu1  ;;  %4930 = vmatmul.mubr.msk.f32.vlgmr.msra.gmra.mrb[68].mxu0 %vm1351_vm2, %v3667_v37 }
0x1b08   : > { %v3670_v39 = vpop.f32.mrb[58].mxu1  ;;  %4940 = vmatprep.mubr.msk.bf16.mxu0 %vm5814_vm0, %v5813_v1 }
0x1b09   : > { %v4926_v40 = vpop.f32.mrb[59].mxu1 }
0x1b0a   : > { %v4563_v40 = vld [vmem:[#allocation15] ss:$0 sm:$0xff] }
0x1b0e   : > { %v3791_v41 = vpop.f32.mrb[60].mxu1 }
0x1b0f   : > { %v3797_v42 = vmul.f32 0.17677669, %v3791_v41  ;;  %v4936_v4 = vpop.f32.mrb[61].mxu1 }
0x1b10   : > { %v3794_v43 = vpop.f32.mrb[62].mxu1 }
0x1b11   : > { %v4937_v44 = vpop.f32.mrb[63].mxu1  ;;  %v3798_v45 = vsel %vm1351_vm2, %v3797_v42, -inf }
0x1b12   : > { %3799 = vmax.xlane.f32.xlu0 %v3798_v45 }
0x1b28   : > { %3810 = vrot.lane.b32.xlu0 %v6536_v8, %s6802_s16  ;;  %s4495_s16 = sshll.u32 %s1250_s7, 3 }
0x1b29   : > { %s1252_s1 = scalar_lea.vmem [#allocation26], %s4495_s16  ;;  %s5672_s16 = sshll.u32 %s5827_s19, 4  ;;  %s5673_s16 = int_to_ptr.vmem [resolvable:$false] %s5672_s16 }
0x1b2a   : > { %s4221_s2 = sshll.u32 %s1252_s1, 4  ;;  %s5674_s6 = scalar_lea.vmem %s5673_s16, 256  ;;  %s6650_s2 = int_to_ptr.vmem [resolvable:$true] %s4221_s2 }
0x1b2b   : > { %s5668_s5 = scalar_lea.vmem %s6650_s2, 128  ;;  %p5675_p6 = scmp.lt.s32.totalorder %s6650_s2, %s5673_s16 }
0x1b2c   : > { %p5669_p3 = scmp.ne.s32.totalorder %s6650_s2, %s5668_s5  ;;  %p5676_p9 = scmp.lt.s32.totalorder %s5674_s6, %s5668_s5 }
0x1b2e   : > { %p5670_p12 = pnand %p5669_p3, %p6806_p4  ;;  %p5677_p10 = por %p5676_p9, %p5675_p6 }
0x1b30   : > { %p5671_p5 = pneg %p5670_p12 }
0x1b32   : > { %p5678_p7 = pnand %p5677_p10, %p5671_p5 }
0x1b9f   : > { %v3800_v46 = vpop.xlane.xlu0 %3799 }
0x1ba0   : > { %v3801_v47 = vsub.f32 %v3797_v42, %v3800_v46 }
0x1ba2   : > { %v3802_v48 = vmul.f32 1.442695, %v3801_v47  ;;  %v4575_v47 = vld [vmem:[#allocation20] ss:$0 sm:$0xff] }
0x1ba3   : > { %v3811_v49 = vpop.permute.xlu0 %3810 }
0x1ba4   : > { %5264 = vpow2.f32 %v3802_v48  ;;  %v3816_v50 = vsel %vm1417_vm4, %v3811_v49, 0 }
0x1ba5   : > { %4939 = vmatpush3.bf16.msra.mxu0 %v3816_v50  ;;  %v4576_v50 = vld [vmem:[#allocation21] ss:$0 sm:$0xff] }
0x1ba6   : > { %4949 = vmatprep.subr.bf16.mxu0 %v5813_v1 }
0x1bae   : > { %v5265_v51 = vpop.eup %5264 }
0x1baf   : > { %v3804_v52 = vsel %vm1351_vm2, %v5265_v51, 0.0 }
0x1bb0   : > { %3805 = vadd.xlane.f32.xlu1 %v3804_v52 }
0x1bda   : > { %v3742_v53 = vpop.f32.mrb[68].mxu0 }
0x1bdb   : > { %v3746_v8 = vadd.f32 %v3742_v53, %v3559_v27  ;;  %v4931_v54 = vpop.f32.mrb[69].mxu0 }
0x1c3d   : > { %v3806_v55 = vpop.xlane.xlu1 %3805 }
0x1c3e   : > { %5266 = vrcp.f32 %v3806_v55  ;;  %v4567_v55 = vld [vmem:[#allocation17] ss:$0 sm:$0xff] }
0x1c48   : > { %v5267_v56 = vpop.eup %5266 }
0x1c49   : > { %v3808_v57 = vmul.f32 %v5267_v56, %v5265_v51 }
0x1c4b   : > { %v3809_v58 = vpack.c.bf16 %v3808_v57, %v3808_v57 }
0x1c4d   : > { %4941 = vmatmul.mubr.msk.bf16.vlgmr.msra.gmra.mrb[72].mxu0 %vm1351_vm2, %v3809_v58 }
0x1c4e   : > { %4953 = vmatprep.mubr.msk.bf16.mxu0 %vm5814_vm0, %v5813_v1  ;;  %4950 = vmatpush3.bf16.msra.mxu0 %v5210_v15  ;;  %v4577_v15 = vld [vmem:[#allocation23] ss:$0 sm:$0xff] }
0x1c4f   : > { %4951 = vmatprep.subr.bf16.mxu0 %v5813_v1 }
0x1c52   : > { %4952 = vmatpush3.bf16.msra.mxu0 %v5211_v16 }
0x1d20   : > { %v3852_v11 = vpop.f32.mrb[72].mxu0 }
0x1d21   : > { %v4942_v59 = vpop.f32.mrb[73].mxu0  ;;  %4947 = vmatmul.mubr.msk.f32.vlgmr.msra.gmra.mrb[64].mxu1 %vm1351_vm2, %v3852_v11 }
0x1d22   : > { %v3855_v60 = vpop.f32.mrb[74].mxu0  ;;  %4965 = vmatprep.mubr.msk.bf16.mxu1 %vm5814_vm0, %v5813_v1  ;;  %4958 = vmatpush3.bf16.msra.mxu1 %v5212_v31 }
0x1d23   : > { %v4943_v17 = vpop.f32.mrb[75].mxu0  ;;  %4959 = vmatprep.subr.bf16.mxu1 %v5813_v1 }
0x1d26   : > { %4960 = vmatpush3.bf16.msra.mxu1 %v5213_v32 }
0x1d27   : > { %4961 = vmatprep.subr.bf16.mxu1 %v5813_v1 }
0x1d2a   : > { %4962 = vmatpush3.bf16.msra.mxu1 %v5214_v33 }
0x1d2b   : > { %4963 = vmatprep.subr.bf16.mxu1 %v5813_v1 }
0x1d2e   : > { %4964 = vmatpush3.bf16.msra.mxu1 %v5215_v34 }
0x1df4   : > { %v3927_v61 = vpop.f32.mrb[64].mxu1 }
0x1df5   : > { %v3931_v0 = vadd.f32 %v3927_v61, %v3746_v8  ;;  %v4948_v2 = vpop.f32.mrb[65].mxu1 }
0x1df7   : > { %v3939_v3 = vadd.f32 %v4560_v63, %v3931_v0 }
0x1df9   : > { %v3940_v5 = vadd.f32 %v3939_v3, %v6529_v62 }
0x1dfb   : > { %v3943_v6 = vsel %vm1295_vm1, %v3940_v5, 0.0 }
0x1dfc   : > { %3944 = vadd.xlane.f32.xlu1 %v3943_v6 }
0x1e89   : > { %v3945_v9 = vpop.xlane.xlu1 %3944 }
0x1e8a   : > { %v3946_v10 = vmul.f32 0.03125, %v3945_v9 }
0x1e8c   : > { %v3947_v12 = vsub.f32 %v3940_v5, %v3946_v10 }
0x1e8e   : > { %v3948_v13 = vmul.f32 %v3947_v12, %v3947_v12 }
0x1e90   : > { %v3949_v14 = vsel %vm1295_vm1, %v3948_v13, 0.0 }
0x1e91   : > { %3950 = vadd.xlane.f32.xlu1 %v3949_v14 }
0x1f1e   : > { %v3951_v18 = vpop.xlane.xlu1 %3950 }
0x1f1f   : > { %v3952_v21 = vmul.f32 0.03125, %v3951_v18  ;;  %v4578_v18 = vld [vmem:[#allocation24] ss:$0 sm:$0xff] }
0x1f21   : > { %v3953_v23 = vadd.f32 1e-05, %v3952_v21 }
0x1f23   : > { %5268 = vrsqrt.f32 %v3953_v23 }
0x1f2d   : > { %v5269_v62 = vpop.eup %5268 }
0x1f2e   : > { %v3955_v25 = vmul.f32 %v5269_v62, %v3947_v12 }
0x1f30   : > { %v3962_v27 = vmul.f32 %v4561_v24, %v3955_v25 }
0x1f32   : > { %v3969_v29 = vadd.f32 %v4562_v26, %v3962_v27 }
0x1f34   : > { %v3970_v22 = vpack.c.bf16 %v3969_v29, %v3969_v29  ;;  %v4131_v20 = vmul.f32 %v4573_v28, %v3969_v29 }
0x1f36   : > { %4954 = vmatmul.mubr.msk.bf16.vlgmr.msra.gmra.mrb[76].mxu0 %vm1295_vm1, %v3970_v22  ;;  %v4132_v30 = vsel %vm1295_vm1, %v4131_v20, 0.0 }
0x1f37   : > { %4133 = vadd.xlane.f32.xlu1 %v4132_v30 }
0x1fc4   : > { %v4134_v36 = vpop.xlane.xlu1 %4133 }
0x1fc5   : > { %v4142_v37 = vadd.f32 %v4574_v35, %v4134_v36 }
0x1fc7   : > { %v4144_v38 = vmul.f32 0.01, %v4142_v37  ;;  %vm4143_vm5 = vcmp.ge.f32.partialorder %v4142_v37, 0.0 }
0x1fc9   : > { %v4145_v39 = vsel %vm4143_vm5, %v4142_v37, %v4144_v38 }
0x1fca   : > { %4149 = vperm.xlu1 %5198, %v4145_v39  }
0x2009   : > { %v4031_v41 = vpop.f32.mrb[76].mxu0 }
0x200a   : > { %v4032_v42 = vadd.f32 %v4563_v40, %v4031_v41  ;;  %v4955_v4 = vpop.f32.mrb[77].mxu0 }
0x200b   : > { %v4034_v43 = vpop.f32.mrb[78].mxu0 }
0x200c   : > { %vm4037_vm6 = vcmp.ge.f32.partialorder %v4032_v42, 0.0  ;;  %v4038_v44 = vmul.f32 0.01, %v4032_v42  ;;  %v4956_v45 = vpop.f32.mrb[79].mxu0 }
0x200e   : > { %v4039_v46 = vsel %vm4037_vm6, %v4032_v42, %v4038_v44 }
0x200f   : > { %v4040_v1 = vpack.c.bf16 %v4039_v46, %v4039_v46 }
0x2011   : > { %4966 = vmatmul.mubr.msk.bf16.vlgmr.msra.gmra.mrb[68].mxu1 %vm4080_vm7, %v4040_v1 }
0x2049   : > { %v4150_v48 = vpop.permute.xlu1 %4149 }
0x204a   : > { %v4158_v49 = vmul.f32 %v4575_v47, %v4150_v48 }
0x204c   : > { %v4166_v51 = vadd.f32 %v4576_v50, %v4158_v49 }
0x204e   : > { %v4167_v52 = vsub.f32 0.0, %v4166_v51 }
0x2050   : > { %v4168_v7 = vmul.f32 1.442695, %v4167_v52 }
0x2052   : > { %5270 = vpow2.f32 %v4168_v7 }
0x205c   : > { %v5271_v53 = vpop.eup %5270 }
0x205d   : > { %v4170_v8 = vadd.f32 1.0, %v5271_v53 }
0x205f   : > { %5272 = vrcp.f32 %v4170_v8 }
0x2069   : > { %v5273_v54 = vpop.eup %5272 }
0x206a   : > { %v4174_v58 = vsub.f32 1.0, %v5273_v54  ;;  %v4173_v61 = vmul.f32 %v5273_v54, %v3969_v29 }
0x20e4   : > { %v4118_v56 = vpop.f32.mrb[68].mxu1 }
0x20e5   : > { %v4119_v57 = vadd.f32 %v4567_v55, %v4118_v56  ;;  %v4967_v11 = vpop.f32.mrb[69].mxu1 }
0x20e6   : > { %v4121_v59 = vpop.f32.mrb[70].mxu1 }
0x20e7   : > { %v4175_v60 = vmul.f32 %v4174_v58, %v4119_v57  ;;  %v4968_v17 = vpop.f32.mrb[71].mxu1 }
0x20e9   : > { %v4176_v63 = vadd.f32 %v4175_v60, %v4173_v61 }
0x20eb   : > { %v4179_v0 = vsel %vm1295_vm1, %v4176_v63, 0.0 }
0x20ec   : > { %4180 = vadd.xlane.f32.xlu0 %v4179_v0 }
0x2179   : > { %v4181_v2 = vpop.xlane.xlu0 %4180 }
0x217a   : > { %v4182_v3 = vmul.f32 0.03125, %v4181_v2 }
0x217c   : > { %v4183_v5 = vsub.f32 %v4176_v63, %v4182_v3 }
0x217e   : > { %v4184_v6 = vmul.f32 %v4183_v5, %v4183_v5 }
0x2180   : > { %v4185_v9 = vsel %vm1295_vm1, %v4184_v6, 0.0 }
0x2181   : > { %4186 = vadd.xlane.f32.xlu1 %v4185_v9 }
0x220e   : > { %v4187_v10 = vpop.xlane.xlu1 %4186 }
0x220f   : > { %v4188_v12 = vmul.f32 0.03125, %v4187_v10 }
0x2211   : > { %v4189_v13 = vadd.f32 1e-05, %v4188_v12 }
0x2213   : > { %5274 = vrsqrt.f32 %v4189_v13 }
0x221d   : > { %v5275_v14 = vpop.eup %5274 }
0x221e   : > { %v4191_v16 = vmul.f32 %v5275_v14, %v4183_v5 }
0x2220   : > { %v4198_v21 = vmul.f32 %v4577_v15, %v4191_v16 }
0x2222   : > { %v4205_v23 = vadd.f32 %v4578_v18, %v4198_v21 }
0x2224   : > { %4206 = vst.msk [vmem:[%s1252_s1] sm:$0xff] %vm1295_vm1, %v4205_v23 }
0x2225   : > { %5681 = shalt.err (!%p5678_p7)
}
0x2226   : > { %s5682_s1 = scalar_lea.hbm %s6648_s3, 128  ;;  %s5686_s7 = scalar_lea.hbm %s6009_s21, 256 }
0x2227   : > { %p5683_p8 = scmp.ne.s32.totalorder %s6648_s3, %s5682_s1  ;;  %p5687_p1 = scmp.lt.u32.totalorder %s6648_s3, %s6009_s21 }
0x2228   : > { %p5688_p2 = scmp.lt.u32.totalorder %s5686_s7, %s5682_s1  ;;  %p5690_p3 = scmp.lt.u32.totalorder %s5682_s1, %s6648_s3 }
0x2229   : > { %p5684_p11 = pnand %p5683_p8, %p6806_p4 }
0x222a   : > { %p5689_p0 = por %p5688_p2, %p5687_p1 }
0x222b   : > { %p5685_p13 = pneg %p5684_p11 }
0x222c   : > { %p5691_p12 = por %p5690_p3, %p5689_p0 }
0x222e   : > { %p5692_p5 = pnand %p5691_p12, %p5685_p13 }
0x2230   : > { %5695 = shalt.err (!%p5692_p5)
}
0x2231   : > { %5025 = dma.vmem_to_hbm [thread:$0]  (%p6806_p4), %s6650_s2, 128, %s6648_s3, %s4208_s4  }
0x2232 PF: > { %s6807_s5 = sld [smem:[#allocation62_spill]]  ;;  %p5102_p6 = scmp.ge.s32.totalorder %s5762_s0, 2 }
0x2233   : > { %s4233_s6 = sand.u32 1, %s5750_s23  }
0x2234   : > { %s4234_s26 = scalar_lea.sflag [#allocation5], %s4233_s6 }
0x2238   : > { %p6808_p9 = scmp.ne.s32.totalorder %s6807_s5, 0 }
0x223a   : > { %p5071_p10 = pnand %p5102_p6, %p6808_p9 }
0x223c   : > { %5745 = dma.done.wait (!%p5071_p10), %s4234_s26, 128  }
0x223d   : > { %5747 = vsyncadd (!%p5071_p10), %s4234_s26, 4294967168  ;;  %s6809_s0 = sld [smem:[#allocation60_spill]]  ;;  %s6810_s19 = sld [smem:[#allocation59_spill]] }
0x223e   : > { %s6811_s26 = sld [smem:[#allocation61_spill]]  ;;  %s6812_s23 = smov %s5754_s22 }
0x2243   : > { %p91_p7 = scmp.ge.s32.totalorder %s6809_s0, 4   ;;  %s6813_s22 = smov %s6810_s19 }
0x2245   :  { %93 = sbr.rel (!%p91_p7) target bundleno = 71 (0x47), region = 290 }
0x224c   :  { %4239 = vsyncpa [#allocation4], 1 }
0x224d   :  { %4241 = vsyncpa [#allocation4 + $0x1], 1 }
0x224e   :  { %4242 = vsyncpa [#allocation7], 1 }
0x224f   :  { %4243 = vsyncpa [#allocation10], 1 }
0x2250   :  { %4244 = vsyncpa [#allocation13], 1 }
0x2251   :  { %4245 = vsyncpa [#allocation16], 1 }
0x2252   :  { %4246 = vsyncpa [#allocation19], 1 }
0x2253   :  { %4247 = vsyncpa [#allocation22], 1 }
0x2254   :  { %4248 = vsyncpa [#allocation25], 1 }
0x2255   :  { %4249 = vsyncpa [#allocation5], 1 }
0x2256   :  { %4251 = vsyncpa [#allocation5 + $0x1], 1 }

</bundles_post_ra>
